<compile_context>
chip_gen: v6e
topology: v6e:2x2x1
jax: 0.10.0
libtpu: 0.0.40
codegen_flags: <defaults>
</compile_context>

<pallas_src>
import numpy as np

import jax
import jax.numpy as jnp
from jax.experimental import pallas as pl
from jax.experimental.pallas import tpu as pltpu


# ---------------------------------------------------------------------------
# Fused kernel: one grid step == one sample.
# ---------------------------------------------------------------------------
def _lenet_kernel(cols1_ref,            # [1, 25, 576]  conv1 im2col for this sample
                  w1m_ref, b1_ref,      # [10, 25], [10, 1]
                  d_ref,                # [4, 576, 144] pool1 shift+decimate selectors
                  s_ref,                # [25, 144, 64] conv2 shift+crop selectors
                  w2r_ref, b2_ref,      # [25, 20, 10], [20, 1]
                  e_ref,                # [4, 64, 16]   pool2 shift+decimate selectors
                  wstk_ref,             # [16, 1000]    fc1 weights stacked per-channel
                  msk_ref,              # [20, 1000]    block-diagonal channel mask
                  g_ref,                # [1000, 50]    fc1 gather/sum selector
                  fb1_ref,              # [1, 50]
                  w2p_ref, fb2_ref,     # [50, 128], [1, 128]  (lane-padded fc2)
                  out_ref):             # [1, 1, 128]
    f32 = jnp.float32

    # ---- conv1 + bias + relu:  [10,25] @ [25,576] -> [10,576] (24x24 map)
    a1 = jnp.dot(w1m_ref[...], cols1_ref[0], preferred_element_type=f32)
    a1 = jnp.maximum(a1 + b1_ref[...], 0.0)

    # ---- pool1 (2x2/2): 4 independent shift+decimate selector matmuls (MXU)
    #      + elementwise max (VPU).  No lane slices / rotates.
    q = [jnp.dot(a1, d_ref[i], preferred_element_type=f32) for i in range(4)]
    p1 = jnp.maximum(jnp.maximum(q[0], q[1]), jnp.maximum(q[2], q[3]))  # [10,144]

    # ---- conv2 + bias + relu: 25 taps, each = constant selector gather matmul
    #      followed by the weight matmul, accumulated round-robin into 4
    #      independent accumulators (breaks the serial add chain).
    accs = [jnp.zeros((20, 64), f32) for _ in range(4)]
    for d in range(25):
        win = jnp.dot(p1, s_ref[d], preferred_element_type=f32)         # [10,64]
        accs[d & 3] = accs[d & 3] + jnp.dot(
            w2r_ref[d], win, preferred_element_type=f32)                # [20,64]
    a2 = (accs[0] + accs[1]) + (accs[2] + accs[3]) + b2_ref[...]
    a2 = jnp.maximum(a2, 0.0)                                           # [20,64]

    # ---- pool2 (2x2/2): same 4-selector trick -> [20,16] (4x4 map)
    r = [jnp.dot(a2, e_ref[i], preferred_element_type=f32) for i in range(4)]
    p2 = jnp.maximum(jnp.maximum(r[0], r[1]), jnp.maximum(r[2], r[3]))  # [20,16]

    # ---- fc1 + relu.  torch's x.view(-1, 320) is channel-major (c, h, w);
    # compute all 20 per-channel contributions in ONE wide GEMM, pick the
    # matching channel with a block-diagonal 0/1 mask, then gather/sum the
    # 20 blocks with a constant matmul.  No serial chain, no reshape.
    m = jnp.dot(p2, wstk_ref[...], preferred_element_type=f32)          # [20,1000]
    t = jnp.dot(m * msk_ref[...], g_ref[...],
                preferred_element_type=f32)                             # [20,50]
    h1 = jnp.maximum(jnp.sum(t, axis=0, keepdims=True) + fb1_ref[...], 0.0)

    # ---- fc2 (lane-padded to 128) + stable log_softmax.  Pad logits carry a
    # -1e30 bias so they vanish in the softmax; the wrapper slices lanes 0..9.
    z = jnp.dot(h1, w2p_ref[...], preferred_element_type=f32) + fb2_ref[...]
    zm = jnp.max(z, axis=-1, keepdims=True)
    ez = jnp.exp(z - zm)
    lse = jnp.log(jnp.sum(ez, axis=-1, keepdims=True)) + zm
    out_ref[0] = (z - lse).astype(out_ref.dtype)


# ---------------------------------------------------------------------------
# One-time parameter / constant preparation (GEMM-ready layouts + selectors).
# ---------------------------------------------------------------------------
def prepare(params):
    f32 = np.float32
    w1m = np.asarray(params["w1"], f32).reshape(10, 25)
    b1c = np.asarray(params["b1"], f32).reshape(10, 1)
    w2r = np.asarray(params["w2"], f32).transpose(2, 3, 0, 1).reshape(25, 20, 10)
    b2c = np.asarray(params["b2"], f32).reshape(20, 1)

    # pool1: 4 shift+decimate selectors, lane (2ph+x)*24 + 2pw+y -> ph*12+pw
    d_sel = np.zeros((4, 576, 144), f32)
    for x in range(2):
        for y in range(2):
            for ph in range(12):
                for pw in range(12):
                    d_sel[x * 2 + y, (2 * ph + x) * 24 + 2 * pw + y,
                          ph * 12 + pw] = 1.0

    # conv2: 25 shift+crop selectors, lane (oh+kh)*12 + ow+kw -> oh*8+ow
    s_sel = np.zeros((25, 144, 64), f32)
    for kh in range(5):
        for kw in range(5):
            for oh in range(8):
                for ow in range(8):
                    s_sel[kh * 5 + kw, (oh + kh) * 12 + ow + kw,
                          oh * 8 + ow] = 1.0

    # pool2: 4 shift+decimate selectors, lane (2ph+x)*8 + 2pw+y -> ph*4+pw
    e_sel = np.zeros((4, 64, 16), f32)
    for x in range(2):
        for y in range(2):
            for ph in range(4):
                for pw in range(4):
                    e_sel[x * 2 + y, (2 * ph + x) * 8 + 2 * pw + y,
                          ph * 4 + pw] = 1.0

    # fc1 as one wide GEMM: wstk[k, c*50+o] = fc1w[o, c*16+k]
    fc1w = np.asarray(params["fc1w"], f32)                      # [50, 320]
    wstk = fc1w.reshape(50, 20, 16).transpose(2, 1, 0).reshape(16, 1000)
    mask = np.zeros((20, 1000), f32)
    gsel = np.zeros((1000, 50), f32)
    for c in range(20):
        mask[c, c * 50:(c + 1) * 50] = 1.0
        for o in range(50):
            gsel[c * 50 + o, o] = 1.0
    fb1 = np.asarray(params["fc1b"], f32).reshape(1, 50)

    # fc2, lane-padded to 128 so the output store is a full (unmasked) vst.
    fc2w = np.asarray(params["fc2w"], f32)                      # [10, 50]
    w2p = np.zeros((50, 128), f32)
    w2p[:, :10] = fc2w.T
    fb2p = np.full((1, 128), -1e30, f32)
    fb2p[0, :10] = np.asarray(params["fc2b"], f32)

    arrs = (w1m, b1c, d_sel, s_sel, w2r, b2c, e_sel,
            wstk, mask, gsel, fb1, w2p, fb2p)
    return tuple(jnp.asarray(a) for a in arrs)


def _replicated(shape):
    nd = len(shape)
    return pl.BlockSpec(shape, lambda b, _nd=nd: (0,) * _nd)


@jax.jit
def forward(x, prep):
    """x: [B, 1, 28, 28] NCHW -> log-probabilities [B, 10]."""
    B = x.shape[0]
    xs = x[:, 0]                                                 # [B, 28, 28]
    # conv1 im2col on the raw input only (6 KB/sample); lands directly in the
    # lane-dense [25, 576] GEMM layout the kernel consumes.
    patches = [xs[:, kh:kh + 24, kw:kw + 24]
               for kh in range(5) for kw in range(5)]
    cols1 = jnp.stack(patches, axis=1).reshape(B, 25, 576)

    in_specs = [pl.BlockSpec((1, 25, 576), lambda b: (b, 0, 0))]
    in_specs += [_replicated(p.shape) for p in prep]

    out = pl.pallas_call(
        _lenet_kernel,
        out_shape=jax.ShapeDtypeStruct((B, 1, 128), jnp.float32),
        grid=(B,),
        in_specs=in_specs,
        out_specs=pl.BlockSpec((1, 1, 128), lambda b: (b, 0, 0)),
        compiler_params=pltpu.CompilerParams(
            dimension_semantics=("parallel",)),
    )(cols1, *prep)
    return out[:, 0, :10]


# ---------------------------------------------------------------------------
# Pure-JAX reference (independent: uses lax.conv) for a correctness check.
# ---------------------------------------------------------------------------
def _reference_forward(x, params):
    def conv(v, w, b):
        out = jax.lax.conv_general_dilated(
            v, w, window_strides=(1, 1), padding="VALID",
            dimension_numbers=("NCHW", "OIHW", "NCHW"))
        return out + b.reshape(1, -1, 1, 1)

    def pool(v):
        return jnp.maximum(
            jnp.maximum(v[:, :, 0::2, 0::2], v[:, :, 0::2, 1::2]),
            jnp.maximum(v[:, :, 1::2, 0::2], v[:, :, 1::2, 1::2]))

    a = pool(jax.nn.relu(conv(x, params["w1"], params["b1"])))
    a = pool(jax.nn.relu(conv(a, params["w2"], params["b2"])))
    a = a.reshape(a.shape[0], -1)
    a = jax.nn.relu(a @ params["fc1w"].T + params["fc1b"])
    z = a @ params["fc2w"].T + params["fc2b"]
    return jax.nn.log_softmax(z, axis=1)


def init_params(key):
    ks = jax.random.split(key, 8)
    s = 0.1
    return {
        "w1": s * jax.random.normal(ks[0], (10, 1, 5, 5), jnp.float32),
        "b1": s * jax.random.normal(ks[1], (10,), jnp.float32),
        "w2": s * jax.random.normal(ks[2], (20, 10, 5, 5), jnp.float32),
        "b2": s * jax.random.normal(ks[3], (20,), jnp.float32),
        "fc1w": s * jax.random.normal(ks[4], (50, 320), jnp.float32),
        "fc1b": s * jax.random.normal(ks[5], (50,), jnp.float32),
        "fc2w": s * jax.random.normal(ks[6], (10, 50), jnp.float32),
        "fc2b": s * jax.random.normal(ks[7], (10,), jnp.float32),
    }


if __name__ == "__main__":
    key = jax.random.PRNGKey(0)
    kx, kp = jax.random.split(key)
    x = jax.random.normal(kx, (2, 1, 28, 28), jnp.float32)   # MNIST-shaped input
    params = init_params(kp)
    prep = prepare(params)

    out = forward(x, prep)
    out = jax.block_until_ready(out)
    assert out.shape == (2, 10)

    ref = _reference_forward(x, params)
    err = float(jnp.max(jnp.abs(out - ref)))
    assert err < 1e-3, f"mismatch vs reference: {err}"

    print("KERNEL_OK")
</pallas_src>

<mosaic_0001>
module attributes {stable_mosaic.version = 11 : i64} {
  func.func @_lenet_kernel(%arg0: i32, %arg1: memref<1x25x576xf32, #tpu.memory_space<vmem>>, %arg2: memref<10x25xf32, #tpu.memory_space<vmem>>, %arg3: memref<10x1xf32, #tpu.memory_space<vmem>>, %arg4: memref<4x576x144xf32, #tpu.memory_space<vmem>>, %arg5: memref<25x144x64xf32, #tpu.memory_space<vmem>>, %arg6: memref<25x20x10xf32, #tpu.memory_space<vmem>>, %arg7: memref<20x1xf32, #tpu.memory_space<vmem>>, %arg8: memref<4x64x16xf32, #tpu.memory_space<vmem>>, %arg9: memref<16x1000xf32, #tpu.memory_space<vmem>>, %arg10: memref<20x1000xf32, #tpu.memory_space<vmem>>, %arg11: memref<1000x50xf32, #tpu.memory_space<vmem>>, %arg12: memref<1x50xf32, #tpu.memory_space<vmem>>, %arg13: memref<50x128xf32, #tpu.memory_space<vmem>>, %arg14: memref<1x128xf32, #tpu.memory_space<vmem>>, %arg15: memref<1x1x128xf32, #tpu.memory_space<vmem>>) attributes {dimension_semantics = [#tpu.dimension_semantics<parallel>], iteration_bounds = array<i64: 2>, scalar_prefetch = 0 : i64, scratch_operands = 0 : i64, tpu.core_type = #tpu.core_type<tc>, window_params = [{transform_indices = @transform_0, window_bounds = array<i64: 1, 25, 576>}, {pipeline_mode = #tpu.pipeline_mode<synchronous>, transform_indices = @transform_1, window_bounds = array<i64: 10, 25>}, {pipeline_mode = #tpu.pipeline_mode<synchronous>, transform_indices = @transform_2, window_bounds = array<i64: 10, 1>}, {pipeline_mode = #tpu.pipeline_mode<synchronous>, transform_indices = @transform_3, window_bounds = array<i64: 4, 576, 144>}, {pipeline_mode = #tpu.pipeline_mode<synchronous>, transform_indices = @transform_4, window_bounds = array<i64: 25, 144, 64>}, {pipeline_mode = #tpu.pipeline_mode<synchronous>, transform_indices = @transform_5, window_bounds = array<i64: 25, 20, 10>}, {pipeline_mode = #tpu.pipeline_mode<synchronous>, transform_indices = @transform_6, window_bounds = array<i64: 20, 1>}, {pipeline_mode = #tpu.pipeline_mode<synchronous>, transform_indices = @transform_7, window_bounds = array<i64: 4, 64, 16>}, {pipeline_mode = #tpu.pipeline_mode<synchronous>, transform_indices = @transform_8, window_bounds = array<i64: 16, 1000>}, {pipeline_mode = #tpu.pipeline_mode<synchronous>, transform_indices = @transform_9, window_bounds = array<i64: 20, 1000>}, {pipeline_mode = #tpu.pipeline_mode<synchronous>, transform_indices = @transform_10, window_bounds = array<i64: 1000, 50>}, {pipeline_mode = #tpu.pipeline_mode<synchronous>, transform_indices = @transform_11, window_bounds = array<i64: 1, 50>}, {pipeline_mode = #tpu.pipeline_mode<synchronous>, transform_indices = @transform_12, window_bounds = array<i64: 50, 128>}, {pipeline_mode = #tpu.pipeline_mode<synchronous>, transform_indices = @transform_13, window_bounds = array<i64: 1, 128>}, {transform_indices = @transform_14, window_bounds = array<i64: 1, 1, 128>}]} {
    %c0 = arith.constant 0 : index
    %c0_0 = arith.constant 0 : index
    %0 = vector.load %arg2[%c0, %c0_0] : memref<10x25xf32, #tpu.memory_space<vmem>>, vector<10x25xf32>
    %c0_1 = arith.constant 0 : index
    %c0_2 = arith.constant 0 : index
    %c0_3 = arith.constant 0 : index
    %1 = vector.load %arg1[%c0_1, %c0_2, %c0_3] : memref<1x25x576xf32, #tpu.memory_space<vmem>>, vector<1x25x576xf32>
    %2 = vector.shape_cast %1 : vector<1x25x576xf32> to vector<25x576xf32>
    %cst = arith.constant dense<0.000000e+00> : vector<10x576xf32>
    %3 = tpu.matmul %0, %2, %cst {dimension_numbers = #tpu.dot_dimension_numbers<[1], [0], [0], [1], [0, 0, 1, 1], [], []>} : vector<10x25xf32>, vector<25x576xf32>, vector<10x576xf32> -> vector<10x576xf32>
    %c0_4 = arith.constant 0 : index
    %c0_5 = arith.constant 0 : index
    %4 = vector.load %arg3[%c0_4, %c0_5] : memref<10x1xf32, #tpu.memory_space<vmem>>, vector<10x1xf32>
    %5 = vector.broadcast %4 : vector<10x1xf32> to vector<10x576xf32>
    %6 = arith.addf %3, %5 : vector<10x576xf32>
    %cst_6 = arith.constant 0.000000e+00 : f32
    %7 = vector.broadcast %cst_6 : f32 to vector<10x576xf32>
    %8 = arith.maximumf %6, %7 : vector<10x576xf32>
    %c0_7 = arith.constant 0 : index
    %c0_8 = arith.constant 0 : index
    %c0_9 = arith.constant 0 : index
    %9 = vector.load %arg4[%c0_7, %c0_8, %c0_9] : memref<4x576x144xf32, #tpu.memory_space<vmem>>, vector<1x576x144xf32>
    %10 = vector.shape_cast %9 : vector<1x576x144xf32> to vector<576x144xf32>
    %cst_10 = arith.constant dense<0.000000e+00> : vector<10x144xf32>
    %11 = tpu.matmul %8, %10, %cst_10 {dimension_numbers = #tpu.dot_dimension_numbers<[1], [0], [0], [1], [0, 0, 1, 1], [], []>} : vector<10x576xf32>, vector<576x144xf32>, vector<10x144xf32> -> vector<10x144xf32>
    %c1 = arith.constant 1 : index
    %c0_11 = arith.constant 0 : index
    %c0_12 = arith.constant 0 : index
    %12 = vector.load %arg4[%c1, %c0_11, %c0_12] : memref<4x576x144xf32, #tpu.memory_space<vmem>>, vector<1x576x144xf32>
    %13 = vector.shape_cast %12 : vector<1x576x144xf32> to vector<576x144xf32>
    %cst_13 = arith.constant dense<0.000000e+00> : vector<10x144xf32>
    %14 = tpu.matmul %8, %13, %cst_13 {dimension_numbers = #tpu.dot_dimension_numbers<[1], [0], [0], [1], [0, 0, 1, 1], [], []>} : vector<10x576xf32>, vector<576x144xf32>, vector<10x144xf32> -> vector<10x144xf32>
    %c2 = arith.constant 2 : index
    %c0_14 = arith.constant 0 : index
    %c0_15 = arith.constant 0 : index
    %15 = vector.load %arg4[%c2, %c0_14, %c0_15] : memref<4x576x144xf32, #tpu.memory_space<vmem>>, vector<1x576x144xf32>
    %16 = vector.shape_cast %15 : vector<1x576x144xf32> to vector<576x144xf32>
    %cst_16 = arith.constant dense<0.000000e+00> : vector<10x144xf32>
    %17 = tpu.matmul %8, %16, %cst_16 {dimension_numbers = #tpu.dot_dimension_numbers<[1], [0], [0], [1], [0, 0, 1, 1], [], []>} : vector<10x576xf32>, vector<576x144xf32>, vector<10x144xf32> -> vector<10x144xf32>
    %c3 = arith.constant 3 : index
    %c0_17 = arith.constant 0 : index
    %c0_18 = arith.constant 0 : index
    %18 = vector.load %arg4[%c3, %c0_17, %c0_18] : memref<4x576x144xf32, #tpu.memory_space<vmem>>, vector<1x576x144xf32>
    %19 = vector.shape_cast %18 : vector<1x576x144xf32> to vector<576x144xf32>
    %cst_19 = arith.constant dense<0.000000e+00> : vector<10x144xf32>
    %20 = tpu.matmul %8, %19, %cst_19 {dimension_numbers = #tpu.dot_dimension_numbers<[1], [0], [0], [1], [0, 0, 1, 1], [], []>} : vector<10x576xf32>, vector<576x144xf32>, vector<10x144xf32> -> vector<10x144xf32>
    %21 = arith.maximumf %11, %14 : vector<10x144xf32>
    %22 = arith.maximumf %17, %20 : vector<10x144xf32>
    %23 = arith.maximumf %21, %22 : vector<10x144xf32>
    %cst_20 = arith.constant 0.000000e+00 : f32
    %24 = vector.broadcast %cst_20 : f32 to vector<20x64xf32>
    %cst_21 = arith.constant 0.000000e+00 : f32
    %25 = vector.broadcast %cst_21 : f32 to vector<20x64xf32>
    %cst_22 = arith.constant 0.000000e+00 : f32
    %26 = vector.broadcast %cst_22 : f32 to vector<20x64xf32>
    %cst_23 = arith.constant 0.000000e+00 : f32
    %27 = vector.broadcast %cst_23 : f32 to vector<20x64xf32>
    %c0_24 = arith.constant 0 : index
    %c0_25 = arith.constant 0 : index
    %c0_26 = arith.constant 0 : index
    %28 = vector.load %arg5[%c0_24, %c0_25, %c0_26] : memref<25x144x64xf32, #tpu.memory_space<vmem>>, vector<1x144x64xf32>
    %29 = vector.shape_cast %28 : vector<1x144x64xf32> to vector<144x64xf32>
    %cst_27 = arith.constant dense<0.000000e+00> : vector<10x64xf32>
    %30 = tpu.matmul %23, %29, %cst_27 {dimension_numbers = #tpu.dot_dimension_numbers<[1], [0], [0], [1], [0, 0, 1, 1], [], []>} : vector<10x144xf32>, vector<144x64xf32>, vector<10x64xf32> -> vector<10x64xf32>
    %c0_28 = arith.constant 0 : index
    %c0_29 = arith.constant 0 : index
    %c0_30 = arith.constant 0 : index
    %31 = vector.load %arg6[%c0_28, %c0_29, %c0_30] : memref<25x20x10xf32, #tpu.memory_space<vmem>>, vector<1x20x10xf32>
    %32 = vector.shape_cast %31 : vector<1x20x10xf32> to vector<20x10xf32>
    %cst_31 = arith.constant dense<0.000000e+00> : vector<20x64xf32>
    %33 = tpu.matmul %32, %30, %cst_31 {dimension_numbers = #tpu.dot_dimension_numbers<[1], [0], [0], [1], [0, 0, 1, 1], [], []>} : vector<20x10xf32>, vector<10x64xf32>, vector<20x64xf32> -> vector<20x64xf32>
    %34 = arith.addf %24, %33 : vector<20x64xf32>
    %c1_32 = arith.constant 1 : index
    %c0_33 = arith.constant 0 : index
    %c0_34 = arith.constant 0 : index
    %35 = vector.load %arg5[%c1_32, %c0_33, %c0_34] : memref<25x144x64xf32, #tpu.memory_space<vmem>>, vector<1x144x64xf32>
    %36 = vector.shape_cast %35 : vector<1x144x64xf32> to vector<144x64xf32>
    %cst_35 = arith.constant dense<0.000000e+00> : vector<10x64xf32>
    %37 = tpu.matmul %23, %36, %cst_35 {dimension_numbers = #tpu.dot_dimension_numbers<[1], [0], [0], [1], [0, 0, 1, 1], [], []>} : vector<10x144xf32>, vector<144x64xf32>, vector<10x64xf32> -> vector<10x64xf32>
    %c1_36 = arith.constant 1 : index
    %c0_37 = arith.constant 0 : index
    %c0_38 = arith.constant 0 : index
    %38 = vector.load %arg6[%c1_36, %c0_37, %c0_38] : memref<25x20x10xf32, #tpu.memory_space<vmem>>, vector<1x20x10xf32>
    %39 = vector.shape_cast %38 : vector<1x20x10xf32> to vector<20x10xf32>
    %cst_39 = arith.constant dense<0.000000e+00> : vector<20x64xf32>
    %40 = tpu.matmul %39, %37, %cst_39 {dimension_numbers = #tpu.dot_dimension_numbers<[1], [0], [0], [1], [0, 0, 1, 1], [], []>} : vector<20x10xf32>, vector<10x64xf32>, vector<20x64xf32> -> vector<20x64xf32>
    %41 = arith.addf %25, %40 : vector<20x64xf32>
    %c2_40 = arith.constant 2 : index
    %c0_41 = arith.constant 0 : index
    %c0_42 = arith.constant 0 : index
    %42 = vector.load %arg5[%c2_40, %c0_41, %c0_42] : memref<25x144x64xf32, #tpu.memory_space<vmem>>, vector<1x144x64xf32>
    %43 = vector.shape_cast %42 : vector<1x144x64xf32> to vector<144x64xf32>
    %cst_43 = arith.constant dense<0.000000e+00> : vector<10x64xf32>
    %44 = tpu.matmul %23, %43, %cst_43 {dimension_numbers = #tpu.dot_dimension_numbers<[1], [0], [0], [1], [0, 0, 1, 1], [], []>} : vector<10x144xf32>, vector<144x64xf32>, vector<10x64xf32> -> vector<10x64xf32>
    %c2_44 = arith.constant 2 : index
    %c0_45 = arith.constant 0 : index
    %c0_46 = arith.constant 0 : index
    %45 = vector.load %arg6[%c2_44, %c0_45, %c0_46] : memref<25x20x10xf32, #tpu.memory_space<vmem>>, vector<1x20x10xf32>
    %46 = vector.shape_cast %45 : vector<1x20x10xf32> to vector<20x10xf32>
    %cst_47 = arith.constant dense<0.000000e+00> : vector<20x64xf32>
    %47 = tpu.matmul %46, %44, %cst_47 {dimension_numbers = #tpu.dot_dimension_numbers<[1], [0], [0], [1], [0, 0, 1, 1], [], []>} : vector<20x10xf32>, vector<10x64xf32>, vector<20x64xf32> -> vector<20x64xf32>
    %48 = arith.addf %26, %47 : vector<20x64xf32>
    %c3_48 = arith.constant 3 : index
    %c0_49 = arith.constant 0 : index
    %c0_50 = arith.constant 0 : index
    %49 = vector.load %arg5[%c3_48, %c0_49, %c0_50] : memref<25x144x64xf32, #tpu.memory_space<vmem>>, vector<1x144x64xf32>
    %50 = vector.shape_cast %49 : vector<1x144x64xf32> to vector<144x64xf32>
    %cst_51 = arith.constant dense<0.000000e+00> : vector<10x64xf32>
    %51 = tpu.matmul %23, %50, %cst_51 {dimension_numbers = #tpu.dot_dimension_numbers<[1], [0], [0], [1], [0, 0, 1, 1], [], []>} : vector<10x144xf32>, vector<144x64xf32>, vector<10x64xf32> -> vector<10x64xf32>
    %c3_52 = arith.constant 3 : index
    %c0_53 = arith.constant 0 : index
    %c0_54 = arith.constant 0 : index
    %52 = vector.load %arg6[%c3_52, %c0_53, %c0_54] : memref<25x20x10xf32, #tpu.memory_space<vmem>>, vector<1x20x10xf32>
    %53 = vector.shape_cast %52 : vector<1x20x10xf32> to vector<20x10xf32>
    %cst_55 = arith.constant dense<0.000000e+00> : vector<20x64xf32>
    %54 = tpu.matmul %53, %51, %cst_55 {dimension_numbers = #tpu.dot_dimension_numbers<[1], [0], [0], [1], [0, 0, 1, 1], [], []>} : vector<20x10xf32>, vector<10x64xf32>, vector<20x64xf32> -> vector<20x64xf32>
    %55 = arith.addf %27, %54 : vector<20x64xf32>
    %c4 = arith.constant 4 : index
    %c0_56 = arith.constant 0 : index
    %c0_57 = arith.constant 0 : index
    %56 = vector.load %arg5[%c4, %c0_56, %c0_57] : memref<25x144x64xf32, #tpu.memory_space<vmem>>, vector<1x144x64xf32>
    %57 = vector.shape_cast %56 : vector<1x144x64xf32> to vector<144x64xf32>
    %cst_58 = arith.constant dense<0.000000e+00> : vector<10x64xf32>
    %58 = tpu.matmul %23, %57, %cst_58 {dimension_numbers = #tpu.dot_dimension_numbers<[1], [0], [0], [1], [0, 0, 1, 1], [], []>} : vector<10x144xf32>, vector<144x64xf32>, vector<10x64xf32> -> vector<10x64xf32>
    %c4_59 = arith.constant 4 : index
    %c0_60 = arith.constant 0 : index
    %c0_61 = arith.constant 0 : index
    %59 = vector.load %arg6[%c4_59, %c0_60, %c0_61] : memref<25x20x10xf32, #tpu.memory_space<vmem>>, vector<1x20x10xf32>
    %60 = vector.shape_cast %59 : vector<1x20x10xf32> to vector<20x10xf32>
    %cst_62 = arith.constant dense<0.000000e+00> : vector<20x64xf32>
    %61 = tpu.matmul %60, %58, %cst_62 {dimension_numbers = #tpu.dot_dimension_numbers<[1], [0], [0], [1], [0, 0, 1, 1], [], []>} : vector<20x10xf32>, vector<10x64xf32>, vector<20x64xf32> -> vector<20x64xf32>
    %62 = arith.addf %34, %61 : vector<20x64xf32>
    %c5 = arith.constant 5 : index
    %c0_63 = arith.constant 0 : index
    %c0_64 = arith.constant 0 : index
    %63 = vector.load %arg5[%c5, %c0_63, %c0_64] : memref<25x144x64xf32, #tpu.memory_space<vmem>>, vector<1x144x64xf32>
    %64 = vector.shape_cast %63 : vector<1x144x64xf32> to vector<144x64xf32>
    %cst_65 = arith.constant dense<0.000000e+00> : vector<10x64xf32>
    %65 = tpu.matmul %23, %64, %cst_65 {dimension_numbers = #tpu.dot_dimension_numbers<[1], [0], [0], [1], [0, 0, 1, 1], [], []>} : vector<10x144xf32>, vector<144x64xf32>, vector<10x64xf32> -> vector<10x64xf32>
    %c5_66 = arith.constant 5 : index
    %c0_67 = arith.constant 0 : index
    %c0_68 = arith.constant 0 : index
    %66 = vector.load %arg6[%c5_66, %c0_67, %c0_68] : memref<25x20x10xf32, #tpu.memory_space<vmem>>, vector<1x20x10xf32>
    %67 = vector.shape_cast %66 : vector<1x20x10xf32> to vector<20x10xf32>
    %cst_69 = arith.constant dense<0.000000e+00> : vector<20x64xf32>
    %68 = tpu.matmul %67, %65, %cst_69 {dimension_numbers = #tpu.dot_dimension_numbers<[1], [0], [0], [1], [0, 0, 1, 1], [], []>} : vector<20x10xf32>, vector<10x64xf32>, vector<20x64xf32> -> vector<20x64xf32>
    %69 = arith.addf %41, %68 : vector<20x64xf32>
    %c6 = arith.constant 6 : index
    %c0_70 = arith.constant 0 : index
    %c0_71 = arith.constant 0 : index
    %70 = vector.load %arg5[%c6, %c0_70, %c0_71] : memref<25x144x64xf32, #tpu.memory_space<vmem>>, vector<1x144x64xf32>
    %71 = vector.shape_cast %70 : vector<1x144x64xf32> to vector<144x64xf32>
    %cst_72 = arith.constant dense<0.000000e+00> : vector<10x64xf32>
    %72 = tpu.matmul %23, %71, %cst_72 {dimension_numbers = #tpu.dot_dimension_numbers<[1], [0], [0], [1], [0, 0, 1, 1], [], []>} : vector<10x144xf32>, vector<144x64xf32>, vector<10x64xf32> -> vector<10x64xf32>
    %c6_73 = arith.constant 6 : index
    %c0_74 = arith.constant 0 : index
    %c0_75 = arith.constant 0 : index
    %73 = vector.load %arg6[%c6_73, %c0_74, %c0_75] : memref<25x20x10xf32, #tpu.memory_space<vmem>>, vector<1x20x10xf32>
    %74 = vector.shape_cast %73 : vector<1x20x10xf32> to vector<20x10xf32>
    %cst_76 = arith.constant dense<0.000000e+00> : vector<20x64xf32>
    %75 = tpu.matmul %74, %72, %cst_76 {dimension_numbers = #tpu.dot_dimension_numbers<[1], [0], [0], [1], [0, 0, 1, 1], [], []>} : vector<20x10xf32>, vector<10x64xf32>, vector<20x64xf32> -> vector<20x64xf32>
    %76 = arith.addf %48, %75 : vector<20x64xf32>
    %c7 = arith.constant 7 : index
    %c0_77 = arith.constant 0 : index
    %c0_78 = arith.constant 0 : index
    %77 = vector.load %arg5[%c7, %c0_77, %c0_78] : memref<25x144x64xf32, #tpu.memory_space<vmem>>, vector<1x144x64xf32>
    %78 = vector.shape_cast %77 : vector<1x144x64xf32> to vector<144x64xf32>
    %cst_79 = arith.constant dense<0.000000e+00> : vector<10x64xf32>
    %79 = tpu.matmul %23, %78, %cst_79 {dimension_numbers = #tpu.dot_dimension_numbers<[1], [0], [0], [1], [0, 0, 1, 1], [], []>} : vector<10x144xf32>, vector<144x64xf32>, vector<10x64xf32> -> vector<10x64xf32>
    %c7_80 = arith.constant 7 : index
    %c0_81 = arith.constant 0 : index
    %c0_82 = arith.constant 0 : index
    %80 = vector.load %arg6[%c7_80, %c0_81, %c0_82] : memref<25x20x10xf32, #tpu.memory_space<vmem>>, vector<1x20x10xf32>
    %81 = vector.shape_cast %80 : vector<1x20x10xf32> to vector<20x10xf32>
    %cst_83 = arith.constant dense<0.000000e+00> : vector<20x64xf32>
    %82 = tpu.matmul %81, %79, %cst_83 {dimension_numbers = #tpu.dot_dimension_numbers<[1], [0], [0], [1], [0, 0, 1, 1], [], []>} : vector<20x10xf32>, vector<10x64xf32>, vector<20x64xf32> -> vector<20x64xf32>
    %83 = arith.addf %55, %82 : vector<20x64xf32>
    %c8 = arith.constant 8 : index
    %c0_84 = arith.constant 0 : index
    %c0_85 = arith.constant 0 : index
    %84 = vector.load %arg5[%c8, %c0_84, %c0_85] : memref<25x144x64xf32, #tpu.memory_space<vmem>>, vector<1x144x64xf32>
    %85 = vector.shape_cast %84 : vector<1x144x64xf32> to vector<144x64xf32>
    %cst_86 = arith.constant dense<0.000000e+00> : vector<10x64xf32>
    %86 = tpu.matmul %23, %85, %cst_86 {dimension_numbers = #tpu.dot_dimension_numbers<[1], [0], [0], [1], [0, 0, 1, 1], [], []>} : vector<10x144xf32>, vector<144x64xf32>, vector<10x64xf32> -> vector<10x64xf32>
    %c8_87 = arith.constant 8 : index
    %c0_88 = arith.constant 0 : index
    %c0_89 = arith.constant 0 : index
    %87 = vector.load %arg6[%c8_87, %c0_88, %c0_89] : memref<25x20x10xf32, #tpu.memory_space<vmem>>, vector<1x20x10xf32>
    %88 = vector.shape_cast %87 : vector<1x20x10xf32> to vector<20x10xf32>
    %cst_90 = arith.constant dense<0.000000e+00> : vector<20x64xf32>
    %89 = tpu.matmul %88, %86, %cst_90 {dimension_numbers = #tpu.dot_dimension_numbers<[1], [0], [0], [1], [0, 0, 1, 1], [], []>} : vector<20x10xf32>, vector<10x64xf32>, vector<20x64xf32> -> vector<20x64xf32>
    %90 = arith.addf %62, %89 : vector<20x64xf32>
    %c9 = arith.constant 9 : index
    %c0_91 = arith.constant 0 : index
    %c0_92 = arith.constant 0 : index
    %91 = vector.load %arg5[%c9, %c0_91, %c0_92] : memref<25x144x64xf32, #tpu.memory_space<vmem>>, vector<1x144x64xf32>
    %92 = vector.shape_cast %91 : vector<1x144x64xf32> to vector<144x64xf32>
    %cst_93 = arith.constant dense<0.000000e+00> : vector<10x64xf32>
    %93 = tpu.matmul %23, %92, %cst_93 {dimension_numbers = #tpu.dot_dimension_numbers<[1], [0], [0], [1], [0, 0, 1, 1], [], []>} : vector<10x144xf32>, vector<144x64xf32>, vector<10x64xf32> -> vector<10x64xf32>
    %c9_94 = arith.constant 9 : index
    %c0_95 = arith.constant 0 : index
    %c0_96 = arith.constant 0 : index
    %94 = vector.load %arg6[%c9_94, %c0_95, %c0_96] : memref<25x20x10xf32, #tpu.memory_space<vmem>>, vector<1x20x10xf32>
    %95 = vector.shape_cast %94 : vector<1x20x10xf32> to vector<20x10xf32>
    %cst_97 = arith.constant dense<0.000000e+00> : vector<20x64xf32>
    %96 = tpu.matmul %95, %93, %cst_97 {dimension_numbers = #tpu.dot_dimension_numbers<[1], [0], [0], [1], [0, 0, 1, 1], [], []>} : vector<20x10xf32>, vector<10x64xf32>, vector<20x64xf32> -> vector<20x64xf32>
    %97 = arith.addf %69, %96 : vector<20x64xf32>
    %c10 = arith.constant 10 : index
    %c0_98 = arith.constant 0 : index
    %c0_99 = arith.constant 0 : index
    %98 = vector.load %arg5[%c10, %c0_98, %c0_99] : memref<25x144x64xf32, #tpu.memory_space<vmem>>, vector<1x144x64xf32>
    %99 = vector.shape_cast %98 : vector<1x144x64xf32> to vector<144x64xf32>
    %cst_100 = arith.constant dense<0.000000e+00> : vector<10x64xf32>
    %100 = tpu.matmul %23, %99, %cst_100 {dimension_numbers = #tpu.dot_dimension_numbers<[1], [0], [0], [1], [0, 0, 1, 1], [], []>} : vector<10x144xf32>, vector<144x64xf32>, vector<10x64xf32> -> vector<10x64xf32>
    %c10_101 = arith.constant 10 : index
    %c0_102 = arith.constant 0 : index
    %c0_103 = arith.constant 0 : index
    %101 = vector.load %arg6[%c10_101, %c0_102, %c0_103] : memref<25x20x10xf32, #tpu.memory_space<vmem>>, vector<1x20x10xf32>
    %102 = vector.shape_cast %101 : vector<1x20x10xf32> to vector<20x10xf32>
    %cst_104 = arith.constant dense<0.000000e+00> : vector<20x64xf32>
    %103 = tpu.matmul %102, %100, %cst_104 {dimension_numbers = #tpu.dot_dimension_numbers<[1], [0], [0], [1], [0, 0, 1, 1], [], []>} : vector<20x10xf32>, vector<10x64xf32>, vector<20x64xf32> -> vector<20x64xf32>
    %104 = arith.addf %76, %103 : vector<20x64xf32>
    %c11 = arith.constant 11 : index
    %c0_105 = arith.constant 0 : index
    %c0_106 = arith.constant 0 : index
    %105 = vector.load %arg5[%c11, %c0_105, %c0_106] : memref<25x144x64xf32, #tpu.memory_space<vmem>>, vector<1x144x64xf32>
    %106 = vector.shape_cast %105 : vector<1x144x64xf32> to vector<144x64xf32>
    %cst_107 = arith.constant dense<0.000000e+00> : vector<10x64xf32>
    %107 = tpu.matmul %23, %106, %cst_107 {dimension_numbers = #tpu.dot_dimension_numbers<[1], [0], [0], [1], [0, 0, 1, 1], [], []>} : vector<10x144xf32>, vector<144x64xf32>, vector<10x64xf32> -> vector<10x64xf32>
    %c11_108 = arith.constant 11 : index
    %c0_109 = arith.constant 0 : index
    %c0_110 = arith.constant 0 : index
    %108 = vector.load %arg6[%c11_108, %c0_109, %c0_110] : memref<25x20x10xf32, #tpu.memory_space<vmem>>, vector<1x20x10xf32>
    %109 = vector.shape_cast %108 : vector<1x20x10xf32> to vector<20x10xf32>
    %cst_111 = arith.constant dense<0.000000e+00> : vector<20x64xf32>
    %110 = tpu.matmul %109, %107, %cst_111 {dimension_numbers = #tpu.dot_dimension_numbers<[1], [0], [0], [1], [0, 0, 1, 1], [], []>} : vector<20x10xf32>, vector<10x64xf32>, vector<20x64xf32> -> vector<20x64xf32>
    %111 = arith.addf %83, %110 : vector<20x64xf32>
    %c12 = arith.constant 12 : index
    %c0_112 = arith.constant 0 : index
    %c0_113 = arith.constant 0 : index
    %112 = vector.load %arg5[%c12, %c0_112, %c0_113] : memref<25x144x64xf32, #tpu.memory_space<vmem>>, vector<1x144x64xf32>
    %113 = vector.shape_cast %112 : vector<1x144x64xf32> to vector<144x64xf32>
    %cst_114 = arith.constant dense<0.000000e+00> : vector<10x64xf32>
    %114 = tpu.matmul %23, %113, %cst_114 {dimension_numbers = #tpu.dot_dimension_numbers<[1], [0], [0], [1], [0, 0, 1, 1], [], []>} : vector<10x144xf32>, vector<144x64xf32>, vector<10x64xf32> -> vector<10x64xf32>
    %c12_115 = arith.constant 12 : index
    %c0_116 = arith.constant 0 : index
    %c0_117 = arith.constant 0 : index
    %115 = vector.load %arg6[%c12_115, %c0_116, %c0_117] : memref<25x20x10xf32, #tpu.memory_space<vmem>>, vector<1x20x10xf32>
    %116 = vector.shape_cast %115 : vector<1x20x10xf32> to vector<20x10xf32>
    %cst_118 = arith.constant dense<0.000000e+00> : vector<20x64xf32>
    %117 = tpu.matmul %116, %114, %cst_118 {dimension_numbers = #tpu.dot_dimension_numbers<[1], [0], [0], [1], [0, 0, 1, 1], [], []>} : vector<20x10xf32>, vector<10x64xf32>, vector<20x64xf32> -> vector<20x64xf32>
    %118 = arith.addf %90, %117 : vector<20x64xf32>
    %c13 = arith.constant 13 : index
    %c0_119 = arith.constant 0 : index
    %c0_120 = arith.constant 0 : index
    %119 = vector.load %arg5[%c13, %c0_119, %c0_120] : memref<25x144x64xf32, #tpu.memory_space<vmem>>, vector<1x144x64xf32>
    %120 = vector.shape_cast %119 : vector<1x144x64xf32> to vector<144x64xf32>
    %cst_121 = arith.constant dense<0.000000e+00> : vector<10x64xf32>
    %121 = tpu.matmul %23, %120, %cst_121 {dimension_numbers = #tpu.dot_dimension_numbers<[1], [0], [0], [1], [0, 0, 1, 1], [], []>} : vector<10x144xf32>, vector<144x64xf32>, vector<10x64xf32> -> vector<10x64xf32>
    %c13_122 = arith.constant 13 : index
    %c0_123 = arith.constant 0 : index
    %c0_124 = arith.constant 0 : index
    %122 = vector.load %arg6[%c13_122, %c0_123, %c0_124] : memref<25x20x10xf32, #tpu.memory_space<vmem>>, vector<1x20x10xf32>
    %123 = vector.shape_cast %122 : vector<1x20x10xf32> to vector<20x10xf32>
    %cst_125 = arith.constant dense<0.000000e+00> : vector<20x64xf32>
    %124 = tpu.matmul %123, %121, %cst_125 {dimension_numbers = #tpu.dot_dimension_numbers<[1], [0], [0], [1], [0, 0, 1, 1], [], []>} : vector<20x10xf32>, vector<10x64xf32>, vector<20x64xf32> -> vector<20x64xf32>
    %125 = arith.addf %97, %124 : vector<20x64xf32>
    %c14 = arith.constant 14 : index
    %c0_126 = arith.constant 0 : index
    %c0_127 = arith.constant 0 : index
    %126 = vector.load %arg5[%c14, %c0_126, %c0_127] : memref<25x144x64xf32, #tpu.memory_space<vmem>>, vector<1x144x64xf32>
    %127 = vector.shape_cast %126 : vector<1x144x64xf32> to vector<144x64xf32>
    %cst_128 = arith.constant dense<0.000000e+00> : vector<10x64xf32>
    %128 = tpu.matmul %23, %127, %cst_128 {dimension_numbers = #tpu.dot_dimension_numbers<[1], [0], [0], [1], [0, 0, 1, 1], [], []>} : vector<10x144xf32>, vector<144x64xf32>, vector<10x64xf32> -> vector<10x64xf32>
    %c14_129 = arith.constant 14 : index
    %c0_130 = arith.constant 0 : index
    %c0_131 = arith.constant 0 : index
    %129 = vector.load %arg6[%c14_129, %c0_130, %c0_131] : memref<25x20x10xf32, #tpu.memory_space<vmem>>, vector<1x20x10xf32>
    %130 = vector.shape_cast %129 : vector<1x20x10xf32> to vector<20x10xf32>
    %cst_132 = arith.constant dense<0.000000e+00> : vector<20x64xf32>
    %131 = tpu.matmul %130, %128, %cst_132 {dimension_numbers = #tpu.dot_dimension_numbers<[1], [0], [0], [1], [0, 0, 1, 1], [], []>} : vector<20x10xf32>, vector<10x64xf32>, vector<20x64xf32> -> vector<20x64xf32>
    %132 = arith.addf %104, %131 : vector<20x64xf32>
    %c15 = arith.constant 15 : index
    %c0_133 = arith.constant 0 : index
    %c0_134 = arith.constant 0 : index
    %133 = vector.load %arg5[%c15, %c0_133, %c0_134] : memref<25x144x64xf32, #tpu.memory_space<vmem>>, vector<1x144x64xf32>
    %134 = vector.shape_cast %133 : vector<1x144x64xf32> to vector<144x64xf32>
    %cst_135 = arith.constant dense<0.000000e+00> : vector<10x64xf32>
    %135 = tpu.matmul %23, %134, %cst_135 {dimension_numbers = #tpu.dot_dimension_numbers<[1], [0], [0], [1], [0, 0, 1, 1], [], []>} : vector<10x144xf32>, vector<144x64xf32>, vector<10x64xf32> -> vector<10x64xf32>
    %c15_136 = arith.constant 15 : index
    %c0_137 = arith.constant 0 : index
    %c0_138 = arith.constant 0 : index
    %136 = vector.load %arg6[%c15_136, %c0_137, %c0_138] : memref<25x20x10xf32, #tpu.memory_space<vmem>>, vector<1x20x10xf32>
    %137 = vector.shape_cast %136 : vector<1x20x10xf32> to vector<20x10xf32>
    %cst_139 = arith.constant dense<0.000000e+00> : vector<20x64xf32>
    %138 = tpu.matmul %137, %135, %cst_139 {dimension_numbers = #tpu.dot_dimension_numbers<[1], [0], [0], [1], [0, 0, 1, 1], [], []>} : vector<20x10xf32>, vector<10x64xf32>, vector<20x64xf32> -> vector<20x64xf32>
    %139 = arith.addf %111, %138 : vector<20x64xf32>
    %c16 = arith.constant 16 : index
    %c0_140 = arith.constant 0 : index
    %c0_141 = arith.constant 0 : index
    %140 = vector.load %arg5[%c16, %c0_140, %c0_141] : memref<25x144x64xf32, #tpu.memory_space<vmem>>, vector<1x144x64xf32>
    %141 = vector.shape_cast %140 : vector<1x144x64xf32> to vector<144x64xf32>
    %cst_142 = arith.constant dense<0.000000e+00> : vector<10x64xf32>
    %142 = tpu.matmul %23, %141, %cst_142 {dimension_numbers = #tpu.dot_dimension_numbers<[1], [0], [0], [1], [0, 0, 1, 1], [], []>} : vector<10x144xf32>, vector<144x64xf32>, vector<10x64xf32> -> vector<10x64xf32>
    %c16_143 = arith.constant 16 : index
    %c0_144 = arith.constant 0 : index
    %c0_145 = arith.constant 0 : index
    %143 = vector.load %arg6[%c16_143, %c0_144, %c0_145] : memref<25x20x10xf32, #tpu.memory_space<vmem>>, vector<1x20x10xf32>
    %144 = vector.shape_cast %143 : vector<1x20x10xf32> to vector<20x10xf32>
    %cst_146 = arith.constant dense<0.000000e+00> : vector<20x64xf32>
    %145 = tpu.matmul %144, %142, %cst_146 {dimension_numbers = #tpu.dot_dimension_numbers<[1], [0], [0], [1], [0, 0, 1, 1], [], []>} : vector<20x10xf32>, vector<10x64xf32>, vector<20x64xf32> -> vector<20x64xf32>
    %146 = arith.addf %118, %145 : vector<20x64xf32>
    %c17 = arith.constant 17 : index
    %c0_147 = arith.constant 0 : index
    %c0_148 = arith.constant 0 : index
    %147 = vector.load %arg5[%c17, %c0_147, %c0_148] : memref<25x144x64xf32, #tpu.memory_space<vmem>>, vector<1x144x64xf32>
    %148 = vector.shape_cast %147 : vector<1x144x64xf32> to vector<144x64xf32>
    %cst_149 = arith.constant dense<0.000000e+00> : vector<10x64xf32>
    %149 = tpu.matmul %23, %148, %cst_149 {dimension_numbers = #tpu.dot_dimension_numbers<[1], [0], [0], [1], [0, 0, 1, 1], [], []>} : vector<10x144xf32>, vector<144x64xf32>, vector<10x64xf32> -> vector<10x64xf32>
    %c17_150 = arith.constant 17 : index
    %c0_151 = arith.constant 0 : index
    %c0_152 = arith.constant 0 : index
    %150 = vector.load %arg6[%c17_150, %c0_151, %c0_152] : memref<25x20x10xf32, #tpu.memory_space<vmem>>, vector<1x20x10xf32>
    %151 = vector.shape_cast %150 : vector<1x20x10xf32> to vector<20x10xf32>
    %cst_153 = arith.constant dense<0.000000e+00> : vector<20x64xf32>
    %152 = tpu.matmul %151, %149, %cst_153 {dimension_numbers = #tpu.dot_dimension_numbers<[1], [0], [0], [1], [0, 0, 1, 1], [], []>} : vector<20x10xf32>, vector<10x64xf32>, vector<20x64xf32> -> vector<20x64xf32>
    %153 = arith.addf %125, %152 : vector<20x64xf32>
    %c18 = arith.constant 18 : index
    %c0_154 = arith.constant 0 : index
    %c0_155 = arith.constant 0 : index
    %154 = vector.load %arg5[%c18, %c0_154, %c0_155] : memref<25x144x64xf32, #tpu.memory_space<vmem>>, vector<1x144x64xf32>
    %155 = vector.shape_cast %154 : vector<1x144x64xf32> to vector<144x64xf32>
    %cst_156 = arith.constant dense<0.000000e+00> : vector<10x64xf32>
    %156 = tpu.matmul %23, %155, %cst_156 {dimension_numbers = #tpu.dot_dimension_numbers<[1], [0], [0], [1], [0, 0, 1, 1], [], []>} : vector<10x144xf32>, vector<144x64xf32>, vector<10x64xf32> -> vector<10x64xf32>
    %c18_157 = arith.constant 18 : index
    %c0_158 = arith.constant 0 : index
    %c0_159 = arith.constant 0 : index
    %157 = vector.load %arg6[%c18_157, %c0_158, %c0_159] : memref<25x20x10xf32, #tpu.memory_space<vmem>>, vector<1x20x10xf32>
    %158 = vector.shape_cast %157 : vector<1x20x10xf32> to vector<20x10xf32>
    %cst_160 = arith.constant dense<0.000000e+00> : vector<20x64xf32>
    %159 = tpu.matmul %158, %156, %cst_160 {dimension_numbers = #tpu.dot_dimension_numbers<[1], [0], [0], [1], [0, 0, 1, 1], [], []>} : vector<20x10xf32>, vector<10x64xf32>, vector<20x64xf32> -> vector<20x64xf32>
    %160 = arith.addf %132, %159 : vector<20x64xf32>
    %c19 = arith.constant 19 : index
    %c0_161 = arith.constant 0 : index
    %c0_162 = arith.constant 0 : index
    %161 = vector.load %arg5[%c19, %c0_161, %c0_162] : memref<25x144x64xf32, #tpu.memory_space<vmem>>, vector<1x144x64xf32>
    %162 = vector.shape_cast %161 : vector<1x144x64xf32> to vector<144x64xf32>
    %cst_163 = arith.constant dense<0.000000e+00> : vector<10x64xf32>
    %163 = tpu.matmul %23, %162, %cst_163 {dimension_numbers = #tpu.dot_dimension_numbers<[1], [0], [0], [1], [0, 0, 1, 1], [], []>} : vector<10x144xf32>, vector<144x64xf32>, vector<10x64xf32> -> vector<10x64xf32>
    %c19_164 = arith.constant 19 : index
    %c0_165 = arith.constant 0 : index
    %c0_166 = arith.constant 0 : index
    %164 = vector.load %arg6[%c19_164, %c0_165, %c0_166] : memref<25x20x10xf32, #tpu.memory_space<vmem>>, vector<1x20x10xf32>
    %165 = vector.shape_cast %164 : vector<1x20x10xf32> to vector<20x10xf32>
    %cst_167 = arith.constant dense<0.000000e+00> : vector<20x64xf32>
    %166 = tpu.matmul %165, %163, %cst_167 {dimension_numbers = #tpu.dot_dimension_numbers<[1], [0], [0], [1], [0, 0, 1, 1], [], []>} : vector<20x10xf32>, vector<10x64xf32>, vector<20x64xf32> -> vector<20x64xf32>
    %167 = arith.addf %139, %166 : vector<20x64xf32>
    %c20 = arith.constant 20 : index
    %c0_168 = arith.constant 0 : index
    %c0_169 = arith.constant 0 : index
    %168 = vector.load %arg5[%c20, %c0_168, %c0_169] : memref<25x144x64xf32, #tpu.memory_space<vmem>>, vector<1x144x64xf32>
    %169 = vector.shape_cast %168 : vector<1x144x64xf32> to vector<144x64xf32>
    %cst_170 = arith.constant dense<0.000000e+00> : vector<10x64xf32>
    %170 = tpu.matmul %23, %169, %cst_170 {dimension_numbers = #tpu.dot_dimension_numbers<[1], [0], [0], [1], [0, 0, 1, 1], [], []>} : vector<10x144xf32>, vector<144x64xf32>, vector<10x64xf32> -> vector<10x64xf32>
    %c20_171 = arith.constant 20 : index
    %c0_172 = arith.constant 0 : index
    %c0_173 = arith.constant 0 : index
    %171 = vector.load %arg6[%c20_171, %c0_172, %c0_173] : memref<25x20x10xf32, #tpu.memory_space<vmem>>, vector<1x20x10xf32>
    %172 = vector.shape_cast %171 : vector<1x20x10xf32> to vector<20x10xf32>
    %cst_174 = arith.constant dense<0.000000e+00> : vector<20x64xf32>
    %173 = tpu.matmul %172, %170, %cst_174 {dimension_numbers = #tpu.dot_dimension_numbers<[1], [0], [0], [1], [0, 0, 1, 1], [], []>} : vector<20x10xf32>, vector<10x64xf32>, vector<20x64xf32> -> vector<20x64xf32>
    %174 = arith.addf %146, %173 : vector<20x64xf32>
    %c21 = arith.constant 21 : index
    %c0_175 = arith.constant 0 : index
    %c0_176 = arith.constant 0 : index
    %175 = vector.load %arg5[%c21, %c0_175, %c0_176] : memref<25x144x64xf32, #tpu.memory_space<vmem>>, vector<1x144x64xf32>
    %176 = vector.shape_cast %175 : vector<1x144x64xf32> to vector<144x64xf32>
    %cst_177 = arith.constant dense<0.000000e+00> : vector<10x64xf32>
    %177 = tpu.matmul %23, %176, %cst_177 {dimension_numbers = #tpu.dot_dimension_numbers<[1], [0], [0], [1], [0, 0, 1, 1], [], []>} : vector<10x144xf32>, vector<144x64xf32>, vector<10x64xf32> -> vector<10x64xf32>
    %c21_178 = arith.constant 21 : index
    %c0_179 = arith.constant 0 : index
    %c0_180 = arith.constant 0 : index
    %178 = vector.load %arg6[%c21_178, %c0_179, %c0_180] : memref<25x20x10xf32, #tpu.memory_space<vmem>>, vector<1x20x10xf32>
    %179 = vector.shape_cast %178 : vector<1x20x10xf32> to vector<20x10xf32>
    %cst_181 = arith.constant dense<0.000000e+00> : vector<20x64xf32>
    %180 = tpu.matmul %179, %177, %cst_181 {dimension_numbers = #tpu.dot_dimension_numbers<[1], [0], [0], [1], [0, 0, 1, 1], [], []>} : vector<20x10xf32>, vector<10x64xf32>, vector<20x64xf32> -> vector<20x64xf32>
    %181 = arith.addf %153, %180 : vector<20x64xf32>
    %c22 = arith.constant 22 : index
    %c0_182 = arith.constant 0 : index
    %c0_183 = arith.constant 0 : index
    %182 = vector.load %arg5[%c22, %c0_182, %c0_183] : memref<25x144x64xf32, #tpu.memory_space<vmem>>, vector<1x144x64xf32>
    %183 = vector.shape_cast %182 : vector<1x144x64xf32> to vector<144x64xf32>
    %cst_184 = arith.constant dense<0.000000e+00> : vector<10x64xf32>
    %184 = tpu.matmul %23, %183, %cst_184 {dimension_numbers = #tpu.dot_dimension_numbers<[1], [0], [0], [1], [0, 0, 1, 1], [], []>} : vector<10x144xf32>, vector<144x64xf32>, vector<10x64xf32> -> vector<10x64xf32>
    %c22_185 = arith.constant 22 : index
    %c0_186 = arith.constant 0 : index
    %c0_187 = arith.constant 0 : index
    %185 = vector.load %arg6[%c22_185, %c0_186, %c0_187] : memref<25x20x10xf32, #tpu.memory_space<vmem>>, vector<1x20x10xf32>
    %186 = vector.shape_cast %185 : vector<1x20x10xf32> to vector<20x10xf32>
    %cst_188 = arith.constant dense<0.000000e+00> : vector<20x64xf32>
    %187 = tpu.matmul %186, %184, %cst_188 {dimension_numbers = #tpu.dot_dimension_numbers<[1], [0], [0], [1], [0, 0, 1, 1], [], []>} : vector<20x10xf32>, vector<10x64xf32>, vector<20x64xf32> -> vector<20x64xf32>
    %188 = arith.addf %160, %187 : vector<20x64xf32>
    %c23 = arith.constant 23 : index
    %c0_189 = arith.constant 0 : index
    %c0_190 = arith.constant 0 : index
    %189 = vector.load %arg5[%c23, %c0_189, %c0_190] : memref<25x144x64xf32, #tpu.memory_space<vmem>>, vector<1x144x64xf32>
    %190 = vector.shape_cast %189 : vector<1x144x64xf32> to vector<144x64xf32>
    %cst_191 = arith.constant dense<0.000000e+00> : vector<10x64xf32>
    %191 = tpu.matmul %23, %190, %cst_191 {dimension_numbers = #tpu.dot_dimension_numbers<[1], [0], [0], [1], [0, 0, 1, 1], [], []>} : vector<10x144xf32>, vector<144x64xf32>, vector<10x64xf32> -> vector<10x64xf32>
    %c23_192 = arith.constant 23 : index
    %c0_193 = arith.constant 0 : index
    %c0_194 = arith.constant 0 : index
    %192 = vector.load %arg6[%c23_192, %c0_193, %c0_194] : memref<25x20x10xf32, #tpu.memory_space<vmem>>, vector<1x20x10xf32>
    %193 = vector.shape_cast %192 : vector<1x20x10xf32> to vector<20x10xf32>
    %cst_195 = arith.constant dense<0.000000e+00> : vector<20x64xf32>
    %194 = tpu.matmul %193, %191, %cst_195 {dimension_numbers = #tpu.dot_dimension_numbers<[1], [0], [0], [1], [0, 0, 1, 1], [], []>} : vector<20x10xf32>, vector<10x64xf32>, vector<20x64xf32> -> vector<20x64xf32>
    %195 = arith.addf %167, %194 : vector<20x64xf32>
    %c24 = arith.constant 24 : index
    %c0_196 = arith.constant 0 : index
    %c0_197 = arith.constant 0 : index
    %196 = vector.load %arg5[%c24, %c0_196, %c0_197] : memref<25x144x64xf32, #tpu.memory_space<vmem>>, vector<1x144x64xf32>
    %197 = vector.shape_cast %196 : vector<1x144x64xf32> to vector<144x64xf32>
    %cst_198 = arith.constant dense<0.000000e+00> : vector<10x64xf32>
    %198 = tpu.matmul %23, %197, %cst_198 {dimension_numbers = #tpu.dot_dimension_numbers<[1], [0], [0], [1], [0, 0, 1, 1], [], []>} : vector<10x144xf32>, vector<144x64xf32>, vector<10x64xf32> -> vector<10x64xf32>
    %c24_199 = arith.constant 24 : index
    %c0_200 = arith.constant 0 : index
    %c0_201 = arith.constant 0 : index
    %199 = vector.load %arg6[%c24_199, %c0_200, %c0_201] : memref<25x20x10xf32, #tpu.memory_space<vmem>>, vector<1x20x10xf32>
    %200 = vector.shape_cast %199 : vector<1x20x10xf32> to vector<20x10xf32>
    %cst_202 = arith.constant dense<0.000000e+00> : vector<20x64xf32>
    %201 = tpu.matmul %200, %198, %cst_202 {dimension_numbers = #tpu.dot_dimension_numbers<[1], [0], [0], [1], [0, 0, 1, 1], [], []>} : vector<20x10xf32>, vector<10x64xf32>, vector<20x64xf32> -> vector<20x64xf32>
    %202 = arith.addf %174, %201 : vector<20x64xf32>
    %203 = arith.addf %202, %181 : vector<20x64xf32>
    %204 = arith.addf %188, %195 : vector<20x64xf32>
    %205 = arith.addf %203, %204 : vector<20x64xf32>
    %c0_203 = arith.constant 0 : index
    %c0_204 = arith.constant 0 : index
    %206 = vector.load %arg7[%c0_203, %c0_204] : memref<20x1xf32, #tpu.memory_space<vmem>>, vector<20x1xf32>
    %207 = vector.broadcast %206 : vector<20x1xf32> to vector<20x64xf32>
    %208 = arith.addf %205, %207 : vector<20x64xf32>
    %cst_205 = arith.constant 0.000000e+00 : f32
    %209 = vector.broadcast %cst_205 : f32 to vector<20x64xf32>
    %210 = arith.maximumf %208, %209 : vector<20x64xf32>
    %c0_206 = arith.constant 0 : index
    %c0_207 = arith.constant 0 : index
    %c0_208 = arith.constant 0 : index
    %211 = vector.load %arg8[%c0_206, %c0_207, %c0_208] : memref<4x64x16xf32, #tpu.memory_space<vmem>>, vector<1x64x16xf32>
    %212 = vector.shape_cast %211 : vector<1x64x16xf32> to vector<64x16xf32>
    %cst_209 = arith.constant dense<0.000000e+00> : vector<20x16xf32>
    %213 = tpu.matmul %210, %212, %cst_209 {dimension_numbers = #tpu.dot_dimension_numbers<[1], [0], [0], [1], [0, 0, 1, 1], [], []>} : vector<20x64xf32>, vector<64x16xf32>, vector<20x16xf32> -> vector<20x16xf32>
    %c1_210 = arith.constant 1 : index
    %c0_211 = arith.constant 0 : index
    %c0_212 = arith.constant 0 : index
    %214 = vector.load %arg8[%c1_210, %c0_211, %c0_212] : memref<4x64x16xf32, #tpu.memory_space<vmem>>, vector<1x64x16xf32>
    %215 = vector.shape_cast %214 : vector<1x64x16xf32> to vector<64x16xf32>
    %cst_213 = arith.constant dense<0.000000e+00> : vector<20x16xf32>
    %216 = tpu.matmul %210, %215, %cst_213 {dimension_numbers = #tpu.dot_dimension_numbers<[1], [0], [0], [1], [0, 0, 1, 1], [], []>} : vector<20x64xf32>, vector<64x16xf32>, vector<20x16xf32> -> vector<20x16xf32>
    %c2_214 = arith.constant 2 : index
    %c0_215 = arith.constant 0 : index
    %c0_216 = arith.constant 0 : index
    %217 = vector.load %arg8[%c2_214, %c0_215, %c0_216] : memref<4x64x16xf32, #tpu.memory_space<vmem>>, vector<1x64x16xf32>
    %218 = vector.shape_cast %217 : vector<1x64x16xf32> to vector<64x16xf32>
    %cst_217 = arith.constant dense<0.000000e+00> : vector<20x16xf32>
    %219 = tpu.matmul %210, %218, %cst_217 {dimension_numbers = #tpu.dot_dimension_numbers<[1], [0], [0], [1], [0, 0, 1, 1], [], []>} : vector<20x64xf32>, vector<64x16xf32>, vector<20x16xf32> -> vector<20x16xf32>
    %c3_218 = arith.constant 3 : index
    %c0_219 = arith.constant 0 : index
    %c0_220 = arith.constant 0 : index
    %220 = vector.load %arg8[%c3_218, %c0_219, %c0_220] : memref<4x64x16xf32, #tpu.memory_space<vmem>>, vector<1x64x16xf32>
    %221 = vector.shape_cast %220 : vector<1x64x16xf32> to vector<64x16xf32>
    %cst_221 = arith.constant dense<0.000000e+00> : vector<20x16xf32>
    %222 = tpu.matmul %210, %221, %cst_221 {dimension_numbers = #tpu.dot_dimension_numbers<[1], [0], [0], [1], [0, 0, 1, 1], [], []>} : vector<20x64xf32>, vector<64x16xf32>, vector<20x16xf32> -> vector<20x16xf32>
    %223 = arith.maximumf %213, %216 : vector<20x16xf32>
    %224 = arith.maximumf %219, %222 : vector<20x16xf32>
    %225 = arith.maximumf %223, %224 : vector<20x16xf32>
    %c0_222 = arith.constant 0 : index
    %c0_223 = arith.constant 0 : index
    %226 = vector.load %arg9[%c0_222, %c0_223] : memref<16x1000xf32, #tpu.memory_space<vmem>>, vector<16x1000xf32>
    %cst_224 = arith.constant dense<0.000000e+00> : vector<20x1000xf32>
    %227 = tpu.matmul %225, %226, %cst_224 {dimension_numbers = #tpu.dot_dimension_numbers<[1], [0], [0], [1], [0, 0, 1, 1], [], []>} : vector<20x16xf32>, vector<16x1000xf32>, vector<20x1000xf32> -> vector<20x1000xf32>
    %c0_225 = arith.constant 0 : index
    %c0_226 = arith.constant 0 : index
    %228 = vector.load %arg10[%c0_225, %c0_226] : memref<20x1000xf32, #tpu.memory_space<vmem>>, vector<20x1000xf32>
    %229 = arith.mulf %227, %228 : vector<20x1000xf32>
    %c0_227 = arith.constant 0 : index
    %c0_228 = arith.constant 0 : index
    %230 = vector.load %arg11[%c0_227, %c0_228] : memref<1000x50xf32, #tpu.memory_space<vmem>>, vector<1000x50xf32>
    %cst_229 = arith.constant dense<0.000000e+00> : vector<20x50xf32>
    %231 = tpu.matmul %229, %230, %cst_229 {dimension_numbers = #tpu.dot_dimension_numbers<[1], [0], [0], [1], [0, 0, 1, 1], [], []>} : vector<20x1000xf32>, vector<1000x50xf32>, vector<20x50xf32> -> vector<20x50xf32>
    %cst_230 = arith.constant dense<0.000000e+00> : vector<50xf32>
    %232 = vector.multi_reduction <add>, %231, %cst_230 [0] : vector<20x50xf32> to vector<50xf32>
    %233 = vector.shape_cast %232 : vector<50xf32> to vector<1x50xf32>
    %c0_231 = arith.constant 0 : index
    %c0_232 = arith.constant 0 : index
    %234 = vector.load %arg12[%c0_231, %c0_232] : memref<1x50xf32, #tpu.memory_space<vmem>>, vector<1x50xf32>
    %235 = arith.addf %233, %234 : vector<1x50xf32>
    %cst_233 = arith.constant 0.000000e+00 : f32
    %236 = vector.broadcast %cst_233 : f32 to vector<1x50xf32>
    %237 = arith.maximumf %235, %236 : vector<1x50xf32>
    %c0_234 = arith.constant 0 : index
    %c0_235 = arith.constant 0 : index
    %238 = vector.load %arg13[%c0_234, %c0_235] : memref<50x128xf32, #tpu.memory_space<vmem>>, vector<50x128xf32>
    %cst_236 = arith.constant dense<0.000000e+00> : vector<1x128xf32>
    %239 = tpu.matmul %237, %238, %cst_236 {dimension_numbers = #tpu.dot_dimension_numbers<[1], [0], [0], [1], [0, 0, 1, 1], [], []>} : vector<1x50xf32>, vector<50x128xf32>, vector<1x128xf32> -> vector<1x128xf32>
    %c0_237 = arith.constant 0 : index
    %c0_238 = arith.constant 0 : index
    %240 = vector.load %arg14[%c0_237, %c0_238] : memref<1x128xf32, #tpu.memory_space<vmem>>, vector<1x128xf32>
    %241 = arith.addf %239, %240 : vector<1x128xf32>
    %cst_239 = arith.constant dense<0xFF800000> : vector<1xf32>
    %242 = vector.multi_reduction <maximumf>, %241, %cst_239 [1] : vector<1x128xf32> to vector<1xf32>
    %243 = vector.shape_cast %242 : vector<1xf32> to vector<1x1xf32>
    %244 = vector.broadcast %243 : vector<1x1xf32> to vector<1x128xf32>
    %245 = arith.subf %241, %244 : vector<1x128xf32>
    %246 = math.exp %245 : vector<1x128xf32>
    %cst_240 = arith.constant dense<0.000000e+00> : vector<1xf32>
    %247 = vector.multi_reduction <add>, %246, %cst_240 [1] : vector<1x128xf32> to vector<1xf32>
    %248 = vector.shape_cast %247 : vector<1xf32> to vector<1x1xf32>
    %249 = math.log %248 : vector<1x1xf32>
    %250 = arith.addf %249, %243 : vector<1x1xf32>
    %251 = vector.broadcast %250 : vector<1x1xf32> to vector<1x128xf32>
    %252 = arith.subf %241, %251 : vector<1x128xf32>
    %c0_241 = arith.constant 0 : index
    %c0_242 = arith.constant 0 : index
    %c0_243 = arith.constant 0 : index
    %253 = vector.load %arg15[%c0_241, %c0_242, %c0_243] : memref<1x1x128xf32, #tpu.memory_space<vmem>>, vector<1x1x128xf32>
    %254 = vector.shape_cast %253 : vector<1x1x128xf32> to vector<1x128xf32>
    %255 = vector.shape_cast %252 : vector<1x128xf32> to vector<1x1x128xf32>
    tpu.vector_store %arg15[%c0_241, %c0_242, %c0_243], %255 {strides = array<i32>} : memref<1x1x128xf32, #tpu.memory_space<vmem>>, vector<1x1x128xf32>,
    return
  }
  func.func @transform_0(%arg0: i32) -> (i32, i32, i32) {
    %c0_i32 = arith.constant 0 : i32
    %c0_i32_0 = arith.constant 0 : i32
    %c0_i32_1 = arith.constant 0 : i32
    return %arg0, %c0_i32, %c0_i32_0 : i32, i32, i32
  }
  func.func @transform_1(%arg0: i32) -> (i32, i32) {
    %c0_i32 = arith.constant 0 : i32
    %c0_i32_0 = arith.constant 0 : i32
    %c0_i32_1 = arith.constant 0 : i32
    return %c0_i32, %c0_i32_0 : i32, i32
  }
  func.func @transform_2(%arg0: i32) -> (i32, i32) {
    %c0_i32 = arith.constant 0 : i32
    %c0_i32_0 = arith.constant 0 : i32
    %c0_i32_1 = arith.constant 0 : i32
    return %c0_i32, %c0_i32_0 : i32, i32
  }
  func.func @transform_3(%arg0: i32) -> (i32, i32, i32) {
    %c0_i32 = arith.constant 0 : i32
    %c0_i32_0 = arith.constant 0 : i32
    %c0_i32_1 = arith.constant 0 : i32
    %c0_i32_2 = arith.constant 0 : i32
    return %c0_i32, %c0_i32_0, %c0_i32_1 : i32, i32, i32
  }
  func.func @transform_4(%arg0: i32) -> (i32, i32, i32) {
    %c0_i32 = arith.constant 0 : i32
    %c0_i32_0 = arith.constant 0 : i32
    %c0_i32_1 = arith.constant 0 : i32
    %c0_i32_2 = arith.constant 0 : i32
    return %c0_i32, %c0_i32_0, %c0_i32_1 : i32, i32, i32
  }
  func.func @transform_5(%arg0: i32) -> (i32, i32, i32) {
    %c0_i32 = arith.constant 0 : i32
    %c0_i32_0 = arith.constant 0 : i32
    %c0_i32_1 = arith.constant 0 : i32
    %c0_i32_2 = arith.constant 0 : i32
    return %c0_i32, %c0_i32_0, %c0_i32_1 : i32, i32, i32
  }
  func.func @transform_6(%arg0: i32) -> (i32, i32) {
    %c0_i32 = arith.constant 0 : i32
    %c0_i32_0 = arith.constant 0 : i32
    %c0_i32_1 = arith.constant 0 : i32
    return %c0_i32, %c0_i32_0 : i32, i32
  }
  func.func @transform_7(%arg0: i32) -> (i32, i32, i32) {
    %c0_i32 = arith.constant 0 : i32
    %c0_i32_0 = arith.constant 0 : i32
    %c0_i32_1 = arith.constant 0 : i32
    %c0_i32_2 = arith.constant 0 : i32
    return %c0_i32, %c0_i32_0, %c0_i32_1 : i32, i32, i32
  }
  func.func @transform_8(%arg0: i32) -> (i32, i32) {
    %c0_i32 = arith.constant 0 : i32
    %c0_i32_0 = arith.constant 0 : i32
    %c0_i32_1 = arith.constant 0 : i32
    return %c0_i32, %c0_i32_0 : i32, i32
  }
  func.func @transform_9(%arg0: i32) -> (i32, i32) {
    %c0_i32 = arith.constant 0 : i32
    %c0_i32_0 = arith.constant 0 : i32
    %c0_i32_1 = arith.constant 0 : i32
    return %c0_i32, %c0_i32_0 : i32, i32
  }
  func.func @transform_10(%arg0: i32) -> (i32, i32) {
    %c0_i32 = arith.constant 0 : i32
    %c0_i32_0 = arith.constant 0 : i32
    %c0_i32_1 = arith.constant 0 : i32
    return %c0_i32, %c0_i32_0 : i32, i32
  }
  func.func @transform_11(%arg0: i32) -> (i32, i32) {
    %c0_i32 = arith.constant 0 : i32
    %c0_i32_0 = arith.constant 0 : i32
    %c0_i32_1 = arith.constant 0 : i32
    return %c0_i32, %c0_i32_0 : i32, i32
  }
  func.func @transform_12(%arg0: i32) -> (i32, i32) {
    %c0_i32 = arith.constant 0 : i32
    %c0_i32_0 = arith.constant 0 : i32
    %c0_i32_1 = arith.constant 0 : i32
    return %c0_i32, %c0_i32_0 : i32, i32
  }
  func.func @transform_13(%arg0: i32) -> (i32, i32) {
    %c0_i32 = arith.constant 0 : i32
    %c0_i32_0 = arith.constant 0 : i32
    %c0_i32_1 = arith.constant 0 : i32
    return %c0_i32, %c0_i32_0 : i32, i32
  }
  func.func @transform_14(%arg0: i32) -> (i32, i32, i32) {
    %c0_i32 = arith.constant 0 : i32
    %c0_i32_0 = arith.constant 0 : i32
    %c0_i32_1 = arith.constant 0 : i32
    return %arg0, %c0_i32, %c0_i32_0 : i32, i32, i32
  }
}

</mosaic_0001>

<bundles_post_ra>
// kernel: forward.1
= control target key start
LH: loop header
LB: loop body
LE: loop exit
PB: predicated region body
PF: predicated region fallthrough
CT: control target
= control target key end

     0   :  { %s16086_s0 = inlined_call_operand.vmem [shape: f32[2,25,576], index: 0, kind: input, shape index: {}]   ;;  %s16087_s1 = inlined_call_operand.vmem [shape: f32[10,25], index: 1, kind: input, shape index: {}]   ;;  %s16088_s2 = inlined_call_operand.vmem [shape: f32[10,1], index: 2, kind: input, shape index: {}]   ;;  %s16089_s3 = inlined_call_operand.vmem [shape: f32[4,576,144], index: 3, kind: input, shape index: {}]   ;;  %s16090_s4 = inlined_call_operand.vmem [shape: f32[25,144,64], index: 4, kind: input, shape index: {}]   ;;  %s16091_s5 = inlined_call_operand.vmem [shape: f32[25,20,10], index: 5, kind: input, shape index: {}]   ;;  %s16092_s6 = inlined_call_operand.vmem [shape: f32[20,1], index: 6, kind: input, shape index: {}]   ;;  %s16093_s7 = inlined_call_operand.vmem [shape: f32[4,64,16], index: 7, kind: input, shape index: {}]   ;;  %s16094_s8 = inlined_call_operand.vmem [shape: f32[16,1000], index: 8, kind: input, shape index: {}]   ;;  %s16095_s9 = inlined_call_operand.vmem [shape: f32[20,1000], index: 9, kind: input, shape index: {}]   ;;  %s16096_s10 = inlined_call_operand.vmem [shape: f32[1000,50], index: 10, kind: input, shape index: {}]   ;;  %s16097_s11 = inlined_call_operand.vmem [shape: f32[1,50], index: 11, kind: input, shape index: {}]   ;;  %s16098_s12 = inlined_call_operand.vmem [shape: f32[50,128], index: 12, kind: input, shape index: {}]   ;;  %s16099_s13 = inlined_call_operand.vmem [shape: f32[1,128], index: 13, kind: input, shape index: {}]   ;;  %s16100_s14 = inlined_call_operand.hbm [shape: f32[2,1,128], index: 14, kind: output, shape index: {}]  }
   0x1   :  { %16102 = sst [smem:[#allocation7_spill]] %s16086_s0 }
   0x2   :  { %16103 = sst [smem:[#allocation8_spill]] %s16087_s1 }
   0x3   :  { %16104 = sst [smem:[#allocation9_spill]] %s16088_s2 }
   0x4   :  { %19 = vsyncpa [#allocation3], 0 }
   0x5   :  { %21 = vsyncpa [#allocation3 + $0x1], 0  ;;  %s10654_s29 = smov 0   ;;  %s10656_s30 = smov 0  }
   0x6   :  { %s10658_s15 = smov 0   ;;  %s10660_s16 = smov 0  }
   0x7 LB: > { %16105 = sst [smem:[#allocation5_spill]] %s10569_s15  ;;  %s10675_s17 = sadd.s32 4294967295, %s10573_s16   ;;  %s10573_s16 = sphi %s10660_s16, %s16116_s16   ;;  %s10569_s15 = sphi %s10658_s15, %s16113_s15   ;;  %s10565_s30 = sphi %s10656_s30, %s16115_s30   ;;  %s10561_s29 = sphi %s10654_s29, %s16114_s29  }
   0x8   : > { %s8539_s18 = sadd.s32 4294967294, %s10573_s16   ;;  %s10679_s19 = sadd.s32 1, %s10573_s16  }
   0x9   : > { %s333_s20 = sadd.s32 1, %s10569_s15  ;;  %s330_s21 = ssub.s32 %s10573_s16, %s10679_s19 }
   0xa   : > { %p343_p0 = scmp.ne.s32.totalorder %s10569_s15, %s10565_s30  ;;  %p331_p1 = scmp.eq.s32.totalorder %s330_s21, 0 }
   0xb   : > { %p344_p2 = scmp.eq.s32.totalorder %s10675_s17, 1  ;;  %p349_p3 = scmp.ne.s32.totalorder %s10565_s30, %s10561_s29 }
   0xc   : > { %p350_p4 = scmp.eq.s32.totalorder %s8539_s18, 1  ;;  %p8542_p7 = scmp.ge.s32.totalorder %s10573_s16, 1 }
   0xd   : > { %s10690_s22 = scalar_select %p331_p1, %s10569_s15, %s333_s20  }
   0xe   : > { %p10692_p5 = por %p344_p2, %p343_p0  ;;  %p10696_p6 = por %p350_p4, %p349_p3 }
   0xf   : > { %16106 = sst [smem:[#allocation6_spill]] %s10690_s22  ;;  %p415_p8 = scmp.lt.s32.totalorder %s10573_s16, 3 }
  0x11   : > { %p416_p9 = pnand %p8542_p7, %p415_p8 }
  0x12   : > { %p460_p10 = scmp.lt.s32.totalorder (!%p416_p9), %s10675_s17, 1  ;;  %s16109_s2 = sld [smem:[#allocation9_spill]] (!%p416_p9) }
  0x13   : > { %419 = sbr.rel (%p416_p9) target bundleno = 7184 (0x1c10), region = 76  ;;  %s16110_s0 = sld [smem:[#allocation7_spill]] (!%p416_p9) }
  0x14   : > { %s16111_s1 = sld [smem:[#allocation8_spill]] (!%p416_p9)  ;;  %s458_s18 = sand.u32 (!%p416_p9), 1, %s10565_s30  }
  0x15   : > { %s9702_s20 = sshll.u32 (!%p416_p9), %s10675_s17, 4  ;;  %s459_s21 = scalar_lea.vmem (!%p416_p9), [#allocation2], %s458_s18 }
  0x16   : > { %s8482_s26 = scalar_lea.hbm (!%p416_p9), %s16100_s14, %s9702_s20 }
  0x18   : > { %v10575_v0 = vmov 0.0   ;;  %v487_v1 = vld [vmem:[%s16109_s2] sm:$0xff]  ;;  %s461_s27 = scalar_select %p460_p10, %s10675_s17, 1  ;;  %v10576_v2 = vmov 0   ;;  %v488_v3 = vld [vmem:[%s16109_s2 + $0x8] sm:$0x3] }
  0x19   : > { %586 = vmatprep.mubr.f32.mxu0 %v10575_v0  ;;  %663 = vmatprep.mubr.f32.mxu1 %v10575_v0  ;;  %vm506_vm0 = vcmask 1040384   ;;  %vm499_vm1 = vcmask 203776   ;;  %v7102_v23 = vld [vmem:[%s16092_s6 + $0x10] sm:$0xf]  ;;  %v792_v27 = vld [vmem:[%s16089_s3 + $0xf8] sm:$0xff]  ;;  %v790_v31 = vld [vmem:[%s16089_s3 + $0xe8] sm:$0xff] }
  0x1a   : > { %10507 = vset.pattern.permute.xlu0 %v10576_v2  ;;  %10508 = vset.pattern.permute.xlu1 %v10576_v2  ;;  %s10464_s28 = smul.u32 160, %s461_s27  ;;  %v465_v20 = vld [vmem:[%s16111_s1] sm:$0xff]  ;;  %v466_v24 = vld [vmem:[%s16111_s1 + $0x8] sm:$0x3]  ;;  %v791_v28 = vld [vmem:[%s16089_s3 + $0xf0] sm:$0xff]  ;;  %vm905_vm2 = vcmask 523264  }
  0x1b   : > { %491 = vperm.xlu0 %10507, %v487_v1   ;;  %v856_v29 = vld [vmem:[%s16089_s3 + $0x2f8] sm:$0xff]  ;;  %v855_v30 = vld [vmem:[%s16089_s3 + $0x2f0] sm:$0xff]  ;;  %v854_v32 = vld [vmem:[%s16089_s3 + $0x2e8] sm:$0xff]  ;;  %vm2301_vm3 = vcmask 130048   ;;  %vm10577_vm4 = vmmov 0   ;;  %vm2788_vm5 = vcmask 1041408  }
  0x1c   : > { %s10715_s15 = scalar_lea.vmem %s16110_s0, %s10464_s28  ;;  %v789_v33 = vld [vmem:[%s16089_s3 + $0xe0] sm:$0xff]  ;;  %v788_v35 = vld [vmem:[%s16089_s3 + $0xd8] sm:$0xff]  ;;  %v787_v37 = vld [vmem:[%s16089_s3 + $0xd0] sm:$0xff]  ;;  %vm2778_vm6 = vcmask 80896   ;;  %vm8027_vm7 = vcmask 850944   ;;  %vm8357_vm8 = vcmask 408576  }
  0x1d   : > { %v483_v4 = vld [vmem:[%s10715_s15 + $0x80] sm:$0x1]  ;;  %v485_v5 = vld [vmem:[%s10715_s15 + $0x90] sm:$0x1]  ;;  %v482_v6 = vld [vmem:[%s10715_s15 + $0x78] sm:$0x1] }
  0x1e   : > { %8544 = vmatprep.subr.msk.mxu0 %vm506_vm0, %v483_v4  ;;  %8548 = vmatprep.subr.msk.mxu1 %vm506_vm0, %v485_v5  ;;  %v484_v7 = vld [vmem:[%s10715_s15 + $0x88] sm:$0x1]  ;;  %v478_v8 = vld [vmem:[%s10715_s15 + $0x58] sm:$0xff]  ;;  %v477_v10 = vld [vmem:[%s10715_s15 + $0x50] sm:$0xff]  ;;  %vm8361_vm9 = vcmask 404480   ;;  %s8484_s0 = sshll.u32 %s459_s21, 4  ;;  %s8485_s0 = int_to_ptr.vmem [resolvable:$true] %s8484_s0 }
  0x1f   : > { %496 = vperm.xlu0 %10507, %v488_v3   ;;  %v480_v9 = vld [vmem:[%s10715_s15 + $0x68] sm:$0xff]  ;;  %8545 = vmatpush1.msk.msra.mxu0 %vm506_vm0, %v482_v6  ;;  %v479_v11 = vld [vmem:[%s10715_s15 + $0x60] sm:$0xff]  ;;  %v473_v12 = vld [vmem:[%s10715_s15 + $0x30] sm:$0xff]  ;;  %s8472_s27 = scalar_lea.sflag [#allocation3], %s458_s18  ;;  %s10578_s28 = smov [#allocation2]  }
  0x20   : > { %8549 = vmatpush1.msk.msra.mxu1 %vm506_vm0, %v484_v7  ;;  %548 = vmatprep.subr.mxu0 %v478_v8  ;;  %v475_v13 = vld [vmem:[%s10715_s15 + $0x40] sm:$0xff]  ;;  %v472_v14 = vld [vmem:[%s10715_s15 + $0x28] sm:$0xff]  ;;  %v474_v15 = vld [vmem:[%s10715_s15 + $0x38] sm:$0xff]  ;;  %s10517_s1 = sshll.u32 %s10578_s28, 4  ;;  %s10518_s1 = int_to_ptr.vmem [resolvable:$false] %s10517_s1 }
  0x21   : > { %625 = vmatprep.subr.mxu1 %v480_v9  ;;  %549 = vmatpush1.msra.mxu0 %v477_v10  ;;  %v468_v16 = vld [vmem:[%s10715_s15 + $0x8] sm:$0xff]  ;;  %v470_v17 = vld [vmem:[%s10715_s15 + $0x18] sm:$0xff]  ;;  %v467_v18 = vld [vmem:[%s10715_s15] sm:$0xff]  ;;  %s10519_s17 = scalar_lea.vmem %s10518_s1, 32  ;;  %p10520_p0 = scmp.lt.s32.totalorder %s8485_s0, %s10518_s1 }
  0x22   : > { %626 = vmatpush1.msra.mxu1 %v479_v11  ;;  %550 = vmatprep.subr.mxu0 %v473_v12  ;;  %v469_v19 = vld [vmem:[%s10715_s15 + $0x10] sm:$0xff]  ;;  %v486_v21 = vld [vmem:[%s10715_s15 + $0x98] sm:$0x1]  ;;  %v476_v25 = vld [vmem:[%s10715_s15 + $0x48] sm:$0xff] }
  0x23   : > { %627 = vmatprep.subr.mxu1 %v475_v13  ;;  %551 = vmatpush1.msra.mxu0 %v472_v14  ;;  %v481_v22 = vld [vmem:[%s10715_s15 + $0x70] sm:$0xff]  ;;  %v471_v26 = vld [vmem:[%s10715_s15 + $0x20] sm:$0xff]  ;;  %v852_v36 = vld [vmem:[%s16089_s3 + $0x2d8] sm:$0xff]  ;;  %s10513_s15 = scalar_lea.vmem %s8485_s0, 16 }
  0x24   : > { %628 = vmatpush1.msra.mxu1 %v474_v15  ;;  %552 = vmatprep.subr.mxu0 %v468_v16  ;;  %v853_v34 = vld [vmem:[%s16089_s3 + $0x2e0] sm:$0xff]  ;;  %v851_v38 = vld [vmem:[%s16089_s3 + $0x2d0] sm:$0xff]  ;;  %v786_v39 = vld [vmem:[%s16089_s3 + $0xc8] sm:$0xff]  ;;  %p10514_p11 = scmp.ne.s32.totalorder %s8485_s0, %s10513_s15  ;;  %p10521_p1 = scmp.lt.s32.totalorder %s10519_s17, %s10513_s15 }
  0x25   : > { %629 = vmatprep.subr.mxu1 %v470_v17  ;;  %553 = vmatpush1.msra.mxu0 %v467_v18  ;;  %v850_v40 = vld [vmem:[%s16089_s3 + $0x2c8] sm:$0xff]  ;;  %v785_v41 = vld [vmem:[%s16089_s3 + $0xc0] sm:$0xff]  ;;  %v784_v43 = vld [vmem:[%s16089_s3 + $0xb8] sm:$0xff] }
  0x26   : > { %630 = vmatpush1.msra.mxu1 %v469_v19  ;;  %8546 = vmatmul.mubr.msk.f32.vlgmr.msra.gmra.mxu0 %vm499_vm1, %v465_v20  ;;  %v849_v42 = vld [vmem:[%s16089_s3 + $0x2c0] sm:$0xff]  ;;  %v848_v44 = vld [vmem:[%s16089_s3 + $0x2b8] sm:$0xff]  ;;  %v783_v45 = vld [vmem:[%s16089_s3 + $0xb0] sm:$0xff]  ;;  %p10515_p12 = pnand %p10514_p11, %p10692_p5  ;;  %p10522_p2 = por %p10521_p1, %p10520_p0 }
  0x27   : > { %8550 = vmatmul.mubr.msk.f32.vlgmr.msra.gmra.mxu1 %vm499_vm1, %v465_v20  ;;  %10011 = vmatprep.subr.msk.mxu0 %vm506_vm0, %v486_v21  ;;  %v847_v46 = vld [vmem:[%s16089_s3 + $0x2b0] sm:$0xff]  ;;  %v782_v47 = vld [vmem:[%s16089_s3 + $0xa8] sm:$0xff]  ;;  %v781_v49 = vld [vmem:[%s16089_s3 + $0xa0] sm:$0xff] }
  0x28   : > { %592 = vmatprep.mubr.f32.mxu0 %v10575_v0  ;;  %10012 = vmatpush3.msk.msra.mxu0 %vm506_vm0, %v486_v21  ;;  %v846_v48 = vld [vmem:[%s16089_s3 + $0x2a8] sm:$0xff]  ;;  %v845_v50 = vld [vmem:[%s16089_s3 + $0x2a0] sm:$0xff]  ;;  %v780_v51 = vld [vmem:[%s16089_s3 + $0x98] sm:$0xff]  ;;  %p10516_p13 = pneg %p10515_p12 }
  0x29   : > { %669 = vmatprep.mubr.f32.mxu1 %v10575_v0  ;;  %10013 = vmatprep.subr.mxu0 %v481_v22  ;;  %v844_v52 = vld [vmem:[%s16089_s3 + $0x298] sm:$0xff]  ;;  %v779_v53 = vld [vmem:[%s16089_s3 + $0x90] sm:$0xff]  ;;  %v778_v55 = vld [vmem:[%s16089_s3 + $0x88] sm:$0xff] }
  0x2a   : > { %7115 = vperm.xlu0 %10507, %v7102_v23   ;;  %10014 = vmatpush3.msra.mxu0 %v481_v22  ;;  %v843_v54 = vld [vmem:[%s16089_s3 + $0x290] sm:$0xff]  ;;  %v842_v56 = vld [vmem:[%s16089_s3 + $0x288] sm:$0xff]  ;;  %v777_v57 = vld [vmem:[%s16089_s3 + $0x80] sm:$0xff]  ;;  %p10523_p3 = pnand %p10522_p2, %p10516_p13 }
  0x2b   : > { %8551 = vmatmul.mubr.msk.f32.gmra.mxu1 %vm499_vm1, %v466_v24  ;;  %8547 = vmatmul.mubr.msk.f32.gmra.mxu0 %vm499_vm1, %v466_v24  ;;  %v841_v58 = vld [vmem:[%s16089_s3 + $0x280] sm:$0xff]  ;;  %v776_v59 = vld [vmem:[%s16089_s3 + $0x78] sm:$0xff]  ;;  %v775_v61 = vld [vmem:[%s16089_s3 + $0x70] sm:$0xff] }
  0x2c   : > { %10015 = vmatprep.subr.mxu0 %v476_v25  ;;  %10019 = vmatprep.mubr.msk.f32.mxu0 %vm499_vm1, %v465_v20  ;;  %v840_v60 = vld [vmem:[%s16089_s3 + $0x278] sm:$0xff]  ;;  %v839_v62 = vld [vmem:[%s16089_s3 + $0x270] sm:$0xff]  ;;  %v774_v63 = vld [vmem:[%s16089_s3 + $0x68] sm:$0xff] }
  0x2d   : > { %10016 = vmatpush3.msra.mxu0 %v476_v25  ;;  %912 = vmatprep.subr.mxu1 %v792_v27  ;;  %v838_v1 = vld [vmem:[%s16089_s3 + $0x268] sm:$0xff]  ;;  %v773_v2 = vld [vmem:[%s16089_s3 + $0x60] sm:$0xff]  ;;  %v772_v4 = vld [vmem:[%s16089_s3 + $0x58] sm:$0xff] }
  0x2e   : > { %10017 = vmatprep.subr.mxu0 %v471_v26  ;;  %913 = vmatpush1.msra.mxu1 %v791_v28  ;;  %v837_v3 = vld [vmem:[%s16089_s3 + $0x260] sm:$0xff]  ;;  %v836_v5 = vld [vmem:[%s16089_s3 + $0x258] sm:$0xff]  ;;  %v771_v6 = vld [vmem:[%s16089_s3 + $0x50] sm:$0xff] }
  0x2f   : > { %10018 = vmatpush3.msra.mxu0 %v471_v26  ;;  %914 = vmatprep.subr.mxu1 %v790_v31  ;;  %v835_v7 = vld [vmem:[%s16089_s3 + $0x250] sm:$0xff]  ;;  %v770_v8 = vld [vmem:[%s16089_s3 + $0x48] sm:$0xff]  ;;  %v769_v10 = vld [vmem:[%s16089_s3 + $0x40] sm:$0xff] }
  0x30   : > { %10020 = vmatmul.mubr.msk.f32.vlgmr.msra.gmra.mxu0 %vm499_vm1, %v466_v24  ;;  %989 = vmatprep.subr.mxu0 %v856_v29  ;;  %v834_v9 = vld [vmem:[%s16089_s3 + $0x248] sm:$0xff]  ;;  %v833_v11 = vld [vmem:[%s16089_s3 + $0x240] sm:$0xff]  ;;  %v768_v12 = vld [vmem:[%s16089_s3 + $0x38] sm:$0xff] }
  0x31   : > { %990 = vmatpush1.msra.mxu0 %v855_v30  ;;  %915 = vmatpush1.msra.mxu1 %v789_v33  ;;  %v832_v13 = vld [vmem:[%s16089_s3 + $0x238] sm:$0xff]  ;;  %v767_v14 = vld [vmem:[%s16089_s3 + $0x30] sm:$0xff]  ;;  %v766_v16 = vld [vmem:[%s16089_s3 + $0x28] sm:$0xff] }
  0x32   : > { %991 = vmatprep.subr.mxu0 %v854_v32  ;;  %916 = vmatprep.subr.mxu1 %v788_v35  ;;  %v831_v15 = vld [vmem:[%s16089_s3 + $0x230] sm:$0xff]  ;;  %v830_v17 = vld [vmem:[%s16089_s3 + $0x228] sm:$0xff]  ;;  %v765_v18 = vld [vmem:[%s16089_s3 + $0x20] sm:$0xff] }
  0x33   : > { %992 = vmatpush1.msra.mxu0 %v853_v34  ;;  %917 = vmatpush1.msra.mxu1 %v787_v37  ;;  %v829_v19 = vld [vmem:[%s16089_s3 + $0x220] sm:$0xff]  ;;  %v764_v20 = vld [vmem:[%s16089_s3 + $0x18] sm:$0xff]  ;;  %v763_v22 = vld [vmem:[%s16089_s3 + $0x10] sm:$0xff] }
  0x34   : > { %993 = vmatprep.subr.mxu0 %v852_v36  ;;  %918 = vmatprep.subr.mxu1 %v786_v39  ;;  %v828_v21 = vld [vmem:[%s16089_s3 + $0x218] sm:$0xff]  ;;  %v827_v23 = vld [vmem:[%s16089_s3 + $0x210] sm:$0xff]  ;;  %v762_v24 = vld [vmem:[%s16089_s3 + $0x8] sm:$0xff] }
  0x35   : > { %994 = vmatpush1.msra.mxu0 %v851_v38  ;;  %919 = vmatpush1.msra.mxu1 %v785_v41  ;;  %v826_v25 = vld [vmem:[%s16089_s3 + $0x208] sm:$0xff]  ;;  %v761_v26 = vld [vmem:[%s16089_s3] sm:$0xff]  ;;  %v824_v28 = vld [vmem:[%s16089_s3 + $0x1f8] sm:$0xff] }
  0x36   : > { %995 = vmatprep.subr.mxu0 %v850_v40  ;;  %920 = vmatprep.subr.mxu1 %v784_v43  ;;  %v825_v27 = vld [vmem:[%s16089_s3 + $0x200] sm:$0xff]  ;;  %v888_v29 = vld [vmem:[%s16089_s3 + $0x3f8] sm:$0xff]  ;;  %v823_v30 = vld [vmem:[%s16089_s3 + $0x1f0] sm:$0xff] }
  0x37   : > { %996 = vmatpush1.msra.mxu0 %v849_v42  ;;  %921 = vmatpush1.msra.mxu1 %v783_v45  ;;  %v887_v31 = vld [vmem:[%s16089_s3 + $0x3f0] sm:$0xff]  ;;  %v822_v32 = vld [vmem:[%s16089_s3 + $0x1e8] sm:$0xff]  ;;  %v821_v34 = vld [vmem:[%s16089_s3 + $0x1e0] sm:$0xff] }
  0x38   : > { %997 = vmatprep.subr.mxu0 %v848_v44  ;;  %922 = vmatprep.subr.mxu1 %v782_v47  ;;  %v886_v33 = vld [vmem:[%s16089_s3 + $0x3e8] sm:$0xff]  ;;  %v885_v35 = vld [vmem:[%s16089_s3 + $0x3e0] sm:$0xff]  ;;  %v820_v36 = vld [vmem:[%s16089_s3 + $0x1d8] sm:$0xff] }
  0x39   : > { %998 = vmatpush1.msra.mxu0 %v847_v46  ;;  %923 = vmatpush1.msra.mxu1 %v781_v49  ;;  %v884_v37 = vld [vmem:[%s16089_s3 + $0x3d8] sm:$0xff]  ;;  %v819_v38 = vld [vmem:[%s16089_s3 + $0x1d0] sm:$0xff]  ;;  %v818_v40 = vld [vmem:[%s16089_s3 + $0x1c8] sm:$0xff] }
  0x3a   : > { %999 = vmatprep.subr.mxu0 %v846_v48  ;;  %924 = vmatprep.subr.mxu1 %v780_v51  ;;  %v883_v39 = vld [vmem:[%s16089_s3 + $0x3d0] sm:$0xff]  ;;  %v882_v41 = vld [vmem:[%s16089_s3 + $0x3c8] sm:$0xff]  ;;  %v817_v42 = vld [vmem:[%s16089_s3 + $0x1c0] sm:$0xff] }
  0x3b   : > { %1000 = vmatpush1.msra.mxu0 %v845_v50  ;;  %925 = vmatpush1.msra.mxu1 %v779_v53  ;;  %v881_v43 = vld [vmem:[%s16089_s3 + $0x3c0] sm:$0xff]  ;;  %v816_v44 = vld [vmem:[%s16089_s3 + $0x1b8] sm:$0xff]  ;;  %v815_v46 = vld [vmem:[%s16089_s3 + $0x1b0] sm:$0xff] }
  0x3c   : > { %1001 = vmatprep.subr.mxu0 %v844_v52  ;;  %926 = vmatprep.subr.mxu1 %v778_v55  ;;  %v880_v45 = vld [vmem:[%s16089_s3 + $0x3b8] sm:$0xff]  ;;  %v879_v47 = vld [vmem:[%s16089_s3 + $0x3b0] sm:$0xff]  ;;  %v814_v48 = vld [vmem:[%s16089_s3 + $0x1a8] sm:$0xff] }
  0x3d   : > { %1002 = vmatpush1.msra.mxu0 %v843_v54  ;;  %927 = vmatpush1.msra.mxu1 %v777_v57  ;;  %v878_v49 = vld [vmem:[%s16089_s3 + $0x3a8] sm:$0xff]  ;;  %v813_v50 = vld [vmem:[%s16089_s3 + $0x1a0] sm:$0xff]  ;;  %v812_v52 = vld [vmem:[%s16089_s3 + $0x198] sm:$0xff] }
  0x3e   : > { %1003 = vmatprep.subr.mxu0 %v842_v56  ;;  %928 = vmatprep.subr.mxu1 %v776_v59  ;;  %v877_v51 = vld [vmem:[%s16089_s3 + $0x3a0] sm:$0xff]  ;;  %v876_v53 = vld [vmem:[%s16089_s3 + $0x398] sm:$0xff]  ;;  %v811_v54 = vld [vmem:[%s16089_s3 + $0x190] sm:$0xff] }
  0x3f   : > { %1004 = vmatpush1.msra.mxu0 %v841_v58  ;;  %929 = vmatpush1.msra.mxu1 %v775_v61  ;;  %v875_v55 = vld [vmem:[%s16089_s3 + $0x390] sm:$0xff]  ;;  %v810_v56 = vld [vmem:[%s16089_s3 + $0x188] sm:$0xff]  ;;  %v809_v58 = vld [vmem:[%s16089_s3 + $0x180] sm:$0xff] }
  0x40   : > { %1005 = vmatprep.subr.mxu0 %v840_v60  ;;  %930 = vmatprep.subr.mxu1 %v774_v63  ;;  %v874_v57 = vld [vmem:[%s16089_s3 + $0x388] sm:$0xff]  ;;  %v873_v59 = vld [vmem:[%s16089_s3 + $0x380] sm:$0xff]  ;;  %v808_v60 = vld [vmem:[%s16089_s3 + $0x178] sm:$0xff] }
  0x41   : > { %1006 = vmatpush1.msra.mxu0 %v839_v62  ;;  %931 = vmatpush1.msra.mxu1 %v773_v2  ;;  %v872_v61 = vld [vmem:[%s16089_s3 + $0x378] sm:$0xff]  ;;  %v807_v62 = vld [vmem:[%s16089_s3 + $0x170] sm:$0xff]  ;;  %v870_v2 = vld [vmem:[%s16089_s3 + $0x368] sm:$0xff] }
  0x42   : > { %1007 = vmatprep.subr.mxu0 %v838_v1  ;;  %932 = vmatprep.subr.mxu1 %v772_v4  ;;  %v871_v63 = vld [vmem:[%s16089_s3 + $0x370] sm:$0xff]  ;;  %v806_v1 = vld [vmem:[%s16089_s3 + $0x168] sm:$0xff]  ;;  %v869_v4 = vld [vmem:[%s16089_s3 + $0x360] sm:$0xff] }
  0x43   : > { %1008 = vmatpush1.msra.mxu0 %v837_v3  ;;  %933 = vmatpush1.msra.mxu1 %v771_v6  ;;  %v805_v3 = vld [vmem:[%s16089_s3 + $0x160] sm:$0xff]  ;;  %v868_v6 = vld [vmem:[%s16089_s3 + $0x358] sm:$0xff] }
  0x44   : > { %1009 = vmatprep.subr.mxu0 %v836_v5  ;;  %934 = vmatprep.subr.mxu1 %v770_v8  ;;  %v804_v5 = vld [vmem:[%s16089_s3 + $0x158] sm:$0xff]  ;;  %v867_v8 = vld [vmem:[%s16089_s3 + $0x350] sm:$0xff] }
  0x45   : > { %1010 = vmatpush1.msra.mxu0 %v835_v7  ;;  %935 = vmatpush1.msra.mxu1 %v769_v10  ;;  %v803_v7 = vld [vmem:[%s16089_s3 + $0x150] sm:$0xff]  ;;  %v866_v10 = vld [vmem:[%s16089_s3 + $0x348] sm:$0xff] }
  0x46   : > { %1011 = vmatprep.subr.mxu0 %v834_v9  ;;  %936 = vmatprep.subr.mxu1 %v768_v12  ;;  %v802_v9 = vld [vmem:[%s16089_s3 + $0x148] sm:$0xff]  ;;  %v865_v12 = vld [vmem:[%s16089_s3 + $0x340] sm:$0xff] }
  0x47   : > { %1012 = vmatpush1.msra.mxu0 %v833_v11  ;;  %937 = vmatpush1.msra.mxu1 %v767_v14  ;;  %v801_v11 = vld [vmem:[%s16089_s3 + $0x140] sm:$0xff]  ;;  %v864_v14 = vld [vmem:[%s16089_s3 + $0x338] sm:$0xff] }
  0x48   : > { %1013 = vmatprep.subr.mxu0 %v832_v13  ;;  %938 = vmatprep.subr.mxu1 %v766_v16  ;;  %v800_v13 = vld [vmem:[%s16089_s3 + $0x138] sm:$0xff]  ;;  %v863_v16 = vld [vmem:[%s16089_s3 + $0x330] sm:$0xff] }
  0x49   : > { %1014 = vmatpush1.msra.mxu0 %v831_v15  ;;  %939 = vmatpush1.msra.mxu1 %v765_v18  ;;  %v799_v15 = vld [vmem:[%s16089_s3 + $0x130] sm:$0xff]  ;;  %v862_v18 = vld [vmem:[%s16089_s3 + $0x328] sm:$0xff] }
  0x4a   : > { %1015 = vmatprep.subr.mxu0 %v830_v17  ;;  %940 = vmatprep.subr.mxu1 %v764_v20  ;;  %v798_v17 = vld [vmem:[%s16089_s3 + $0x128] sm:$0xff]  ;;  %v861_v20 = vld [vmem:[%s16089_s3 + $0x320] sm:$0xff] }
  0x4b   : > { %1016 = vmatpush1.msra.mxu0 %v829_v19  ;;  %941 = vmatpush1.msra.mxu1 %v763_v22  ;;  %v797_v19 = vld [vmem:[%s16089_s3 + $0x120] sm:$0xff]  ;;  %v860_v22 = vld [vmem:[%s16089_s3 + $0x318] sm:$0xff] }
  0x4c   : > { %1017 = vmatprep.subr.mxu0 %v828_v21  ;;  %942 = vmatprep.subr.mxu1 %v762_v24  ;;  %v796_v21 = vld [vmem:[%s16089_s3 + $0x118] sm:$0xff]  ;;  %v859_v24 = vld [vmem:[%s16089_s3 + $0x310] sm:$0xff] }
  0x4d   : > { %1018 = vmatpush1.msra.mxu0 %v827_v23  ;;  %943 = vmatpush1.msra.mxu1 %v761_v26  ;;  %v795_v23 = vld [vmem:[%s16089_s3 + $0x110] sm:$0xff]  ;;  %v858_v26 = vld [vmem:[%s16089_s3 + $0x308] sm:$0xff] }
  0x4e   : > { %1019 = vmatprep.subr.mxu0 %v826_v25  ;;  %944 = vmatprep.subr.mxu1 %v824_v28  ;;  %v794_v25 = vld [vmem:[%s16089_s3 + $0x108] sm:$0xff]  ;;  %v857_v28 = vld [vmem:[%s16089_s3 + $0x300] sm:$0xff] }
  0x4f   : > { %1020 = vmatpush1.msra.mxu0 %v825_v27  ;;  %945 = vmatpush2.msra.mxu1 %v823_v30  ;;  %v793_v27 = vld [vmem:[%s16089_s3 + $0x100] sm:$0xff]  ;;  %v8588_v30 = vld [vmem:[%s16089_s3 + $0x578] sm:$0xff] }
  0x50   : > { %1021 = vmatprep.subr.mxu0 %v888_v29  ;;  %946 = vmatprep.subr.mxu1 %v822_v32  ;;  %v904_v29 = vld [vmem:[%s16089_s3 + $0x478] sm:$0xff] }
  0x51   : > { %1022 = vmatpush2.msra.mxu0 %v887_v31  ;;  %947 = vmatpush2.msra.mxu1 %v821_v34 }
  0x52   : > { %1023 = vmatprep.subr.mxu0 %v886_v33  ;;  %948 = vmatprep.subr.mxu1 %v820_v36 }
  0x53   : > { %1024 = vmatpush2.msra.mxu0 %v885_v35  ;;  %949 = vmatpush2.msra.mxu1 %v819_v38 }
  0x54   : > { %1025 = vmatprep.subr.mxu0 %v884_v37  ;;  %950 = vmatprep.subr.mxu1 %v818_v40 }
  0x55   : > { %1026 = vmatpush2.msra.mxu0 %v883_v39  ;;  %951 = vmatpush2.msra.mxu1 %v817_v42 }
  0x56   : > { %1027 = vmatprep.subr.mxu0 %v882_v41  ;;  %952 = vmatprep.subr.mxu1 %v816_v44 }
  0x57   : > { %1028 = vmatpush2.msra.mxu0 %v881_v43  ;;  %953 = vmatpush2.msra.mxu1 %v815_v46 }
  0x58   : > { %1029 = vmatprep.subr.mxu0 %v880_v45  ;;  %954 = vmatprep.subr.mxu1 %v814_v48  ;;  %v903_v48 = vld [vmem:[%s16089_s3 + $0x470] sm:$0xff] }
  0x59   : > { %1030 = vmatpush2.msra.mxu0 %v879_v47  ;;  %955 = vmatpush2.msra.mxu1 %v813_v50 }
  0x5a   : > { %1031 = vmatprep.subr.mxu0 %v878_v49  ;;  %956 = vmatprep.subr.mxu1 %v812_v52  ;;  %v8587_v49 = vld [vmem:[%s16089_s3 + $0x570] sm:$0xff]  ;;  %v902_v52 = vld [vmem:[%s16089_s3 + $0x468] sm:$0xff] }
  0x5b   : > { %1032 = vmatpush2.msra.mxu0 %v877_v51  ;;  %957 = vmatpush2.msra.mxu1 %v811_v54 }
  0x5c   : > { %1033 = vmatprep.subr.mxu0 %v876_v53  ;;  %958 = vmatprep.subr.mxu1 %v810_v56  ;;  %v8586_v53 = vld [vmem:[%s16089_s3 + $0x568] sm:$0xff] }
  0x5d   : > { %1034 = vmatpush2.msra.mxu0 %v875_v55  ;;  %959 = vmatpush2.msra.mxu1 %v809_v58  ;;  %v8585_v58 = vld [vmem:[%s16089_s3 + $0x560] sm:$0xff] }
  0x5e   : > { %1035 = vmatprep.subr.mxu0 %v874_v57  ;;  %960 = vmatprep.subr.mxu1 %v808_v60  ;;  %v901_v57 = vld [vmem:[%s16089_s3 + $0x460] sm:$0xff] }
  0x5f   : > { %1036 = vmatpush2.msra.mxu0 %v873_v59  ;;  %961 = vmatpush2.msra.mxu1 %v807_v62  ;;  %v8584_v62 = vld [vmem:[%s16089_s3 + $0x558] sm:$0xff] }
  0x60   : > { %1037 = vmatprep.subr.mxu0 %v872_v61  ;;  %962 = vmatprep.subr.mxu1 %v806_v1  ;;  %v900_v61 = vld [vmem:[%s16089_s3 + $0x458] sm:$0xff] }
  0x61   : > { %1038 = vmatpush2.msra.mxu0 %v871_v63  ;;  %963 = vmatpush2.msra.mxu1 %v805_v3  ;;  %v8583_v3 = vld [vmem:[%s16089_s3 + $0x550] sm:$0xff] }
  0x62   : > { %1039 = vmatprep.subr.mxu0 %v870_v2  ;;  %964 = vmatprep.subr.mxu1 %v804_v5  ;;  %v899_v2 = vld [vmem:[%s16089_s3 + $0x450] sm:$0xff]  ;;  %v8582_v5 = vld [vmem:[%s16089_s3 + $0x548] sm:$0xff] }
  0x63   : > { %1040 = vmatpush2.msra.mxu0 %v869_v4  ;;  %965 = vmatpush2.msra.mxu1 %v803_v7  ;;  %v898_v4 = vld [vmem:[%s16089_s3 + $0x448] sm:$0xff]  ;;  %v897_v7 = vld [vmem:[%s16089_s3 + $0x440] sm:$0xff] }
  0x64   : > { %1041 = vmatprep.subr.mxu0 %v868_v6  ;;  %966 = vmatprep.subr.mxu1 %v802_v9  ;;  %v896_v9 = vld [vmem:[%s16089_s3 + $0x438] sm:$0xff] }
  0x65   : > { %1042 = vmatpush2.msra.mxu0 %v867_v8  ;;  %967 = vmatpush2.msra.mxu1 %v801_v11  ;;  %v8581_v8 = vld [vmem:[%s16089_s3 + $0x540] sm:$0xff]  ;;  %v895_v11 = vld [vmem:[%s16089_s3 + $0x430] sm:$0xff] }
  0x66   : > { %1043 = vmatprep.subr.mxu0 %v866_v10  ;;  %968 = vmatprep.subr.mxu1 %v800_v13  ;;  %v8580_v10 = vld [vmem:[%s16089_s3 + $0x538] sm:$0xff]  ;;  %v894_v13 = vld [vmem:[%s16089_s3 + $0x428] sm:$0xff] }
  0x67   : > { %1044 = vmatpush2.msra.mxu0 %v865_v12  ;;  %969 = vmatpush2.msra.mxu1 %v799_v15  ;;  %v8579_v12 = vld [vmem:[%s16089_s3 + $0x530] sm:$0xff]  ;;  %v8578_v15 = vld [vmem:[%s16089_s3 + $0x528] sm:$0xff] }
  0x68   : > { %1045 = vmatprep.subr.mxu0 %v864_v14  ;;  %970 = vmatprep.subr.mxu1 %v798_v17  ;;  %v8577_v17 = vld [vmem:[%s16089_s3 + $0x520] sm:$0xff] }
  0x69   : > { %1046 = vmatpush2.msra.mxu0 %v863_v16  ;;  %971 = vmatpush2.msra.mxu1 %v797_v19  ;;  %v893_v16 = vld [vmem:[%s16089_s3 + $0x420] sm:$0xff]  ;;  %v8576_v19 = vld [vmem:[%s16089_s3 + $0x518] sm:$0xff] }
  0x6a   : > { %1047 = vmatprep.subr.mxu0 %v862_v18  ;;  %972 = vmatprep.subr.mxu1 %v796_v21  ;;  %v892_v18 = vld [vmem:[%s16089_s3 + $0x418] sm:$0xff] }
  0x6b   : > { %1048 = vmatpush2.msra.mxu0 %v861_v20  ;;  %973 = vmatpush2.msra.mxu1 %v795_v23  ;;  %v891_v20 = vld [vmem:[%s16089_s3 + $0x410] sm:$0xff]  ;;  %v890_v23 = vld [vmem:[%s16089_s3 + $0x408] sm:$0xff] }
  0x6c   : > { %1049 = vmatprep.subr.mxu0 %v860_v22  ;;  %974 = vmatprep.subr.mxu1 %v794_v25  ;;  %v8575_v22 = vld [vmem:[%s16089_s3 + $0x510] sm:$0xff]  ;;  %v889_v25 = vld [vmem:[%s16089_s3 + $0x400] sm:$0xff] }
  0x6d   : > { %1050 = vmatpush2.msra.mxu0 %v859_v24  ;;  %975 = vmatpush2.msra.mxu1 %v793_v27  ;;  %v8574_v24 = vld [vmem:[%s16089_s3 + $0x508] sm:$0xff]  ;;  %v8572_v27 = vld [vmem:[%s16089_s3 + $0x4f8] sm:$0xff] }
  0x6e   : > { %1051 = vmatprep.subr.mxu0 %v858_v26  ;;  %1082 = vmatprep.subr.mxu1 %v904_v29  ;;  %v8573_v26 = vld [vmem:[%s16089_s3 + $0x500] sm:$0xff]  ;;  %v8652_v29 = vld [vmem:[%s16089_s3 + $0x778] sm:$0xff] }
  0x6f   : > { %1052 = vmatpush2.msra.mxu0 %v857_v28 }
  0x70   : > { %1288 = vmatprep.subr.mxu0 %v8588_v30  ;;  %v8571_v30 = vld [vmem:[%s16089_s3 + $0x4f0] sm:$0xff] }
  0x96   : > { %v11150_v31 = vpop.permute.xlu0 %491 }
  0x9a   : > { %v11162_v45 = vpop.permute.xlu0 %496 }
  0xe6   : > { %v588_v32 = vpop.f32.mrf.mxu0 }
  0xe7   : > { %v665_v33 = vpop.f32.mrf.mxu1  ;;  %v589_v35 = vadd.f32 %v588_v32, %v11150_v31  ;;  %v8651_v32 = vld [vmem:[%s16089_s3 + $0x770] sm:$0xff] }
  0xe8   : > { %v666_v34 = vadd.f32 %v665_v33, %v11150_v31  ;;  %v590_v36 = vpop.f32.mrf.mxu0  ;;  %v8570_v33 = vld [vmem:[%s16089_s3 + $0x4e8] sm:$0xff] }
  0xe9   : > { %v667_v37 = vpop.f32.mrf.mxu1  ;;  %v591_v38 = vadd.f32 %v590_v36, %v11150_v31  ;;  %v11164_v46 = vmax.f32 %v589_v35, 0.0  ;;  %v8569_v35 = vld [vmem:[%s16089_s3 + $0x4e0] sm:$0xff] }
  0xea   : > { %v668_v39 = vadd.f32 %v667_v37, %v11150_v31  ;;  %v11156_v40 = vmax.f32 %v666_v34, 0.0  ;;  %v8650_v34 = vld [vmem:[%s16089_s3 + $0x768] sm:$0xff]  ;;  %v8649_v36 = vld [vmem:[%s16089_s3 + $0x760] sm:$0xff]  ;;  %v8568_v37 = vld [vmem:[%s16089_s3 + $0x4d8] sm:$0xff] }
  0xeb   : > { %v671_v41 = vpop.f32.mrf.mxu1  ;;  %v11158_v42 = vmax.f32 %v591_v38, 0.0  ;;  %v594_v44 = vpop.f32.mrf.mxu0 }
  0xec   : > { %v11160_v43 = vmax.f32 %v668_v39, 0.0  ;;  %v595_v54 = vadd.f32 %v594_v44, %v11162_v45  ;;  %v672_v55 = vadd.f32 %v671_v41, %v11162_v45  ;;  %v8648_v39 = vld [vmem:[%s16089_s3 + $0x758] sm:$0xff]  ;;  %v8567_v41 = vld [vmem:[%s16089_s3 + $0x4d0] sm:$0xff] }
  0xed   : > { %v673_v47 = vpop.f32.mrf.mxu1  ;;  %v596_v50 = vpop.f32.mrf.mxu0  ;;  %976 = vmatprep.mubr.f32.mxu1 %v11158_v42  ;;  %v8647_v44 = vld [vmem:[%s16089_s3 + $0x750] sm:$0xff] }
  0xee   : > { %v674_v51 = vadd.f32 %v673_v47, %v11162_v45  ;;  %1053 = vmatprep.mubr.f32.mxu0 %v11160_v43  ;;  %v597_v56 = vadd.f32 %v596_v50, %v11162_v45  ;;  %977 = vmatmul.mubr.f32.vlgmr.msra.gmra.mxu1 %v11164_v46  ;;  %v11202_v63 = vmax.f32 %v595_v54, 0.0  ;;  %v11204_v1 = vmax.f32 %v672_v55, 0.0  ;;  %v8646_v47 = vld [vmem:[%s16089_s3 + $0x748] sm:$0xff]  ;;  %v8564_v50 = vld [vmem:[%s16089_s3 + $0x4b8] sm:$0xff] }
  0xef   : > { %1054 = vmatmul.mubr.f32.vlgmr.msra.gmra.mxu0 %v11156_v40  ;;  %1083 = vmatpush1.msra.mxu1 %v903_v48  ;;  %v8565_v48 = vld [vmem:[%s16089_s3 + $0x4c0] sm:$0xff]  ;;  %v8562_v54 = vld [vmem:[%s16089_s3 + $0x4a8] sm:$0xff] }
  0xf0   : > { %v11192_v59 = vmax.f32 %v674_v51, 0.0  ;;  %1289 = vmatpush1.msra.mxu0 %v8587_v49  ;;  %v11194_v60 = vmax.f32 %v597_v56, 0.0  ;;  %1084 = vmatprep.subr.mxu1 %v902_v52  ;;  %v10021_v6 = vpop.f32.mrf.mxu0  ;;  %v8645_v49 = vld [vmem:[%s16089_s3 + $0x740] sm:$0xff]  ;;  %v8644_v51 = vld [vmem:[%s16089_s3 + $0x738] sm:$0xff]  ;;  %v8563_v52 = vld [vmem:[%s16089_s3 + $0x4b0] sm:$0xff] }
  0xf1   : > { %1290 = vmatprep.subr.mxu0 %v8586_v53  ;;  %1085 = vmatpush1.msra.mxu1 %v901_v57  ;;  %v8643_v53 = vld [vmem:[%s16089_s3 + $0x730] sm:$0xff]  ;;  %v8642_v55 = vld [vmem:[%s16089_s3 + $0x728] sm:$0xff]  ;;  %v8561_v56 = vld [vmem:[%s16089_s3 + $0x4a0] sm:$0xff] }
  0xf2   : > { %1291 = vmatpush1.msra.mxu0 %v8585_v58  ;;  %982 = vmatprep.mubr.f32.mxu1 %v11194_v60  ;;  %v742_v14 = vpop.f32.mrf.mxu0  ;;  %v8641_v57 = vld [vmem:[%s16089_s3 + $0x720] sm:$0xff]  ;;  %v8560_v58 = vld [vmem:[%s16089_s3 + $0x498] sm:$0xff] }
  0xf3   : > { %1059 = vmatprep.mubr.f32.mxu0 %v11192_v59  ;;  %1086 = vmatprep.subr.mxu1 %v900_v61  ;;  %v743_v21 = vadd.f32 %v742_v14, %v11150_v31  ;;  %v748_v31 = vadd.f32 %v10021_v6, %v11162_v45  ;;  %v8566_v45 = vld [vmem:[%s16089_s3 + $0x4c8] sm:$0xff]  ;;  %v8640_v61 = vld [vmem:[%s16089_s3 + $0x718] sm:$0xff]  ;;  %v8637_v6 = vld [vmem:[%s16089_s3 + $0x700] sm:$0xff] }
  0xf4   : > { %1292 = vmatprep.subr.mxu0 %v8584_v62  ;;  %983 = vmatmul.mubr.f32.gmra.mxu1 %v11202_v63  ;;  %v8559_v62 = vld [vmem:[%s16089_s3 + $0x490] sm:$0xff]  ;;  %v8633_v14 = vld [vmem:[%s16089_s3 + $0x6e0] sm:$0xff] }
  0xf5   : > { %1060 = vmatmul.mubr.f32.gmra.mxu0 %v11204_v1  ;;  %1087 = vmatpush1.msra.mxu1 %v899_v2  ;;  %v11281_v28 = vmax.f32 %v743_v21, 0.0  ;;  %v11311_v38 = vmax.f32 %v748_v31, 0.0  ;;  %v8639_v2 = vld [vmem:[%s16089_s3 + $0x710] sm:$0xff]  ;;  %v8613_v21 = vld [vmem:[%s16089_s3 + $0x640] sm:$0xff] }
  0xf6   : > { %1293 = vmatpush1.msra.mxu0 %v8583_v3  ;;  %1088 = vmatprep.subr.mxu1 %v898_v4  ;;  %v8558_v3 = vld [vmem:[%s16089_s3 + $0x488] sm:$0xff]  ;;  %v8625_v31 = vld [vmem:[%s16089_s3 + $0x6a0] sm:$0xff] }
  0xf7   : > { %1294 = vmatprep.subr.mxu0 %v8582_v5  ;;  %1352 = vmatprep.mubr.f32.mxu0 %v11158_v42  ;;  %v8638_v4 = vld [vmem:[%s16089_s3 + $0x708] sm:$0xff]  ;;  %v8557_v5 = vld [vmem:[%s16089_s3 + $0x480] sm:$0xff] }
  0xf8   : > { %1089 = vmatpush1.msra.mxu1 %v897_v7  ;;  %1295 = vmatpush1.msra.mxu0 %v8581_v8  ;;  %v8620_v7 = vld [vmem:[%s16089_s3 + $0x678] sm:$0xff] }
  0xf9   : > { %1090 = vmatprep.subr.mxu1 %v896_v9  ;;  %1296 = vmatprep.subr.mxu0 %v8580_v10  ;;  %v8636_v8 = vld [vmem:[%s16089_s3 + $0x6f8] sm:$0xff]  ;;  %v8619_v9 = vld [vmem:[%s16089_s3 + $0x670] sm:$0xff] }
  0xfa   : > { %1091 = vmatpush1.msra.mxu1 %v895_v11  ;;  %1297 = vmatpush1.msra.mxu0 %v8579_v12  ;;  %v8635_v10 = vld [vmem:[%s16089_s3 + $0x6f0] sm:$0xff]  ;;  %v8618_v11 = vld [vmem:[%s16089_s3 + $0x668] sm:$0xff] }
  0xfb   : > { %1092 = vmatprep.subr.mxu1 %v894_v13  ;;  %1298 = vmatprep.subr.mxu0 %v8578_v15  ;;  %v8634_v12 = vld [vmem:[%s16089_s3 + $0x6e8] sm:$0xff]  ;;  %v8617_v13 = vld [vmem:[%s16089_s3 + $0x660] sm:$0xff]  ;;  %v8616_v15 = vld [vmem:[%s16089_s3 + $0x658] sm:$0xff] }
  0xfc   : > { %1093 = vmatpush1.msra.mxu1 %v893_v16  ;;  %1299 = vmatpush1.msra.mxu0 %v8577_v17  ;;  %v8632_v16 = vld [vmem:[%s16089_s3 + $0x6d8] sm:$0xff]  ;;  %v8615_v17 = vld [vmem:[%s16089_s3 + $0x650] sm:$0xff] }
  0xfd   : > { %1094 = vmatprep.subr.mxu1 %v892_v18  ;;  %1300 = vmatprep.subr.mxu0 %v8576_v19  ;;  %v8631_v18 = vld [vmem:[%s16089_s3 + $0x6d0] sm:$0xff]  ;;  %v8614_v19 = vld [vmem:[%s16089_s3 + $0x648] sm:$0xff] }
  0xfe   : > { %1095 = vmatpush1.msra.mxu1 %v891_v20  ;;  %1301 = vmatpush1.msra.mxu0 %v8575_v22  ;;  %v8630_v20 = vld [vmem:[%s16089_s3 + $0x6c8] sm:$0xff]  ;;  %v8629_v22 = vld [vmem:[%s16089_s3 + $0x6c0] sm:$0xff] }
  0xff   : > { %1096 = vmatprep.subr.mxu1 %v890_v23  ;;  %1302 = vmatprep.subr.mxu0 %v8574_v24  ;;  %v8612_v23 = vld [vmem:[%s16089_s3 + $0x638] sm:$0xff] }
 0x100   : > { %1097 = vmatpush1.msra.mxu1 %v889_v25  ;;  %1130 = vmatprep.mubr.f32.mxu1 %v10575_v0  ;;  %v8628_v24 = vld [vmem:[%s16089_s3 + $0x6b8] sm:$0xff]  ;;  %v8611_v25 = vld [vmem:[%s16089_s3 + $0x630] sm:$0xff] }
 0x101   : > { %1303 = vmatpush1.msra.mxu0 %v8573_v26  ;;  %8555 = vmatmul.mubr.msk.f32.vlgmr.msra.gmra.mxu1 %vm905_vm2, %v11281_v28  ;;  %v8627_v26 = vld [vmem:[%s16089_s3 + $0x6b0] sm:$0xff] }
 0x102   : > { %1304 = vmatprep.subr.mxu0 %v8572_v27  ;;  %1365 = vmatprep.subr.mxu1 %v8652_v29  ;;  %v8610_v27 = vld [vmem:[%s16089_s3 + $0x628] sm:$0xff] }
 0x103   : > { %1305 = vmatpush1.msra.mxu0 %v8571_v30  ;;  %1366 = vmatpush1.msra.mxu1 %v8651_v32  ;;  %v8626_v29 = vld [vmem:[%s16089_s3 + $0x6a8] sm:$0xff]  ;;  %v8609_v30 = vld [vmem:[%s16089_s3 + $0x620] sm:$0xff]  ;;  %v8608_v32 = vld [vmem:[%s16089_s3 + $0x618] sm:$0xff] }
 0x104   : > { %1306 = vmatprep.subr.mxu0 %v8570_v33  ;;  %1367 = vmatprep.subr.mxu1 %v8650_v34  ;;  %v8624_v33 = vld [vmem:[%s16089_s3 + $0x698] sm:$0xff]  ;;  %v8607_v34 = vld [vmem:[%s16089_s3 + $0x610] sm:$0xff] }
 0x105   : > { %1136 = vmatprep.mubr.f32.mxu1 %v10575_v0  ;;  %1307 = vmatpush1.msra.mxu0 %v8569_v35  ;;  %v8623_v35 = vld [vmem:[%s16089_s3 + $0x690] sm:$0xff] }
 0x106   : > { %1368 = vmatpush1.msra.mxu1 %v8649_v36  ;;  %1308 = vmatprep.subr.mxu0 %v8568_v37  ;;  %v8606_v36 = vld [vmem:[%s16089_s3 + $0x608] sm:$0xff] }
 0x107   : > { %8556 = vmatmul.mubr.msk.f32.gmra.mxu1 %vm905_vm2, %v11311_v38  ;;  %1369 = vmatprep.subr.mxu1 %v8648_v39  ;;  %v8622_v37 = vld [vmem:[%s16089_s3 + $0x688] sm:$0xff]  ;;  %v8605_v39 = vld [vmem:[%s16089_s3 + $0x600] sm:$0xff] }
 0x108   : > { %1309 = vmatpush1.msra.mxu0 %v8567_v41  ;;  %1370 = vmatpush1.msra.mxu1 %v8647_v44  ;;  %v8621_v41 = vld [vmem:[%s16089_s3 + $0x680] sm:$0xff]  ;;  %v8604_v44 = vld [vmem:[%s16089_s3 + $0x5f8] sm:$0xff] }
 0x109   : > { %1429 = vmatprep.mubr.f32.mxu1 %v11160_v43  ;;  %1310 = vmatprep.subr.mxu0 %v8566_v45  ;;  %v8684_v45 = vld [vmem:[%s16089_s3 + $0x878] sm:$0xff] }
 0x10a   : > { %1371 = vmatprep.subr.mxu1 %v8646_v47  ;;  %1311 = vmatpush1.msra.mxu0 %v8565_v48  ;;  %v8603_v47 = vld [vmem:[%s16089_s3 + $0x5f0] sm:$0xff] }
 0x10b   : > { %1372 = vmatpush1.msra.mxu1 %v8645_v49  ;;  %1312 = vmatprep.subr.mxu0 %v8564_v50  ;;  %v8683_v48 = vld [vmem:[%s16089_s3 + $0x870] sm:$0xff]  ;;  %v8602_v49 = vld [vmem:[%s16089_s3 + $0x5e8] sm:$0xff] }
 0x10c   : > { %1373 = vmatprep.subr.mxu1 %v8644_v51  ;;  %1313 = vmatpush1.msra.mxu0 %v8563_v52  ;;  %v8682_v50 = vld [vmem:[%s16089_s3 + $0x868] sm:$0xff]  ;;  %v8601_v51 = vld [vmem:[%s16089_s3 + $0x5e0] sm:$0xff] }
 0x10d   : > { %1374 = vmatpush1.msra.mxu1 %v8643_v53  ;;  %1314 = vmatprep.subr.mxu0 %v8562_v54  ;;  %v8681_v52 = vld [vmem:[%s16089_s3 + $0x860] sm:$0xff]  ;;  %v8600_v53 = vld [vmem:[%s16089_s3 + $0x5d8] sm:$0xff] }
 0x10e   : > { %1375 = vmatprep.subr.mxu1 %v8642_v55  ;;  %1315 = vmatpush1.msra.mxu0 %v8561_v56  ;;  %v8680_v54 = vld [vmem:[%s16089_s3 + $0x858] sm:$0xff]  ;;  %v8599_v55 = vld [vmem:[%s16089_s3 + $0x5d0] sm:$0xff] }
 0x10f   : > { %1376 = vmatpush1.msra.mxu1 %v8641_v57  ;;  %1316 = vmatprep.subr.mxu0 %v8560_v58  ;;  %v8679_v56 = vld [vmem:[%s16089_s3 + $0x850] sm:$0xff]  ;;  %v8598_v57 = vld [vmem:[%s16089_s3 + $0x5c8] sm:$0xff] }
 0x110   : > { %1377 = vmatprep.subr.mxu1 %v8640_v61  ;;  %1317 = vmatpush1.msra.mxu0 %v8559_v62  ;;  %v8678_v58 = vld [vmem:[%s16089_s3 + $0x848] sm:$0xff]  ;;  %v8597_v61 = vld [vmem:[%s16089_s3 + $0x5c0] sm:$0xff] }
 0x111   : > { %1378 = vmatpush1.msra.mxu1 %v8639_v2  ;;  %1318 = vmatprep.subr.mxu0 %v8558_v3  ;;  %v8677_v62 = vld [vmem:[%s16089_s3 + $0x840] sm:$0xff]  ;;  %v8596_v2 = vld [vmem:[%s16089_s3 + $0x5b8] sm:$0xff] }
 0x112   : > { %1379 = vmatprep.subr.mxu1 %v8638_v4  ;;  %1319 = vmatpush1.msra.mxu0 %v8557_v5  ;;  %v8676_v3 = vld [vmem:[%s16089_s3 + $0x838] sm:$0xff]  ;;  %v8595_v4 = vld [vmem:[%s16089_s3 + $0x5b0] sm:$0xff] }
 0x113   : > { %1380 = vmatpush1.msra.mxu1 %v8637_v6  ;;  %1320 = vmatprep.subr.mxu0 %v8620_v7  ;;  %v8675_v5 = vld [vmem:[%s16089_s3 + $0x830] sm:$0xff]  ;;  %v8594_v6 = vld [vmem:[%s16089_s3 + $0x5a8] sm:$0xff] }
 0x114   : > { %1381 = vmatprep.subr.mxu1 %v8636_v8  ;;  %1321 = vmatpush2.msra.mxu0 %v8619_v9  ;;  %v8674_v7 = vld [vmem:[%s16089_s3 + $0x828] sm:$0xff]  ;;  %v8593_v8 = vld [vmem:[%s16089_s3 + $0x5a0] sm:$0xff] }
 0x115   : > { %1382 = vmatpush1.msra.mxu1 %v8635_v10  ;;  %1322 = vmatprep.subr.mxu0 %v8618_v11  ;;  %v8673_v9 = vld [vmem:[%s16089_s3 + $0x820] sm:$0xff]  ;;  %v8592_v10 = vld [vmem:[%s16089_s3 + $0x598] sm:$0xff] }
 0x116   : > { %1383 = vmatprep.subr.mxu1 %v8634_v12  ;;  %1323 = vmatpush2.msra.mxu0 %v8617_v13  ;;  %v8672_v11 = vld [vmem:[%s16089_s3 + $0x818] sm:$0xff]  ;;  %v8591_v12 = vld [vmem:[%s16089_s3 + $0x590] sm:$0xff] }
 0x117   : > { %1384 = vmatpush1.msra.mxu1 %v8633_v14  ;;  %1324 = vmatprep.subr.mxu0 %v8616_v15  ;;  %v8671_v13 = vld [vmem:[%s16089_s3 + $0x810] sm:$0xff]  ;;  %v8590_v14 = vld [vmem:[%s16089_s3 + $0x588] sm:$0xff] }
 0x118   : > { %1385 = vmatprep.subr.mxu1 %v8632_v16  ;;  %1325 = vmatpush2.msra.mxu0 %v8615_v17  ;;  %v8670_v15 = vld [vmem:[%s16089_s3 + $0x808] sm:$0xff]  ;;  %v8589_v16 = vld [vmem:[%s16089_s3 + $0x580] sm:$0xff] }
 0x119   : > { %1386 = vmatpush1.msra.mxu1 %v8631_v18  ;;  %1326 = vmatprep.subr.mxu0 %v8614_v19  ;;  %v8669_v17 = vld [vmem:[%s16089_s3 + $0x800] sm:$0xff]  ;;  %v8668_v18 = vld [vmem:[%s16089_s3 + $0x7f8] sm:$0xff] }
 0x11a   : > { %1387 = vmatprep.subr.mxu1 %v8630_v20  ;;  %1327 = vmatpush2.msra.mxu0 %v8613_v21  ;;  %v8798_v19 = vld [vmem:[%s16089_s3 + $0xbf8] sm:$0xff]  ;;  %v8667_v20 = vld [vmem:[%s16089_s3 + $0x7f0] sm:$0xff] }
 0x11b   : > { %1388 = vmatpush1.msra.mxu1 %v8629_v22  ;;  %1328 = vmatprep.subr.mxu0 %v8612_v23  ;;  %v8797_v21 = vld [vmem:[%s16089_s3 + $0xbf0] sm:$0xff]  ;;  %v8666_v22 = vld [vmem:[%s16089_s3 + $0x7e8] sm:$0xff] }
 0x11c   : > { %1389 = vmatprep.subr.mxu1 %v8628_v24  ;;  %1329 = vmatpush2.msra.mxu0 %v8611_v25  ;;  %v8796_v23 = vld [vmem:[%s16089_s3 + $0xbe8] sm:$0xff]  ;;  %v8665_v24 = vld [vmem:[%s16089_s3 + $0x7e0] sm:$0xff] }
 0x11d   : > { %1390 = vmatpush1.msra.mxu1 %v8627_v26  ;;  %1330 = vmatprep.subr.mxu0 %v8610_v27  ;;  %v8795_v25 = vld [vmem:[%s16089_s3 + $0xbe0] sm:$0xff]  ;;  %v8664_v26 = vld [vmem:[%s16089_s3 + $0x7d8] sm:$0xff] }
 0x11e   : > { %1391 = vmatprep.subr.mxu1 %v8626_v29  ;;  %1331 = vmatpush2.msra.mxu0 %v8609_v30  ;;  %v8794_v27 = vld [vmem:[%s16089_s3 + $0xbd8] sm:$0xff]  ;;  %v8663_v29 = vld [vmem:[%s16089_s3 + $0x7d0] sm:$0xff] }
 0x11f   : > { %1392 = vmatpush1.msra.mxu1 %v8625_v31  ;;  %1332 = vmatprep.subr.mxu0 %v8608_v32  ;;  %v8793_v30 = vld [vmem:[%s16089_s3 + $0xbd0] sm:$0xff]  ;;  %v8662_v31 = vld [vmem:[%s16089_s3 + $0x7c8] sm:$0xff] }
 0x120   : > { %1393 = vmatprep.subr.mxu1 %v8624_v33  ;;  %1333 = vmatpush2.msra.mxu0 %v8607_v34  ;;  %v8792_v32 = vld [vmem:[%s16089_s3 + $0xbc8] sm:$0xff]  ;;  %v8661_v33 = vld [vmem:[%s16089_s3 + $0x7c0] sm:$0xff] }
 0x121   : > { %1394 = vmatpush1.msra.mxu1 %v8623_v35  ;;  %1334 = vmatprep.subr.mxu0 %v8606_v36  ;;  %v8791_v34 = vld [vmem:[%s16089_s3 + $0xbc0] sm:$0xff]  ;;  %v8660_v35 = vld [vmem:[%s16089_s3 + $0x7b8] sm:$0xff] }
 0x122   : > { %1395 = vmatprep.subr.mxu1 %v8622_v37  ;;  %1335 = vmatpush2.msra.mxu0 %v8605_v39  ;;  %v8790_v36 = vld [vmem:[%s16089_s3 + $0xbb8] sm:$0xff]  ;;  %v8659_v37 = vld [vmem:[%s16089_s3 + $0x7b0] sm:$0xff] }
 0x123   : > { %1396 = vmatpush1.msra.mxu1 %v8621_v41  ;;  %1336 = vmatprep.subr.mxu0 %v8604_v44  ;;  %v8789_v39 = vld [vmem:[%s16089_s3 + $0xbb0] sm:$0xff]  ;;  %v8658_v41 = vld [vmem:[%s16089_s3 + $0x7a8] sm:$0xff] }
 0x124   : > { %1397 = vmatprep.subr.mxu1 %v8684_v45  ;;  %1337 = vmatpush2.msra.mxu0 %v8603_v47  ;;  %v8788_v44 = vld [vmem:[%s16089_s3 + $0xba8] sm:$0xff]  ;;  %v8657_v45 = vld [vmem:[%s16089_s3 + $0x7a0] sm:$0xff] }
 0x125   : > { %1398 = vmatpush2.msra.mxu1 %v8683_v48  ;;  %1338 = vmatprep.subr.mxu0 %v8602_v49  ;;  %v8787_v47 = vld [vmem:[%s16089_s3 + $0xba0] sm:$0xff]  ;;  %v8656_v48 = vld [vmem:[%s16089_s3 + $0x798] sm:$0xff] }
 0x126   : > { %1399 = vmatprep.subr.mxu1 %v8682_v50  ;;  %1339 = vmatpush2.msra.mxu0 %v8601_v51  ;;  %v8786_v49 = vld [vmem:[%s16089_s3 + $0xb98] sm:$0xff]  ;;  %v8655_v50 = vld [vmem:[%s16089_s3 + $0x790] sm:$0xff] }
 0x127   : > { %1400 = vmatpush2.msra.mxu1 %v8681_v52  ;;  %1340 = vmatprep.subr.mxu0 %v8600_v53  ;;  %v8785_v51 = vld [vmem:[%s16089_s3 + $0xb90] sm:$0xff]  ;;  %v8654_v52 = vld [vmem:[%s16089_s3 + $0x788] sm:$0xff] }
 0x128   : > { %1401 = vmatprep.subr.mxu1 %v8680_v54  ;;  %1341 = vmatpush2.msra.mxu0 %v8599_v55  ;;  %v8784_v53 = vld [vmem:[%s16089_s3 + $0xb88] sm:$0xff]  ;;  %v8653_v54 = vld [vmem:[%s16089_s3 + $0x780] sm:$0xff] }
 0x129   : > { %1402 = vmatpush2.msra.mxu1 %v8679_v56  ;;  %1342 = vmatprep.subr.mxu0 %v8598_v57  ;;  %v8783_v55 = vld [vmem:[%s16089_s3 + $0xb80] sm:$0xff]  ;;  %v8700_v56 = vld [vmem:[%s16089_s3 + $0x8f8] sm:$0xff] }
 0x12a   : > { %1403 = vmatprep.subr.mxu1 %v8678_v58  ;;  %1343 = vmatpush2.msra.mxu0 %v8597_v61  ;;  %v8782_v57 = vld [vmem:[%s16089_s3 + $0xb78] sm:$0xff]  ;;  %v8699_v58 = vld [vmem:[%s16089_s3 + $0x8f0] sm:$0xff] }
 0x12b   : > { %1404 = vmatpush2.msra.mxu1 %v8677_v62  ;;  %1344 = vmatprep.subr.mxu0 %v8596_v2  ;;  %v8781_v61 = vld [vmem:[%s16089_s3 + $0xb70] sm:$0xff]  ;;  %v8698_v62 = vld [vmem:[%s16089_s3 + $0x8e8] sm:$0xff] }
 0x12c   : > { %1405 = vmatprep.subr.mxu1 %v8676_v3  ;;  %1345 = vmatpush2.msra.mxu0 %v8595_v4  ;;  %v8780_v2 = vld [vmem:[%s16089_s3 + $0xb68] sm:$0xff]  ;;  %v8697_v3 = vld [vmem:[%s16089_s3 + $0x8e0] sm:$0xff] }
 0x12d   : > { %1406 = vmatpush2.msra.mxu1 %v8675_v5  ;;  %1346 = vmatprep.subr.mxu0 %v8594_v6  ;;  %v8779_v4 = vld [vmem:[%s16089_s3 + $0xb60] sm:$0xff]  ;;  %v8696_v5 = vld [vmem:[%s16089_s3 + $0x8d8] sm:$0xff] }
 0x12e   : > { %1407 = vmatprep.subr.mxu1 %v8674_v7  ;;  %1347 = vmatpush2.msra.mxu0 %v8593_v8  ;;  %v8778_v6 = vld [vmem:[%s16089_s3 + $0xb58] sm:$0xff]  ;;  %v8695_v7 = vld [vmem:[%s16089_s3 + $0x8d0] sm:$0xff] }
 0x12f   : > { %1408 = vmatpush2.msra.mxu1 %v8673_v9  ;;  %1348 = vmatprep.subr.mxu0 %v8592_v10  ;;  %v8777_v8 = vld [vmem:[%s16089_s3 + $0xb50] sm:$0xff]  ;;  %v8694_v9 = vld [vmem:[%s16089_s3 + $0x8c8] sm:$0xff] }
 0x130   : > { %1409 = vmatprep.subr.mxu1 %v8672_v11  ;;  %1349 = vmatpush2.msra.mxu0 %v8591_v12  ;;  %v8776_v10 = vld [vmem:[%s16089_s3 + $0xb48] sm:$0xff]  ;;  %v8693_v11 = vld [vmem:[%s16089_s3 + $0x8c0] sm:$0xff] }
 0x131   : > { %1410 = vmatpush2.msra.mxu1 %v8671_v13  ;;  %1350 = vmatprep.subr.mxu0 %v8590_v14  ;;  %v8775_v12 = vld [vmem:[%s16089_s3 + $0xb40] sm:$0xff]  ;;  %v8692_v13 = vld [vmem:[%s16089_s3 + $0x8b8] sm:$0xff] }
 0x132   : > { %1411 = vmatprep.subr.mxu1 %v8670_v15  ;;  %1351 = vmatpush2.msra.mxu0 %v8589_v16  ;;  %v8774_v14 = vld [vmem:[%s16089_s3 + $0xb38] sm:$0xff]  ;;  %v8691_v15 = vld [vmem:[%s16089_s3 + $0x8b0] sm:$0xff] }
 0x133   : > { %1412 = vmatpush2.msra.mxu1 %v8669_v17  ;;  %1353 = vmatmul.mubr.f32.vlgmr.msra.gmra.mxu0 %v11164_v46  ;;  %v8773_v16 = vld [vmem:[%s16089_s3 + $0xb30] sm:$0xff]  ;;  %v8690_v17 = vld [vmem:[%s16089_s3 + $0x8a8] sm:$0xff] }
 0x134   : > { %1413 = vmatprep.subr.mxu1 %v8668_v18  ;;  %1741 = vmatprep.subr.mxu0 %v8798_v19  ;;  %v8772_v18 = vld [vmem:[%s16089_s3 + $0xb28] sm:$0xff]  ;;  %v8689_v19 = vld [vmem:[%s16089_s3 + $0x8a0] sm:$0xff] }
 0x135   : > { %1358 = vmatprep.mubr.f32.mxu0 %v11194_v60  ;;  %1414 = vmatpush2.msra.mxu1 %v8667_v20  ;;  %v8771_v20 = vld [vmem:[%s16089_s3 + $0xb20] sm:$0xff] }
 0x136   : > { %1742 = vmatpush1.msra.mxu0 %v8797_v21  ;;  %1415 = vmatprep.subr.mxu1 %v8666_v22  ;;  %v8688_v21 = vld [vmem:[%s16089_s3 + $0x898] sm:$0xff] }
 0x137   : > { %1743 = vmatprep.subr.mxu0 %v8796_v23  ;;  %1416 = vmatpush2.msra.mxu1 %v8665_v24  ;;  %v8770_v22 = vld [vmem:[%s16089_s3 + $0xb18] sm:$0xff]  ;;  %v8687_v23 = vld [vmem:[%s16089_s3 + $0x890] sm:$0xff] }
 0x138   : > { %1744 = vmatpush1.msra.mxu0 %v8795_v25  ;;  %1417 = vmatprep.subr.mxu1 %v8664_v26  ;;  %v8769_v24 = vld [vmem:[%s16089_s3 + $0xb10] sm:$0xff]  ;;  %v8686_v25 = vld [vmem:[%s16089_s3 + $0x888] sm:$0xff] }
 0x139   : > { %1359 = vmatmul.mubr.f32.gmra.mxu0 %v11202_v63  ;;  %1745 = vmatprep.subr.mxu0 %v8794_v27  ;;  %v8768_v26 = vld [vmem:[%s16089_s3 + $0xb08] sm:$0xff]  ;;  %v8685_v27 = vld [vmem:[%s16089_s3 + $0x880] sm:$0xff] }
 0x13a   : > { %1418 = vmatpush2.msra.mxu1 %v8663_v29  ;;  %1746 = vmatpush1.msra.mxu0 %v8793_v30  ;;  %v8767_v29 = vld [vmem:[%s16089_s3 + $0xb00] sm:$0xff]  ;;  %v8734_v30 = vld [vmem:[%s16089_s3 + $0x9f8] sm:$0xff] }
 0x13b   : > { %1805 = vmatprep.mubr.f32.mxu0 %v11160_v43  ;;  %1419 = vmatprep.subr.mxu1 %v8662_v31  ;;  %v8830_v31 = vld [vmem:[%s16089_s3 + $0xcf8] sm:$0xff] }
 0x13c   : > { %1747 = vmatprep.subr.mxu0 %v8792_v32  ;;  %1420 = vmatpush2.msra.mxu1 %v8661_v33  ;;  %v8733_v32 = vld [vmem:[%s16089_s3 + $0x9f0] sm:$0xff] }
 0x13d   : > { %1748 = vmatpush1.msra.mxu0 %v8791_v34  ;;  %1421 = vmatprep.subr.mxu1 %v8660_v35  ;;  %v8829_v33 = vld [vmem:[%s16089_s3 + $0xcf0] sm:$0xff]  ;;  %v8732_v34 = vld [vmem:[%s16089_s3 + $0x9e8] sm:$0xff] }
 0x13e   : > { %1749 = vmatprep.subr.mxu0 %v8790_v36  ;;  %1422 = vmatpush2.msra.mxu1 %v8659_v37  ;;  %v8828_v35 = vld [vmem:[%s16089_s3 + $0xce8] sm:$0xff]  ;;  %v8731_v36 = vld [vmem:[%s16089_s3 + $0x9e0] sm:$0xff] }
 0x13f   : > { %1750 = vmatpush1.msra.mxu0 %v8789_v39  ;;  %1423 = vmatprep.subr.mxu1 %v8658_v41  ;;  %v8827_v37 = vld [vmem:[%s16089_s3 + $0xce0] sm:$0xff]  ;;  %v8730_v39 = vld [vmem:[%s16089_s3 + $0x9d8] sm:$0xff] }
 0x140   : > { %1751 = vmatprep.subr.mxu0 %v8788_v44  ;;  %1424 = vmatpush2.msra.mxu1 %v8657_v45  ;;  %v8826_v41 = vld [vmem:[%s16089_s3 + $0xcd8] sm:$0xff]  ;;  %v8729_v44 = vld [vmem:[%s16089_s3 + $0x9d0] sm:$0xff] }
 0x141   : > { %1752 = vmatpush1.msra.mxu0 %v8787_v47  ;;  %1425 = vmatprep.subr.mxu1 %v8656_v48  ;;  %v8825_v45 = vld [vmem:[%s16089_s3 + $0xcd0] sm:$0xff]  ;;  %v8728_v47 = vld [vmem:[%s16089_s3 + $0x9c8] sm:$0xff] }
 0x142   : > { %1753 = vmatprep.subr.mxu0 %v8786_v49  ;;  %1426 = vmatpush2.msra.mxu1 %v8655_v50  ;;  %v8824_v48 = vld [vmem:[%s16089_s3 + $0xcc8] sm:$0xff]  ;;  %v8727_v49 = vld [vmem:[%s16089_s3 + $0x9c0] sm:$0xff] }
 0x143   : > { %1754 = vmatpush1.msra.mxu0 %v8785_v51  ;;  %1427 = vmatprep.subr.mxu1 %v8654_v52  ;;  %v8823_v50 = vld [vmem:[%s16089_s3 + $0xcc0] sm:$0xff]  ;;  %v8726_v51 = vld [vmem:[%s16089_s3 + $0x9b8] sm:$0xff] }
 0x144   : > { %1755 = vmatprep.subr.mxu0 %v8784_v53  ;;  %1428 = vmatpush2.msra.mxu1 %v8653_v54  ;;  %v8822_v52 = vld [vmem:[%s16089_s3 + $0xcb8] sm:$0xff]  ;;  %v8725_v53 = vld [vmem:[%s16089_s3 + $0x9b0] sm:$0xff] }
 0x145   : > { %1756 = vmatpush1.msra.mxu0 %v8783_v55  ;;  %1430 = vmatmul.mubr.f32.vlgmr.msra.gmra.mxu1 %v11156_v40  ;;  %v8821_v54 = vld [vmem:[%s16089_s3 + $0xcb0] sm:$0xff]  ;;  %v8724_v55 = vld [vmem:[%s16089_s3 + $0x9a8] sm:$0xff] }
 0x146   : > { %1458 = vmatprep.subr.mxu1 %v8700_v56  ;;  %1757 = vmatprep.subr.mxu0 %v8782_v57  ;;  %v8820_v56 = vld [vmem:[%s16089_s3 + $0xca8] sm:$0xff]  ;;  %v8723_v57 = vld [vmem:[%s16089_s3 + $0x9a0] sm:$0xff] }
 0x147   : > { %1435 = vmatprep.mubr.f32.mxu1 %v11192_v59  ;;  %1459 = vmatpush1.msra.mxu1 %v8699_v58  ;;  %v8819_v58 = vld [vmem:[%s16089_s3 + $0xca0] sm:$0xff] }
 0x148   : > { %1758 = vmatpush1.msra.mxu0 %v8781_v61  ;;  %1460 = vmatprep.subr.mxu1 %v8698_v62  ;;  %v8722_v61 = vld [vmem:[%s16089_s3 + $0x998] sm:$0xff] }
 0x149   : > { %1759 = vmatprep.subr.mxu0 %v8780_v2  ;;  %1461 = vmatpush1.msra.mxu1 %v8697_v3  ;;  %v8818_v62 = vld [vmem:[%s16089_s3 + $0xc98] sm:$0xff]  ;;  %v8721_v2 = vld [vmem:[%s16089_s3 + $0x990] sm:$0xff] }
 0x14a   : > { %1760 = vmatpush1.msra.mxu0 %v8779_v4  ;;  %1436 = vmatmul.mubr.f32.gmra.mxu1 %v11204_v1  ;;  %v8817_v3 = vld [vmem:[%s16089_s3 + $0xc90] sm:$0xff]  ;;  %v8720_v4 = vld [vmem:[%s16089_s3 + $0x988] sm:$0xff] }
 0x14b   : > { %1462 = vmatprep.subr.mxu1 %v8696_v5  ;;  %1761 = vmatprep.subr.mxu0 %v8778_v6  ;;  %v8816_v5 = vld [vmem:[%s16089_s3 + $0xc88] sm:$0xff]  ;;  %v8719_v6 = vld [vmem:[%s16089_s3 + $0x980] sm:$0xff] }
 0x14c   : > { %1463 = vmatpush1.msra.mxu1 %v8695_v7  ;;  %1762 = vmatpush1.msra.mxu0 %v8777_v8  ;;  %v8815_v7 = vld [vmem:[%s16089_s3 + $0xc80] sm:$0xff]  ;;  %v8718_v8 = vld [vmem:[%s16089_s3 + $0x978] sm:$0xff] }
 0x14d   : > { %1464 = vmatprep.subr.mxu1 %v8694_v9  ;;  %1763 = vmatprep.subr.mxu0 %v8776_v10  ;;  %v8814_v9 = vld [vmem:[%s16089_s3 + $0xc78] sm:$0xff]  ;;  %v8717_v10 = vld [vmem:[%s16089_s3 + $0x970] sm:$0xff] }
 0x14e   : > { %1465 = vmatpush1.msra.mxu1 %v8693_v11  ;;  %1764 = vmatpush1.msra.mxu0 %v8775_v12  ;;  %v8813_v11 = vld [vmem:[%s16089_s3 + $0xc70] sm:$0xff]  ;;  %v8716_v12 = vld [vmem:[%s16089_s3 + $0x968] sm:$0xff] }
 0x14f   : > { %1466 = vmatprep.subr.mxu1 %v8692_v13  ;;  %1765 = vmatprep.subr.mxu0 %v8774_v14  ;;  %v8812_v13 = vld [vmem:[%s16089_s3 + $0xc68] sm:$0xff]  ;;  %v8715_v14 = vld [vmem:[%s16089_s3 + $0x960] sm:$0xff] }
 0x150   : > { %1467 = vmatpush1.msra.mxu1 %v8691_v15  ;;  %1766 = vmatpush1.msra.mxu0 %v8773_v16  ;;  %v8811_v15 = vld [vmem:[%s16089_s3 + $0xc60] sm:$0xff]  ;;  %v8714_v16 = vld [vmem:[%s16089_s3 + $0x958] sm:$0xff] }
 0x151   : > { %1468 = vmatprep.subr.mxu1 %v8690_v17  ;;  %1767 = vmatprep.subr.mxu0 %v8772_v18  ;;  %v8810_v17 = vld [vmem:[%s16089_s3 + $0xc58] sm:$0xff]  ;;  %v8713_v18 = vld [vmem:[%s16089_s3 + $0x950] sm:$0xff] }
 0x152   : > { %1469 = vmatpush1.msra.mxu1 %v8689_v19  ;;  %1768 = vmatpush1.msra.mxu0 %v8771_v20  ;;  %v8809_v19 = vld [vmem:[%s16089_s3 + $0xc50] sm:$0xff]  ;;  %v8712_v20 = vld [vmem:[%s16089_s3 + $0x948] sm:$0xff] }
 0x153   : > { %1470 = vmatprep.subr.mxu1 %v8688_v21  ;;  %1769 = vmatprep.subr.mxu0 %v8770_v22  ;;  %v8808_v21 = vld [vmem:[%s16089_s3 + $0xc48] sm:$0xff]  ;;  %v8711_v22 = vld [vmem:[%s16089_s3 + $0x940] sm:$0xff] }
 0x154   : > { %1471 = vmatpush1.msra.mxu1 %v8687_v23  ;;  %1770 = vmatpush1.msra.mxu0 %v8769_v24  ;;  %v8807_v23 = vld [vmem:[%s16089_s3 + $0xc40] sm:$0xff]  ;;  %v8710_v24 = vld [vmem:[%s16089_s3 + $0x938] sm:$0xff] }
 0x155   : > { %1472 = vmatprep.subr.mxu1 %v8686_v25  ;;  %1771 = vmatprep.subr.mxu0 %v8768_v26  ;;  %v8806_v25 = vld [vmem:[%s16089_s3 + $0xc38] sm:$0xff]  ;;  %v8709_v26 = vld [vmem:[%s16089_s3 + $0x930] sm:$0xff] }
 0x156   : > { %1473 = vmatpush1.msra.mxu1 %v8685_v27  ;;  %1506 = vmatprep.mubr.f32.mxu1 %v10575_v0  ;;  %v8805_v27 = vld [vmem:[%s16089_s3 + $0xc30] sm:$0xff] }
 0x157   : > { %1772 = vmatpush1.msra.mxu0 %v8767_v29  ;;  %8701 = vmatmul.mubr.msk.f32.vlgmr.msra.gmra.mxu1 %vm905_vm2, %v11281_v28  ;;  %v8708_v29 = vld [vmem:[%s16089_s3 + $0x928] sm:$0xff] }
 0x158   : > { %1664 = vmatprep.subr.mxu1 %v8734_v30  ;;  %1773 = vmatprep.subr.mxu0 %v8830_v31  ;;  %v8804_v30 = vld [vmem:[%s16089_s3 + $0xc28] sm:$0xff]  ;;  %v8707_v31 = vld [vmem:[%s16089_s3 + $0x920] sm:$0xff] }
 0x159   : > { %1665 = vmatpush1.msra.mxu1 %v8733_v32  ;;  %1774 = vmatpush2.msra.mxu0 %v8829_v33  ;;  %v8803_v32 = vld [vmem:[%s16089_s3 + $0xc20] sm:$0xff]  ;;  %v8706_v33 = vld [vmem:[%s16089_s3 + $0x918] sm:$0xff] }
 0x15a   : > { %1666 = vmatprep.subr.mxu1 %v8732_v34  ;;  %1775 = vmatprep.subr.mxu0 %v8828_v35  ;;  %v8802_v34 = vld [vmem:[%s16089_s3 + $0xc18] sm:$0xff]  ;;  %v8705_v35 = vld [vmem:[%s16089_s3 + $0x910] sm:$0xff] }
 0x15b   : > { %1512 = vmatprep.mubr.f32.mxu1 %v10575_v0  ;;  %1667 = vmatpush1.msra.mxu1 %v8731_v36  ;;  %v8801_v36 = vld [vmem:[%s16089_s3 + $0xc10] sm:$0xff] }
 0x15c   : > { %1776 = vmatpush2.msra.mxu0 %v8827_v37  ;;  %8702 = vmatmul.mubr.msk.f32.gmra.mxu1 %vm905_vm2, %v11311_v38  ;;  %v8704_v37 = vld [vmem:[%s16089_s3 + $0x908] sm:$0xff] }
 0x15d   : > { %1668 = vmatprep.subr.mxu1 %v8730_v39  ;;  %1777 = vmatprep.subr.mxu0 %v8826_v41  ;;  %v8800_v39 = vld [vmem:[%s16089_s3 + $0xc08] sm:$0xff]  ;;  %v8703_v41 = vld [vmem:[%s16089_s3 + $0x900] sm:$0xff] }
 0x15e   : > { %1669 = vmatpush1.msra.mxu1 %v8729_v44  ;;  %1728 = vmatprep.mubr.f32.mxu1 %v11158_v42  ;;  %v8799_v44 = vld [vmem:[%s16089_s3 + $0xc00] sm:$0xff] }
 0x15f   : > { %1778 = vmatpush2.msra.mxu0 %v8825_v45  ;;  %1670 = vmatprep.subr.mxu1 %v8728_v47  ;;  %v8766_v45 = vld [vmem:[%s16089_s3 + $0xaf8] sm:$0xff] }
 0x160   : > { %1779 = vmatprep.subr.mxu0 %v8824_v48  ;;  %1671 = vmatpush1.msra.mxu1 %v8727_v49  ;;  %v8880_v47 = vld [vmem:[%s16089_s3 + $0xe78] sm:$0xff]  ;;  %v8765_v48 = vld [vmem:[%s16089_s3 + $0xaf0] sm:$0xff] }
 0x161   : > { %1780 = vmatpush2.msra.mxu0 %v8823_v50  ;;  %1672 = vmatprep.subr.mxu1 %v8726_v51  ;;  %v8879_v49 = vld [vmem:[%s16089_s3 + $0xe70] sm:$0xff]  ;;  %v8764_v50 = vld [vmem:[%s16089_s3 + $0xae8] sm:$0xff] }
 0x162   : > { %1781 = vmatprep.subr.mxu0 %v8822_v52  ;;  %1673 = vmatpush1.msra.mxu1 %v8725_v53  ;;  %v8878_v51 = vld [vmem:[%s16089_s3 + $0xe68] sm:$0xff]  ;;  %v8763_v52 = vld [vmem:[%s16089_s3 + $0xae0] sm:$0xff] }
 0x163   : > { %1782 = vmatpush2.msra.mxu0 %v8821_v54  ;;  %1674 = vmatprep.subr.mxu1 %v8724_v55  ;;  %v8877_v53 = vld [vmem:[%s16089_s3 + $0xe60] sm:$0xff]  ;;  %v8762_v54 = vld [vmem:[%s16089_s3 + $0xad8] sm:$0xff] }
 0x164   : > { %1783 = vmatprep.subr.mxu0 %v8820_v56  ;;  %1675 = vmatpush1.msra.mxu1 %v8723_v57  ;;  %v8876_v55 = vld [vmem:[%s16089_s3 + $0xe58] sm:$0xff]  ;;  %v8761_v56 = vld [vmem:[%s16089_s3 + $0xad0] sm:$0xff] }
 0x165   : > { %1784 = vmatpush2.msra.mxu0 %v8819_v58  ;;  %1676 = vmatprep.subr.mxu1 %v8722_v61  ;;  %v8875_v57 = vld [vmem:[%s16089_s3 + $0xe50] sm:$0xff]  ;;  %v8760_v58 = vld [vmem:[%s16089_s3 + $0xac8] sm:$0xff] }
 0x166   : > { %1785 = vmatprep.subr.mxu0 %v8818_v62  ;;  %1677 = vmatpush1.msra.mxu1 %v8721_v2  ;;  %v8874_v61 = vld [vmem:[%s16089_s3 + $0xe48] sm:$0xff]  ;;  %v8759_v62 = vld [vmem:[%s16089_s3 + $0xac0] sm:$0xff] }
 0x167   : > { %1786 = vmatpush2.msra.mxu0 %v8817_v3  ;;  %1678 = vmatprep.subr.mxu1 %v8720_v4  ;;  %v8873_v2 = vld [vmem:[%s16089_s3 + $0xe40] sm:$0xff]  ;;  %v8758_v3 = vld [vmem:[%s16089_s3 + $0xab8] sm:$0xff] }
 0x168   : > { %1787 = vmatprep.subr.mxu0 %v8816_v5  ;;  %1679 = vmatpush1.msra.mxu1 %v8719_v6  ;;  %v8872_v4 = vld [vmem:[%s16089_s3 + $0xe38] sm:$0xff]  ;;  %v8757_v5 = vld [vmem:[%s16089_s3 + $0xab0] sm:$0xff] }
 0x169   : > { %1788 = vmatpush2.msra.mxu0 %v8815_v7  ;;  %1680 = vmatprep.subr.mxu1 %v8718_v8  ;;  %v8871_v6 = vld [vmem:[%s16089_s3 + $0xe30] sm:$0xff]  ;;  %v8870_v7 = vld [vmem:[%s16089_s3 + $0xe28] sm:$0xff]  ;;  %v8755_v8 = vld [vmem:[%s16089_s3 + $0xaa0] sm:$0xff] }
 0x16a   : > { %1789 = vmatprep.subr.mxu0 %v8814_v9  ;;  %1681 = vmatpush1.msra.mxu1 %v8717_v10  ;;  %v8869_v9 = vld [vmem:[%s16089_s3 + $0xe20] sm:$0xff]  ;;  %v8754_v10 = vld [vmem:[%s16089_s3 + $0xa98] sm:$0xff] }
 0x16b   : > { %1790 = vmatpush2.msra.mxu0 %v8813_v11  ;;  %1682 = vmatprep.subr.mxu1 %v8716_v12  ;;  %v8868_v11 = vld [vmem:[%s16089_s3 + $0xe18] sm:$0xff]  ;;  %v8753_v12 = vld [vmem:[%s16089_s3 + $0xa90] sm:$0xff] }
 0x16c   : > { %1791 = vmatprep.subr.mxu0 %v8812_v13  ;;  %1683 = vmatpush1.msra.mxu1 %v8715_v14  ;;  %v8867_v13 = vld [vmem:[%s16089_s3 + $0xe10] sm:$0xff]  ;;  %v8752_v14 = vld [vmem:[%s16089_s3 + $0xa88] sm:$0xff] }
 0x16d   : > { %1792 = vmatpush2.msra.mxu0 %v8811_v15  ;;  %1684 = vmatprep.subr.mxu1 %v8714_v16  ;;  %v8866_v15 = vld [vmem:[%s16089_s3 + $0xe08] sm:$0xff]  ;;  %v8751_v16 = vld [vmem:[%s16089_s3 + $0xa80] sm:$0xff] }
 0x16e   : > { %1793 = vmatprep.subr.mxu0 %v8810_v17  ;;  %1685 = vmatpush1.msra.mxu1 %v8713_v18  ;;  %v8865_v17 = vld [vmem:[%s16089_s3 + $0xe00] sm:$0xff]  ;;  %v8750_v18 = vld [vmem:[%s16089_s3 + $0xa78] sm:$0xff] }
 0x16f   : > { %1794 = vmatpush2.msra.mxu0 %v8809_v19  ;;  %1686 = vmatprep.subr.mxu1 %v8712_v20  ;;  %v8864_v19 = vld [vmem:[%s16089_s3 + $0xdf8] sm:$0xff]  ;;  %v8749_v20 = vld [vmem:[%s16089_s3 + $0xa70] sm:$0xff] }
 0x170   : > { %1795 = vmatprep.subr.mxu0 %v8808_v21  ;;  %1687 = vmatpush1.msra.mxu1 %v8711_v22  ;;  %v8863_v21 = vld [vmem:[%s16089_s3 + $0xdf0] sm:$0xff]  ;;  %v8748_v22 = vld [vmem:[%s16089_s3 + $0xa68] sm:$0xff] }
 0x171   : > { %1796 = vmatpush2.msra.mxu0 %v8807_v23  ;;  %1688 = vmatprep.subr.mxu1 %v8710_v24  ;;  %v8862_v23 = vld [vmem:[%s16089_s3 + $0xde8] sm:$0xff]  ;;  %v8747_v24 = vld [vmem:[%s16089_s3 + $0xa60] sm:$0xff] }
 0x172   : > { %1797 = vmatprep.subr.mxu0 %v8806_v25  ;;  %1689 = vmatpush1.msra.mxu1 %v8709_v26  ;;  %v8861_v25 = vld [vmem:[%s16089_s3 + $0xde0] sm:$0xff]  ;;  %v8746_v26 = vld [vmem:[%s16089_s3 + $0xa58] sm:$0xff] }
 0x173   : > { %1798 = vmatpush2.msra.mxu0 %v8805_v27  ;;  %1690 = vmatprep.subr.mxu1 %v8708_v29  ;;  %v8860_v27 = vld [vmem:[%s16089_s3 + $0xdd8] sm:$0xff]  ;;  %v8745_v29 = vld [vmem:[%s16089_s3 + $0xa50] sm:$0xff] }
 0x174   : > { %1799 = vmatprep.subr.mxu0 %v8804_v30  ;;  %1691 = vmatpush1.msra.mxu1 %v8707_v31  ;;  %v8859_v30 = vld [vmem:[%s16089_s3 + $0xdd0] sm:$0xff]  ;;  %v8744_v31 = vld [vmem:[%s16089_s3 + $0xa48] sm:$0xff] }
 0x175   : > { %1800 = vmatpush2.msra.mxu0 %v8803_v32  ;;  %1692 = vmatprep.subr.mxu1 %v8706_v33  ;;  %v8858_v32 = vld [vmem:[%s16089_s3 + $0xdc8] sm:$0xff]  ;;  %v8743_v33 = vld [vmem:[%s16089_s3 + $0xa40] sm:$0xff] }
 0x176   : > { %1801 = vmatprep.subr.mxu0 %v8802_v34  ;;  %1693 = vmatpush1.msra.mxu1 %v8705_v35  ;;  %v8857_v34 = vld [vmem:[%s16089_s3 + $0xdc0] sm:$0xff]  ;;  %v8742_v35 = vld [vmem:[%s16089_s3 + $0xa38] sm:$0xff] }
 0x177   : > { %1802 = vmatpush2.msra.mxu0 %v8801_v36  ;;  %1694 = vmatprep.subr.mxu1 %v8704_v37  ;;  %v8856_v36 = vld [vmem:[%s16089_s3 + $0xdb8] sm:$0xff]  ;;  %v8741_v37 = vld [vmem:[%s16089_s3 + $0xa30] sm:$0xff] }
 0x178   : > { %1803 = vmatprep.subr.mxu0 %v8800_v39  ;;  %1695 = vmatpush1.msra.mxu1 %v8703_v41  ;;  %v8855_v39 = vld [vmem:[%s16089_s3 + $0xdb0] sm:$0xff]  ;;  %v8740_v41 = vld [vmem:[%s16089_s3 + $0xa28] sm:$0xff] }
 0x179   : > { %1804 = vmatpush2.msra.mxu0 %v8799_v44  ;;  %1696 = vmatprep.subr.mxu1 %v8766_v45  ;;  %v8854_v44 = vld [vmem:[%s16089_s3 + $0xda8] sm:$0xff]  ;;  %v8739_v45 = vld [vmem:[%s16089_s3 + $0xa20] sm:$0xff] }
 0x17a   : > { %1806 = vmatmul.mubr.f32.vlgmr.msra.gmra.mxu0 %v11156_v40  ;;  %2040 = vmatprep.subr.mxu0 %v8880_v47  ;;  %v8853_v47 = vld [vmem:[%s16089_s3 + $0xda0] sm:$0xff] }
 0x17b   : > { %1697 = vmatpush2.msra.mxu1 %v8765_v48  ;;  %1811 = vmatprep.mubr.f32.mxu0 %v11192_v59  ;;  %v8738_v48 = vld [vmem:[%s16089_s3 + $0xa18] sm:$0xff] }
 0x17c   : > { %2041 = vmatpush1.msra.mxu0 %v8879_v49  ;;  %1698 = vmatprep.subr.mxu1 %v8764_v50  ;;  %v8852_v49 = vld [vmem:[%s16089_s3 + $0xd98] sm:$0xff]  ;;  %v8737_v50 = vld [vmem:[%s16089_s3 + $0xa10] sm:$0xff] }
 0x17d   : > { %2042 = vmatprep.subr.mxu0 %v8878_v51  ;;  %1699 = vmatpush2.msra.mxu1 %v8763_v52  ;;  %v8851_v51 = vld [vmem:[%s16089_s3 + $0xd90] sm:$0xff]  ;;  %v8736_v52 = vld [vmem:[%s16089_s3 + $0xa08] sm:$0xff] }
 0x17e   : > { %2043 = vmatpush1.msra.mxu0 %v8877_v53  ;;  %1700 = vmatprep.subr.mxu1 %v8762_v54  ;;  %v8850_v53 = vld [vmem:[%s16089_s3 + $0xd88] sm:$0xff]  ;;  %v8735_v54 = vld [vmem:[%s16089_s3 + $0xa00] sm:$0xff] }
 0x17f   : > { %1812 = vmatmul.mubr.f32.gmra.mxu0 %v11204_v1  ;;  %2044 = vmatprep.subr.mxu0 %v8876_v55  ;;  %v8849_v55 = vld [vmem:[%s16089_s3 + $0xd80] sm:$0xff] }
 0x180   : > { %1701 = vmatpush2.msra.mxu1 %v8761_v56  ;;  %2045 = vmatpush1.msra.mxu0 %v8875_v57  ;;  %v8846_v56 = vld [vmem:[%s16089_s3 + $0xd78] sm:$0xff] }
 0x181   : > { %2104 = vmatprep.mubr.f32.mxu0 %v11158_v42  ;;  %1702 = vmatprep.subr.mxu1 %v8760_v58  ;;  %v8756_v42 = vld [vmem:[%s16089_s3 + $0xaa8] sm:$0xff]  ;;  %v8912_v57 = vld [vmem:[%s16089_s3 + $0xf78] sm:$0xff]  ;;  %v8845_v58 = vld [vmem:[%s16089_s3 + $0xd70] sm:$0xff] }
 0x182   : > { %2046 = vmatprep.subr.mxu0 %v8874_v61  ;;  %1703 = vmatpush2.msra.mxu1 %v8759_v62  ;;  %v8911_v61 = vld [vmem:[%s16089_s3 + $0xf70] sm:$0xff]  ;;  %v8844_v62 = vld [vmem:[%s16089_s3 + $0xd68] sm:$0xff] }
 0x183   : > { %2047 = vmatpush1.msra.mxu0 %v8873_v2  ;;  %1704 = vmatprep.subr.mxu1 %v8758_v3  ;;  %v8910_v2 = vld [vmem:[%s16089_s3 + $0xf68] sm:$0xff]  ;;  %v8843_v3 = vld [vmem:[%s16089_s3 + $0xd60] sm:$0xff] }
 0x184   : > { %2048 = vmatprep.subr.mxu0 %v8872_v4  ;;  %1705 = vmatpush2.msra.mxu1 %v8757_v5  ;;  %v8909_v4 = vld [vmem:[%s16089_s3 + $0xf60] sm:$0xff]  ;;  %v8842_v5 = vld [vmem:[%s16089_s3 + $0xd58] sm:$0xff] }
 0x185   : > { %2049 = vmatpush1.msra.mxu0 %v8871_v6  ;;  %1706 = vmatprep.subr.mxu1 %v8756_v42  ;;  %v8908_v6 = vld [vmem:[%s16089_s3 + $0xf58] sm:$0xff]  ;;  %v8841_v42 = vld [vmem:[%s16089_s3 + $0xd50] sm:$0xff] }
 0x186   : > { %2050 = vmatprep.subr.mxu0 %v8870_v7  ;;  %1707 = vmatpush2.msra.mxu1 %v8755_v8  ;;  %v8907_v7 = vld [vmem:[%s16089_s3 + $0xf50] sm:$0xff]  ;;  %v8840_v8 = vld [vmem:[%s16089_s3 + $0xd48] sm:$0xff] }
 0x187   : > { %2051 = vmatpush1.msra.mxu0 %v8869_v9  ;;  %1708 = vmatprep.subr.mxu1 %v8754_v10  ;;  %v8906_v9 = vld [vmem:[%s16089_s3 + $0xf48] sm:$0xff]  ;;  %v8839_v10 = vld [vmem:[%s16089_s3 + $0xd40] sm:$0xff] }
 0x188   : > { %2052 = vmatprep.subr.mxu0 %v8868_v11  ;;  %1709 = vmatpush2.msra.mxu1 %v8753_v12  ;;  %v8905_v11 = vld [vmem:[%s16089_s3 + $0xf40] sm:$0xff]  ;;  %v8838_v12 = vld [vmem:[%s16089_s3 + $0xd38] sm:$0xff] }
 0x189   : > { %2053 = vmatpush1.msra.mxu0 %v8867_v13  ;;  %1710 = vmatprep.subr.mxu1 %v8752_v14  ;;  %v8904_v13 = vld [vmem:[%s16089_s3 + $0xf38] sm:$0xff]  ;;  %v8837_v14 = vld [vmem:[%s16089_s3 + $0xd30] sm:$0xff] }
 0x18a   : > { %2054 = vmatprep.subr.mxu0 %v8866_v15  ;;  %1711 = vmatpush2.msra.mxu1 %v8751_v16  ;;  %v8903_v15 = vld [vmem:[%s16089_s3 + $0xf30] sm:$0xff]  ;;  %v8836_v16 = vld [vmem:[%s16089_s3 + $0xd28] sm:$0xff] }
 0x18b   : > { %2055 = vmatpush1.msra.mxu0 %v8865_v17  ;;  %1712 = vmatprep.subr.mxu1 %v8750_v18  ;;  %v8902_v17 = vld [vmem:[%s16089_s3 + $0xf28] sm:$0xff]  ;;  %v8835_v18 = vld [vmem:[%s16089_s3 + $0xd20] sm:$0xff] }
 0x18c   : > { %2056 = vmatprep.subr.mxu0 %v8864_v19  ;;  %1713 = vmatpush2.msra.mxu1 %v8749_v20  ;;  %v8901_v19 = vld [vmem:[%s16089_s3 + $0xf20] sm:$0xff]  ;;  %v8834_v20 = vld [vmem:[%s16089_s3 + $0xd18] sm:$0xff] }
 0x18d   : > { %2057 = vmatpush1.msra.mxu0 %v8863_v21  ;;  %1714 = vmatprep.subr.mxu1 %v8748_v22  ;;  %v8900_v21 = vld [vmem:[%s16089_s3 + $0xf18] sm:$0xff]  ;;  %v8833_v22 = vld [vmem:[%s16089_s3 + $0xd10] sm:$0xff] }
 0x18e   : > { %2058 = vmatprep.subr.mxu0 %v8862_v23  ;;  %1715 = vmatpush2.msra.mxu1 %v8747_v24  ;;  %v8899_v23 = vld [vmem:[%s16089_s3 + $0xf10] sm:$0xff]  ;;  %v8832_v24 = vld [vmem:[%s16089_s3 + $0xd08] sm:$0xff] }
 0x18f   : > { %2059 = vmatpush1.msra.mxu0 %v8861_v25  ;;  %1716 = vmatprep.subr.mxu1 %v8746_v26  ;;  %v8898_v25 = vld [vmem:[%s16089_s3 + $0xf08] sm:$0xff]  ;;  %v8831_v26 = vld [vmem:[%s16089_s3 + $0xd00] sm:$0xff] }
 0x190   : > { %2060 = vmatprep.subr.mxu0 %v8860_v27  ;;  %1717 = vmatpush2.msra.mxu1 %v8745_v29  ;;  %v8897_v27 = vld [vmem:[%s16089_s3 + $0xf00] sm:$0xff]  ;;  %v8896_v29 = vld [vmem:[%s16089_s3 + $0xef8] sm:$0xff] }
 0x191   : > { %2061 = vmatpush1.msra.mxu0 %v8859_v30  ;;  %1718 = vmatprep.subr.mxu1 %v8744_v31  ;;  %v8944_v30 = vld [vmem:[%s16089_s3 + $0x1078] sm:$0xff]  ;;  %v8895_v31 = vld [vmem:[%s16089_s3 + $0xef0] sm:$0xff] }
 0x192   : > { %2062 = vmatprep.subr.mxu0 %v8858_v32  ;;  %1719 = vmatpush2.msra.mxu1 %v8743_v33  ;;  %v8943_v32 = vld [vmem:[%s16089_s3 + $0x1070] sm:$0xff]  ;;  %v8894_v33 = vld [vmem:[%s16089_s3 + $0xee8] sm:$0xff] }
 0x193   : > { %2063 = vmatpush1.msra.mxu0 %v8857_v34  ;;  %1720 = vmatprep.subr.mxu1 %v8742_v35  ;;  %v8942_v34 = vld [vmem:[%s16089_s3 + $0x1068] sm:$0xff]  ;;  %v8893_v35 = vld [vmem:[%s16089_s3 + $0xee0] sm:$0xff] }
 0x194   : > { %2064 = vmatprep.subr.mxu0 %v8856_v36  ;;  %1721 = vmatpush2.msra.mxu1 %v8741_v37  ;;  %v8941_v36 = vld [vmem:[%s16089_s3 + $0x1060] sm:$0xff]  ;;  %v8892_v37 = vld [vmem:[%s16089_s3 + $0xed8] sm:$0xff] }
 0x195   : > { %2065 = vmatpush1.msra.mxu0 %v8855_v39  ;;  %1722 = vmatprep.subr.mxu1 %v8740_v41  ;;  %v8940_v39 = vld [vmem:[%s16089_s3 + $0x1058] sm:$0xff]  ;;  %v8891_v41 = vld [vmem:[%s16089_s3 + $0xed0] sm:$0xff] }
 0x196   : > { %2066 = vmatprep.subr.mxu0 %v8854_v44  ;;  %1723 = vmatpush2.msra.mxu1 %v8739_v45  ;;  %v8939_v44 = vld [vmem:[%s16089_s3 + $0x1050] sm:$0xff]  ;;  %v8890_v45 = vld [vmem:[%s16089_s3 + $0xec8] sm:$0xff] }
 0x197   : > { %2067 = vmatpush1.msra.mxu0 %v8853_v47  ;;  %1724 = vmatprep.subr.mxu1 %v8738_v48  ;;  %v8938_v47 = vld [vmem:[%s16089_s3 + $0x1048] sm:$0xff]  ;;  %v8889_v48 = vld [vmem:[%s16089_s3 + $0xec0] sm:$0xff] }
 0x198   : > { %2068 = vmatprep.subr.mxu0 %v8852_v49  ;;  %1725 = vmatpush2.msra.mxu1 %v8737_v50  ;;  %v8937_v49 = vld [vmem:[%s16089_s3 + $0x1040] sm:$0xff]  ;;  %v8888_v50 = vld [vmem:[%s16089_s3 + $0xeb8] sm:$0xff] }
 0x199   : > { %2069 = vmatpush1.msra.mxu0 %v8851_v51  ;;  %1726 = vmatprep.subr.mxu1 %v8736_v52  ;;  %v8936_v51 = vld [vmem:[%s16089_s3 + $0x1038] sm:$0xff]  ;;  %v8887_v52 = vld [vmem:[%s16089_s3 + $0xeb0] sm:$0xff] }
 0x19a   : > { %2070 = vmatprep.subr.mxu0 %v8850_v53  ;;  %1727 = vmatpush2.msra.mxu1 %v8735_v54  ;;  %v8935_v53 = vld [vmem:[%s16089_s3 + $0x1030] sm:$0xff]  ;;  %v8934_v54 = vld [vmem:[%s16089_s3 + $0x1028] sm:$0xff] }
 0x19b   : > { %2071 = vmatpush1.msra.mxu0 %v8849_v55  ;;  %1729 = vmatmul.mubr.f32.vlgmr.msra.gmra.mxu1 %v11164_v46  ;;  %v8885_v55 = vld [vmem:[%s16089_s3 + $0xea0] sm:$0xff] }
 0x19c   : > { %1834 = vmatprep.subr.mxu1 %v8846_v56  ;;  %2072 = vmatprep.subr.mxu0 %v8912_v57  ;;  %v8933_v56 = vld [vmem:[%s16089_s3 + $0x1020] sm:$0xff]  ;;  %v8884_v57 = vld [vmem:[%s16089_s3 + $0xe98] sm:$0xff] }
 0x19d   : > { %1734 = vmatprep.mubr.f32.mxu1 %v11194_v60  ;;  %1835 = vmatpush1.msra.mxu1 %v8845_v58  ;;  %v8932_v58 = vld [vmem:[%s16089_s3 + $0x1018] sm:$0xff] }
 0x19e   : > { %2073 = vmatpush2.msra.mxu0 %v8911_v61  ;;  %1836 = vmatprep.subr.mxu1 %v8844_v62  ;;  %v8883_v61 = vld [vmem:[%s16089_s3 + $0xe90] sm:$0xff] }
 0x19f   : > { %2074 = vmatprep.subr.mxu0 %v8910_v2  ;;  %1837 = vmatpush1.msra.mxu1 %v8843_v3  ;;  %v8931_v62 = vld [vmem:[%s16089_s3 + $0x1010] sm:$0xff]  ;;  %v8882_v2 = vld [vmem:[%s16089_s3 + $0xe88] sm:$0xff] }
 0x1a0   : > { %2075 = vmatpush2.msra.mxu0 %v8909_v4  ;;  %1735 = vmatmul.mubr.f32.gmra.mxu1 %v11202_v63  ;;  %v8930_v3 = vld [vmem:[%s16089_s3 + $0x1008] sm:$0xff]  ;;  %v8881_v4 = vld [vmem:[%s16089_s3 + $0xe80] sm:$0xff] }
 0x1a1   : > { %1838 = vmatprep.subr.mxu1 %v8842_v5  ;;  %2076 = vmatprep.subr.mxu0 %v8908_v6  ;;  %v8929_v5 = vld [vmem:[%s16089_s3 + $0x1000] sm:$0xff]  ;;  %v8928_v6 = vld [vmem:[%s16089_s3 + $0xff8] sm:$0xff] }
 0x1a2   : > { %1839 = vmatpush1.msra.mxu1 %v8841_v42  ;;  %2077 = vmatpush2.msra.mxu0 %v8907_v7  ;;  %v8992_v42 = vld [vmem:[%s16089_s3 + $0x11f8] sm:$0xff]  ;;  %v8927_v7 = vld [vmem:[%s16089_s3 + $0xff0] sm:$0xff] }
 0x1a3   : > { %1840 = vmatprep.subr.mxu1 %v8840_v8  ;;  %2078 = vmatprep.subr.mxu0 %v8906_v9  ;;  %v8991_v8 = vld [vmem:[%s16089_s3 + $0x11f0] sm:$0xff]  ;;  %v8926_v9 = vld [vmem:[%s16089_s3 + $0xfe8] sm:$0xff] }
 0x1a4   : > { %1841 = vmatpush1.msra.mxu1 %v8839_v10  ;;  %2079 = vmatpush2.msra.mxu0 %v8905_v11  ;;  %v8990_v10 = vld [vmem:[%s16089_s3 + $0x11e8] sm:$0xff]  ;;  %v8925_v11 = vld [vmem:[%s16089_s3 + $0xfe0] sm:$0xff] }
 0x1a5   : > { %1842 = vmatprep.subr.mxu1 %v8838_v12  ;;  %2080 = vmatprep.subr.mxu0 %v8904_v13  ;;  %v8924_v12 = vld [vmem:[%s16089_s3 + $0xfd8] sm:$0xff]  ;;  %v8923_v13 = vld [vmem:[%s16089_s3 + $0xfd0] sm:$0xff] }
 0x1a6   : > { %1843 = vmatpush1.msra.mxu1 %v8837_v14  ;;  %2081 = vmatpush2.msra.mxu0 %v8903_v15  ;;  %v8987_v14 = vld [vmem:[%s16089_s3 + $0x11d0] sm:$0xff]  ;;  %v8922_v15 = vld [vmem:[%s16089_s3 + $0xfc8] sm:$0xff] }
 0x1a7   : > { %1844 = vmatprep.subr.mxu1 %v8836_v16  ;;  %2082 = vmatprep.subr.mxu0 %v8902_v17  ;;  %v8986_v16 = vld [vmem:[%s16089_s3 + $0x11c8] sm:$0xff]  ;;  %v8921_v17 = vld [vmem:[%s16089_s3 + $0xfc0] sm:$0xff] }
 0x1a8   : > { %1845 = vmatpush1.msra.mxu1 %v8835_v18  ;;  %2083 = vmatpush2.msra.mxu0 %v8901_v19  ;;  %v8985_v18 = vld [vmem:[%s16089_s3 + $0x11c0] sm:$0xff]  ;;  %v8920_v19 = vld [vmem:[%s16089_s3 + $0xfb8] sm:$0xff] }
 0x1a9   : > { %1846 = vmatprep.subr.mxu1 %v8834_v20  ;;  %2084 = vmatprep.subr.mxu0 %v8900_v21  ;;  %v8919_v20 = vld [vmem:[%s16089_s3 + $0xfb0] sm:$0xff] }
 0x1aa   : > { %1847 = vmatpush1.msra.mxu1 %v8833_v22  ;;  %2085 = vmatpush2.msra.mxu0 %v8899_v23  ;;  %v8983_v21 = vld [vmem:[%s16089_s3 + $0x11b0] sm:$0xff]  ;;  %v8918_v22 = vld [vmem:[%s16089_s3 + $0xfa8] sm:$0xff] }
 0x1ab   : > { %1848 = vmatprep.subr.mxu1 %v8832_v24  ;;  %2086 = vmatprep.subr.mxu0 %v8898_v25  ;;  %v8982_v23 = vld [vmem:[%s16089_s3 + $0x11a8] sm:$0xff]  ;;  %v8917_v24 = vld [vmem:[%s16089_s3 + $0xfa0] sm:$0xff] }
 0x1ac   : > { %1849 = vmatpush1.msra.mxu1 %v8831_v26  ;;  %1882 = vmatprep.mubr.f32.mxu1 %v10575_v0  ;;  %v8981_v25 = vld [vmem:[%s16089_s3 + $0x11a0] sm:$0xff]  ;;  %v8916_v26 = vld [vmem:[%s16089_s3 + $0xf98] sm:$0xff] }
 0x1ad   : > { %2087 = vmatpush2.msra.mxu0 %v8897_v27  ;;  %8847 = vmatmul.mubr.msk.f32.vlgmr.msra.gmra.mxu1 %vm905_vm2, %v11281_v28  ;;  %v8980_v27 = vld [vmem:[%s16089_s3 + $0x1198] sm:$0xff] }
 0x1ae   : > { %2088 = vmatprep.subr.mxu0 %v8896_v29  ;;  %2117 = vmatprep.subr.mxu1 %v8944_v30  ;;  %v8915_v29 = vld [vmem:[%s16089_s3 + $0xf90] sm:$0xff] }
 0x1af   : > { %2089 = vmatpush2.msra.mxu0 %v8895_v31  ;;  %2118 = vmatpush1.msra.mxu1 %v8943_v32  ;;  %v8979_v30 = vld [vmem:[%s16089_s3 + $0x1190] sm:$0xff]  ;;  %v8914_v31 = vld [vmem:[%s16089_s3 + $0xf88] sm:$0xff] }
 0x1b0   : > { %2090 = vmatprep.subr.mxu0 %v8894_v33  ;;  %2119 = vmatprep.subr.mxu1 %v8942_v34  ;;  %v8978_v32 = vld [vmem:[%s16089_s3 + $0x1188] sm:$0xff]  ;;  %v8913_v33 = vld [vmem:[%s16089_s3 + $0xf80] sm:$0xff] }
 0x1b1   : > { %1888 = vmatprep.mubr.f32.mxu1 %v10575_v0  ;;  %2091 = vmatpush2.msra.mxu0 %v8893_v35  ;;  %v8977_v34 = vld [vmem:[%s16089_s3 + $0x1180] sm:$0xff]  ;;  %v8976_v35 = vld [vmem:[%s16089_s3 + $0x1178] sm:$0xff] }
 0x1b2   : > { %2120 = vmatpush1.msra.mxu1 %v8941_v36  ;;  %2092 = vmatprep.subr.mxu0 %v8892_v37  ;;  %v8975_v36 = vld [vmem:[%s16089_s3 + $0x1170] sm:$0xff]  ;;  %v8974_v37 = vld [vmem:[%s16089_s3 + $0x1168] sm:$0xff] }
 0x1b3   : > { %8848 = vmatmul.mubr.msk.f32.gmra.mxu1 %vm905_vm2, %v11311_v38  ;;  %2121 = vmatprep.subr.mxu1 %v8940_v39  ;;  %v8973_v39 = vld [vmem:[%s16089_s3 + $0x1160] sm:$0xff] }
 0x1b4   : > { %2093 = vmatpush2.msra.mxu0 %v8891_v41  ;;  %2122 = vmatpush1.msra.mxu1 %v8939_v44  ;;  %v8972_v41 = vld [vmem:[%s16089_s3 + $0x1158] sm:$0xff]  ;;  %v8971_v44 = vld [vmem:[%s16089_s3 + $0x1150] sm:$0xff] }
 0x1b5   : > { %2181 = vmatprep.mubr.f32.mxu1 %v11160_v43  ;;  %2094 = vmatprep.subr.mxu0 %v8890_v45  ;;  %v8886_v43 = vld [vmem:[%s16089_s3 + $0xea8] sm:$0xff]  ;;  %v8969_v45 = vld [vmem:[%s16089_s3 + $0x1140] sm:$0xff] }
 0x1b6   : > { %2123 = vmatprep.subr.mxu1 %v8938_v47  ;;  %2095 = vmatpush2.msra.mxu0 %v8889_v48  ;;  %v8968_v47 = vld [vmem:[%s16089_s3 + $0x1138] sm:$0xff]  ;;  %v8967_v48 = vld [vmem:[%s16089_s3 + $0x1130] sm:$0xff] }
 0x1b7   : > { %2124 = vmatpush1.msra.mxu1 %v8937_v49  ;;  %2096 = vmatprep.subr.mxu0 %v8888_v50  ;;  %v8966_v49 = vld [vmem:[%s16089_s3 + $0x1128] sm:$0xff]  ;;  %v8964_v50 = vld [vmem:[%s16089_s3 + $0x1118] sm:$0xff] }
 0x1b8   : > { %2125 = vmatprep.subr.mxu1 %v8936_v51  ;;  %2097 = vmatpush2.msra.mxu0 %v8887_v52  ;;  %v8963_v51 = vld [vmem:[%s16089_s3 + $0x1110] sm:$0xff]  ;;  %v8962_v52 = vld [vmem:[%s16089_s3 + $0x1108] sm:$0xff] }
 0x1b9   : > { %2126 = vmatpush1.msra.mxu1 %v8935_v53  ;;  %2098 = vmatprep.subr.mxu0 %v8886_v43  ;;  %v8961_v53 = vld [vmem:[%s16089_s3 + $0x1100] sm:$0xff]  ;;  %v8960_v43 = vld [vmem:[%s16089_s3 + $0x10f8] sm:$0xff] }
 0x1ba   : > { %2127 = vmatprep.subr.mxu1 %v8934_v54  ;;  %2099 = vmatpush2.msra.mxu0 %v8885_v55  ;;  %v8959_v54 = vld [vmem:[%s16089_s3 + $0x10f0] sm:$0xff]  ;;  %v8958_v55 = vld [vmem:[%s16089_s3 + $0x10e8] sm:$0xff] }
 0x1bb   : > { %2128 = vmatpush1.msra.mxu1 %v8933_v56  ;;  %2100 = vmatprep.subr.mxu0 %v8884_v57  ;;  %v8957_v56 = vld [vmem:[%s16089_s3 + $0x10e0] sm:$0xff]  ;;  %v8956_v57 = vld [vmem:[%s16089_s3 + $0x10d8] sm:$0xff] }
 0x1bc   : > { %2129 = vmatprep.subr.mxu1 %v8932_v58  ;;  %2101 = vmatpush2.msra.mxu0 %v8883_v61  ;;  %v8955_v58 = vld [vmem:[%s16089_s3 + $0x10d0] sm:$0xff]  ;;  %v8954_v61 = vld [vmem:[%s16089_s3 + $0x10c8] sm:$0xff] }
 0x1bd   : > { %2130 = vmatpush1.msra.mxu1 %v8931_v62  ;;  %2102 = vmatprep.subr.mxu0 %v8882_v2  ;;  %v8953_v62 = vld [vmem:[%s16089_s3 + $0x10c0] sm:$0xff]  ;;  %v8952_v2 = vld [vmem:[%s16089_s3 + $0x10b8] sm:$0xff] }
 0x1be   : > { %2131 = vmatprep.subr.mxu1 %v8930_v3  ;;  %2103 = vmatpush2.msra.mxu0 %v8881_v4  ;;  %v8951_v3 = vld [vmem:[%s16089_s3 + $0x10b0] sm:$0xff]  ;;  %v8950_v4 = vld [vmem:[%s16089_s3 + $0x10a8] sm:$0xff] }
 0x1bf   : > { %2132 = vmatpush1.msra.mxu1 %v8929_v5  ;;  %2105 = vmatmul.mubr.f32.vlgmr.msra.gmra.mxu0 %v11164_v46  ;;  %v8989_v46 = vld [vmem:[%s16089_s3 + $0x11e0] sm:$0xff] }
 0x1c0   : > { %2133 = vmatprep.subr.mxu1 %v8928_v6  ;;  %2210 = vmatprep.subr.mxu0 %v8992_v42  ;;  %v8949_v5 = vld [vmem:[%s16089_s3 + $0x10a0] sm:$0xff]  ;;  %v8948_v6 = vld [vmem:[%s16089_s3 + $0x1098] sm:$0xff]  ;;  %v8947_v42 = vld [vmem:[%s16089_s3 + $0x1090] sm:$0xff] }
 0x1c1   : > { %2110 = vmatprep.mubr.f32.mxu0 %v11194_v60  ;;  %2134 = vmatpush1.msra.mxu1 %v8927_v7  ;;  %v8988_v60 = vld [vmem:[%s16089_s3 + $0x11d8] sm:$0xff]  ;;  %v8946_v7 = vld [vmem:[%s16089_s3 + $0x1088] sm:$0xff] }
 0x1c2   : > { %2211 = vmatpush1.msra.mxu0 %v8991_v8  ;;  %2135 = vmatprep.subr.mxu1 %v8926_v9  ;;  %v8945_v8 = vld [vmem:[%s16089_s3 + $0x1080] sm:$0xff]  ;;  %v2298_v9 = vld [vmem:[%s16090_s4 + $0x78] sm:$0xff] }
 0x1c3   : > { %2212 = vmatprep.subr.mxu0 %v8990_v10  ;;  %2136 = vmatpush1.msra.mxu1 %v8925_v11  ;;  %v9012_v10 = vld [vmem:[%s16090_s4 + $0x108] sm:$0xff]  ;;  %v2297_v11 = vld [vmem:[%s16090_s4 + $0x70] sm:$0xff] }
 0x1c4   : > { %2213 = vmatpush1.msra.mxu0 %v8989_v46  ;;  %2137 = vmatprep.subr.mxu1 %v8924_v12  ;;  %v2295_v46 = vld [vmem:[%s16090_s4 + $0x60] sm:$0xff]  ;;  %v9009_v12 = vld [vmem:[%s16090_s4 + $0xf0] sm:$0xff] }
 0x1c5   : > { %2111 = vmatmul.mubr.f32.gmra.mxu0 %v11202_v63  ;;  %2214 = vmatprep.subr.mxu0 %v8988_v60  ;;  %v8984_v63 = vld [vmem:[%s16089_s3 + $0x11b8] sm:$0xff] }
 0x1c6   : > { %2138 = vmatpush1.msra.mxu1 %v8923_v13  ;;  %2215 = vmatpush1.msra.mxu0 %v8987_v14  ;;  %v2294_v60 = vld [vmem:[%s16090_s4 + $0x58] sm:$0xff]  ;;  %v9008_v13 = vld [vmem:[%s16090_s4 + $0xe8] sm:$0xff]  ;;  %v2293_v14 = vld [vmem:[%s16090_s4 + $0x50] sm:$0xff] }
 0x1c7   : > { %2139 = vmatprep.subr.mxu1 %v8922_v15  ;;  %2216 = vmatprep.subr.mxu0 %v8986_v16  ;;  %v9007_v15 = vld [vmem:[%s16090_s4 + $0xe0] sm:$0xff]  ;;  %v2292_v16 = vld [vmem:[%s16090_s4 + $0x48] sm:$0xff] }
 0x1c8   : > { %2140 = vmatpush1.msra.mxu1 %v8921_v17  ;;  %2217 = vmatpush1.msra.mxu0 %v8985_v18  ;;  %v9006_v17 = vld [vmem:[%s16090_s4 + $0xd8] sm:$0xff]  ;;  %v2291_v18 = vld [vmem:[%s16090_s4 + $0x40] sm:$0xff] }
 0x1c9   : > { %2141 = vmatprep.subr.mxu1 %v8920_v19  ;;  %2218 = vmatprep.subr.mxu0 %v8984_v63  ;;  %v9005_v19 = vld [vmem:[%s16090_s4 + $0xd0] sm:$0xff]  ;;  %v2290_v63 = vld [vmem:[%s16090_s4 + $0x38] sm:$0xff] }
 0x1ca   : > { %2142 = vmatpush1.msra.mxu1 %v8919_v20  ;;  %2219 = vmatpush1.msra.mxu0 %v8983_v21  ;;  %v9004_v20 = vld [vmem:[%s16090_s4 + $0xc8] sm:$0xff]  ;;  %v2289_v21 = vld [vmem:[%s16090_s4 + $0x30] sm:$0xff] }
 0x1cb   : > { %2143 = vmatprep.subr.mxu1 %v8918_v22  ;;  %2220 = vmatprep.subr.mxu0 %v8982_v23  ;;  %v9003_v22 = vld [vmem:[%s16090_s4 + $0xc0] sm:$0xff]  ;;  %v2288_v23 = vld [vmem:[%s16090_s4 + $0x28] sm:$0xff] }
 0x1cc   : > { %2144 = vmatpush1.msra.mxu1 %v8917_v24  ;;  %2221 = vmatpush1.msra.mxu0 %v8981_v25  ;;  %v9002_v24 = vld [vmem:[%s16090_s4 + $0xb8] sm:$0xff]  ;;  %v2287_v25 = vld [vmem:[%s16090_s4 + $0x20] sm:$0xff] }
 0x1cd   : > { %2145 = vmatprep.subr.mxu1 %v8916_v26  ;;  %2222 = vmatprep.subr.mxu0 %v8980_v27  ;;  %v9001_v26 = vld [vmem:[%s16090_s4 + $0xb0] sm:$0xff]  ;;  %v2286_v27 = vld [vmem:[%s16090_s4 + $0x18] sm:$0xff] }
 0x1ce   : > { %2146 = vmatpush1.msra.mxu1 %v8915_v29  ;;  %2223 = vmatpush1.msra.mxu0 %v8979_v30  ;;  %v9000_v29 = vld [vmem:[%s16090_s4 + $0xa8] sm:$0xff]  ;;  %v2285_v30 = vld [vmem:[%s16090_s4 + $0x10] sm:$0xff] }
 0x1cf   : > { %2147 = vmatprep.subr.mxu1 %v8914_v31  ;;  %2224 = vmatprep.subr.mxu0 %v8978_v32  ;;  %v8999_v31 = vld [vmem:[%s16090_s4 + $0xa0] sm:$0xff]  ;;  %v2284_v32 = vld [vmem:[%s16090_s4 + $0x8] sm:$0xff] }
 0x1d0   : > { %2148 = vmatpush1.msra.mxu1 %v8913_v33  ;;  %2225 = vmatpush1.msra.mxu0 %v8977_v34  ;;  %v8998_v33 = vld [vmem:[%s16090_s4 + $0x98] sm:$0xff]  ;;  %v2283_v34 = vld [vmem:[%s16090_s4] sm:$0xff] }
 0x1d1   : > { %2258 = vmatprep.mubr.f32.mxu0 %v10575_v0  ;;  %2149 = vmatprep.subr.mxu1 %v8976_v35  ;;  %v8997_v35 = vld [vmem:[%s16090_s4 + $0x90] sm:$0xff] }
 0x1d2   : > { %8993 = vmatmul.mubr.msk.f32.vlgmr.msra.gmra.mxu0 %vm905_vm2, %v11281_v28  ;;  %2150 = vmatpush2.msra.mxu1 %v8975_v36  ;;  %v8970_v28 = vld [vmem:[%s16089_s3 + $0x1148] sm:$0xff] }
 0x1d3   : > { %2264 = vmatprep.mubr.f32.mxu0 %v10575_v0  ;;  %2151 = vmatprep.subr.mxu1 %v8974_v37  ;;  %v2300_v36 = vld [vmem:[%s16090_s4 + $0x88] sm:$0xff]  ;;  %v9014_v37 = vld [vmem:[%s16090_s4 + $0x118] sm:$0xff] }
 0x1d4   : > { %2405 = vmatprep.subr.mxu0 %v10575_v0  ;;  %2152 = vmatpush2.msra.mxu1 %v8973_v39  ;;  %v2299_v39 = vld [vmem:[%s16090_s4 + $0x80] sm:$0xff] }
 0x1d5   : > { %2153 = vmatprep.subr.mxu1 %v8972_v41  ;;  %2406 = vmatpush1.msra.mxu0 %v9012_v10  ;;  %v9013_v41 = vld [vmem:[%s16090_s4 + $0x110] sm:$0xff] }
 0x1d6   : > { %8994 = vmatmul.mubr.msk.f32.gmra.mxu0 %vm905_vm2, %v11311_v38  ;;  %2154 = vmatpush2.msra.mxu1 %v8971_v44  ;;  %v8965_v38 = vld [vmem:[%s16089_s3 + $0x1120] sm:$0xff]  ;;  %v978_v44 = vpop.f32.mrf.mxu1 }
 0x1d7   : > { %2155 = vmatprep.subr.mxu1 %v8970_v28  ;;  %2407 = vmatprep.subr.mxu0 %v10575_v0 }
 0x1d8   : > { %2156 = vmatpush2.msra.mxu1 %v8969_v45  ;;  %v980_v28 = vpop.f32.mrf.mxu1 }
 0x1d9   : > { %2157 = vmatprep.subr.mxu1 %v8968_v47 }
 0x1da   : > { %2158 = vmatpush2.msra.mxu1 %v8967_v48  ;;  %v12724_v45 = vpop.f32.mrf.mxu1 }
 0x1db   : > { %2159 = vmatprep.subr.mxu1 %v8966_v49 }
 0x1dc   : > { %2160 = vmatpush2.msra.mxu1 %v8965_v38  ;;  %v986_v47 = vpop.f32.mrf.mxu1 }
 0x1dd   : > { %2161 = vmatprep.subr.mxu1 %v8964_v50  ;;  %v1055_v50 = vpop.f32.mrf.mxu0 }
 0x1de   : > { %2162 = vmatpush2.msra.mxu1 %v8963_v51  ;;  %v1132_v48 = vpop.f32.mrf.mxu1 }
 0x1df   : > { %2163 = vmatprep.subr.mxu1 %v8962_v52  ;;  %v1057_v52 = vpop.f32.mrf.mxu0 }
 0x1e0   : > { %2164 = vmatpush2.msra.mxu1 %v8961_v53  ;;  %v1134_v49 = vpop.f32.mrf.mxu1 }
 0x1e1   : > { %2165 = vmatprep.subr.mxu1 %v8960_v43  ;;  %v12730_v43 = vpop.f32.mrf.mxu0 }
 0x1e2   : > { %2166 = vmatpush2.msra.mxu1 %v8959_v54  ;;  %v12726_v38 = vpop.f32.mrf.mxu1 }
 0x1e3   : > { %2167 = vmatprep.subr.mxu1 %v8958_v55  ;;  %v1063_v55 = vpop.f32.mrf.mxu0 }
 0x1e4   : > { %2168 = vmatpush2.msra.mxu1 %v8957_v56  ;;  %v12728_v51 = vpop.f32.mrf.mxu1 }
 0x1e5   : > { %2169 = vmatprep.subr.mxu1 %v8956_v57 }
 0x1e6   : > { %2170 = vmatpush2.msra.mxu1 %v8955_v58 }
 0x1e7   : > { %2171 = vmatprep.subr.mxu1 %v8954_v61 }
 0x1e8   : > { %2172 = vmatpush2.msra.mxu1 %v8953_v62 }
 0x1e9   : > { %2173 = vmatprep.subr.mxu1 %v8952_v2 }
 0x1ea   : > { %2174 = vmatpush2.msra.mxu1 %v8951_v3 }
 0x1eb   : > { %2175 = vmatprep.subr.mxu1 %v8950_v4 }
 0x1ec   : > { %2176 = vmatpush2.msra.mxu1 %v8949_v5 }
 0x1ed   : > { %2177 = vmatprep.subr.mxu1 %v8948_v6 }
 0x1ee   : > { %2178 = vmatpush2.msra.mxu1 %v8947_v42 }
 0x1ef   : > { %2179 = vmatprep.subr.mxu1 %v8946_v7 }
 0x1f0   : > { %2180 = vmatpush2.msra.mxu1 %v8945_v8 }
 0x1f1   : > { %2182 = vmatmul.mubr.f32.vlgmr.msra.gmra.mxu1 %v11156_v40  ;;  %2308 = vmatprep.subr.mxu1 %v10575_v0  ;;  %v9011_v40 = vld [vmem:[%s16090_s4 + $0x100] sm:$0xff] }
 0x1f2   : > { %2187 = vmatprep.mubr.f32.mxu1 %v11192_v59  ;;  %2309 = vmatpush1.msra.mxu1 %v2298_v9  ;;  %v2296_v59 = vld [vmem:[%s16090_s4 + $0x68] sm:$0xff] }
 0x1f3   : > { %2310 = vmatprep.subr.mxu1 %v10575_v0  ;;  %2408 = vmatpush1.msra.mxu0 %v9011_v40  ;;  %v1354_v57 = vpop.f32.mrf.mxu0 }
 0x1f4   : > { %2311 = vmatpush1.msra.mxu1 %v2297_v11  ;;  %2409 = vmatprep.subr.mxu0 %v10575_v0 }
 0x1f5   : > { %2188 = vmatmul.mubr.f32.gmra.mxu1 %v11204_v1  ;;  %v9010_v1 = vld [vmem:[%s16090_s4 + $0xf8] sm:$0xff]  ;;  %2312 = vmatprep.subr.mxu1 %v10575_v0  ;;  %v1356_v61 = vpop.f32.mrf.mxu0 }
 0x1f6   : > { %2313 = vmatpush1.msra.mxu1 %v2296_v59  ;;  %2410 = vmatpush1.msra.mxu0 %v9010_v1 }
 0x1f7   : > { %2314 = vmatprep.subr.mxu1 %v10575_v0  ;;  %2411 = vmatprep.subr.mxu0 %v10575_v0 }
 0x1f8   : > { %2315 = vmatpush1.msra.mxu1 %v2295_v46  ;;  %2412 = vmatpush1.msra.mxu0 %v9009_v12 }
 0x1f9   : > { %2316 = vmatprep.subr.mxu1 %v10575_v0  ;;  %2413 = vmatprep.subr.mxu0 %v10575_v0  ;;  %v1360_v2 = vpop.f32.mrf.mxu0 }
 0x1fa   : > { %2317 = vmatpush1.msra.mxu1 %v2294_v60  ;;  %2414 = vmatpush1.msra.mxu0 %v9008_v13 }
 0x1fb   : > { %2318 = vmatprep.subr.mxu1 %v10575_v0  ;;  %2415 = vmatprep.subr.mxu0 %v10575_v0  ;;  %v1362_v4 = vpop.f32.mrf.mxu0 }
 0x1fc   : > { %2319 = vmatpush1.msra.mxu1 %v2293_v14  ;;  %2416 = vmatpush1.msra.mxu0 %v9007_v15 }
 0x1fd   : > { %2320 = vmatprep.subr.mxu1 %v10575_v0  ;;  %2417 = vmatprep.subr.mxu0 %v10575_v0 }
 0x1fe   : > { %2321 = vmatpush1.msra.mxu1 %v2292_v16  ;;  %2418 = vmatpush1.msra.mxu0 %v9006_v17 }
 0x1ff   : > { %2322 = vmatprep.subr.mxu1 %v10575_v0  ;;  %2419 = vmatprep.subr.mxu0 %v10575_v0 }
 0x200   : > { %2323 = vmatpush1.msra.mxu1 %v2291_v18  ;;  %2420 = vmatpush1.msra.mxu0 %v9005_v19 }
 0x201   : > { %2324 = vmatprep.subr.mxu1 %v10575_v0  ;;  %2421 = vmatprep.subr.mxu0 %v10575_v0 }
 0x202   : > { %2325 = vmatpush1.msra.mxu1 %v2290_v63  ;;  %2422 = vmatpush1.msra.mxu0 %v9004_v20 }
 0x203   : > { %2326 = vmatprep.subr.mxu1 %v10575_v0  ;;  %2423 = vmatprep.subr.mxu0 %v10575_v0 }
 0x204   : > { %2327 = vmatpush1.msra.mxu1 %v2289_v21  ;;  %2424 = vmatpush1.msra.mxu0 %v9003_v22  ;;  %v1058_v21 = vadd.f32 %v1057_v52, %v980_v28 }
 0x205   : > { %2328 = vmatprep.subr.mxu1 %v10575_v0  ;;  %2425 = vmatprep.subr.mxu0 %v10575_v0  ;;  %v1431_v53 = vpop.f32.mrf.mxu1 }
 0x206   : > { %2329 = vmatpush1.msra.mxu1 %v2288_v23  ;;  %2426 = vmatpush1.msra.mxu0 %v9002_v24  ;;  %v1432_v22 = vadd.f32 %v1431_v53, %v1354_v57 }
 0x207   : > { %2330 = vmatprep.subr.mxu1 %v10575_v0  ;;  %2427 = vmatprep.subr.mxu0 %v10575_v0  ;;  %v1433_v54 = vpop.f32.mrf.mxu1 }
 0x208   : > { %2331 = vmatpush1.msra.mxu1 %v2287_v25  ;;  %2428 = vmatpush1.msra.mxu0 %v9001_v26  ;;  %v1434_v18 = vadd.f32 %v1433_v54, %v1356_v61  ;;  %v1056_v26 = vadd.f32 %v1055_v50, %v978_v44 }
 0x209   : > { %2332 = vmatprep.subr.mxu1 %v10575_v0  ;;  %2429 = vmatprep.subr.mxu0 %v10575_v0 }
 0x20a   : > { %2333 = vmatpush1.msra.mxu1 %v2286_v27  ;;  %2430 = vmatpush1.msra.mxu0 %v9000_v29  ;;  %v1437_v56 = vpop.f32.mrf.mxu1  ;;  %v1133_v61 = vadd.f32 %v1132_v48, %v1056_v26  ;;  %v1062_v48 = vadd.f32 %v12730_v43, %v12724_v45  ;;  %v9048_v26 = vld [vmem:[%s16090_s4 + $0x1d8] sm:$0xff] }
 0x20b   : > { %2334 = vmatprep.subr.mxu1 %v10575_v0  ;;  %2431 = vmatprep.subr.mxu0 %v10575_v0  ;;  %v1438_v28 = vadd.f32 %v1437_v56, %v1360_v2 }
 0x20c   : > { %2335 = vmatpush1.msra.mxu1 %v2285_v30  ;;  %2432 = vmatpush1.msra.mxu0 %v8999_v31  ;;  %v1439_v58 = vpop.f32.mrf.mxu1  ;;  %v1064_v31 = vadd.f32 %v1063_v55, %v986_v47  ;;  %v1139_v45 = vadd.f32 %v12726_v38, %v1062_v48  ;;  %v9066_v48 = vld [vmem:[%s16090_s4 + $0x240] sm:$0xff] }
 0x20d   : > { %2336 = vmatprep.subr.mxu1 %v10575_v0  ;;  %2433 = vmatprep.subr.mxu0 %v10575_v0 }
 0x20e   : > { %2337 = vmatpush1.msra.mxu1 %v2284_v32  ;;  %2434 = vmatpush1.msra.mxu0 %v8998_v33  ;;  %v1135_v32 = vadd.f32 %v1134_v49, %v1058_v21  ;;  %v9027_v21 = vld [vmem:[%s16090_s4 + $0x158] sm:$0xff] }
 0x20f   : > { %2338 = vmatprep.subr.mxu1 %v10575_v0  ;;  %2435 = vmatprep.subr.mxu0 %v10575_v0 }
 0x210   : > { %2339 = vmatpush1.msra.mxu1 %v2283_v34  ;;  %2436 = vmatpush1.msra.mxu0 %v8997_v35 }
 0x211   : > { %2368 = vmatprep.subr.mxu1 %v10575_v0  ;;  %2465 = vmatprep.subr.mxu0 %v10575_v0 }
 0x212   : > { %2369 = vmatpush2.msra.mxu1 %v2300_v36  ;;  %2466 = vmatpush2.msra.mxu0 %v9014_v37  ;;  %v1440_v37 = vadd.f32 %v1439_v58, %v1362_v4 }
 0x213   : > { %2370 = vmatprep.subr.mxu1 %v10575_v0  ;;  %2467 = vmatprep.subr.mxu0 %v10575_v0 }
 0x214   : > { %2371 = vmatpush2.msra.mxu1 %v2299_v39  ;;  %2468 = vmatpush2.msra.mxu0 %v9013_v41 }
 0x215   : > { %2503 = vmatprep.subr.mxu1 %v10575_v0  ;;  %2601 = vmatprep.subr.mxu0 %v10575_v0 }
 0x217   : > { %v1508_v62 = vpop.f32.mrf.mxu1 }
 0x218   : > { %v1509_v33 = vadd.f32 %v1508_v62, %v1432_v22  ;;  %v1141_v62 = vadd.f32 %v12728_v51, %v1064_v31  ;;  %v9050_v22 = vld [vmem:[%s16090_s4 + $0x1e8] sm:$0xff] }
 0x219   : > { %v1510_v3 = vpop.f32.mrf.mxu1  ;;  %v9046_v31 = vld [vmem:[%s16090_s4 + $0x1c8] sm:$0xff] }
 0x21a   : > { %v1511_v23 = vadd.f32 %v1510_v3, %v1434_v18  ;;  %v9029_v18 = vld [vmem:[%s16090_s4 + $0x168] sm:$0xff] }
 0x21c   : > { %v1514_v5 = vpop.f32.mrf.mxu1  ;;  %v2272_v52 = vmax.f32 %v1135_v32, %v1511_v23  ;;  %v9026_v23 = vld [vmem:[%s16090_s4 + $0x150] sm:$0xff] }
 0x21d   : > { %v1515_v56 = vadd.f32 %v1514_v5, %v1438_v28  ;;  %v9034_v5 = vld [vmem:[%s16090_s4 + $0x190] sm:$0xff]  ;;  %v9081_v28 = vld [vmem:[%s16090_s4 + $0x2b8] sm:$0xff] }
 0x21e   : > { %v1516_v42 = vpop.f32.mrf.mxu1  ;;  %v9022_v32 = vld [vmem:[%s16090_s4 + $0x130] sm:$0xff] }
 0x21f   : > { %v1517_v3 = vadd.f32 %v1516_v42, %v1440_v37  ;;  %v9043_v37 = vld [vmem:[%s16090_s4 + $0x1b0] sm:$0xff] }
 0x221   : > { %v2274_v51 = vmax.f32 %v1141_v62, %v1517_v3  ;;  %v9077_v3 = vld [vmem:[%s16090_s4 + $0x298] sm:$0xff] }
 0x222   : > { %v9069_v62 = vld [vmem:[%s16090_s4 + $0x258] sm:$0xff] }
 0x23a   : > { %v1807_v6 = vpop.f32.mrf.mxu0 }
 0x23c   : > { %v1809_v7 = vpop.f32.mrf.mxu0 }
 0x23f   : > { %v1813_v9 = vpop.f32.mrf.mxu0 }
 0x241   : > { %v1815_v11 = vpop.f32.mrf.mxu0 }
 0x25b   : > { %v1730_v8 = vpop.f32.mrf.mxu1 }
 0x25c   : > { %v1808_v24 = vadd.f32 %v1807_v6, %v1730_v8 }
 0x25d   : > { %v1732_v10 = vpop.f32.mrf.mxu1 }
 0x25e   : > { %v1810_v27 = vadd.f32 %v1809_v7, %v1732_v10  ;;  %v2271_v7 = vmax.f32 %v1133_v61, %v1509_v33  ;;  %v9058_v10 = vld [vmem:[%s16090_s4 + $0x228] sm:$0xff]  ;;  %v9045_v33 = vld [vmem:[%s16090_s4 + $0x1c0] sm:$0xff]  ;;  %v9059_v61 = vld [vmem:[%s16090_s4 + $0x230] sm:$0xff] }
 0x260   : > { %v1736_v40 = vpop.f32.mrf.mxu1 }
 0x261   : > { %v1814_v47 = vadd.f32 %v1813_v9, %v1736_v40  ;;  %v9035_v9 = vld [vmem:[%s16090_s4 + $0x198] sm:$0xff]  ;;  %v9057_v40 = vld [vmem:[%s16090_s4 + $0x220] sm:$0xff] }
 0x262   : > { %v1738_v1 = vpop.f32.mrf.mxu1 }
 0x263   : > { %v1816_v44 = vadd.f32 %v1815_v11, %v1738_v1  ;;  %v2273_v1 = vmax.f32 %v1139_v45, %v1515_v56  ;;  %v9083_v56 = vld [vmem:[%s16090_s4 + $0x2c8] sm:$0xff] }
 0x26d   : > { %v1884_v46 = vpop.f32.mrf.mxu1 }
 0x26e   : > { %v1885_v34 = vadd.f32 %v1884_v46, %v1808_v24  ;;  %v9033_v46 = vld [vmem:[%s16090_s4 + $0x188] sm:$0xff]  ;;  %v9049_v24 = vld [vmem:[%s16090_s4 + $0x1e0] sm:$0xff] }
 0x26f   : > { %v1886_v60 = vpop.f32.mrf.mxu1 }
 0x270   : > { %v1887_v39 = vadd.f32 %v1886_v60, %v1810_v27  ;;  %v9032_v60 = vld [vmem:[%s16090_s4 + $0x180] sm:$0xff] }
 0x271   : > { %v9024_v27 = vld [vmem:[%s16090_s4 + $0x140] sm:$0xff] }
 0x273   : > { %v1890_v14 = vpop.f32.mrf.mxu1 }
 0x274   : > { %v1891_v2 = vadd.f32 %v1890_v14, %v1814_v47  ;;  %v9031_v14 = vld [vmem:[%s16090_s4 + $0x178] sm:$0xff]  ;;  %v9072_v47 = vld [vmem:[%s16090_s4 + $0x270] sm:$0xff] }
 0x275   : > { %v1892_v17 = vpop.f32.mrf.mxu1 }
 0x276   : > { %v1893_v58 = vadd.f32 %v1892_v17, %v1816_v44  ;;  %v9053_v17 = vld [vmem:[%s16090_s4 + $0x200] sm:$0xff]  ;;  %v9076_v44 = vld [vmem:[%s16090_s4 + $0x290] sm:$0xff] }
 0x27f   : > { %v2106_v59 = vpop.f32.mrf.mxu0 }
 0x281   : > { %v2108_v12 = vpop.f32.mrf.mxu0 }
 0x285   : > { %v2112_v13 = vpop.f32.mrf.mxu0 }
 0x287   : > { %v2114_v15 = vpop.f32.mrf.mxu0 }
 0x292   : > { %v2260_v16 = vpop.f32.mrf.mxu0 }
 0x294   : > { %v2262_v19 = vpop.f32.mrf.mxu0 }
 0x296   : > { %v2266_v35 = vpop.f32.mrf.mxu0 }
 0x298   : > { %v2268_v49 = vpop.f32.mrf.mxu0 }
 0x2b1   : > { %v2183_v63 = vpop.f32.mrf.mxu1 }
 0x2b2   : > { %v2184_v20 = vadd.f32 %v2183_v63, %v2106_v59  ;;  %v9028_v63 = vld [vmem:[%s16090_s4 + $0x160] sm:$0xff] }
 0x2b3   : > { %v2185_v25 = vpop.f32.mrf.mxu1 }
 0x2b4   : > { %v2261_v29 = vadd.f32 %v2260_v16, %v2184_v20  ;;  %v2186_v30 = vadd.f32 %v2185_v25, %v2108_v12  ;;  %v9056_v12 = vld [vmem:[%s16090_s4 + $0x218] sm:$0xff]  ;;  %v9030_v16 = vld [vmem:[%s16090_s4 + $0x170] sm:$0xff]  ;;  %v9025_v25 = vld [vmem:[%s16090_s4 + $0x148] sm:$0xff] }
 0x2b5   : > { %v2189_v36 = vpop.f32.mrf.mxu1  ;;  %v9051_v20 = vld [vmem:[%s16090_s4 + $0x1f0] sm:$0xff] }
 0x2b6   : > { %v2263_v41 = vadd.f32 %v2262_v19, %v2186_v30  ;;  %v2190_v54 = vadd.f32 %v2189_v36, %v2112_v13  ;;  %v2275_v53 = vmax.f32 %v1885_v34, %v2261_v29  ;;  %v9055_v13 = vld [vmem:[%s16090_s4 + $0x210] sm:$0xff]  ;;  %v9052_v19 = vld [vmem:[%s16090_s4 + $0x1f8] sm:$0xff]  ;;  %v9021_v34 = vld [vmem:[%s16090_s4 + $0x128] sm:$0xff] }
 0x2b7   : > { %v2191_v57 = vpop.f32.mrf.mxu1  ;;  %v9047_v29 = vld [vmem:[%s16090_s4 + $0x1d0] sm:$0xff]  ;;  %v9023_v30 = vld [vmem:[%s16090_s4 + $0x138] sm:$0xff]  ;;  %v9020_v36 = vld [vmem:[%s16090_s4 + $0x120] sm:$0xff] }
 0x2b8   : > { %v2276_v50 = vmax.f32 %v1887_v39, %v2263_v41  ;;  %v2192_v6 = vadd.f32 %v2191_v57, %v2114_v15  ;;  %v2267_v55 = vadd.f32 %v2266_v35, %v2190_v54  ;;  %v12737_v42 = vmax.f32 %v2271_v7, %v2275_v53  ;;  %v9054_v15 = vld [vmem:[%s16090_s4 + $0x208] sm:$0xff]  ;;  %v9044_v35 = vld [vmem:[%s16090_s4 + $0x1b8] sm:$0xff]  ;;  %v9036_v54 = vld [vmem:[%s16090_s4 + $0x1a0] sm:$0xff] }
 0x2b9   : > { %v9037_v39 = vld [vmem:[%s16090_s4 + $0x1a8] sm:$0xff]  ;;  %v9060_v41 = vld [vmem:[%s16090_s4 + $0x238] sm:$0xff]  ;;  %v9078_v57 = vld [vmem:[%s16090_s4 + $0x2a0] sm:$0xff] }
 0x2ba   : > { %v12733_v4 = vmax.f32 %v2272_v52, %v2276_v50  ;;  %v2269_v8 = vadd.f32 %v2268_v49, %v2192_v6  ;;  %v2277_v43 = vmax.f32 %v1891_v2, %v2267_v55  ;;  %v9080_v52 = vld [vmem:[%s16090_s4 + $0x2b0] sm:$0xff]  ;;  %v9079_v53 = vld [vmem:[%s16090_s4 + $0x2a8] sm:$0xff]  ;;  %v9074_v6 = vld [vmem:[%s16090_s4 + $0x280] sm:$0xff] }
 0x2bb   : > { %v9075_v50 = vld [vmem:[%s16090_s4 + $0x288] sm:$0xff]  ;;  %v9073_v7 = vld [vmem:[%s16090_s4 + $0x278] sm:$0xff]  ;;  %v9070_v55 = vld [vmem:[%s16090_s4 + $0x260] sm:$0xff] }
 0x2bc   : > { %v2278_v11 = vmax.f32 %v1893_v58, %v2269_v8  ;;  %8995 = vmatprep.mubr.msk.f32.mxu1 %vm2301_vm3, %v12733_v4  ;;  %9015 = vmatprep.mubr.msk.f32.mxu0 %vm2301_vm3, %v12733_v4  ;;  %v12762_v38 = vmax.f32 %v2273_v1, %v2277_v43  ;;  %v9071_v49 = vld [vmem:[%s16090_s4 + $0x268] sm:$0xff]  ;;  %v9068_v58 = vld [vmem:[%s16090_s4 + $0x250] sm:$0xff]  ;;  %v9082_v2 = vld [vmem:[%s16090_s4 + $0x2c0] sm:$0xff] }
 0x2bd   : > { %2373 = vmatmul.mubr.f32.vlgmr.msra.gmra.mxu1 %v12737_v42  ;;  %2470 = vmatmul.mubr.f32.vlgmr.msra.gmra.mxu0 %v12737_v42  ;;  %v9067_v8 = vld [vmem:[%s16090_s4 + $0x248] sm:$0xff] }
 0x2be   : > { %v12758_v59 = vmax.f32 %v2274_v51, %v2278_v11  ;;  %2504 = vmatpush1.msra.mxu1 %v9035_v9  ;;  %2602 = vmatpush1.msra.mxu0 %v9058_v10 }
 0x2bf   : > { %2505 = vmatprep.subr.mxu1 %v10575_v0  ;;  %2603 = vmatprep.subr.mxu0 %v10575_v0 }
 0x2c0   : > { %2506 = vmatpush1.msra.mxu1 %v9034_v5  ;;  %2604 = vmatpush1.msra.mxu0 %v9057_v40 }
 0x2c1   : > { %8996 = vmatprep.mubr.msk.f32.mxu1 %vm2301_vm3, %v12758_v59  ;;  %9016 = vmatprep.mubr.msk.f32.mxu0 %vm2301_vm3, %v12758_v59 }
 0x2c2   : > { %2507 = vmatprep.subr.mxu1 %v10575_v0  ;;  %2605 = vmatprep.subr.mxu0 %v10575_v0 }
 0x2c3   : > { %2378 = vmatmul.mubr.f32.gmra.mxu1 %v12762_v38  ;;  %2475 = vmatmul.mubr.f32.gmra.mxu0 %v12762_v38 }
 0x2c4   : > { %2508 = vmatpush1.msra.mxu1 %v9033_v46  ;;  %2606 = vmatpush1.msra.mxu0 %v9056_v12 }
 0x2c5   : > { %2509 = vmatprep.subr.mxu1 %v10575_v0  ;;  %9038 = vmatprep.mubr.msk.f32.mxu1 %vm2301_vm3, %v12733_v4 }
 0x2c6   : > { %2607 = vmatprep.subr.mxu0 %v10575_v0  ;;  %9061 = vmatprep.mubr.msk.f32.mxu0 %vm2301_vm3, %v12733_v4 }
 0x2c7   : > { %2510 = vmatpush1.msra.mxu1 %v9032_v60  ;;  %2608 = vmatpush1.msra.mxu0 %v9055_v13 }
 0x2c8   : > { %2511 = vmatprep.subr.mxu1 %v10575_v0  ;;  %2609 = vmatprep.subr.mxu0 %v10575_v0 }
 0x2c9   : > { %2512 = vmatpush1.msra.mxu1 %v9031_v14  ;;  %2610 = vmatpush1.msra.mxu0 %v9054_v15 }
 0x2ca   : > { %2513 = vmatprep.subr.mxu1 %v10575_v0  ;;  %2611 = vmatprep.subr.mxu0 %v10575_v0 }
 0x2cb   : > { %2514 = vmatpush1.msra.mxu1 %v9030_v16  ;;  %2612 = vmatpush1.msra.mxu0 %v9053_v17 }
 0x2cc   : > { %2515 = vmatprep.subr.mxu1 %v10575_v0  ;;  %2613 = vmatprep.subr.mxu0 %v10575_v0 }
 0x2cd   : > { %2516 = vmatpush1.msra.mxu1 %v9029_v18  ;;  %2614 = vmatpush1.msra.mxu0 %v9052_v19 }
 0x2ce   : > { %2517 = vmatprep.subr.mxu1 %v10575_v0  ;;  %2615 = vmatprep.subr.mxu0 %v10575_v0 }
 0x2cf   : > { %2518 = vmatpush1.msra.mxu1 %v9028_v63  ;;  %2616 = vmatpush1.msra.mxu0 %v9051_v20  ;;  %v9086_v63 = vld [vmem:[%s16091_s5 + $0x60] sm:$0xff] }
 0x2d0   : > { %2519 = vmatprep.subr.mxu1 %v10575_v0  ;;  %2617 = vmatprep.subr.mxu0 %v10575_v0 }
 0x2d1   : > { %2520 = vmatpush1.msra.mxu1 %v9027_v21  ;;  %2618 = vmatpush1.msra.mxu0 %v9050_v22  ;;  %v9087_v21 = vld [vmem:[%s16091_s5 + $0x68] sm:$0xff]  ;;  %v9088_v22 = vld [vmem:[%s16091_s5 + $0x70] sm:$0xf] }
 0x2d2   : > { %2521 = vmatprep.subr.mxu1 %v10575_v0  ;;  %2619 = vmatprep.subr.mxu0 %v10575_v0 }
 0x2d3   : > { %2522 = vmatpush1.msra.mxu1 %v9026_v23  ;;  %2620 = vmatpush1.msra.mxu0 %v9049_v24  ;;  %v2383_v23 = vld [vmem:[%s16091_s5] sm:$0xff]  ;;  %v9112_v24 = vld [vmem:[%s16090_s4 + $0x348] sm:$0xff] }
 0x2d4   : > { %2523 = vmatprep.subr.mxu1 %v10575_v0  ;;  %2621 = vmatprep.subr.mxu0 %v10575_v0 }
 0x2d5   : > { %2524 = vmatpush1.msra.mxu1 %v9025_v25  ;;  %2622 = vmatpush1.msra.mxu0 %v9048_v26  ;;  %v9111_v25 = vld [vmem:[%s16090_s4 + $0x340] sm:$0xff]  ;;  %v2384_v26 = vld [vmem:[%s16091_s5 + $0x8] sm:$0xff] }
 0x2d6   : > { %2525 = vmatprep.subr.mxu1 %v10575_v0  ;;  %2623 = vmatprep.subr.mxu0 %v10575_v0 }
 0x2d7   : > { %2526 = vmatpush1.msra.mxu1 %v9024_v27  ;;  %2624 = vmatpush1.msra.mxu0 %v9047_v29  ;;  %v9110_v27 = vld [vmem:[%s16090_s4 + $0x338] sm:$0xff]  ;;  %v9109_v29 = vld [vmem:[%s16090_s4 + $0x330] sm:$0xff] }
 0x2d8   : > { %2527 = vmatprep.subr.mxu1 %v10575_v0  ;;  %2625 = vmatprep.subr.mxu0 %v10575_v0 }
 0x2d9   : > { %2528 = vmatpush1.msra.mxu1 %v9023_v30  ;;  %2626 = vmatpush1.msra.mxu0 %v9046_v31  ;;  %v2385_v30 = vld [vmem:[%s16091_s5 + $0x10] sm:$0xf]  ;;  %v9108_v31 = vld [vmem:[%s16090_s4 + $0x328] sm:$0xff] }
 0x2da   : > { %2529 = vmatprep.subr.mxu1 %v10575_v0  ;;  %2627 = vmatprep.subr.mxu0 %v10575_v0 }
 0x2db   : > { %2530 = vmatpush1.msra.mxu1 %v9022_v32  ;;  %2628 = vmatpush1.msra.mxu0 %v9045_v33  ;;  %v9107_v32 = vld [vmem:[%s16090_s4 + $0x320] sm:$0xff]  ;;  %v9106_v33 = vld [vmem:[%s16090_s4 + $0x318] sm:$0xff] }
 0x2dc   : > { %2531 = vmatprep.subr.mxu1 %v10575_v0  ;;  %2629 = vmatprep.subr.mxu0 %v10575_v0 }
 0x2dd   : > { %2532 = vmatpush1.msra.mxu1 %v9021_v34  ;;  %2630 = vmatpush1.msra.mxu0 %v9044_v35  ;;  %v9105_v34 = vld [vmem:[%s16090_s4 + $0x310] sm:$0xff]  ;;  %v9104_v35 = vld [vmem:[%s16090_s4 + $0x308] sm:$0xff] }
 0x2de   : > { %2533 = vmatprep.subr.mxu1 %v10575_v0  ;;  %2631 = vmatprep.subr.mxu0 %v10575_v0 }
 0x2df   : > { %2534 = vmatpush1.msra.mxu1 %v9020_v36  ;;  %2632 = vmatpush1.msra.mxu0 %v9043_v37  ;;  %v9103_v36 = vld [vmem:[%s16090_s4 + $0x300] sm:$0xff]  ;;  %v9102_v37 = vld [vmem:[%s16090_s4 + $0x2f8] sm:$0xff] }
 0x2e0   : > { %2563 = vmatprep.subr.mxu1 %v10575_v0  ;;  %2661 = vmatprep.subr.mxu0 %v10575_v0 }
 0x2e1   : > { %2564 = vmatpush2.msra.mxu1 %v9037_v39  ;;  %2662 = vmatpush2.msra.mxu0 %v9060_v41  ;;  %v9101_v39 = vld [vmem:[%s16090_s4 + $0x2f0] sm:$0xff]  ;;  %v9100_v41 = vld [vmem:[%s16090_s4 + $0x2e8] sm:$0xff] }
 0x2e2   : > { %2565 = vmatprep.subr.mxu1 %v10575_v0  ;;  %2663 = vmatprep.subr.mxu0 %v10575_v0 }
 0x2e3   : > { %2566 = vmatpush2.msra.mxu1 %v9036_v54  ;;  %2664 = vmatpush2.msra.mxu0 %v9059_v61  ;;  %v9099_v54 = vld [vmem:[%s16090_s4 + $0x2e0] sm:$0xff]  ;;  %v9098_v61 = vld [vmem:[%s16090_s4 + $0x2d8] sm:$0xff] }
 0x2e4   : > { %2568 = vmatmul.mubr.f32.vlgmr.msra.gmra.mxu1 %v12737_v42  ;;  %2666 = vmatmul.mubr.f32.vlgmr.msra.gmra.mxu0 %v12737_v42 }
 0x2e5   : > { %2699 = vmatprep.subr.mxu1 %v10575_v0  ;;  %9039 = vmatprep.mubr.msk.f32.mxu1 %vm2301_vm3, %v12758_v59 }
 0x2e6   : > { %9062 = vmatprep.mubr.msk.f32.mxu0 %vm2301_vm3, %v12758_v59  ;;  %2700 = vmatpush1.msra.mxu1 %v9081_v28  ;;  %v9097_v28 = vld [vmem:[%s16090_s4 + $0x2d0] sm:$0xff] }
 0x2e7   : > { %2701 = vmatprep.subr.mxu1 %v10575_v0  ;;  %10022 = vmatprep.subr.mxu0 %v10575_v0 }
 0x2e8   : > { %2702 = vmatpush1.msra.mxu1 %v9080_v52  ;;  %2671 = vmatmul.mubr.f32.gmra.mxu0 %v12762_v38  ;;  %v9114_v52 = vld [vmem:[%s16090_s4 + $0x358] sm:$0xff] }
 0x2e9   : > { %2573 = vmatmul.mubr.f32.gmra.mxu1 %v12762_v38  ;;  %2703 = vmatprep.subr.mxu1 %v10575_v0 }
 0x2ea   : > { %2704 = vmatpush1.msra.mxu1 %v9079_v53  ;;  %9084 = vmatprep.mubr.msk.f32.mxu1 %vm2301_vm3, %v12733_v4  ;;  %v9113_v53 = vld [vmem:[%s16090_s4 + $0x350] sm:$0xff] }
 0x2eb   : > { %2705 = vmatprep.subr.mxu1 %v10575_v0  ;;  %10026 = vmatprep.mubr.msk.f32.mxu0 %vm10577_vm4, %v10575_v0 }
 0x2ec   : > { %2706 = vmatpush1.msra.mxu1 %v9078_v57 }
 0x2ed   : > { %2707 = vmatprep.subr.mxu1 %v10575_v0 }
 0x2ee   : > { %2708 = vmatpush1.msra.mxu1 %v9077_v3 }
 0x2ef   : > { %2709 = vmatprep.subr.mxu1 %v10575_v0 }
 0x2f0   : > { %2710 = vmatpush1.msra.mxu1 %v9076_v44 }
 0x2f1   : > { %2711 = vmatprep.subr.mxu1 %v10575_v0 }
 0x2f2   : > { %2712 = vmatpush1.msra.mxu1 %v9075_v50 }
 0x2f3   : > { %2713 = vmatprep.subr.mxu1 %v10575_v0 }
 0x2f4   : > { %2714 = vmatpush1.msra.mxu1 %v9074_v6 }
 0x2f5   : > { %2715 = vmatprep.subr.mxu1 %v10575_v0 }
 0x2f6   : > { %2716 = vmatpush1.msra.mxu1 %v9073_v7 }
 0x2f7   : > { %2717 = vmatprep.subr.mxu1 %v10575_v0 }
 0x2f8   : > { %2718 = vmatpush1.msra.mxu1 %v9072_v47 }
 0x2f9   : > { %2719 = vmatprep.subr.mxu1 %v10575_v0 }
 0x2fa   : > { %2720 = vmatpush1.msra.mxu1 %v9071_v49 }
 0x2fb   : > { %2721 = vmatprep.subr.mxu1 %v10575_v0 }
 0x2fc   : > { %2722 = vmatpush1.msra.mxu1 %v9070_v55 }
 0x2fd   : > { %2723 = vmatprep.subr.mxu1 %v10575_v0 }
 0x2fe   : > { %2724 = vmatpush1.msra.mxu1 %v9069_v62 }
 0x2ff   : > { %2725 = vmatprep.subr.mxu1 %v10575_v0 }
 0x300   : > { %2726 = vmatpush1.msra.mxu1 %v9068_v58 }
 0x301   : > { %2727 = vmatprep.subr.mxu1 %v10575_v0 }
 0x302   : > { %2728 = vmatpush1.msra.mxu1 %v9067_v8 }
 0x303   : > { %2729 = vmatprep.subr.mxu1 %v10575_v0 }
 0x304   : > { %2730 = vmatpush1.msra.mxu1 %v9066_v48 }
 0x305   : > { %2759 = vmatprep.subr.mxu1 %v10575_v0 }
 0x306   : > { %2760 = vmatpush2.msra.mxu1 %v9083_v56 }
 0x307   : > { %2761 = vmatprep.subr.mxu1 %v10575_v0 }
 0x308   : > { %2762 = vmatpush2.msra.mxu1 %v9082_v2 }
 0x309   : > { %2764 = vmatmul.mubr.f32.vlgmr.msra.gmra.mxu1 %v12737_v42  ;;  %10048 = vmatprep.subr.mxu1 %v10575_v0 }
 0x30a   : > { %9085 = vmatprep.mubr.msk.f32.mxu1 %vm2301_vm3, %v12758_v59 }
 0x30d   : > { %2769 = vmatmul.mubr.f32.gmra.mxu1 %v12762_v38 }
 0x30e   : > { %10052 = vmatprep.mubr.msk.f32.mxu1 %vm10577_vm4, %v10575_v0 }
 0x37d   : > { %v2374_v9 = vpop.f32.mrf.mxu1  ;;  %v12994_v10 = vpop.f32.mrf.mxu0 }
 0x37f   : > { %v2376_v51 = vpop.f32.mrf.mxu1  ;;  %v2473_v11 = vpop.f32.mrf.mxu0 }
 0x383   : > { %v2379_v45 = vpop.f32.mrf.mxu1  ;;  %v12996_v43 = vpop.f32.mrf.mxu0 }
 0x385   : > { %v2381_v5 = vpop.f32.mrf.mxu1  ;;  %v2478_v40 = vpop.f32.mrf.mxu0 }
 0x386   : > { %v9118_v40 = vld [vmem:[%s16091_s5 + $0x80] sm:$0xff] }
 0x3a4   : > { %v12998_v1 = vpop.f32.mrf.mxu1  ;;  %v13000_v46 = vpop.f32.mrf.mxu0 }
 0x3a6   : > { %v2571_v12 = vpop.f32.mrf.mxu1  ;;  %v2669_v60 = vpop.f32.mrf.mxu0 }
 0x3a7   : > { %v9143_v12 = vld [vmem:[%s16090_s4 + $0x3d8] sm:$0xff]  ;;  %v9142_v60 = vld [vmem:[%s16090_s4 + $0x3d0] sm:$0xff] }
 0x3a8   : > { %v13002_v13 = vpop.f32.mrf.mxu0 }
 0x3a9   : > { %v13004_v14 = vpop.f32.mrf.mxu1 }
 0x3aa   : > { %v2674_v15 = vpop.f32.mrf.mxu0 }
 0x3ab   : > { %v2576_v16 = vpop.f32.mrf.mxu1  ;;  %v9018_v15 = vld [vmem:[%s16091_s5 + $0x20] sm:$0xff] }
 0x3ac   : > { %v9141_v16 = vld [vmem:[%s16090_s4 + $0x3c8] sm:$0xff] }
 0x3c9   : > { %v2765_v17 = vpop.f32.mrf.mxu1 }
 0x3cb   : > { %v2767_v18 = vpop.f32.mrf.mxu1 }
 0x3cc   : > { %v9019_v18 = vld [vmem:[%s16091_s5 + $0x28] sm:$0xf] }
 0x3cd   : > { %v2770_v19 = vpop.f32.mrf.mxu1 }
 0x3ce   : > { %10023 = vmatpush3.msk.msra.mxu0 %vm2788_vm5, %v2770_v19  ;;  %v9139_v19 = vld [vmem:[%s16090_s4 + $0x3b8] sm:$0xff] }
 0x3cf   : > { %v2772_v20 = vpop.f32.mrf.mxu1  ;;  %10024 = vmatprep.subr.mxu0 %v10575_v0 }
 0x3d0   : > { %10025 = vmatpush3.msra.mxu0 %v2765_v17  ;;  %v9140_v17 = vld [vmem:[%s16090_s4 + $0x3c0] sm:$0xff]  ;;  %v9137_v20 = vld [vmem:[%s16090_s4 + $0x3a8] sm:$0xff] }
 0x3d1   : > { %10027 = vmatmul.mubr.msk.f32.vlgmr.msra.gmra.mxu0 %vm2778_vm6, %v9086_v63  ;;  %10035 = vmatprep.subr.mxu0 %v10575_v0  ;;  %v9138_v63 = vld [vmem:[%s16090_s4 + $0x3b0] sm:$0xff] }
 0x3d2   : > { %10036 = vmatpush3.msk.msra.mxu0 %vm2788_vm5, %v2379_v45  ;;  %10029 = vmatprep.mubr.msk.f32.mxu0 %vm10577_vm4, %v10575_v0  ;;  %v9117_v45 = vld [vmem:[%s16091_s5 + $0x78] sm:$0xff] }
 0x3d3   : > { %10037 = vmatprep.subr.mxu0 %v10575_v0 }
 0x3d4   : > { %10038 = vmatpush3.msra.mxu0 %v2374_v9 }
 0x3d5   : > { %10030 = vmatmul.mubr.msk.f32.gmra.mxu0 %vm2778_vm6, %v9087_v21  ;;  %2983 = vmatprep.subr.mxu0 %v10575_v0  ;;  %v9136_v21 = vld [vmem:[%s16090_s4 + $0x3a0] sm:$0xff] }
 0x3d6   : > { %10032 = vmatprep.mubr.msk.f32.mxu0 %vm10577_vm4, %v10575_v0 }
 0x3d9   : > { %10033 = vmatmul.mubr.msk.f32.gmra.mxu0 %vm2778_vm6, %v9088_v22  ;;  %v9135_v22 = vld [vmem:[%s16090_s4 + $0x398] sm:$0xff] }
 0x3da   : > { %10039 = vmatprep.mubr.msk.f32.mxu0 %vm10577_vm4, %v10575_v0 }
 0x3dd   : > { %10040 = vmatmul.mubr.msk.f32.vlgmr.msra.gmra.mxu0 %vm2778_vm6, %v2383_v23  ;;  %v9134_v23 = vld [vmem:[%s16090_s4 + $0x390] sm:$0xff] }
 0x3de   : > { %2984 = vmatpush1.msra.mxu0 %v9112_v24  ;;  %10042 = vmatprep.mubr.msk.f32.mxu0 %vm10577_vm4, %v10575_v0  ;;  %v9133_v24 = vld [vmem:[%s16090_s4 + $0x388] sm:$0xff] }
 0x3df   : > { %2985 = vmatprep.subr.mxu0 %v10575_v0 }
 0x3e0   : > { %2986 = vmatpush1.msra.mxu0 %v9111_v25  ;;  %v9132_v25 = vld [vmem:[%s16090_s4 + $0x380] sm:$0xff] }
 0x3e1   : > { %2987 = vmatprep.subr.mxu0 %v10575_v0  ;;  %10043 = vmatmul.mubr.msk.f32.gmra.mxu0 %vm2778_vm6, %v2384_v26  ;;  %v9131_v26 = vld [vmem:[%s16090_s4 + $0x378] sm:$0xff] }
 0x3e2   : > { %2988 = vmatpush1.msra.mxu0 %v9110_v27  ;;  %10045 = vmatprep.mubr.msk.f32.mxu0 %vm10577_vm4, %v10575_v0  ;;  %v9130_v27 = vld [vmem:[%s16090_s4 + $0x370] sm:$0xff] }
 0x3e3   : > { %2989 = vmatprep.subr.mxu0 %v10575_v0 }
 0x3e4   : > { %2990 = vmatpush1.msra.mxu0 %v9109_v29  ;;  %v9129_v29 = vld [vmem:[%s16090_s4 + $0x368] sm:$0xff] }
 0x3e5   : > { %2991 = vmatprep.subr.mxu0 %v10575_v0  ;;  %10046 = vmatmul.mubr.msk.f32.gmra.mxu0 %vm2778_vm6, %v2385_v30  ;;  %v9128_v30 = vld [vmem:[%s16090_s4 + $0x360] sm:$0xff] }
 0x3e6   : > { %2992 = vmatpush1.msra.mxu0 %v9108_v31  ;;  %9115 = vmatprep.mubr.msk.f32.mxu0 %vm2301_vm3, %v12733_v4  ;;  %v9145_v31 = vld [vmem:[%s16090_s4 + $0x3e8] sm:$0xff] }
 0x3e7   : > { %2993 = vmatprep.subr.mxu0 %v10575_v0 }
 0x3e8   : > { %2994 = vmatpush1.msra.mxu0 %v9107_v32  ;;  %v9144_v32 = vld [vmem:[%s16090_s4 + $0x3e0] sm:$0xff] }
 0x3e9   : > { %2995 = vmatprep.subr.mxu0 %v10575_v0 }
 0x3ea   : > { %2996 = vmatpush1.msra.mxu0 %v9106_v33 }
 0x3eb   : > { %2997 = vmatprep.subr.mxu0 %v10575_v0 }
 0x3ec   : > { %2998 = vmatpush1.msra.mxu0 %v9105_v34 }
 0x3ed   : > { %2999 = vmatprep.subr.mxu0 %v10575_v0 }
 0x3ee   : > { %3000 = vmatpush1.msra.mxu0 %v9104_v35 }
 0x3ef   : > { %3001 = vmatprep.subr.mxu0 %v10575_v0 }
 0x3f0   : > { %3002 = vmatpush1.msra.mxu0 %v9103_v36 }
 0x3f1   : > { %3003 = vmatprep.subr.mxu0 %v10575_v0 }
 0x3f2   : > { %3004 = vmatpush1.msra.mxu0 %v9102_v37 }
 0x3f3   : > { %3005 = vmatprep.subr.mxu0 %v10575_v0 }
 0x3f4   : > { %3006 = vmatpush1.msra.mxu0 %v9101_v39 }
 0x3f5   : > { %3007 = vmatprep.subr.mxu0 %v10575_v0 }
 0x3f6   : > { %3008 = vmatpush1.msra.mxu0 %v9100_v41 }
 0x3f7   : > { %3009 = vmatprep.subr.mxu0 %v10575_v0 }
 0x3f8   : > { %3010 = vmatpush1.msra.mxu0 %v9099_v54 }
 0x3f9   : > { %3011 = vmatprep.subr.mxu0 %v10575_v0 }
 0x3fa   : > { %3012 = vmatpush1.msra.mxu0 %v9098_v61 }
 0x3fb   : > { %3013 = vmatprep.subr.mxu0 %v10575_v0 }
 0x3fc   : > { %3014 = vmatpush1.msra.mxu0 %v9097_v28 }
 0x3fd   : > { %3043 = vmatprep.subr.mxu0 %v10575_v0 }
 0x3fe   : > { %3044 = vmatpush2.msra.mxu0 %v9114_v52 }
 0x3ff   : > { %3045 = vmatprep.subr.mxu0 %v10575_v0 }
 0x400   : > { %3046 = vmatpush2.msra.mxu0 %v9113_v53 }
 0x401   : > { %3048 = vmatmul.mubr.f32.vlgmr.msra.gmra.mxu0 %v12737_v42  ;;  %10074 = vmatprep.subr.mxu0 %v10575_v0 }
 0x402   : > { %9116 = vmatprep.mubr.msk.f32.mxu0 %vm2301_vm3, %v12758_v59 }
 0x405   : > { %3053 = vmatmul.mubr.f32.gmra.mxu0 %v12762_v38 }
 0x406   : > { %10078 = vmatprep.mubr.msk.f32.mxu0 %vm10577_vm4, %v10575_v0 }
 0x491   : > { %v2858_v57 = vpop.f32.mrf.mxu0 }
 0x493   : > { %v10028_v3 = vpop.f32.mrf.mxu0 }
 0x495   : > { %v2863_v44 = vpop.f32.mrf.mxu0 }
 0x497   : > { %v10031_v50 = vpop.f32.mrf.mxu0 }
 0x499   : > { %v2868_v6 = vpop.f32.mrf.mxu0 }
 0x49b   : > { %v10034_v7 = vpop.f32.mrf.mxu0 }
 0x49d   : > { %v2950_v47 = vpop.f32.mrf.mxu0 }
 0x49e   : > { %v13126_v49 = vadd.f32 %v2950_v47, %v2858_v57  ;;  %v9148_v47 = vld [vmem:[%s16091_s5 + $0x90] sm:$0xff] }
 0x49f   : > { %v10041_v55 = vpop.f32.mrf.mxu0 }
 0x4a1   : > { %v2955_v62 = vpop.f32.mrf.mxu0 }
 0x4a2   : > { %v13128_v58 = vadd.f32 %v2955_v62, %v2863_v44  ;;  %v9149_v62 = vld [vmem:[%s16091_s5 + $0x98] sm:$0xff] }
 0x4a3   : > { %v10044_v8 = vpop.f32.mrf.mxu0 }
 0x4a4   : > { %v9174_v8 = vld [vmem:[%s16090_s4 + $0x468] sm:$0xff] }
 0x4a5   : > { %v2960_v48 = vpop.f32.mrf.mxu0 }
 0x4a6   : > { %v13130_v56 = vadd.f32 %v2960_v48, %v2868_v6  ;;  %v9173_v48 = vld [vmem:[%s16090_s4 + $0x460] sm:$0xff] }
 0x4a7   : > { %v10047_v2 = vpop.f32.mrf.mxu0 }
 0x4a8   : > { %v9041_v2 = vld [vmem:[%s16091_s5 + $0x38] sm:$0xff] }
 0x4c1   : > { %v3049_v9 = vpop.f32.mrf.mxu0 }
 0x4c3   : > { %v3051_v51 = vpop.f32.mrf.mxu0 }
 0x4c4   : > { %v9171_v51 = vld [vmem:[%s16090_s4 + $0x450] sm:$0xff] }
 0x4c5   : > { %v3054_v11 = vpop.f32.mrf.mxu0 }
 0x4c6   : > { %10049 = vmatpush3.msk.msra.mxu1 %vm2788_vm5, %v3054_v11  ;;  %v9042_v11 = vld [vmem:[%s16091_s5 + $0x40] sm:$0xf] }
 0x4c7   : > { %v3056_v5 = vpop.f32.mrf.mxu0  ;;  %10050 = vmatprep.subr.mxu1 %v10575_v0 }
 0x4c8   : > { %10051 = vmatpush3.msra.mxu1 %v3049_v9  ;;  %v9172_v9 = vld [vmem:[%s16090_s4 + $0x458] sm:$0xff]  ;;  %v9169_v5 = vld [vmem:[%s16090_s4 + $0x440] sm:$0xff] }
 0x4c9   : > { %10053 = vmatmul.mubr.msk.f32.vlgmr.msra.gmra.mxu1 %vm2778_vm6, %v9117_v45  ;;  %10061 = vmatprep.subr.mxu1 %v10575_v0  ;;  %v9170_v45 = vld [vmem:[%s16090_s4 + $0x448] sm:$0xff] }
 0x4ca   : > { %10062 = vmatpush3.msk.msra.mxu1 %vm2788_vm5, %v12996_v43  ;;  %10055 = vmatprep.mubr.msk.f32.mxu1 %vm10577_vm4, %v10575_v0  ;;  %v9119_v43 = vld [vmem:[%s16091_s5 + $0x88] sm:$0xf] }
 0x4cb   : > { %10063 = vmatprep.subr.mxu1 %v10575_v0 }
 0x4cc   : > { %10064 = vmatpush3.msra.mxu1 %v12994_v10  ;;  %v9017_v10 = vld [vmem:[%s16091_s5 + $0x18] sm:$0xff] }
 0x4cd   : > { %10056 = vmatmul.mubr.msk.f32.gmra.mxu1 %vm2778_vm6, %v9118_v40  ;;  %3265 = vmatprep.subr.mxu1 %v10575_v0  ;;  %v9168_v40 = vld [vmem:[%s16090_s4 + $0x438] sm:$0xff] }
 0x4ce   : > { %10058 = vmatprep.mubr.msk.f32.mxu1 %vm10577_vm4, %v10575_v0 }
 0x4d1   : > { %10059 = vmatmul.mubr.msk.f32.gmra.mxu1 %vm2778_vm6, %v9119_v43  ;;  %v9167_v43 = vld [vmem:[%s16090_s4 + $0x430] sm:$0xff] }
 0x4d2   : > { %10065 = vmatprep.mubr.msk.f32.mxu1 %vm10577_vm4, %v10575_v0 }
 0x4d5   : > { %10066 = vmatmul.mubr.msk.f32.vlgmr.msra.gmra.mxu1 %vm2778_vm6, %v9017_v10  ;;  %v9166_v10 = vld [vmem:[%s16090_s4 + $0x428] sm:$0xff] }
 0x4d6   : > { %3266 = vmatpush1.msra.mxu1 %v9143_v12  ;;  %10068 = vmatprep.mubr.msk.f32.mxu1 %vm10577_vm4, %v10575_v0  ;;  %v9165_v12 = vld [vmem:[%s16090_s4 + $0x420] sm:$0xff] }
 0x4d7   : > { %3267 = vmatprep.subr.mxu1 %v10575_v0 }
 0x4d8   : > { %3268 = vmatpush1.msra.mxu1 %v9142_v60  ;;  %v9164_v60 = vld [vmem:[%s16090_s4 + $0x418] sm:$0xff] }
 0x4d9   : > { %3269 = vmatprep.subr.mxu1 %v10575_v0  ;;  %10069 = vmatmul.mubr.msk.f32.gmra.mxu1 %vm2778_vm6, %v9018_v15  ;;  %v9163_v15 = vld [vmem:[%s16090_s4 + $0x410] sm:$0xff] }
 0x4da   : > { %3270 = vmatpush1.msra.mxu1 %v9141_v16  ;;  %10071 = vmatprep.mubr.msk.f32.mxu1 %vm10577_vm4, %v10575_v0  ;;  %v9162_v16 = vld [vmem:[%s16090_s4 + $0x408] sm:$0xff] }
 0x4db   : > { %3271 = vmatprep.subr.mxu1 %v10575_v0 }
 0x4dc   : > { %3272 = vmatpush1.msra.mxu1 %v9140_v17  ;;  %v9161_v17 = vld [vmem:[%s16090_s4 + $0x400] sm:$0xff] }
 0x4dd   : > { %3273 = vmatprep.subr.mxu1 %v10575_v0  ;;  %10072 = vmatmul.mubr.msk.f32.gmra.mxu1 %vm2778_vm6, %v9019_v18  ;;  %v9160_v18 = vld [vmem:[%s16090_s4 + $0x3f8] sm:$0xff] }
 0x4de   : > { %3274 = vmatpush1.msra.mxu1 %v9139_v19  ;;  %9146 = vmatprep.mubr.msk.f32.mxu1 %vm2301_vm3, %v12733_v4  ;;  %v9159_v19 = vld [vmem:[%s16090_s4 + $0x3f0] sm:$0xff] }
 0x4df   : > { %3275 = vmatprep.subr.mxu1 %v10575_v0 }
 0x4e0   : > { %3276 = vmatpush1.msra.mxu1 %v9138_v63  ;;  %v9176_v63 = vld [vmem:[%s16090_s4 + $0x478] sm:$0xff] }
 0x4e1   : > { %3277 = vmatprep.subr.mxu1 %v10575_v0 }
 0x4e2   : > { %3278 = vmatpush1.msra.mxu1 %v9137_v20  ;;  %v9175_v20 = vld [vmem:[%s16090_s4 + $0x470] sm:$0xff] }
 0x4e3   : > { %3279 = vmatprep.subr.mxu1 %v10575_v0 }
 0x4e4   : > { %3280 = vmatpush1.msra.mxu1 %v9136_v21 }
 0x4e5   : > { %3281 = vmatprep.subr.mxu1 %v10575_v0 }
 0x4e6   : > { %3282 = vmatpush1.msra.mxu1 %v9135_v22 }
 0x4e7   : > { %3283 = vmatprep.subr.mxu1 %v10575_v0 }
 0x4e8   : > { %3284 = vmatpush1.msra.mxu1 %v9134_v23 }
 0x4e9   : > { %3285 = vmatprep.subr.mxu1 %v10575_v0 }
 0x4ea   : > { %3286 = vmatpush1.msra.mxu1 %v9133_v24 }
 0x4eb   : > { %3287 = vmatprep.subr.mxu1 %v10575_v0 }
 0x4ec   : > { %3288 = vmatpush1.msra.mxu1 %v9132_v25 }
 0x4ed   : > { %3289 = vmatprep.subr.mxu1 %v10575_v0 }
 0x4ee   : > { %3290 = vmatpush1.msra.mxu1 %v9131_v26 }
 0x4ef   : > { %3291 = vmatprep.subr.mxu1 %v10575_v0 }
 0x4f0   : > { %3292 = vmatpush1.msra.mxu1 %v9130_v27 }
 0x4f1   : > { %3293 = vmatprep.subr.mxu1 %v10575_v0 }
 0x4f2   : > { %3294 = vmatpush1.msra.mxu1 %v9129_v29 }
 0x4f3   : > { %3295 = vmatprep.subr.mxu1 %v10575_v0 }
 0x4f4   : > { %3296 = vmatpush1.msra.mxu1 %v9128_v30 }
 0x4f5   : > { %3325 = vmatprep.subr.mxu1 %v10575_v0 }
 0x4f6   : > { %3326 = vmatpush2.msra.mxu1 %v9145_v31 }
 0x4f7   : > { %3327 = vmatprep.subr.mxu1 %v10575_v0 }
 0x4f8   : > { %3328 = vmatpush2.msra.mxu1 %v9144_v32 }
 0x4f9   : > { %3330 = vmatmul.mubr.f32.vlgmr.msra.gmra.mxu1 %v12737_v42  ;;  %10100 = vmatprep.subr.mxu1 %v10575_v0 }
 0x4fa   : > { %9147 = vmatprep.mubr.msk.f32.mxu1 %vm2301_vm3, %v12758_v59 }
 0x4fd   : > { %3335 = vmatmul.mubr.f32.gmra.mxu1 %v12762_v38 }
 0x4fe   : > { %10104 = vmatprep.mubr.msk.f32.mxu1 %vm10577_vm4, %v10575_v0 }
 0x589   : > { %v3140_v33 = vpop.f32.mrf.mxu1 }
 0x58b   : > { %v10054_v34 = vpop.f32.mrf.mxu1 }
 0x58d   : > { %v3145_v35 = vpop.f32.mrf.mxu1 }
 0x58f   : > { %v10057_v36 = vpop.f32.mrf.mxu1 }
 0x591   : > { %v3150_v37 = vpop.f32.mrf.mxu1 }
 0x593   : > { %v10060_v39 = vpop.f32.mrf.mxu1 }
 0x595   : > { %v3232_v41 = vpop.f32.mrf.mxu1 }
 0x596   : > { %v13254_v54 = vadd.f32 %v3232_v41, %v3140_v33 }
 0x597   : > { %v10067_v61 = vpop.f32.mrf.mxu1 }
 0x598   : > { %v9179_v61 = vld [vmem:[%s16091_s5 + $0xa8] sm:$0xff] }
 0x599   : > { %v3237_v28 = vpop.f32.mrf.mxu1 }
 0x59a   : > { %v13256_v52 = vadd.f32 %v3237_v28, %v3145_v35 }
 0x59b   : > { %v10070_v53 = vpop.f32.mrf.mxu1 }
 0x59c   : > { %v9180_v53 = vld [vmem:[%s16091_s5 + $0xb0] sm:$0xff] }
 0x59d   : > { %v3242_v57 = vpop.f32.mrf.mxu1 }
 0x59e   : > { %v13258_v3 = vadd.f32 %v3242_v57, %v3150_v37  ;;  %v9205_v57 = vld [vmem:[%s16090_s4 + $0x4f8] sm:$0xff] }
 0x59f   : > { %v10073_v44 = vpop.f32.mrf.mxu1 }
 0x5a0   : > { %v9204_v44 = vld [vmem:[%s16090_s4 + $0x4f0] sm:$0xff] }
 0x5b9   : > { %v3331_v50 = vpop.f32.mrf.mxu1 }
 0x5bb   : > { %v3333_v6 = vpop.f32.mrf.mxu1 }
 0x5bc   : > { %v9203_v6 = vld [vmem:[%s16090_s4 + $0x4e8] sm:$0xff] }
 0x5bd   : > { %v3336_v7 = vpop.f32.mrf.mxu1 }
 0x5be   : > { %10075 = vmatpush3.msk.msra.mxu0 %vm2788_vm5, %v3336_v7  ;;  %v9202_v7 = vld [vmem:[%s16090_s4 + $0x4e0] sm:$0xff] }
 0x5bf   : > { %v3338_v55 = vpop.f32.mrf.mxu1  ;;  %10076 = vmatprep.subr.mxu0 %v10575_v0 }
 0x5c0   : > { %10077 = vmatpush3.msra.mxu0 %v3331_v50  ;;  %v9064_v50 = vld [vmem:[%s16091_s5 + $0x50] sm:$0xff]  ;;  %v9201_v55 = vld [vmem:[%s16090_s4 + $0x4d8] sm:$0xff] }
 0x5c1   : > { %10079 = vmatmul.mubr.msk.f32.vlgmr.msra.gmra.mxu0 %vm2778_vm6, %v9148_v47  ;;  %10087 = vmatprep.subr.mxu0 %v10575_v0  ;;  %v9065_v47 = vld [vmem:[%s16091_s5 + $0x58] sm:$0xf] }
 0x5c2   : > { %10088 = vmatpush3.msk.msra.mxu0 %vm2788_vm5, %v13004_v14  ;;  %10081 = vmatprep.mubr.msk.f32.mxu0 %vm10577_vm4, %v10575_v0  ;;  %v9150_v14 = vld [vmem:[%s16091_s5 + $0xa0] sm:$0xf] }
 0x5c3   : > { %10089 = vmatprep.subr.mxu0 %v10575_v0 }
 0x5c4   : > { %10090 = vmatpush3.msra.mxu0 %v12998_v1  ;;  %v9040_v1 = vld [vmem:[%s16091_s5 + $0x30] sm:$0xff] }
 0x5c5   : > { %10082 = vmatmul.mubr.msk.f32.gmra.mxu0 %vm2778_vm6, %v9149_v62  ;;  %3547 = vmatprep.subr.mxu0 %v10575_v0  ;;  %v9200_v62 = vld [vmem:[%s16090_s4 + $0x4d0] sm:$0xff] }
 0x5c6   : > { %10084 = vmatprep.mubr.msk.f32.mxu0 %vm10577_vm4, %v10575_v0 }
 0x5c9   : > { %10085 = vmatmul.mubr.msk.f32.gmra.mxu0 %vm2778_vm6, %v9150_v14  ;;  %v9199_v14 = vld [vmem:[%s16090_s4 + $0x4c8] sm:$0xff] }
 0x5ca   : > { %10091 = vmatprep.mubr.msk.f32.mxu0 %vm10577_vm4, %v10575_v0 }
 0x5cd   : > { %10092 = vmatmul.mubr.msk.f32.vlgmr.msra.gmra.mxu0 %vm2778_vm6, %v9040_v1  ;;  %v9198_v1 = vld [vmem:[%s16090_s4 + $0x4c0] sm:$0xff] }
 0x5ce   : > { %3548 = vmatpush1.msra.mxu0 %v9174_v8  ;;  %10094 = vmatprep.mubr.msk.f32.mxu0 %vm10577_vm4, %v10575_v0  ;;  %v9197_v8 = vld [vmem:[%s16090_s4 + $0x4b8] sm:$0xff] }
 0x5cf   : > { %3549 = vmatprep.subr.mxu0 %v10575_v0 }
 0x5d0   : > { %3550 = vmatpush1.msra.mxu0 %v9173_v48  ;;  %v9196_v48 = vld [vmem:[%s16090_s4 + $0x4b0] sm:$0xff] }
 0x5d1   : > { %3551 = vmatprep.subr.mxu0 %v10575_v0  ;;  %10095 = vmatmul.mubr.msk.f32.gmra.mxu0 %vm2778_vm6, %v9041_v2  ;;  %v9195_v2 = vld [vmem:[%s16090_s4 + $0x4a8] sm:$0xff] }
 0x5d2   : > { %3552 = vmatpush1.msra.mxu0 %v9172_v9  ;;  %10097 = vmatprep.mubr.msk.f32.mxu0 %vm10577_vm4, %v10575_v0  ;;  %v9194_v9 = vld [vmem:[%s16090_s4 + $0x4a0] sm:$0xff] }
 0x5d3   : > { %3553 = vmatprep.subr.mxu0 %v10575_v0 }
 0x5d4   : > { %3554 = vmatpush1.msra.mxu0 %v9171_v51  ;;  %v9193_v51 = vld [vmem:[%s16090_s4 + $0x498] sm:$0xff] }
 0x5d5   : > { %3555 = vmatprep.subr.mxu0 %v10575_v0  ;;  %10098 = vmatmul.mubr.msk.f32.gmra.mxu0 %vm2778_vm6, %v9042_v11  ;;  %v9192_v11 = vld [vmem:[%s16090_s4 + $0x490] sm:$0xff] }
 0x5d6   : > { %3556 = vmatpush1.msra.mxu0 %v9170_v45  ;;  %9177 = vmatprep.mubr.msk.f32.mxu0 %vm2301_vm3, %v12733_v4  ;;  %v9191_v45 = vld [vmem:[%s16090_s4 + $0x488] sm:$0xff] }
 0x5d7   : > { %3557 = vmatprep.subr.mxu0 %v10575_v0 }
 0x5d8   : > { %3558 = vmatpush1.msra.mxu0 %v9169_v5  ;;  %v9190_v5 = vld [vmem:[%s16090_s4 + $0x480] sm:$0xff] }
 0x5d9   : > { %3559 = vmatprep.subr.mxu0 %v10575_v0 }
 0x5da   : > { %3560 = vmatpush1.msra.mxu0 %v9168_v40  ;;  %v9207_v40 = vld [vmem:[%s16090_s4 + $0x508] sm:$0xff] }
 0x5db   : > { %3561 = vmatprep.subr.mxu0 %v10575_v0 }
 0x5dc   : > { %3562 = vmatpush1.msra.mxu0 %v9167_v43  ;;  %v9206_v43 = vld [vmem:[%s16090_s4 + $0x500] sm:$0xff] }
 0x5dd   : > { %3563 = vmatprep.subr.mxu0 %v10575_v0 }
 0x5de   : > { %3564 = vmatpush1.msra.mxu0 %v9166_v10 }
 0x5df   : > { %3565 = vmatprep.subr.mxu0 %v10575_v0 }
 0x5e0   : > { %3566 = vmatpush1.msra.mxu0 %v9165_v12 }
 0x5e1   : > { %3567 = vmatprep.subr.mxu0 %v10575_v0 }
 0x5e2   : > { %3568 = vmatpush1.msra.mxu0 %v9164_v60 }
 0x5e3   : > { %3569 = vmatprep.subr.mxu0 %v10575_v0 }
 0x5e4   : > { %3570 = vmatpush1.msra.mxu0 %v9163_v15 }
 0x5e5   : > { %3571 = vmatprep.subr.mxu0 %v10575_v0 }
 0x5e6   : > { %3572 = vmatpush1.msra.mxu0 %v9162_v16 }
 0x5e7   : > { %3573 = vmatprep.subr.mxu0 %v10575_v0 }
 0x5e8   : > { %3574 = vmatpush1.msra.mxu0 %v9161_v17 }
 0x5e9   : > { %3575 = vmatprep.subr.mxu0 %v10575_v0 }
 0x5ea   : > { %3576 = vmatpush1.msra.mxu0 %v9160_v18 }
 0x5eb   : > { %3577 = vmatprep.subr.mxu0 %v10575_v0 }
 0x5ec   : > { %3578 = vmatpush1.msra.mxu0 %v9159_v19 }
 0x5ed   : > { %3607 = vmatprep.subr.mxu0 %v10575_v0 }
 0x5ee   : > { %3608 = vmatpush2.msra.mxu0 %v9176_v63 }
 0x5ef   : > { %3609 = vmatprep.subr.mxu0 %v10575_v0 }
 0x5f0   : > { %3610 = vmatpush2.msra.mxu0 %v9175_v20 }
 0x5f1   : > { %3612 = vmatmul.mubr.f32.vlgmr.msra.gmra.mxu0 %v12737_v42  ;;  %10126 = vmatprep.subr.mxu0 %v10575_v0 }
 0x5f2   : > { %9178 = vmatprep.mubr.msk.f32.mxu0 %vm2301_vm3, %v12758_v59 }
 0x5f5   : > { %3617 = vmatmul.mubr.f32.gmra.mxu0 %v12762_v38 }
 0x5f6   : > { %10130 = vmatprep.mubr.msk.f32.mxu0 %vm10577_vm4, %v10575_v0 }
 0x681   : > { %v3422_v21 = vpop.f32.mrf.mxu0 }
 0x683   : > { %v10080_v22 = vpop.f32.mrf.mxu0 }
 0x685   : > { %v3427_v23 = vpop.f32.mrf.mxu0 }
 0x687   : > { %v10083_v24 = vpop.f32.mrf.mxu0 }
 0x689   : > { %v3432_v25 = vpop.f32.mrf.mxu0 }
 0x68b   : > { %v10086_v26 = vpop.f32.mrf.mxu0 }
 0x68d   : > { %v3514_v27 = vpop.f32.mrf.mxu0 }
 0x68e   : > { %v13382_v29 = vadd.f32 %v3514_v27, %v3422_v21 }
 0x68f   : > { %v10093_v30 = vpop.f32.mrf.mxu0 }
 0x691   : > { %v3519_v31 = vpop.f32.mrf.mxu0 }
 0x692   : > { %v13384_v32 = vadd.f32 %v3519_v31, %v3427_v23  ;;  %v9210_v31 = vld [vmem:[%s16091_s5 + $0xc0] sm:$0xff] }
 0x693   : > { %v10096_v33 = vpop.f32.mrf.mxu0 }
 0x695   : > { %v3524_v34 = vpop.f32.mrf.mxu0 }
 0x696   : > { %v13386_v35 = vadd.f32 %v3524_v34, %v3432_v25  ;;  %v9232_v34 = vld [vmem:[%s16090_s4 + $0x588] sm:$0xff] }
 0x697   : > { %v10099_v36 = vpop.f32.mrf.mxu0 }
 0x698   : > { %v9231_v36 = vld [vmem:[%s16090_s4 + $0x580] sm:$0xff] }
 0x6b1   : > { %v3613_v37 = vpop.f32.mrf.mxu0 }
 0x6b3   : > { %v3615_v39 = vpop.f32.mrf.mxu0 }
 0x6b4   : > { %v9230_v39 = vld [vmem:[%s16090_s4 + $0x578] sm:$0xff] }
 0x6b5   : > { %v3618_v41 = vpop.f32.mrf.mxu0 }
 0x6b6   : > { %10101 = vmatpush3.msk.msra.mxu1 %vm2788_vm5, %v3618_v41  ;;  %v9229_v41 = vld [vmem:[%s16090_s4 + $0x570] sm:$0xff] }
 0x6b7   : > { %v3620_v28 = vpop.f32.mrf.mxu0  ;;  %10102 = vmatprep.subr.mxu1 %v10575_v0 }
 0x6b8   : > { %10103 = vmatpush3.msra.mxu1 %v3613_v37  ;;  %v9211_v37 = vld [vmem:[%s16091_s5 + $0xc8] sm:$0xff] }
 0x6b9   : > { %10105 = vmatmul.mubr.msk.f32.vlgmr.msra.gmra.mxu1 %vm2778_vm6, %v9179_v61  ;;  %10113 = vmatprep.subr.mxu1 %v10575_v0  ;;  %v9212_v61 = vld [vmem:[%s16091_s5 + $0xd0] sm:$0xf]  ;;  %v9228_v28 = vld [vmem:[%s16090_s4 + $0x568] sm:$0xff] }
 0x6ba   : > { %10114 = vmatpush3.msk.msra.mxu1 %vm2788_vm5, %v13002_v13  ;;  %10107 = vmatprep.mubr.msk.f32.mxu1 %vm10577_vm4, %v10575_v0  ;;  %v9181_v13 = vld [vmem:[%s16091_s5 + $0xb8] sm:$0xf] }
 0x6bb   : > { %10115 = vmatprep.subr.mxu1 %v10575_v0 }
 0x6bc   : > { %10116 = vmatpush3.msra.mxu1 %v13000_v46  ;;  %v9063_v46 = vld [vmem:[%s16091_s5 + $0x48] sm:$0xff] }
 0x6bd   : > { %10108 = vmatmul.mubr.msk.f32.gmra.mxu1 %vm2778_vm6, %v9180_v53  ;;  %3829 = vmatprep.subr.mxu1 %v10575_v0  ;;  %v9227_v53 = vld [vmem:[%s16090_s4 + $0x560] sm:$0xff] }
 0x6be   : > { %10110 = vmatprep.mubr.msk.f32.mxu1 %vm10577_vm4, %v10575_v0 }
 0x6c1   : > { %10111 = vmatmul.mubr.msk.f32.gmra.mxu1 %vm2778_vm6, %v9181_v13  ;;  %v9226_v13 = vld [vmem:[%s16090_s4 + $0x558] sm:$0xff] }
 0x6c2   : > { %10117 = vmatprep.mubr.msk.f32.mxu1 %vm10577_vm4, %v10575_v0 }
 0x6c5   : > { %10118 = vmatmul.mubr.msk.f32.vlgmr.msra.gmra.mxu1 %vm2778_vm6, %v9063_v46  ;;  %v9225_v46 = vld [vmem:[%s16090_s4 + $0x550] sm:$0xff] }
 0x6c6   : > { %3830 = vmatpush1.msra.mxu1 %v9205_v57  ;;  %10120 = vmatprep.mubr.msk.f32.mxu1 %vm10577_vm4, %v10575_v0  ;;  %v9224_v57 = vld [vmem:[%s16090_s4 + $0x548] sm:$0xff] }
 0x6c7   : > { %3831 = vmatprep.subr.mxu1 %v10575_v0 }
 0x6c8   : > { %3832 = vmatpush1.msra.mxu1 %v9204_v44  ;;  %v9223_v44 = vld [vmem:[%s16090_s4 + $0x540] sm:$0xff] }
 0x6c9   : > { %3833 = vmatprep.subr.mxu1 %v10575_v0  ;;  %10121 = vmatmul.mubr.msk.f32.gmra.mxu1 %vm2778_vm6, %v9064_v50  ;;  %v9222_v50 = vld [vmem:[%s16090_s4 + $0x538] sm:$0xff] }
 0x6ca   : > { %3834 = vmatpush1.msra.mxu1 %v9203_v6  ;;  %10123 = vmatprep.mubr.msk.f32.mxu1 %vm10577_vm4, %v10575_v0  ;;  %v9221_v6 = vld [vmem:[%s16090_s4 + $0x530] sm:$0xff] }
 0x6cb   : > { %3835 = vmatprep.subr.mxu1 %v10575_v0 }
 0x6cc   : > { %3836 = vmatpush1.msra.mxu1 %v9202_v7  ;;  %v9220_v7 = vld [vmem:[%s16090_s4 + $0x528] sm:$0xff] }
 0x6cd   : > { %3837 = vmatprep.subr.mxu1 %v10575_v0  ;;  %10124 = vmatmul.mubr.msk.f32.gmra.mxu1 %vm2778_vm6, %v9065_v47  ;;  %v9219_v47 = vld [vmem:[%s16090_s4 + $0x520] sm:$0xff] }
 0x6ce   : > { %3838 = vmatpush1.msra.mxu1 %v9201_v55  ;;  %9208 = vmatprep.mubr.msk.f32.mxu1 %vm2301_vm3, %v12733_v4  ;;  %v9218_v55 = vld [vmem:[%s16090_s4 + $0x518] sm:$0xff] }
 0x6cf   : > { %3839 = vmatprep.subr.mxu1 %v10575_v0 }
 0x6d0   : > { %3840 = vmatpush1.msra.mxu1 %v9200_v62  ;;  %v9217_v62 = vld [vmem:[%s16090_s4 + $0x510] sm:$0xff] }
 0x6d1   : > { %3841 = vmatprep.subr.mxu1 %v10575_v0 }
 0x6d2   : > { %3842 = vmatpush1.msra.mxu1 %v9199_v14  ;;  %v9234_v14 = vld [vmem:[%s16090_s4 + $0x598] sm:$0xff] }
 0x6d3   : > { %3843 = vmatprep.subr.mxu1 %v10575_v0 }
 0x6d4   : > { %3844 = vmatpush1.msra.mxu1 %v9198_v1  ;;  %v9233_v1 = vld [vmem:[%s16090_s4 + $0x590] sm:$0xff] }
 0x6d5   : > { %3845 = vmatprep.subr.mxu1 %v10575_v0 }
 0x6d6   : > { %3846 = vmatpush1.msra.mxu1 %v9197_v8 }
 0x6d7   : > { %3847 = vmatprep.subr.mxu1 %v10575_v0 }
 0x6d8   : > { %3848 = vmatpush1.msra.mxu1 %v9196_v48 }
 0x6d9   : > { %3849 = vmatprep.subr.mxu1 %v10575_v0 }
 0x6da   : > { %3850 = vmatpush1.msra.mxu1 %v9195_v2 }
 0x6db   : > { %3851 = vmatprep.subr.mxu1 %v10575_v0 }
 0x6dc   : > { %3852 = vmatpush1.msra.mxu1 %v9194_v9 }
 0x6dd   : > { %3853 = vmatprep.subr.mxu1 %v10575_v0 }
 0x6de   : > { %3854 = vmatpush1.msra.mxu1 %v9193_v51 }
 0x6df   : > { %3855 = vmatprep.subr.mxu1 %v10575_v0 }
 0x6e0   : > { %3856 = vmatpush1.msra.mxu1 %v9192_v11 }
 0x6e1   : > { %3857 = vmatprep.subr.mxu1 %v10575_v0 }
 0x6e2   : > { %3858 = vmatpush1.msra.mxu1 %v9191_v45 }
 0x6e3   : > { %3859 = vmatprep.subr.mxu1 %v10575_v0 }
 0x6e4   : > { %3860 = vmatpush1.msra.mxu1 %v9190_v5 }
 0x6e5   : > { %3889 = vmatprep.subr.mxu1 %v10575_v0 }
 0x6e6   : > { %3890 = vmatpush2.msra.mxu1 %v9207_v40 }
 0x6e7   : > { %3891 = vmatprep.subr.mxu1 %v10575_v0 }
 0x6e8   : > { %3892 = vmatpush2.msra.mxu1 %v9206_v43 }
 0x6e9   : > { %3894 = vmatmul.mubr.f32.vlgmr.msra.gmra.mxu1 %v12737_v42  ;;  %10139 = vmatprep.subr.mxu1 %v10575_v0 }
 0x6ea   : > { %9209 = vmatprep.mubr.msk.f32.mxu1 %vm2301_vm3, %v12758_v59 }
 0x6ed   : > { %3899 = vmatmul.mubr.f32.gmra.mxu1 %v12762_v38 }
 0x6ee   : > { %10143 = vmatprep.mubr.msk.f32.mxu1 %vm10577_vm4, %v10575_v0 }
 0x779   : > { %v3704_v10 = vpop.f32.mrf.mxu1 }
 0x77b   : > { %v10106_v12 = vpop.f32.mrf.mxu1 }
 0x77d   : > { %v3709_v60 = vpop.f32.mrf.mxu1 }
 0x77f   : > { %v10109_v15 = vpop.f32.mrf.mxu1 }
 0x780   : > { %v9238_v15 = vld [vmem:[%s16091_s5 + $0xe0] sm:$0xff] }
 0x781   : > { %v3714_v16 = vpop.f32.mrf.mxu1 }
 0x783   : > { %v10112_v17 = vpop.f32.mrf.mxu1 }
 0x784   : > { %v9256_v17 = vld [vmem:[%s16090_s4 + $0x600] sm:$0xff] }
 0x785   : > { %v3796_v18 = vpop.f32.mrf.mxu1 }
 0x786   : > { %v13510_v19 = vadd.f32 %v3796_v18, %v3704_v10  ;;  %v9239_v18 = vld [vmem:[%s16091_s5 + $0xe8] sm:$0xf] }
 0x787   : > { %v10119_v63 = vpop.f32.mrf.mxu1 }
 0x788   : > { %v9255_v63 = vld [vmem:[%s16090_s4 + $0x5f8] sm:$0xff] }
 0x789   : > { %v3801_v20 = vpop.f32.mrf.mxu1 }
 0x78a   : > { %v13512_v21 = vadd.f32 %v3801_v20, %v3709_v60  ;;  %v9254_v20 = vld [vmem:[%s16090_s4 + $0x5f0] sm:$0xff] }
 0x78b   : > { %v10122_v22 = vpop.f32.mrf.mxu1 }
 0x78c   : > { %v9253_v22 = vld [vmem:[%s16090_s4 + $0x5e8] sm:$0xff] }
 0x78d   : > { %v3806_v23 = vpop.f32.mrf.mxu1 }
 0x78e   : > { %v13514_v24 = vadd.f32 %v3806_v23, %v3714_v16  ;;  %v9257_v16 = vld [vmem:[%s16090_s4 + $0x608] sm:$0xff]  ;;  %v9252_v23 = vld [vmem:[%s16090_s4 + $0x5e0] sm:$0xff] }
 0x78f   : > { %v10125_v25 = vpop.f32.mrf.mxu1 }
 0x790   : > { %v9251_v25 = vld [vmem:[%s16090_s4 + $0x5d8] sm:$0xff] }
 0x7a9   : > { %v3895_v26 = vpop.f32.mrf.mxu1 }
 0x7ab   : > { %v3897_v27 = vpop.f32.mrf.mxu1 }
 0x7ac   : > { %v9249_v27 = vld [vmem:[%s16090_s4 + $0x5c8] sm:$0xff] }
 0x7ad   : > { %v3900_v30 = vpop.f32.mrf.mxu1 }
 0x7ae   : > { %10127 = vmatpush3.msk.msra.mxu0 %vm2788_vm5, %v3900_v30  ;;  %v9248_v30 = vld [vmem:[%s16090_s4 + $0x5c0] sm:$0xff] }
 0x7af   : > { %v3902_v33 = vpop.f32.mrf.mxu1  ;;  %10128 = vmatprep.subr.mxu0 %v10575_v0 }
 0x7b0   : > { %10129 = vmatpush3.msra.mxu0 %v3895_v26  ;;  %v9250_v26 = vld [vmem:[%s16090_s4 + $0x5d0] sm:$0xff] }
 0x7b1   : > { %10131 = vmatmul.mubr.msk.f32.vlgmr.msra.gmra.mxu0 %vm2778_vm6, %v9210_v31  ;;  %4022 = vmatprep.subr.mxu0 %v10575_v0  ;;  %v9247_v31 = vld [vmem:[%s16090_s4 + $0x5b8] sm:$0xff]  ;;  %v9246_v33 = vld [vmem:[%s16090_s4 + $0x5b0] sm:$0xff] }
 0x7b2   : > { %4023 = vmatpush1.msra.mxu0 %v9232_v34  ;;  %10133 = vmatprep.mubr.msk.f32.mxu0 %vm10577_vm4, %v10575_v0  ;;  %v9245_v34 = vld [vmem:[%s16090_s4 + $0x5a8] sm:$0xff] }
 0x7b3   : > { %4024 = vmatprep.subr.mxu0 %v10575_v0 }
 0x7b4   : > { %4025 = vmatpush1.msra.mxu0 %v9231_v36  ;;  %v9244_v36 = vld [vmem:[%s16090_s4 + $0x5a0] sm:$0xff] }
 0x7b5   : > { %10134 = vmatmul.mubr.msk.f32.gmra.mxu0 %vm2778_vm6, %v9211_v37  ;;  %4026 = vmatprep.subr.mxu0 %v10575_v0  ;;  %v9261_v37 = vld [vmem:[%s16090_s4 + $0x628] sm:$0xff] }
 0x7b6   : > { %4027 = vmatpush1.msra.mxu0 %v9230_v39  ;;  %10136 = vmatprep.mubr.msk.f32.mxu0 %vm10577_vm4, %v10575_v0  ;;  %v9260_v39 = vld [vmem:[%s16090_s4 + $0x620] sm:$0xff] }
 0x7b7   : > { %4028 = vmatprep.subr.mxu0 %v10575_v0 }
 0x7b8   : > { %4029 = vmatpush1.msra.mxu0 %v9229_v41 }
 0x7b9   : > { %10137 = vmatmul.mubr.msk.f32.gmra.mxu0 %vm2778_vm6, %v9212_v61  ;;  %4030 = vmatprep.subr.mxu0 %v10575_v0 }
 0x7ba   : > { %4031 = vmatpush1.msra.mxu0 %v9228_v28  ;;  %9235 = vmatprep.mubr.msk.f32.mxu0 %vm2301_vm3, %v12733_v4 }
 0x7bb   : > { %4032 = vmatprep.subr.mxu0 %v10575_v0 }
 0x7bc   : > { %4033 = vmatpush1.msra.mxu0 %v9227_v53 }
 0x7bd   : > { %4034 = vmatprep.subr.mxu0 %v10575_v0 }
 0x7be   : > { %4035 = vmatpush1.msra.mxu0 %v9226_v13 }
 0x7bf   : > { %4036 = vmatprep.subr.mxu0 %v10575_v0 }
 0x7c0   : > { %4037 = vmatpush1.msra.mxu0 %v9225_v46 }
 0x7c1   : > { %4038 = vmatprep.subr.mxu0 %v10575_v0 }
 0x7c2   : > { %4039 = vmatpush1.msra.mxu0 %v9224_v57 }
 0x7c3   : > { %4040 = vmatprep.subr.mxu0 %v10575_v0 }
 0x7c4   : > { %4041 = vmatpush1.msra.mxu0 %v9223_v44 }
 0x7c5   : > { %4042 = vmatprep.subr.mxu0 %v10575_v0 }
 0x7c6   : > { %4043 = vmatpush1.msra.mxu0 %v9222_v50 }
 0x7c7   : > { %4044 = vmatprep.subr.mxu0 %v10575_v0 }
 0x7c8   : > { %4045 = vmatpush1.msra.mxu0 %v9221_v6 }
 0x7c9   : > { %4046 = vmatprep.subr.mxu0 %v10575_v0 }
 0x7ca   : > { %4047 = vmatpush1.msra.mxu0 %v9220_v7 }
 0x7cb   : > { %4048 = vmatprep.subr.mxu0 %v10575_v0 }
 0x7cc   : > { %4049 = vmatpush1.msra.mxu0 %v9219_v47 }
 0x7cd   : > { %4050 = vmatprep.subr.mxu0 %v10575_v0 }
 0x7ce   : > { %4051 = vmatpush1.msra.mxu0 %v9218_v55 }
 0x7cf   : > { %4052 = vmatprep.subr.mxu0 %v10575_v0 }
 0x7d0   : > { %4053 = vmatpush1.msra.mxu0 %v9217_v62  ;;  %v9265_v62 = vld [vmem:[%s16091_s5 + $0xf8] sm:$0xff] }
 0x7d1   : > { %4082 = vmatprep.subr.mxu0 %v10575_v0 }
 0x7d2   : > { %4083 = vmatpush2.msra.mxu0 %v9234_v14  ;;  %v9284_v14 = vld [vmem:[%s16090_s4 + $0x698] sm:$0xff] }
 0x7d3   : > { %4084 = vmatprep.subr.mxu0 %v10575_v0 }
 0x7d4   : > { %4085 = vmatpush2.msra.mxu0 %v9233_v1  ;;  %v9283_v1 = vld [vmem:[%s16090_s4 + $0x690] sm:$0xff] }
 0x7d5   : > { %4087 = vmatmul.mubr.f32.vlgmr.msra.gmra.mxu0 %v12737_v42  ;;  %10152 = vmatprep.subr.mxu0 %v10575_v0 }
 0x7d6   : > { %9236 = vmatprep.mubr.msk.f32.mxu0 %vm2301_vm3, %v12758_v59 }
 0x7d9   : > { %4092 = vmatmul.mubr.f32.gmra.mxu0 %v12762_v38 }
 0x7da   : > { %10156 = vmatprep.mubr.msk.f32.mxu0 %vm10577_vm4, %v10575_v0 }
 0x871   : > { %v3986_v8 = vpop.f32.mrf.mxu0 }
 0x872   : > { %v13616_v48 = vadd.f32 %v3986_v8, %v13126_v49  ;;  %v9237_v49 = vld [vmem:[%s16091_s5 + $0xd8] sm:$0xff]  ;;  %v9266_v8 = vld [vmem:[%s16091_s5 + $0x100] sm:$0xf] }
 0x873   : > { %v10132_v2 = vpop.f32.mrf.mxu0 }
 0x874   : > { %v9282_v2 = vld [vmem:[%s16090_s4 + $0x688] sm:$0xff] }
 0x875   : > { %v3991_v9 = vpop.f32.mrf.mxu0 }
 0x876   : > { %v13619_v51 = vadd.f32 %v3991_v9, %v13128_v58  ;;  %v9259_v58 = vld [vmem:[%s16090_s4 + $0x618] sm:$0xff]  ;;  %v9281_v9 = vld [vmem:[%s16090_s4 + $0x680] sm:$0xff] }
 0x877   : > { %v10135_v11 = vpop.f32.mrf.mxu0 }
 0x878   : > { %v9280_v11 = vld [vmem:[%s16090_s4 + $0x678] sm:$0xff] }
 0x879   : > { %v3996_v45 = vpop.f32.mrf.mxu0 }
 0x87a   : > { %v13622_v5 = vadd.f32 %v3996_v45, %v13130_v56  ;;  %v9258_v56 = vld [vmem:[%s16090_s4 + $0x610] sm:$0xff] }
 0x87b   : > { %v10138_v40 = vpop.f32.mrf.mxu0  ;;  %v9279_v45 = vld [vmem:[%s16090_s4 + $0x670] sm:$0xff] }
 0x87c   : > { %v9278_v40 = vld [vmem:[%s16090_s4 + $0x668] sm:$0xff] }
 0x895   : > { %v4088_v43 = vpop.f32.mrf.mxu0 }
 0x897   : > { %v4090_v10 = vpop.f32.mrf.mxu0 }
 0x898   : > { %v9276_v10 = vld [vmem:[%s16090_s4 + $0x658] sm:$0xff] }
 0x899   : > { %v4093_v12 = vpop.f32.mrf.mxu0 }
 0x89a   : > { %10140 = vmatpush3.msk.msra.mxu1 %vm2788_vm5, %v4093_v12  ;;  %v9275_v12 = vld [vmem:[%s16090_s4 + $0x650] sm:$0xff] }
 0x89b   : > { %v4095_v60 = vpop.f32.mrf.mxu0  ;;  %10141 = vmatprep.subr.mxu1 %v10575_v0 }
 0x89c   : > { %10142 = vmatpush3.msra.mxu1 %v4088_v43  ;;  %v9277_v43 = vld [vmem:[%s16090_s4 + $0x660] sm:$0xff] }
 0x89d   : > { %10144 = vmatmul.mubr.msk.f32.vlgmr.msra.gmra.mxu1 %vm2778_vm6, %v9237_v49  ;;  %4215 = vmatprep.subr.mxu1 %v10575_v0  ;;  %v9274_v49 = vld [vmem:[%s16090_s4 + $0x648] sm:$0xff]  ;;  %v9273_v60 = vld [vmem:[%s16090_s4 + $0x640] sm:$0xff] }
 0x89e   : > { %4216 = vmatpush1.msra.mxu1 %v9259_v58  ;;  %10146 = vmatprep.mubr.msk.f32.mxu1 %vm10577_vm4, %v10575_v0  ;;  %v9272_v58 = vld [vmem:[%s16090_s4 + $0x638] sm:$0xff] }
 0x89f   : > { %4217 = vmatprep.subr.mxu1 %v10575_v0 }
 0x8a0   : > { %4218 = vmatpush1.msra.mxu1 %v9258_v56  ;;  %v9271_v56 = vld [vmem:[%s16090_s4 + $0x630] sm:$0xff] }
 0x8a1   : > { %10147 = vmatmul.mubr.msk.f32.gmra.mxu1 %vm2778_vm6, %v9238_v15  ;;  %4219 = vmatprep.subr.mxu1 %v10575_v0  ;;  %v9288_v15 = vld [vmem:[%s16090_s4 + $0x6b8] sm:$0xff] }
 0x8a2   : > { %4220 = vmatpush1.msra.mxu1 %v9257_v16  ;;  %10149 = vmatprep.mubr.msk.f32.mxu1 %vm10577_vm4, %v10575_v0  ;;  %v9287_v16 = vld [vmem:[%s16090_s4 + $0x6b0] sm:$0xff] }
 0x8a3   : > { %4221 = vmatprep.subr.mxu1 %v10575_v0 }
 0x8a4   : > { %4222 = vmatpush1.msra.mxu1 %v9256_v17 }
 0x8a5   : > { %10150 = vmatmul.mubr.msk.f32.gmra.mxu1 %vm2778_vm6, %v9239_v18  ;;  %4223 = vmatprep.subr.mxu1 %v10575_v0 }
 0x8a6   : > { %4224 = vmatpush1.msra.mxu1 %v9255_v63  ;;  %9262 = vmatprep.mubr.msk.f32.mxu1 %vm2301_vm3, %v12733_v4 }
 0x8a7   : > { %4225 = vmatprep.subr.mxu1 %v10575_v0 }
 0x8a8   : > { %4226 = vmatpush1.msra.mxu1 %v9254_v20 }
 0x8a9   : > { %4227 = vmatprep.subr.mxu1 %v10575_v0 }
 0x8aa   : > { %4228 = vmatpush1.msra.mxu1 %v9253_v22 }
 0x8ab   : > { %4229 = vmatprep.subr.mxu1 %v10575_v0 }
 0x8ac   : > { %4230 = vmatpush1.msra.mxu1 %v9252_v23 }
 0x8ad   : > { %4231 = vmatprep.subr.mxu1 %v10575_v0 }
 0x8ae   : > { %4232 = vmatpush1.msra.mxu1 %v9251_v25 }
 0x8af   : > { %4233 = vmatprep.subr.mxu1 %v10575_v0 }
 0x8b0   : > { %4234 = vmatpush1.msra.mxu1 %v9250_v26 }
 0x8b1   : > { %4235 = vmatprep.subr.mxu1 %v10575_v0 }
 0x8b2   : > { %4236 = vmatpush1.msra.mxu1 %v9249_v27 }
 0x8b3   : > { %4237 = vmatprep.subr.mxu1 %v10575_v0 }
 0x8b4   : > { %4238 = vmatpush1.msra.mxu1 %v9248_v30 }
 0x8b5   : > { %4239 = vmatprep.subr.mxu1 %v10575_v0 }
 0x8b6   : > { %4240 = vmatpush1.msra.mxu1 %v9247_v31 }
 0x8b7   : > { %4241 = vmatprep.subr.mxu1 %v10575_v0 }
 0x8b8   : > { %4242 = vmatpush1.msra.mxu1 %v9246_v33 }
 0x8b9   : > { %4243 = vmatprep.subr.mxu1 %v10575_v0 }
 0x8ba   : > { %4244 = vmatpush1.msra.mxu1 %v9245_v34 }
 0x8bb   : > { %4245 = vmatprep.subr.mxu1 %v10575_v0 }
 0x8bc   : > { %4246 = vmatpush1.msra.mxu1 %v9244_v36  ;;  %v9292_v36 = vld [vmem:[%s16091_s5 + $0x110] sm:$0xff] }
 0x8bd   : > { %4275 = vmatprep.subr.mxu1 %v10575_v0 }
 0x8be   : > { %4276 = vmatpush2.msra.mxu1 %v9261_v37  ;;  %v9311_v37 = vld [vmem:[%s16090_s4 + $0x728] sm:$0xff] }
 0x8bf   : > { %4277 = vmatprep.subr.mxu1 %v10575_v0 }
 0x8c0   : > { %4278 = vmatpush2.msra.mxu1 %v9260_v39  ;;  %v9310_v39 = vld [vmem:[%s16090_s4 + $0x720] sm:$0xff] }
 0x8c1   : > { %4280 = vmatmul.mubr.f32.vlgmr.msra.gmra.mxu1 %v12737_v42  ;;  %10165 = vmatprep.subr.mxu1 %v10575_v0 }
 0x8c2   : > { %9263 = vmatprep.mubr.msk.f32.mxu1 %vm2301_vm3, %v12758_v59 }
 0x8c5   : > { %4285 = vmatmul.mubr.f32.gmra.mxu1 %v12762_v38 }
 0x8c6   : > { %10169 = vmatprep.mubr.msk.f32.mxu1 %vm10577_vm4, %v10575_v0 }
 0x95d   : > { %v4179_v41 = vpop.f32.mrf.mxu1 }
 0x95e   : > { %v13724_v61 = vadd.f32 %v4179_v41, %v13254_v54  ;;  %v9264_v54 = vld [vmem:[%s16091_s5 + $0xf0] sm:$0xff]  ;;  %v9293_v41 = vld [vmem:[%s16091_s5 + $0x118] sm:$0xf] }
 0x95f   : > { %v10145_v28 = vpop.f32.mrf.mxu1 }
 0x960   : > { %v9309_v28 = vld [vmem:[%s16090_s4 + $0x718] sm:$0xff] }
 0x961   : > { %v4184_v53 = vpop.f32.mrf.mxu1 }
 0x962   : > { %v13727_v13 = vadd.f32 %v4184_v53, %v13256_v52  ;;  %v9286_v52 = vld [vmem:[%s16090_s4 + $0x6a8] sm:$0xff]  ;;  %v9308_v53 = vld [vmem:[%s16090_s4 + $0x710] sm:$0xff] }
 0x963   : > { %v10148_v46 = vpop.f32.mrf.mxu1 }
 0x964   : > { %v9307_v46 = vld [vmem:[%s16090_s4 + $0x708] sm:$0xff] }
 0x965   : > { %v4189_v57 = vpop.f32.mrf.mxu1 }
 0x966   : > { %v13730_v44 = vadd.f32 %v4189_v57, %v13258_v3  ;;  %v9285_v3 = vld [vmem:[%s16090_s4 + $0x6a0] sm:$0xff] }
 0x967   : > { %v10151_v50 = vpop.f32.mrf.mxu1  ;;  %v9306_v57 = vld [vmem:[%s16090_s4 + $0x700] sm:$0xff] }
 0x968   : > { %v9305_v50 = vld [vmem:[%s16090_s4 + $0x6f8] sm:$0xff] }
 0x981   : > { %v4281_v6 = vpop.f32.mrf.mxu1 }
 0x983   : > { %v4283_v7 = vpop.f32.mrf.mxu1 }
 0x984   : > { %v9303_v7 = vld [vmem:[%s16090_s4 + $0x6e8] sm:$0xff] }
 0x985   : > { %v4286_v47 = vpop.f32.mrf.mxu1 }
 0x986   : > { %10153 = vmatpush3.msk.msra.mxu0 %vm2788_vm5, %v4286_v47  ;;  %v9302_v47 = vld [vmem:[%s16090_s4 + $0x6e0] sm:$0xff] }
 0x987   : > { %v4288_v55 = vpop.f32.mrf.mxu1  ;;  %10154 = vmatprep.subr.mxu0 %v10575_v0 }
 0x988   : > { %10155 = vmatpush3.msra.mxu0 %v4281_v6  ;;  %v9304_v6 = vld [vmem:[%s16090_s4 + $0x6f0] sm:$0xff] }
 0x989   : > { %10157 = vmatmul.mubr.msk.f32.vlgmr.msra.gmra.mxu0 %vm2778_vm6, %v9264_v54  ;;  %4408 = vmatprep.subr.mxu0 %v10575_v0  ;;  %v9301_v54 = vld [vmem:[%s16090_s4 + $0x6d8] sm:$0xff]  ;;  %v9300_v55 = vld [vmem:[%s16090_s4 + $0x6d0] sm:$0xff] }
 0x98a   : > { %4409 = vmatpush1.msra.mxu0 %v9286_v52  ;;  %10159 = vmatprep.mubr.msk.f32.mxu0 %vm10577_vm4, %v10575_v0  ;;  %v9299_v52 = vld [vmem:[%s16090_s4 + $0x6c8] sm:$0xff] }
 0x98b   : > { %4410 = vmatprep.subr.mxu0 %v10575_v0 }
 0x98c   : > { %4411 = vmatpush1.msra.mxu0 %v9285_v3  ;;  %v9298_v3 = vld [vmem:[%s16090_s4 + $0x6c0] sm:$0xff] }
 0x98d   : > { %10160 = vmatmul.mubr.msk.f32.gmra.mxu0 %vm2778_vm6, %v9265_v62  ;;  %4412 = vmatprep.subr.mxu0 %v10575_v0  ;;  %v9315_v62 = vld [vmem:[%s16090_s4 + $0x748] sm:$0xff] }
 0x98e   : > { %4413 = vmatpush1.msra.mxu0 %v9284_v14  ;;  %10162 = vmatprep.mubr.msk.f32.mxu0 %vm10577_vm4, %v10575_v0  ;;  %v9314_v14 = vld [vmem:[%s16090_s4 + $0x740] sm:$0xff] }
 0x98f   : > { %4414 = vmatprep.subr.mxu0 %v10575_v0 }
 0x990   : > { %4415 = vmatpush1.msra.mxu0 %v9283_v1 }
 0x991   : > { %10163 = vmatmul.mubr.msk.f32.gmra.mxu0 %vm2778_vm6, %v9266_v8  ;;  %4416 = vmatprep.subr.mxu0 %v10575_v0 }
 0x992   : > { %4417 = vmatpush1.msra.mxu0 %v9282_v2  ;;  %9289 = vmatprep.mubr.msk.f32.mxu0 %vm2301_vm3, %v12733_v4 }
 0x993   : > { %4418 = vmatprep.subr.mxu0 %v10575_v0 }
 0x994   : > { %4419 = vmatpush1.msra.mxu0 %v9281_v9 }
 0x995   : > { %4420 = vmatprep.subr.mxu0 %v10575_v0 }
 0x996   : > { %4421 = vmatpush1.msra.mxu0 %v9280_v11 }
 0x997   : > { %4422 = vmatprep.subr.mxu0 %v10575_v0 }
 0x998   : > { %4423 = vmatpush1.msra.mxu0 %v9279_v45 }
 0x999   : > { %4424 = vmatprep.subr.mxu0 %v10575_v0 }
 0x99a   : > { %4425 = vmatpush1.msra.mxu0 %v9278_v40 }
 0x99b   : > { %4426 = vmatprep.subr.mxu0 %v10575_v0 }
 0x99c   : > { %4427 = vmatpush1.msra.mxu0 %v9277_v43 }
 0x99d   : > { %4428 = vmatprep.subr.mxu0 %v10575_v0 }
 0x99e   : > { %4429 = vmatpush1.msra.mxu0 %v9276_v10 }
 0x99f   : > { %4430 = vmatprep.subr.mxu0 %v10575_v0 }
 0x9a0   : > { %4431 = vmatpush1.msra.mxu0 %v9275_v12 }
 0x9a1   : > { %4432 = vmatprep.subr.mxu0 %v10575_v0 }
 0x9a2   : > { %4433 = vmatpush1.msra.mxu0 %v9274_v49 }
 0x9a3   : > { %4434 = vmatprep.subr.mxu0 %v10575_v0 }
 0x9a4   : > { %4435 = vmatpush1.msra.mxu0 %v9273_v60 }
 0x9a5   : > { %4436 = vmatprep.subr.mxu0 %v10575_v0 }
 0x9a6   : > { %4437 = vmatpush1.msra.mxu0 %v9272_v58 }
 0x9a7   : > { %4438 = vmatprep.subr.mxu0 %v10575_v0 }
 0x9a8   : > { %4439 = vmatpush1.msra.mxu0 %v9271_v56  ;;  %v9319_v56 = vld [vmem:[%s16091_s5 + $0x128] sm:$0xff] }
 0x9a9   : > { %4468 = vmatprep.subr.mxu0 %v10575_v0 }
 0x9aa   : > { %4469 = vmatpush2.msra.mxu0 %v9288_v15  ;;  %v9338_v15 = vld [vmem:[%s16090_s4 + $0x7b8] sm:$0xff] }
 0x9ab   : > { %4470 = vmatprep.subr.mxu0 %v10575_v0 }
 0x9ac   : > { %4471 = vmatpush2.msra.mxu0 %v9287_v16  ;;  %v9337_v16 = vld [vmem:[%s16090_s4 + $0x7b0] sm:$0xff] }
 0x9ad   : > { %4473 = vmatmul.mubr.f32.vlgmr.msra.gmra.mxu0 %v12737_v42  ;;  %10178 = vmatprep.subr.mxu0 %v10575_v0 }
 0x9ae   : > { %9290 = vmatprep.mubr.msk.f32.mxu0 %vm2301_vm3, %v12758_v59 }
 0x9b1   : > { %4478 = vmatmul.mubr.f32.gmra.mxu0 %v12762_v38 }
 0x9b2   : > { %10182 = vmatprep.mubr.msk.f32.mxu0 %vm10577_vm4, %v10575_v0 }
 0xa49   : > { %v4372_v17 = vpop.f32.mrf.mxu0 }
 0xa4a   : > { %v13832_v18 = vadd.f32 %v4372_v17, %v13382_v29  ;;  %v9291_v29 = vld [vmem:[%s16091_s5 + $0x108] sm:$0xff]  ;;  %v9320_v17 = vld [vmem:[%s16091_s5 + $0x130] sm:$0xf] }
 0xa4b   : > { %v10158_v63 = vpop.f32.mrf.mxu0 }
 0xa4c   : > { %v9336_v63 = vld [vmem:[%s16090_s4 + $0x7a8] sm:$0xff] }
 0xa4d   : > { %v4377_v20 = vpop.f32.mrf.mxu0 }
 0xa4e   : > { %v13835_v22 = vadd.f32 %v4377_v20, %v13384_v32  ;;  %v9313_v32 = vld [vmem:[%s16090_s4 + $0x738] sm:$0xff]  ;;  %v9335_v20 = vld [vmem:[%s16090_s4 + $0x7a0] sm:$0xff] }
 0xa4f   : > { %v10161_v23 = vpop.f32.mrf.mxu0 }
 0xa50   : > { %v9334_v23 = vld [vmem:[%s16090_s4 + $0x798] sm:$0xff] }
 0xa51   : > { %v4382_v25 = vpop.f32.mrf.mxu0 }
 0xa52   : > { %v13838_v26 = vadd.f32 %v4382_v25, %v13386_v35  ;;  %v9312_v35 = vld [vmem:[%s16090_s4 + $0x730] sm:$0xff] }
 0xa53   : > { %v10164_v27 = vpop.f32.mrf.mxu0  ;;  %v9333_v25 = vld [vmem:[%s16090_s4 + $0x790] sm:$0xff] }
 0xa54   : > { %v9332_v27 = vld [vmem:[%s16090_s4 + $0x788] sm:$0xff] }
 0xa6d   : > { %v4474_v30 = vpop.f32.mrf.mxu0 }
 0xa6f   : > { %v4476_v31 = vpop.f32.mrf.mxu0 }
 0xa70   : > { %v9330_v31 = vld [vmem:[%s16090_s4 + $0x778] sm:$0xff] }
 0xa71   : > { %v4479_v33 = vpop.f32.mrf.mxu0 }
 0xa72   : > { %10166 = vmatpush3.msk.msra.mxu1 %vm2788_vm5, %v4479_v33  ;;  %v9329_v33 = vld [vmem:[%s16090_s4 + $0x770] sm:$0xff] }
 0xa73   : > { %v4481_v34 = vpop.f32.mrf.mxu0  ;;  %10167 = vmatprep.subr.mxu1 %v10575_v0 }
 0xa74   : > { %10168 = vmatpush3.msra.mxu1 %v4474_v30  ;;  %v9331_v30 = vld [vmem:[%s16090_s4 + $0x780] sm:$0xff] }
 0xa75   : > { %10170 = vmatmul.mubr.msk.f32.vlgmr.msra.gmra.mxu1 %vm2778_vm6, %v9291_v29  ;;  %4601 = vmatprep.subr.mxu1 %v10575_v0  ;;  %v9328_v29 = vld [vmem:[%s16090_s4 + $0x768] sm:$0xff]  ;;  %v9327_v34 = vld [vmem:[%s16090_s4 + $0x760] sm:$0xff] }
 0xa76   : > { %4602 = vmatpush1.msra.mxu1 %v9313_v32  ;;  %10172 = vmatprep.mubr.msk.f32.mxu1 %vm10577_vm4, %v10575_v0  ;;  %v9326_v32 = vld [vmem:[%s16090_s4 + $0x758] sm:$0xff] }
 0xa77   : > { %4603 = vmatprep.subr.mxu1 %v10575_v0 }
 0xa78   : > { %4604 = vmatpush1.msra.mxu1 %v9312_v35  ;;  %v9325_v35 = vld [vmem:[%s16090_s4 + $0x750] sm:$0xff] }
 0xa79   : > { %10173 = vmatmul.mubr.msk.f32.gmra.mxu1 %vm2778_vm6, %v9292_v36  ;;  %4605 = vmatprep.subr.mxu1 %v10575_v0  ;;  %v9342_v36 = vld [vmem:[%s16090_s4 + $0x7d8] sm:$0xff] }
 0xa7a   : > { %4606 = vmatpush1.msra.mxu1 %v9311_v37  ;;  %10175 = vmatprep.mubr.msk.f32.mxu1 %vm10577_vm4, %v10575_v0  ;;  %v9341_v37 = vld [vmem:[%s16090_s4 + $0x7d0] sm:$0xff] }
 0xa7b   : > { %4607 = vmatprep.subr.mxu1 %v10575_v0 }
 0xa7c   : > { %4608 = vmatpush1.msra.mxu1 %v9310_v39 }
 0xa7d   : > { %10176 = vmatmul.mubr.msk.f32.gmra.mxu1 %vm2778_vm6, %v9293_v41  ;;  %4609 = vmatprep.subr.mxu1 %v10575_v0 }
 0xa7e   : > { %4610 = vmatpush1.msra.mxu1 %v9309_v28  ;;  %9316 = vmatprep.mubr.msk.f32.mxu1 %vm2301_vm3, %v12733_v4 }
 0xa7f   : > { %4611 = vmatprep.subr.mxu1 %v10575_v0 }
 0xa80   : > { %4612 = vmatpush1.msra.mxu1 %v9308_v53 }
 0xa81   : > { %4613 = vmatprep.subr.mxu1 %v10575_v0 }
 0xa82   : > { %4614 = vmatpush1.msra.mxu1 %v9307_v46 }
 0xa83   : > { %4615 = vmatprep.subr.mxu1 %v10575_v0 }
 0xa84   : > { %4616 = vmatpush1.msra.mxu1 %v9306_v57 }
 0xa85   : > { %4617 = vmatprep.subr.mxu1 %v10575_v0 }
 0xa86   : > { %4618 = vmatpush1.msra.mxu1 %v9305_v50 }
 0xa87   : > { %4619 = vmatprep.subr.mxu1 %v10575_v0 }
 0xa88   : > { %4620 = vmatpush1.msra.mxu1 %v9304_v6 }
 0xa89   : > { %4621 = vmatprep.subr.mxu1 %v10575_v0 }
 0xa8a   : > { %4622 = vmatpush1.msra.mxu1 %v9303_v7 }
 0xa8b   : > { %4623 = vmatprep.subr.mxu1 %v10575_v0 }
 0xa8c   : > { %4624 = vmatpush1.msra.mxu1 %v9302_v47 }
 0xa8d   : > { %4625 = vmatprep.subr.mxu1 %v10575_v0 }
 0xa8e   : > { %4626 = vmatpush1.msra.mxu1 %v9301_v54 }
 0xa8f   : > { %4627 = vmatprep.subr.mxu1 %v10575_v0 }
 0xa90   : > { %4628 = vmatpush1.msra.mxu1 %v9300_v55 }
 0xa91   : > { %4629 = vmatprep.subr.mxu1 %v10575_v0 }
 0xa92   : > { %4630 = vmatpush1.msra.mxu1 %v9299_v52 }
 0xa93   : > { %4631 = vmatprep.subr.mxu1 %v10575_v0 }
 0xa94   : > { %4632 = vmatpush1.msra.mxu1 %v9298_v3  ;;  %v9346_v3 = vld [vmem:[%s16091_s5 + $0x140] sm:$0xff] }
 0xa95   : > { %4661 = vmatprep.subr.mxu1 %v10575_v0 }
 0xa96   : > { %4662 = vmatpush2.msra.mxu1 %v9315_v62  ;;  %v9365_v62 = vld [vmem:[%s16090_s4 + $0x848] sm:$0xff] }
 0xa97   : > { %4663 = vmatprep.subr.mxu1 %v10575_v0 }
 0xa98   : > { %4664 = vmatpush2.msra.mxu1 %v9314_v14  ;;  %v9364_v14 = vld [vmem:[%s16090_s4 + $0x840] sm:$0xff] }
 0xa99   : > { %4666 = vmatmul.mubr.f32.vlgmr.msra.gmra.mxu1 %v12737_v42  ;;  %10191 = vmatprep.subr.mxu1 %v10575_v0 }
 0xa9a   : > { %9317 = vmatprep.mubr.msk.f32.mxu1 %vm2301_vm3, %v12758_v59 }
 0xa9d   : > { %4671 = vmatmul.mubr.f32.gmra.mxu1 %v12762_v38 }
 0xa9e   : > { %10195 = vmatprep.mubr.msk.f32.mxu1 %vm10577_vm4, %v10575_v0 }
 0xb35   : > { %v4565_v1 = vpop.f32.mrf.mxu1 }
 0xb36   : > { %v13940_v8 = vadd.f32 %v4565_v1, %v13510_v19  ;;  %v9318_v19 = vld [vmem:[%s16091_s5 + $0x120] sm:$0xff]  ;;  %v9347_v1 = vld [vmem:[%s16091_s5 + $0x148] sm:$0xf] }
 0xb37   : > { %v10171_v2 = vpop.f32.mrf.mxu1 }
 0xb38   : > { %v9363_v2 = vld [vmem:[%s16090_s4 + $0x838] sm:$0xff] }
 0xb39   : > { %v4570_v9 = vpop.f32.mrf.mxu1 }
 0xb3a   : > { %v13943_v11 = vadd.f32 %v4570_v9, %v13512_v21  ;;  %v9340_v21 = vld [vmem:[%s16090_s4 + $0x7c8] sm:$0xff]  ;;  %v9362_v9 = vld [vmem:[%s16090_s4 + $0x830] sm:$0xff] }
 0xb3b   : > { %v10174_v45 = vpop.f32.mrf.mxu1 }
 0xb3c   : > { %v9361_v45 = vld [vmem:[%s16090_s4 + $0x828] sm:$0xff] }
 0xb3d   : > { %v4575_v40 = vpop.f32.mrf.mxu1 }
 0xb3e   : > { %v13946_v43 = vadd.f32 %v4575_v40, %v13514_v24  ;;  %v9339_v24 = vld [vmem:[%s16090_s4 + $0x7c0] sm:$0xff] }
 0xb3f   : > { %v10177_v10 = vpop.f32.mrf.mxu1  ;;  %v9360_v40 = vld [vmem:[%s16090_s4 + $0x820] sm:$0xff] }
 0xb40   : > { %v9359_v10 = vld [vmem:[%s16090_s4 + $0x818] sm:$0xff] }
 0xb59   : > { %v4667_v12 = vpop.f32.mrf.mxu1 }
 0xb5b   : > { %v4669_v49 = vpop.f32.mrf.mxu1 }
 0xb5c   : > { %v9357_v49 = vld [vmem:[%s16090_s4 + $0x808] sm:$0xff] }
 0xb5d   : > { %v4672_v60 = vpop.f32.mrf.mxu1 }
 0xb5e   : > { %10179 = vmatpush3.msk.msra.mxu0 %vm2788_vm5, %v4672_v60  ;;  %v9356_v60 = vld [vmem:[%s16090_s4 + $0x800] sm:$0xff] }
 0xb5f   : > { %v4674_v58 = vpop.f32.mrf.mxu1  ;;  %10180 = vmatprep.subr.mxu0 %v10575_v0 }
 0xb60   : > { %10181 = vmatpush3.msra.mxu0 %v4667_v12  ;;  %v9358_v12 = vld [vmem:[%s16090_s4 + $0x810] sm:$0xff] }
 0xb61   : > { %10183 = vmatmul.mubr.msk.f32.vlgmr.msra.gmra.mxu0 %vm2778_vm6, %v9318_v19  ;;  %4794 = vmatprep.subr.mxu0 %v10575_v0  ;;  %v9355_v19 = vld [vmem:[%s16090_s4 + $0x7f8] sm:$0xff]  ;;  %v9354_v58 = vld [vmem:[%s16090_s4 + $0x7f0] sm:$0xff] }
 0xb62   : > { %4795 = vmatpush1.msra.mxu0 %v9340_v21  ;;  %10185 = vmatprep.mubr.msk.f32.mxu0 %vm10577_vm4, %v10575_v0  ;;  %v9353_v21 = vld [vmem:[%s16090_s4 + $0x7e8] sm:$0xff] }
 0xb63   : > { %4796 = vmatprep.subr.mxu0 %v10575_v0 }
 0xb64   : > { %4797 = vmatpush1.msra.mxu0 %v9339_v24  ;;  %v9352_v24 = vld [vmem:[%s16090_s4 + $0x7e0] sm:$0xff] }
 0xb65   : > { %10186 = vmatmul.mubr.msk.f32.gmra.mxu0 %vm2778_vm6, %v9319_v56  ;;  %4798 = vmatprep.subr.mxu0 %v10575_v0  ;;  %v9369_v56 = vld [vmem:[%s16090_s4 + $0x868] sm:$0xff] }
 0xb66   : > { %4799 = vmatpush1.msra.mxu0 %v9338_v15  ;;  %10188 = vmatprep.mubr.msk.f32.mxu0 %vm10577_vm4, %v10575_v0  ;;  %v9368_v15 = vld [vmem:[%s16090_s4 + $0x860] sm:$0xff] }
 0xb67   : > { %4800 = vmatprep.subr.mxu0 %v10575_v0 }
 0xb68   : > { %4801 = vmatpush1.msra.mxu0 %v9337_v16 }
 0xb69   : > { %10189 = vmatmul.mubr.msk.f32.gmra.mxu0 %vm2778_vm6, %v9320_v17  ;;  %4802 = vmatprep.subr.mxu0 %v10575_v0 }
 0xb6a   : > { %4803 = vmatpush1.msra.mxu0 %v9336_v63  ;;  %9343 = vmatprep.mubr.msk.f32.mxu0 %vm2301_vm3, %v12733_v4 }
 0xb6b   : > { %4804 = vmatprep.subr.mxu0 %v10575_v0 }
 0xb6c   : > { %4805 = vmatpush1.msra.mxu0 %v9335_v20 }
 0xb6d   : > { %4806 = vmatprep.subr.mxu0 %v10575_v0 }
 0xb6e   : > { %4807 = vmatpush1.msra.mxu0 %v9334_v23 }
 0xb6f   : > { %4808 = vmatprep.subr.mxu0 %v10575_v0 }
 0xb70   : > { %4809 = vmatpush1.msra.mxu0 %v9333_v25 }
 0xb71   : > { %4810 = vmatprep.subr.mxu0 %v10575_v0 }
 0xb72   : > { %4811 = vmatpush1.msra.mxu0 %v9332_v27 }
 0xb73   : > { %4812 = vmatprep.subr.mxu0 %v10575_v0 }
 0xb74   : > { %4813 = vmatpush1.msra.mxu0 %v9331_v30 }
 0xb75   : > { %4814 = vmatprep.subr.mxu0 %v10575_v0 }
 0xb76   : > { %4815 = vmatpush1.msra.mxu0 %v9330_v31 }
 0xb77   : > { %4816 = vmatprep.subr.mxu0 %v10575_v0 }
 0xb78   : > { %4817 = vmatpush1.msra.mxu0 %v9329_v33 }
 0xb79   : > { %4818 = vmatprep.subr.mxu0 %v10575_v0 }
 0xb7a   : > { %4819 = vmatpush1.msra.mxu0 %v9328_v29 }
 0xb7b   : > { %4820 = vmatprep.subr.mxu0 %v10575_v0 }
 0xb7c   : > { %4821 = vmatpush1.msra.mxu0 %v9327_v34 }
 0xb7d   : > { %4822 = vmatprep.subr.mxu0 %v10575_v0 }
 0xb7e   : > { %4823 = vmatpush1.msra.mxu0 %v9326_v32 }
 0xb7f   : > { %4824 = vmatprep.subr.mxu0 %v10575_v0 }
 0xb80   : > { %4825 = vmatpush1.msra.mxu0 %v9325_v35  ;;  %v9373_v35 = vld [vmem:[%s16091_s5 + $0x158] sm:$0xff] }
 0xb81   : > { %4854 = vmatprep.subr.mxu0 %v10575_v0 }
 0xb82   : > { %4855 = vmatpush2.msra.mxu0 %v9342_v36  ;;  %v9392_v36 = vld [vmem:[%s16090_s4 + $0x8d8] sm:$0xff] }
 0xb83   : > { %4856 = vmatprep.subr.mxu0 %v10575_v0 }
 0xb84   : > { %4857 = vmatpush2.msra.mxu0 %v9341_v37  ;;  %v9391_v37 = vld [vmem:[%s16090_s4 + $0x8d0] sm:$0xff] }
 0xb85   : > { %4859 = vmatmul.mubr.f32.vlgmr.msra.gmra.mxu0 %v12737_v42  ;;  %10204 = vmatprep.subr.mxu0 %v10575_v0 }
 0xb86   : > { %9344 = vmatprep.mubr.msk.f32.mxu0 %vm2301_vm3, %v12758_v59 }
 0xb89   : > { %4864 = vmatmul.mubr.f32.gmra.mxu0 %v12762_v38 }
 0xb8a   : > { %10208 = vmatprep.mubr.msk.f32.mxu0 %vm10577_vm4, %v10575_v0 }
 0xc21   : > { %v4758_v39 = vpop.f32.mrf.mxu0 }
 0xc22   : > { %v14048_v41 = vadd.f32 %v4758_v39, %v13616_v48  ;;  %v9345_v48 = vld [vmem:[%s16091_s5 + $0x138] sm:$0xff]  ;;  %v9374_v39 = vld [vmem:[%s16091_s5 + $0x160] sm:$0xf] }
 0xc23   : > { %v10184_v28 = vpop.f32.mrf.mxu0 }
 0xc24   : > { %v9390_v28 = vld [vmem:[%s16090_s4 + $0x8c8] sm:$0xff] }
 0xc25   : > { %v4763_v53 = vpop.f32.mrf.mxu0 }
 0xc26   : > { %v14051_v46 = vadd.f32 %v4763_v53, %v13619_v51  ;;  %v9367_v51 = vld [vmem:[%s16090_s4 + $0x858] sm:$0xff]  ;;  %v9389_v53 = vld [vmem:[%s16090_s4 + $0x8c0] sm:$0xff] }
 0xc27   : > { %v10187_v57 = vpop.f32.mrf.mxu0 }
 0xc28   : > { %v9388_v57 = vld [vmem:[%s16090_s4 + $0x8b8] sm:$0xff] }
 0xc29   : > { %v4768_v50 = vpop.f32.mrf.mxu0 }
 0xc2a   : > { %v14054_v6 = vadd.f32 %v4768_v50, %v13622_v5  ;;  %v9366_v5 = vld [vmem:[%s16090_s4 + $0x850] sm:$0xff] }
 0xc2b   : > { %v10190_v7 = vpop.f32.mrf.mxu0  ;;  %v9387_v50 = vld [vmem:[%s16090_s4 + $0x8b0] sm:$0xff] }
 0xc2c   : > { %v9386_v7 = vld [vmem:[%s16090_s4 + $0x8a8] sm:$0xff] }
 0xc45   : > { %v4860_v47 = vpop.f32.mrf.mxu0 }
 0xc47   : > { %v4862_v54 = vpop.f32.mrf.mxu0 }
 0xc48   : > { %v9384_v54 = vld [vmem:[%s16090_s4 + $0x898] sm:$0xff] }
 0xc49   : > { %v4865_v55 = vpop.f32.mrf.mxu0 }
 0xc4a   : > { %10192 = vmatpush3.msk.msra.mxu1 %vm2788_vm5, %v4865_v55  ;;  %v9383_v55 = vld [vmem:[%s16090_s4 + $0x890] sm:$0xff] }
 0xc4b   : > { %v4867_v52 = vpop.f32.mrf.mxu0  ;;  %10193 = vmatprep.subr.mxu1 %v10575_v0 }
 0xc4c   : > { %10194 = vmatpush3.msra.mxu1 %v4860_v47  ;;  %v9385_v47 = vld [vmem:[%s16090_s4 + $0x8a0] sm:$0xff] }
 0xc4d   : > { %10196 = vmatmul.mubr.msk.f32.vlgmr.msra.gmra.mxu1 %vm2778_vm6, %v9345_v48  ;;  %4987 = vmatprep.subr.mxu1 %v10575_v0  ;;  %v9382_v48 = vld [vmem:[%s16090_s4 + $0x888] sm:$0xff]  ;;  %v9381_v52 = vld [vmem:[%s16090_s4 + $0x880] sm:$0xff] }
 0xc4e   : > { %4988 = vmatpush1.msra.mxu1 %v9367_v51  ;;  %10198 = vmatprep.mubr.msk.f32.mxu1 %vm10577_vm4, %v10575_v0  ;;  %v9380_v51 = vld [vmem:[%s16090_s4 + $0x878] sm:$0xff] }
 0xc4f   : > { %4989 = vmatprep.subr.mxu1 %v10575_v0 }
 0xc50   : > { %4990 = vmatpush1.msra.mxu1 %v9366_v5  ;;  %v9379_v5 = vld [vmem:[%s16090_s4 + $0x870] sm:$0xff] }
 0xc51   : > { %10199 = vmatmul.mubr.msk.f32.gmra.mxu1 %vm2778_vm6, %v9346_v3  ;;  %4991 = vmatprep.subr.mxu1 %v10575_v0  ;;  %v9396_v3 = vld [vmem:[%s16090_s4 + $0x8f8] sm:$0xff] }
 0xc52   : > { %4992 = vmatpush1.msra.mxu1 %v9365_v62  ;;  %10201 = vmatprep.mubr.msk.f32.mxu1 %vm10577_vm4, %v10575_v0  ;;  %v9395_v62 = vld [vmem:[%s16090_s4 + $0x8f0] sm:$0xff] }
 0xc53   : > { %4993 = vmatprep.subr.mxu1 %v10575_v0 }
 0xc54   : > { %4994 = vmatpush1.msra.mxu1 %v9364_v14 }
 0xc55   : > { %10202 = vmatmul.mubr.msk.f32.gmra.mxu1 %vm2778_vm6, %v9347_v1  ;;  %4995 = vmatprep.subr.mxu1 %v10575_v0 }
 0xc56   : > { %4996 = vmatpush1.msra.mxu1 %v9363_v2  ;;  %9370 = vmatprep.mubr.msk.f32.mxu1 %vm2301_vm3, %v12733_v4 }
 0xc57   : > { %4997 = vmatprep.subr.mxu1 %v10575_v0 }
 0xc58   : > { %4998 = vmatpush1.msra.mxu1 %v9362_v9 }
 0xc59   : > { %4999 = vmatprep.subr.mxu1 %v10575_v0 }
 0xc5a   : > { %5000 = vmatpush1.msra.mxu1 %v9361_v45 }
 0xc5b   : > { %5001 = vmatprep.subr.mxu1 %v10575_v0 }
 0xc5c   : > { %5002 = vmatpush1.msra.mxu1 %v9360_v40 }
 0xc5d   : > { %5003 = vmatprep.subr.mxu1 %v10575_v0 }
 0xc5e   : > { %5004 = vmatpush1.msra.mxu1 %v9359_v10 }
 0xc5f   : > { %5005 = vmatprep.subr.mxu1 %v10575_v0 }
 0xc60   : > { %5006 = vmatpush1.msra.mxu1 %v9358_v12 }
 0xc61   : > { %5007 = vmatprep.subr.mxu1 %v10575_v0 }
 0xc62   : > { %5008 = vmatpush1.msra.mxu1 %v9357_v49 }
 0xc63   : > { %5009 = vmatprep.subr.mxu1 %v10575_v0 }
 0xc64   : > { %5010 = vmatpush1.msra.mxu1 %v9356_v60 }
 0xc65   : > { %5011 = vmatprep.subr.mxu1 %v10575_v0 }
 0xc66   : > { %5012 = vmatpush1.msra.mxu1 %v9355_v19 }
 0xc67   : > { %5013 = vmatprep.subr.mxu1 %v10575_v0 }
 0xc68   : > { %5014 = vmatpush1.msra.mxu1 %v9354_v58 }
 0xc69   : > { %5015 = vmatprep.subr.mxu1 %v10575_v0 }
 0xc6a   : > { %5016 = vmatpush1.msra.mxu1 %v9353_v21 }
 0xc6b   : > { %5017 = vmatprep.subr.mxu1 %v10575_v0 }
 0xc6c   : > { %5018 = vmatpush1.msra.mxu1 %v9352_v24  ;;  %v9400_v24 = vld [vmem:[%s16091_s5 + $0x170] sm:$0xff] }
 0xc6d   : > { %5047 = vmatprep.subr.mxu1 %v10575_v0 }
 0xc6e   : > { %5048 = vmatpush2.msra.mxu1 %v9369_v56  ;;  %v9419_v56 = vld [vmem:[%s16090_s4 + $0x968] sm:$0xff] }
 0xc6f   : > { %5049 = vmatprep.subr.mxu1 %v10575_v0 }
 0xc70   : > { %5050 = vmatpush2.msra.mxu1 %v9368_v15  ;;  %v9418_v15 = vld [vmem:[%s16090_s4 + $0x960] sm:$0xff] }
 0xc71   : > { %5052 = vmatmul.mubr.f32.vlgmr.msra.gmra.mxu1 %v12737_v42  ;;  %10217 = vmatprep.subr.mxu1 %v10575_v0 }
 0xc72   : > { %9371 = vmatprep.mubr.msk.f32.mxu1 %vm2301_vm3, %v12758_v59 }
 0xc75   : > { %5057 = vmatmul.mubr.f32.gmra.mxu1 %v12762_v38 }
 0xc76   : > { %10221 = vmatprep.mubr.msk.f32.mxu1 %vm10577_vm4, %v10575_v0 }
 0xd0d   : > { %v4951_v16 = vpop.f32.mrf.mxu1 }
 0xd0e   : > { %v14156_v17 = vadd.f32 %v4951_v16, %v13724_v61  ;;  %v9372_v61 = vld [vmem:[%s16091_s5 + $0x150] sm:$0xff]  ;;  %v9401_v16 = vld [vmem:[%s16091_s5 + $0x178] sm:$0xf] }
 0xd0f   : > { %v10197_v63 = vpop.f32.mrf.mxu1 }
 0xd10   : > { %v9417_v63 = vld [vmem:[%s16090_s4 + $0x958] sm:$0xff] }
 0xd11   : > { %v4956_v20 = vpop.f32.mrf.mxu1 }
 0xd12   : > { %v14159_v23 = vadd.f32 %v4956_v20, %v13727_v13  ;;  %v9394_v13 = vld [vmem:[%s16090_s4 + $0x8e8] sm:$0xff]  ;;  %v9416_v20 = vld [vmem:[%s16090_s4 + $0x950] sm:$0xff] }
 0xd13   : > { %v10200_v25 = vpop.f32.mrf.mxu1 }
 0xd14   : > { %v9415_v25 = vld [vmem:[%s16090_s4 + $0x948] sm:$0xff] }
 0xd15   : > { %v4961_v27 = vpop.f32.mrf.mxu1 }
 0xd16   : > { %v14162_v30 = vadd.f32 %v4961_v27, %v13730_v44  ;;  %v9393_v44 = vld [vmem:[%s16090_s4 + $0x8e0] sm:$0xff] }
 0xd17   : > { %v10203_v31 = vpop.f32.mrf.mxu1  ;;  %v9414_v27 = vld [vmem:[%s16090_s4 + $0x940] sm:$0xff] }
 0xd18   : > { %v9413_v31 = vld [vmem:[%s16090_s4 + $0x938] sm:$0xff] }
 0xd31   : > { %v5053_v33 = vpop.f32.mrf.mxu1 }
 0xd33   : > { %v5055_v29 = vpop.f32.mrf.mxu1 }
 0xd34   : > { %v9411_v29 = vld [vmem:[%s16090_s4 + $0x928] sm:$0xff] }
 0xd35   : > { %v5058_v34 = vpop.f32.mrf.mxu1 }
 0xd36   : > { %10205 = vmatpush3.msk.msra.mxu0 %vm2788_vm5, %v5058_v34  ;;  %v9410_v34 = vld [vmem:[%s16090_s4 + $0x920] sm:$0xff] }
 0xd37   : > { %v5060_v32 = vpop.f32.mrf.mxu1  ;;  %10206 = vmatprep.subr.mxu0 %v10575_v0 }
 0xd38   : > { %10207 = vmatpush3.msra.mxu0 %v5053_v33  ;;  %v9412_v33 = vld [vmem:[%s16090_s4 + $0x930] sm:$0xff] }
 0xd39   : > { %10209 = vmatmul.mubr.msk.f32.vlgmr.msra.gmra.mxu0 %vm2778_vm6, %v9372_v61  ;;  %5180 = vmatprep.subr.mxu0 %v10575_v0  ;;  %v9409_v61 = vld [vmem:[%s16090_s4 + $0x918] sm:$0xff]  ;;  %v9408_v32 = vld [vmem:[%s16090_s4 + $0x910] sm:$0xff] }
 0xd3a   : > { %5181 = vmatpush1.msra.mxu0 %v9394_v13  ;;  %10211 = vmatprep.mubr.msk.f32.mxu0 %vm10577_vm4, %v10575_v0  ;;  %v9407_v13 = vld [vmem:[%s16090_s4 + $0x908] sm:$0xff] }
 0xd3b   : > { %5182 = vmatprep.subr.mxu0 %v10575_v0 }
 0xd3c   : > { %5183 = vmatpush1.msra.mxu0 %v9393_v44  ;;  %v9406_v44 = vld [vmem:[%s16090_s4 + $0x900] sm:$0xff] }
 0xd3d   : > { %10212 = vmatmul.mubr.msk.f32.gmra.mxu0 %vm2778_vm6, %v9373_v35  ;;  %5184 = vmatprep.subr.mxu0 %v10575_v0  ;;  %v9423_v35 = vld [vmem:[%s16090_s4 + $0x988] sm:$0xff] }
 0xd3e   : > { %5185 = vmatpush1.msra.mxu0 %v9392_v36  ;;  %10214 = vmatprep.mubr.msk.f32.mxu0 %vm10577_vm4, %v10575_v0  ;;  %v9422_v36 = vld [vmem:[%s16090_s4 + $0x980] sm:$0xff] }
 0xd3f   : > { %5186 = vmatprep.subr.mxu0 %v10575_v0 }
 0xd40   : > { %5187 = vmatpush1.msra.mxu0 %v9391_v37 }
 0xd41   : > { %10215 = vmatmul.mubr.msk.f32.gmra.mxu0 %vm2778_vm6, %v9374_v39  ;;  %5188 = vmatprep.subr.mxu0 %v10575_v0 }
 0xd42   : > { %5189 = vmatpush1.msra.mxu0 %v9390_v28  ;;  %9397 = vmatprep.mubr.msk.f32.mxu0 %vm2301_vm3, %v12733_v4 }
 0xd43   : > { %5190 = vmatprep.subr.mxu0 %v10575_v0 }
 0xd44   : > { %5191 = vmatpush1.msra.mxu0 %v9389_v53 }
 0xd45   : > { %5192 = vmatprep.subr.mxu0 %v10575_v0 }
 0xd46   : > { %5193 = vmatpush1.msra.mxu0 %v9388_v57 }
 0xd47   : > { %5194 = vmatprep.subr.mxu0 %v10575_v0 }
 0xd48   : > { %5195 = vmatpush1.msra.mxu0 %v9387_v50 }
 0xd49   : > { %5196 = vmatprep.subr.mxu0 %v10575_v0 }
 0xd4a   : > { %5197 = vmatpush1.msra.mxu0 %v9386_v7 }
 0xd4b   : > { %5198 = vmatprep.subr.mxu0 %v10575_v0 }
 0xd4c   : > { %5199 = vmatpush1.msra.mxu0 %v9385_v47 }
 0xd4d   : > { %5200 = vmatprep.subr.mxu0 %v10575_v0 }
 0xd4e   : > { %5201 = vmatpush1.msra.mxu0 %v9384_v54 }
 0xd4f   : > { %5202 = vmatprep.subr.mxu0 %v10575_v0 }
 0xd50   : > { %5203 = vmatpush1.msra.mxu0 %v9383_v55 }
 0xd51   : > { %5204 = vmatprep.subr.mxu0 %v10575_v0 }
 0xd52   : > { %5205 = vmatpush1.msra.mxu0 %v9382_v48 }
 0xd53   : > { %5206 = vmatprep.subr.mxu0 %v10575_v0 }
 0xd54   : > { %5207 = vmatpush1.msra.mxu0 %v9381_v52 }
 0xd55   : > { %5208 = vmatprep.subr.mxu0 %v10575_v0 }
 0xd56   : > { %5209 = vmatpush1.msra.mxu0 %v9380_v51 }
 0xd57   : > { %5210 = vmatprep.subr.mxu0 %v10575_v0 }
 0xd58   : > { %5211 = vmatpush1.msra.mxu0 %v9379_v5  ;;  %v9427_v5 = vld [vmem:[%s16091_s5 + $0x188] sm:$0xff] }
 0xd59   : > { %5240 = vmatprep.subr.mxu0 %v10575_v0 }
 0xd5a   : > { %5241 = vmatpush2.msra.mxu0 %v9396_v3  ;;  %v9446_v3 = vld [vmem:[%s16090_s4 + $0x9f8] sm:$0xff] }
 0xd5b   : > { %5242 = vmatprep.subr.mxu0 %v10575_v0 }
 0xd5c   : > { %5243 = vmatpush2.msra.mxu0 %v9395_v62  ;;  %v9445_v62 = vld [vmem:[%s16090_s4 + $0x9f0] sm:$0xff] }
 0xd5d   : > { %5245 = vmatmul.mubr.f32.vlgmr.msra.gmra.mxu0 %v12737_v42  ;;  %10230 = vmatprep.subr.mxu0 %v10575_v0 }
 0xd5e   : > { %9398 = vmatprep.mubr.msk.f32.mxu0 %vm2301_vm3, %v12758_v59 }
 0xd61   : > { %5250 = vmatmul.mubr.f32.gmra.mxu0 %v12762_v38 }
 0xd62   : > { %10234 = vmatprep.mubr.msk.f32.mxu0 %vm10577_vm4, %v10575_v0 }
 0xdf9   : > { %v5144_v14 = vpop.f32.mrf.mxu0 }
 0xdfa   : > { %v14264_v1 = vadd.f32 %v5144_v14, %v13832_v18  ;;  %v9399_v18 = vld [vmem:[%s16091_s5 + $0x168] sm:$0xff]  ;;  %v9428_v14 = vld [vmem:[%s16091_s5 + $0x190] sm:$0xf] }
 0xdfb   : > { %v10210_v2 = vpop.f32.mrf.mxu0 }
 0xdfc   : > { %v9444_v2 = vld [vmem:[%s16090_s4 + $0x9e8] sm:$0xff] }
 0xdfd   : > { %v5149_v9 = vpop.f32.mrf.mxu0 }
 0xdfe   : > { %v14267_v45 = vadd.f32 %v5149_v9, %v13835_v22  ;;  %v9421_v22 = vld [vmem:[%s16090_s4 + $0x978] sm:$0xff]  ;;  %v9443_v9 = vld [vmem:[%s16090_s4 + $0x9e0] sm:$0xff] }
 0xdff   : > { %v10213_v40 = vpop.f32.mrf.mxu0 }
 0xe00   : > { %v9442_v40 = vld [vmem:[%s16090_s4 + $0x9d8] sm:$0xff] }
 0xe01   : > { %v5154_v10 = vpop.f32.mrf.mxu0 }
 0xe02   : > { %v14270_v12 = vadd.f32 %v5154_v10, %v13838_v26  ;;  %v9420_v26 = vld [vmem:[%s16090_s4 + $0x970] sm:$0xff] }
 0xe03   : > { %v10216_v49 = vpop.f32.mrf.mxu0  ;;  %v9441_v10 = vld [vmem:[%s16090_s4 + $0x9d0] sm:$0xff] }
 0xe04   : > { %v9440_v49 = vld [vmem:[%s16090_s4 + $0x9c8] sm:$0xff] }
 0xe1d   : > { %v5246_v60 = vpop.f32.mrf.mxu0 }
 0xe1f   : > { %v5248_v19 = vpop.f32.mrf.mxu0 }
 0xe20   : > { %v9438_v19 = vld [vmem:[%s16090_s4 + $0x9b8] sm:$0xff] }
 0xe21   : > { %v5251_v58 = vpop.f32.mrf.mxu0 }
 0xe22   : > { %10218 = vmatpush3.msk.msra.mxu1 %vm2788_vm5, %v5251_v58  ;;  %v9437_v58 = vld [vmem:[%s16090_s4 + $0x9b0] sm:$0xff] }
 0xe23   : > { %v5253_v21 = vpop.f32.mrf.mxu0  ;;  %10219 = vmatprep.subr.mxu1 %v10575_v0 }
 0xe24   : > { %10220 = vmatpush3.msra.mxu1 %v5246_v60  ;;  %v9439_v60 = vld [vmem:[%s16090_s4 + $0x9c0] sm:$0xff] }
 0xe25   : > { %10222 = vmatmul.mubr.msk.f32.vlgmr.msra.gmra.mxu1 %vm2778_vm6, %v9399_v18  ;;  %5373 = vmatprep.subr.mxu1 %v10575_v0  ;;  %v9436_v18 = vld [vmem:[%s16090_s4 + $0x9a8] sm:$0xff]  ;;  %v9435_v21 = vld [vmem:[%s16090_s4 + $0x9a0] sm:$0xff] }
 0xe26   : > { %5374 = vmatpush1.msra.mxu1 %v9421_v22  ;;  %10224 = vmatprep.mubr.msk.f32.mxu1 %vm10577_vm4, %v10575_v0  ;;  %v9434_v22 = vld [vmem:[%s16090_s4 + $0x998] sm:$0xff] }
 0xe27   : > { %5375 = vmatprep.subr.mxu1 %v10575_v0 }
 0xe28   : > { %5376 = vmatpush1.msra.mxu1 %v9420_v26  ;;  %v9433_v26 = vld [vmem:[%s16090_s4 + $0x990] sm:$0xff] }
 0xe29   : > { %10225 = vmatmul.mubr.msk.f32.gmra.mxu1 %vm2778_vm6, %v9400_v24  ;;  %5377 = vmatprep.subr.mxu1 %v10575_v0  ;;  %v9450_v24 = vld [vmem:[%s16090_s4 + $0xa18] sm:$0xff] }
 0xe2a   : > { %5378 = vmatpush1.msra.mxu1 %v9419_v56  ;;  %10227 = vmatprep.mubr.msk.f32.mxu1 %vm10577_vm4, %v10575_v0  ;;  %v9449_v56 = vld [vmem:[%s16090_s4 + $0xa10] sm:$0xff] }
 0xe2b   : > { %5379 = vmatprep.subr.mxu1 %v10575_v0 }
 0xe2c   : > { %5380 = vmatpush1.msra.mxu1 %v9418_v15 }
 0xe2d   : > { %10228 = vmatmul.mubr.msk.f32.gmra.mxu1 %vm2778_vm6, %v9401_v16  ;;  %5381 = vmatprep.subr.mxu1 %v10575_v0 }
 0xe2e   : > { %5382 = vmatpush1.msra.mxu1 %v9417_v63  ;;  %9424 = vmatprep.mubr.msk.f32.mxu1 %vm2301_vm3, %v12733_v4 }
 0xe2f   : > { %5383 = vmatprep.subr.mxu1 %v10575_v0 }
 0xe30   : > { %5384 = vmatpush1.msra.mxu1 %v9416_v20 }
 0xe31   : > { %5385 = vmatprep.subr.mxu1 %v10575_v0 }
 0xe32   : > { %5386 = vmatpush1.msra.mxu1 %v9415_v25 }
 0xe33   : > { %5387 = vmatprep.subr.mxu1 %v10575_v0 }
 0xe34   : > { %5388 = vmatpush1.msra.mxu1 %v9414_v27 }
 0xe35   : > { %5389 = vmatprep.subr.mxu1 %v10575_v0 }
 0xe36   : > { %5390 = vmatpush1.msra.mxu1 %v9413_v31 }
 0xe37   : > { %5391 = vmatprep.subr.mxu1 %v10575_v0 }
 0xe38   : > { %5392 = vmatpush1.msra.mxu1 %v9412_v33 }
 0xe39   : > { %5393 = vmatprep.subr.mxu1 %v10575_v0 }
 0xe3a   : > { %5394 = vmatpush1.msra.mxu1 %v9411_v29 }
 0xe3b   : > { %5395 = vmatprep.subr.mxu1 %v10575_v0 }
 0xe3c   : > { %5396 = vmatpush1.msra.mxu1 %v9410_v34 }
 0xe3d   : > { %5397 = vmatprep.subr.mxu1 %v10575_v0 }
 0xe3e   : > { %5398 = vmatpush1.msra.mxu1 %v9409_v61 }
 0xe3f   : > { %5399 = vmatprep.subr.mxu1 %v10575_v0 }
 0xe40   : > { %5400 = vmatpush1.msra.mxu1 %v9408_v32 }
 0xe41   : > { %5401 = vmatprep.subr.mxu1 %v10575_v0 }
 0xe42   : > { %5402 = vmatpush1.msra.mxu1 %v9407_v13 }
 0xe43   : > { %5403 = vmatprep.subr.mxu1 %v10575_v0 }
 0xe44   : > { %5404 = vmatpush1.msra.mxu1 %v9406_v44  ;;  %v9454_v44 = vld [vmem:[%s16091_s5 + $0x1a0] sm:$0xff] }
 0xe45   : > { %5433 = vmatprep.subr.mxu1 %v10575_v0 }
 0xe46   : > { %5434 = vmatpush2.msra.mxu1 %v9423_v35  ;;  %v9473_v35 = vld [vmem:[%s16090_s4 + $0xa88] sm:$0xff] }
 0xe47   : > { %5435 = vmatprep.subr.mxu1 %v10575_v0 }
 0xe48   : > { %5436 = vmatpush2.msra.mxu1 %v9422_v36  ;;  %v9472_v36 = vld [vmem:[%s16090_s4 + $0xa80] sm:$0xff] }
 0xe49   : > { %5438 = vmatmul.mubr.f32.vlgmr.msra.gmra.mxu1 %v12737_v42  ;;  %10243 = vmatprep.subr.mxu1 %v10575_v0 }
 0xe4a   : > { %9425 = vmatprep.mubr.msk.f32.mxu1 %vm2301_vm3, %v12758_v59 }
 0xe4d   : > { %5443 = vmatmul.mubr.f32.gmra.mxu1 %v12762_v38 }
 0xe4e   : > { %10247 = vmatprep.mubr.msk.f32.mxu1 %vm10577_vm4, %v10575_v0 }
 0xee5   : > { %v5337_v37 = vpop.f32.mrf.mxu1 }
 0xee6   : > { %v14372_v39 = vadd.f32 %v5337_v37, %v13940_v8  ;;  %v9426_v8 = vld [vmem:[%s16091_s5 + $0x180] sm:$0xff]  ;;  %v9455_v37 = vld [vmem:[%s16091_s5 + $0x1a8] sm:$0xf] }
 0xee7   : > { %v10223_v28 = vpop.f32.mrf.mxu1 }
 0xee8   : > { %v9471_v28 = vld [vmem:[%s16090_s4 + $0xa78] sm:$0xff] }
 0xee9   : > { %v5342_v53 = vpop.f32.mrf.mxu1 }
 0xeea   : > { %v14375_v57 = vadd.f32 %v5342_v53, %v13943_v11  ;;  %v9448_v11 = vld [vmem:[%s16090_s4 + $0xa08] sm:$0xff]  ;;  %v9470_v53 = vld [vmem:[%s16090_s4 + $0xa70] sm:$0xff] }
 0xeeb   : > { %v10226_v50 = vpop.f32.mrf.mxu1 }
 0xeec   : > { %v9469_v50 = vld [vmem:[%s16090_s4 + $0xa68] sm:$0xff] }
 0xeed   : > { %v5347_v7 = vpop.f32.mrf.mxu1 }
 0xeee   : > { %v14378_v47 = vadd.f32 %v5347_v7, %v13946_v43  ;;  %v9447_v43 = vld [vmem:[%s16090_s4 + $0xa00] sm:$0xff] }
 0xeef   : > { %v10229_v54 = vpop.f32.mrf.mxu1  ;;  %v9468_v7 = vld [vmem:[%s16090_s4 + $0xa60] sm:$0xff] }
 0xef0   : > { %v9467_v54 = vld [vmem:[%s16090_s4 + $0xa58] sm:$0xff] }
 0xf09   : > { %v5439_v55 = vpop.f32.mrf.mxu1 }
 0xf0b   : > { %v5441_v48 = vpop.f32.mrf.mxu1 }
 0xf0c   : > { %v9465_v48 = vld [vmem:[%s16090_s4 + $0xa48] sm:$0xff] }
 0xf0d   : > { %v5444_v52 = vpop.f32.mrf.mxu1 }
 0xf0e   : > { %10231 = vmatpush3.msk.msra.mxu0 %vm2788_vm5, %v5444_v52  ;;  %v9464_v52 = vld [vmem:[%s16090_s4 + $0xa40] sm:$0xff] }
 0xf0f   : > { %v5446_v51 = vpop.f32.mrf.mxu1  ;;  %10232 = vmatprep.subr.mxu0 %v10575_v0 }
 0xf10   : > { %10233 = vmatpush3.msra.mxu0 %v5439_v55  ;;  %v9466_v55 = vld [vmem:[%s16090_s4 + $0xa50] sm:$0xff] }
 0xf11   : > { %10235 = vmatmul.mubr.msk.f32.vlgmr.msra.gmra.mxu0 %vm2778_vm6, %v9426_v8  ;;  %5566 = vmatprep.subr.mxu0 %v10575_v0  ;;  %v9463_v8 = vld [vmem:[%s16090_s4 + $0xa38] sm:$0xff]  ;;  %v9462_v51 = vld [vmem:[%s16090_s4 + $0xa30] sm:$0xff] }
 0xf12   : > { %5567 = vmatpush1.msra.mxu0 %v9448_v11  ;;  %10237 = vmatprep.mubr.msk.f32.mxu0 %vm10577_vm4, %v10575_v0  ;;  %v9461_v11 = vld [vmem:[%s16090_s4 + $0xa28] sm:$0xff] }
 0xf13   : > { %5568 = vmatprep.subr.mxu0 %v10575_v0 }
 0xf14   : > { %5569 = vmatpush1.msra.mxu0 %v9447_v43  ;;  %v9460_v43 = vld [vmem:[%s16090_s4 + $0xa20] sm:$0xff] }
 0xf15   : > { %10238 = vmatmul.mubr.msk.f32.gmra.mxu0 %vm2778_vm6, %v9427_v5  ;;  %5570 = vmatprep.subr.mxu0 %v10575_v0  ;;  %v9477_v5 = vld [vmem:[%s16090_s4 + $0xaa8] sm:$0xff] }
 0xf16   : > { %5571 = vmatpush1.msra.mxu0 %v9446_v3  ;;  %10240 = vmatprep.mubr.msk.f32.mxu0 %vm10577_vm4, %v10575_v0  ;;  %v9476_v3 = vld [vmem:[%s16090_s4 + $0xaa0] sm:$0xff] }
 0xf17   : > { %5572 = vmatprep.subr.mxu0 %v10575_v0 }
 0xf18   : > { %5573 = vmatpush1.msra.mxu0 %v9445_v62 }
 0xf19   : > { %10241 = vmatmul.mubr.msk.f32.gmra.mxu0 %vm2778_vm6, %v9428_v14  ;;  %5574 = vmatprep.subr.mxu0 %v10575_v0 }
 0xf1a   : > { %5575 = vmatpush1.msra.mxu0 %v9444_v2  ;;  %9451 = vmatprep.mubr.msk.f32.mxu0 %vm2301_vm3, %v12733_v4 }
 0xf1b   : > { %5576 = vmatprep.subr.mxu0 %v10575_v0 }
 0xf1c   : > { %5577 = vmatpush1.msra.mxu0 %v9443_v9 }
 0xf1d   : > { %5578 = vmatprep.subr.mxu0 %v10575_v0 }
 0xf1e   : > { %5579 = vmatpush1.msra.mxu0 %v9442_v40 }
 0xf1f   : > { %5580 = vmatprep.subr.mxu0 %v10575_v0 }
 0xf20   : > { %5581 = vmatpush1.msra.mxu0 %v9441_v10 }
 0xf21   : > { %5582 = vmatprep.subr.mxu0 %v10575_v0 }
 0xf22   : > { %5583 = vmatpush1.msra.mxu0 %v9440_v49 }
 0xf23   : > { %5584 = vmatprep.subr.mxu0 %v10575_v0 }
 0xf24   : > { %5585 = vmatpush1.msra.mxu0 %v9439_v60 }
 0xf25   : > { %5586 = vmatprep.subr.mxu0 %v10575_v0 }
 0xf26   : > { %5587 = vmatpush1.msra.mxu0 %v9438_v19 }
 0xf27   : > { %5588 = vmatprep.subr.mxu0 %v10575_v0 }
 0xf28   : > { %5589 = vmatpush1.msra.mxu0 %v9437_v58 }
 0xf29   : > { %5590 = vmatprep.subr.mxu0 %v10575_v0 }
 0xf2a   : > { %5591 = vmatpush1.msra.mxu0 %v9436_v18 }
 0xf2b   : > { %5592 = vmatprep.subr.mxu0 %v10575_v0 }
 0xf2c   : > { %5593 = vmatpush1.msra.mxu0 %v9435_v21 }
 0xf2d   : > { %5594 = vmatprep.subr.mxu0 %v10575_v0 }
 0xf2e   : > { %5595 = vmatpush1.msra.mxu0 %v9434_v22 }
 0xf2f   : > { %5596 = vmatprep.subr.mxu0 %v10575_v0 }
 0xf30   : > { %5597 = vmatpush1.msra.mxu0 %v9433_v26  ;;  %v9481_v26 = vld [vmem:[%s16091_s5 + $0x1b8] sm:$0xff] }
 0xf31   : > { %5626 = vmatprep.subr.mxu0 %v10575_v0 }
 0xf32   : > { %5627 = vmatpush2.msra.mxu0 %v9450_v24  ;;  %v9500_v24 = vld [vmem:[%s16090_s4 + $0xb18] sm:$0xff] }
 0xf33   : > { %5628 = vmatprep.subr.mxu0 %v10575_v0 }
 0xf34   : > { %5629 = vmatpush2.msra.mxu0 %v9449_v56  ;;  %v9499_v56 = vld [vmem:[%s16090_s4 + $0xb10] sm:$0xff] }
 0xf35   : > { %5631 = vmatmul.mubr.f32.vlgmr.msra.gmra.mxu0 %v12737_v42  ;;  %10256 = vmatprep.subr.mxu0 %v10575_v0 }
 0xf36   : > { %9452 = vmatprep.mubr.msk.f32.mxu0 %vm2301_vm3, %v12758_v59 }
 0xf39   : > { %5636 = vmatmul.mubr.f32.gmra.mxu0 %v12762_v38 }
 0xf3a   : > { %10260 = vmatprep.mubr.msk.f32.mxu0 %vm10577_vm4, %v10575_v0 }
 0xfd1   : > { %v5530_v15 = vpop.f32.mrf.mxu0 }
 0xfd2   : > { %v14480_v16 = vadd.f32 %v5530_v15, %v14048_v41  ;;  %v9453_v41 = vld [vmem:[%s16091_s5 + $0x198] sm:$0xff]  ;;  %v9482_v15 = vld [vmem:[%s16091_s5 + $0x1c0] sm:$0xf] }
 0xfd3   : > { %v10236_v63 = vpop.f32.mrf.mxu0 }
 0xfd4   : > { %v9498_v63 = vld [vmem:[%s16090_s4 + $0xb08] sm:$0xff] }
 0xfd5   : > { %v5535_v20 = vpop.f32.mrf.mxu0 }
 0xfd6   : > { %v14483_v25 = vadd.f32 %v5535_v20, %v14051_v46  ;;  %v9475_v46 = vld [vmem:[%s16090_s4 + $0xa98] sm:$0xff]  ;;  %v9497_v20 = vld [vmem:[%s16090_s4 + $0xb00] sm:$0xff] }
 0xfd7   : > { %v10239_v27 = vpop.f32.mrf.mxu0 }
 0xfd8   : > { %v9496_v27 = vld [vmem:[%s16090_s4 + $0xaf8] sm:$0xff] }
 0xfd9   : > { %v5540_v31 = vpop.f32.mrf.mxu0 }
 0xfda   : > { %v14486_v33 = vadd.f32 %v5540_v31, %v14054_v6  ;;  %v9474_v6 = vld [vmem:[%s16090_s4 + $0xa90] sm:$0xff] }
 0xfdb   : > { %v10242_v29 = vpop.f32.mrf.mxu0  ;;  %v9495_v31 = vld [vmem:[%s16090_s4 + $0xaf0] sm:$0xff] }
 0xfdc   : > { %v9494_v29 = vld [vmem:[%s16090_s4 + $0xae8] sm:$0xff] }
 0xff5   : > { %v5632_v34 = vpop.f32.mrf.mxu0 }
 0xff7   : > { %v5634_v61 = vpop.f32.mrf.mxu0 }
 0xff8   : > { %v9492_v61 = vld [vmem:[%s16090_s4 + $0xad8] sm:$0xff] }
 0xff9   : > { %v5637_v32 = vpop.f32.mrf.mxu0 }
 0xffa   : > { %10244 = vmatpush3.msk.msra.mxu1 %vm2788_vm5, %v5637_v32  ;;  %v9491_v32 = vld [vmem:[%s16090_s4 + $0xad0] sm:$0xff] }
 0xffb   : > { %v5639_v13 = vpop.f32.mrf.mxu0  ;;  %10245 = vmatprep.subr.mxu1 %v10575_v0 }
 0xffc   : > { %10246 = vmatpush3.msra.mxu1 %v5632_v34  ;;  %v9493_v34 = vld [vmem:[%s16090_s4 + $0xae0] sm:$0xff] }
 0xffd   : > { %10248 = vmatmul.mubr.msk.f32.vlgmr.msra.gmra.mxu1 %vm2778_vm6, %v9453_v41  ;;  %5759 = vmatprep.subr.mxu1 %v10575_v0  ;;  %v9490_v41 = vld [vmem:[%s16090_s4 + $0xac8] sm:$0xff]  ;;  %v9489_v13 = vld [vmem:[%s16090_s4 + $0xac0] sm:$0xff] }
 0xffe   : > { %5760 = vmatpush1.msra.mxu1 %v9475_v46  ;;  %10250 = vmatprep.mubr.msk.f32.mxu1 %vm10577_vm4, %v10575_v0  ;;  %v9488_v46 = vld [vmem:[%s16090_s4 + $0xab8] sm:$0xff] }
 0xfff   : > { %5761 = vmatprep.subr.mxu1 %v10575_v0 }
0x1000   : > { %5762 = vmatpush1.msra.mxu1 %v9474_v6  ;;  %v9487_v6 = vld [vmem:[%s16090_s4 + $0xab0] sm:$0xff] }
0x1001   : > { %10251 = vmatmul.mubr.msk.f32.gmra.mxu1 %vm2778_vm6, %v9454_v44  ;;  %5763 = vmatprep.subr.mxu1 %v10575_v0  ;;  %v9504_v44 = vld [vmem:[%s16090_s4 + $0xb38] sm:$0xff] }
0x1002   : > { %5764 = vmatpush1.msra.mxu1 %v9473_v35  ;;  %10253 = vmatprep.mubr.msk.f32.mxu1 %vm10577_vm4, %v10575_v0  ;;  %v9503_v35 = vld [vmem:[%s16090_s4 + $0xb30] sm:$0xff] }
0x1003   : > { %5765 = vmatprep.subr.mxu1 %v10575_v0 }
0x1004   : > { %5766 = vmatpush1.msra.mxu1 %v9472_v36 }
0x1005   : > { %10254 = vmatmul.mubr.msk.f32.gmra.mxu1 %vm2778_vm6, %v9455_v37  ;;  %5767 = vmatprep.subr.mxu1 %v10575_v0 }
0x1006   : > { %5768 = vmatpush1.msra.mxu1 %v9471_v28  ;;  %9478 = vmatprep.mubr.msk.f32.mxu1 %vm2301_vm3, %v12733_v4 }
0x1007   : > { %5769 = vmatprep.subr.mxu1 %v10575_v0 }
0x1008   : > { %5770 = vmatpush1.msra.mxu1 %v9470_v53 }
0x1009   : > { %5771 = vmatprep.subr.mxu1 %v10575_v0 }
0x100a   : > { %5772 = vmatpush1.msra.mxu1 %v9469_v50 }
0x100b   : > { %5773 = vmatprep.subr.mxu1 %v10575_v0 }
0x100c   : > { %5774 = vmatpush1.msra.mxu1 %v9468_v7 }
0x100d   : > { %5775 = vmatprep.subr.mxu1 %v10575_v0 }
0x100e   : > { %5776 = vmatpush1.msra.mxu1 %v9467_v54 }
0x100f   : > { %5777 = vmatprep.subr.mxu1 %v10575_v0 }
0x1010   : > { %5778 = vmatpush1.msra.mxu1 %v9466_v55 }
0x1011   : > { %5779 = vmatprep.subr.mxu1 %v10575_v0 }
0x1012   : > { %5780 = vmatpush1.msra.mxu1 %v9465_v48 }
0x1013   : > { %5781 = vmatprep.subr.mxu1 %v10575_v0 }
0x1014   : > { %5782 = vmatpush1.msra.mxu1 %v9464_v52 }
0x1015   : > { %5783 = vmatprep.subr.mxu1 %v10575_v0 }
0x1016   : > { %5784 = vmatpush1.msra.mxu1 %v9463_v8 }
0x1017   : > { %5785 = vmatprep.subr.mxu1 %v10575_v0 }
0x1018   : > { %5786 = vmatpush1.msra.mxu1 %v9462_v51 }
0x1019   : > { %5787 = vmatprep.subr.mxu1 %v10575_v0 }
0x101a   : > { %5788 = vmatpush1.msra.mxu1 %v9461_v11 }
0x101b   : > { %5789 = vmatprep.subr.mxu1 %v10575_v0 }
0x101c   : > { %5790 = vmatpush1.msra.mxu1 %v9460_v43  ;;  %v9508_v43 = vld [vmem:[%s16091_s5 + $0x1d0] sm:$0xff] }
0x101d   : > { %5819 = vmatprep.subr.mxu1 %v10575_v0 }
0x101e   : > { %5820 = vmatpush2.msra.mxu1 %v9477_v5  ;;  %v9527_v5 = vld [vmem:[%s16090_s4 + $0xba8] sm:$0xff] }
0x101f   : > { %5821 = vmatprep.subr.mxu1 %v10575_v0 }
0x1020   : > { %5822 = vmatpush2.msra.mxu1 %v9476_v3  ;;  %v9526_v3 = vld [vmem:[%s16090_s4 + $0xba0] sm:$0xff] }
0x1021   : > { %5824 = vmatmul.mubr.f32.vlgmr.msra.gmra.mxu1 %v12737_v42  ;;  %10269 = vmatprep.subr.mxu1 %v10575_v0 }
0x1022   : > { %9479 = vmatprep.mubr.msk.f32.mxu1 %vm2301_vm3, %v12758_v59 }
0x1025   : > { %5829 = vmatmul.mubr.f32.gmra.mxu1 %v12762_v38 }
0x1026   : > { %10273 = vmatprep.mubr.msk.f32.mxu1 %vm10577_vm4, %v10575_v0 }
0x10bd   : > { %v5723_v62 = vpop.f32.mrf.mxu1 }
0x10be   : > { %v14588_v14 = vadd.f32 %v5723_v62, %v14156_v17  ;;  %v9480_v17 = vld [vmem:[%s16091_s5 + $0x1b0] sm:$0xff]  ;;  %v9509_v62 = vld [vmem:[%s16091_s5 + $0x1d8] sm:$0xf] }
0x10bf   : > { %v10249_v2 = vpop.f32.mrf.mxu1 }
0x10c0   : > { %v9525_v2 = vld [vmem:[%s16090_s4 + $0xb98] sm:$0xff] }
0x10c1   : > { %v5728_v9 = vpop.f32.mrf.mxu1 }
0x10c2   : > { %v14591_v40 = vadd.f32 %v5728_v9, %v14159_v23  ;;  %v9502_v23 = vld [vmem:[%s16090_s4 + $0xb28] sm:$0xff]  ;;  %v9524_v9 = vld [vmem:[%s16090_s4 + $0xb90] sm:$0xff] }
0x10c3   : > { %v10252_v10 = vpop.f32.mrf.mxu1 }
0x10c4   : > { %v9523_v10 = vld [vmem:[%s16090_s4 + $0xb88] sm:$0xff] }
0x10c5   : > { %v5733_v49 = vpop.f32.mrf.mxu1 }
0x10c6   : > { %v14594_v60 = vadd.f32 %v5733_v49, %v14162_v30  ;;  %v9501_v30 = vld [vmem:[%s16090_s4 + $0xb20] sm:$0xff] }
0x10c7   : > { %v10255_v19 = vpop.f32.mrf.mxu1  ;;  %v9522_v49 = vld [vmem:[%s16090_s4 + $0xb80] sm:$0xff] }
0x10c8   : > { %v9521_v19 = vld [vmem:[%s16090_s4 + $0xb78] sm:$0xff] }
0x10e1   : > { %v5825_v58 = vpop.f32.mrf.mxu1 }
0x10e3   : > { %v5827_v18 = vpop.f32.mrf.mxu1 }
0x10e4   : > { %v9519_v18 = vld [vmem:[%s16090_s4 + $0xb68] sm:$0xff] }
0x10e5   : > { %v5830_v21 = vpop.f32.mrf.mxu1 }
0x10e6   : > { %10257 = vmatpush3.msk.msra.mxu0 %vm2788_vm5, %v5830_v21  ;;  %v9518_v21 = vld [vmem:[%s16090_s4 + $0xb60] sm:$0xff] }
0x10e7   : > { %v5832_v22 = vpop.f32.mrf.mxu1  ;;  %10258 = vmatprep.subr.mxu0 %v10575_v0 }
0x10e8   : > { %10259 = vmatpush3.msra.mxu0 %v5825_v58  ;;  %v9520_v58 = vld [vmem:[%s16090_s4 + $0xb70] sm:$0xff] }
0x10e9   : > { %10261 = vmatmul.mubr.msk.f32.vlgmr.msra.gmra.mxu0 %vm2778_vm6, %v9480_v17  ;;  %5952 = vmatprep.subr.mxu0 %v10575_v0  ;;  %v9517_v17 = vld [vmem:[%s16090_s4 + $0xb58] sm:$0xff]  ;;  %v9516_v22 = vld [vmem:[%s16090_s4 + $0xb50] sm:$0xff] }
0x10ea   : > { %5953 = vmatpush1.msra.mxu0 %v9502_v23  ;;  %10263 = vmatprep.mubr.msk.f32.mxu0 %vm10577_vm4, %v10575_v0  ;;  %v9515_v23 = vld [vmem:[%s16090_s4 + $0xb48] sm:$0xff] }
0x10eb   : > { %5954 = vmatprep.subr.mxu0 %v10575_v0 }
0x10ec   : > { %5955 = vmatpush1.msra.mxu0 %v9501_v30  ;;  %v9514_v30 = vld [vmem:[%s16090_s4 + $0xb40] sm:$0xff] }
0x10ed   : > { %10264 = vmatmul.mubr.msk.f32.gmra.mxu0 %vm2778_vm6, %v9481_v26  ;;  %5956 = vmatprep.subr.mxu0 %v10575_v0  ;;  %v9531_v26 = vld [vmem:[%s16090_s4 + $0xbc8] sm:$0xff] }
0x10ee   : > { %5957 = vmatpush1.msra.mxu0 %v9500_v24  ;;  %10266 = vmatprep.mubr.msk.f32.mxu0 %vm10577_vm4, %v10575_v0  ;;  %v9530_v24 = vld [vmem:[%s16090_s4 + $0xbc0] sm:$0xff] }
0x10ef   : > { %5958 = vmatprep.subr.mxu0 %v10575_v0 }
0x10f0   : > { %5959 = vmatpush1.msra.mxu0 %v9499_v56 }
0x10f1   : > { %10267 = vmatmul.mubr.msk.f32.gmra.mxu0 %vm2778_vm6, %v9482_v15  ;;  %5960 = vmatprep.subr.mxu0 %v10575_v0 }
0x10f2   : > { %5961 = vmatpush1.msra.mxu0 %v9498_v63  ;;  %9505 = vmatprep.mubr.msk.f32.mxu0 %vm2301_vm3, %v12733_v4 }
0x10f3   : > { %5962 = vmatprep.subr.mxu0 %v10575_v0 }
0x10f4   : > { %5963 = vmatpush1.msra.mxu0 %v9497_v20 }
0x10f5   : > { %5964 = vmatprep.subr.mxu0 %v10575_v0 }
0x10f6   : > { %5965 = vmatpush1.msra.mxu0 %v9496_v27 }
0x10f7   : > { %5966 = vmatprep.subr.mxu0 %v10575_v0 }
0x10f8   : > { %5967 = vmatpush1.msra.mxu0 %v9495_v31 }
0x10f9   : > { %5968 = vmatprep.subr.mxu0 %v10575_v0 }
0x10fa   : > { %5969 = vmatpush1.msra.mxu0 %v9494_v29 }
0x10fb   : > { %5970 = vmatprep.subr.mxu0 %v10575_v0 }
0x10fc   : > { %5971 = vmatpush1.msra.mxu0 %v9493_v34 }
0x10fd   : > { %5972 = vmatprep.subr.mxu0 %v10575_v0 }
0x10fe   : > { %5973 = vmatpush1.msra.mxu0 %v9492_v61 }
0x10ff   : > { %5974 = vmatprep.subr.mxu0 %v10575_v0 }
0x1100   : > { %5975 = vmatpush1.msra.mxu0 %v9491_v32 }
0x1101   : > { %5976 = vmatprep.subr.mxu0 %v10575_v0 }
0x1102   : > { %5977 = vmatpush1.msra.mxu0 %v9490_v41 }
0x1103   : > { %5978 = vmatprep.subr.mxu0 %v10575_v0 }
0x1104   : > { %5979 = vmatpush1.msra.mxu0 %v9489_v13 }
0x1105   : > { %5980 = vmatprep.subr.mxu0 %v10575_v0 }
0x1106   : > { %5981 = vmatpush1.msra.mxu0 %v9488_v46 }
0x1107   : > { %5982 = vmatprep.subr.mxu0 %v10575_v0 }
0x1108   : > { %5983 = vmatpush1.msra.mxu0 %v9487_v6  ;;  %v9535_v6 = vld [vmem:[%s16091_s5 + $0x1e8] sm:$0xff] }
0x1109   : > { %6012 = vmatprep.subr.mxu0 %v10575_v0 }
0x110a   : > { %6013 = vmatpush2.msra.mxu0 %v9504_v44  ;;  %v9554_v44 = vld [vmem:[%s16090_s4 + $0xc38] sm:$0xff] }
0x110b   : > { %6014 = vmatprep.subr.mxu0 %v10575_v0 }
0x110c   : > { %6015 = vmatpush2.msra.mxu0 %v9503_v35  ;;  %v9553_v35 = vld [vmem:[%s16090_s4 + $0xc30] sm:$0xff] }
0x110d   : > { %6017 = vmatmul.mubr.f32.vlgmr.msra.gmra.mxu0 %v12737_v42  ;;  %10282 = vmatprep.subr.mxu0 %v10575_v0 }
0x110e   : > { %9506 = vmatprep.mubr.msk.f32.mxu0 %vm2301_vm3, %v12758_v59 }
0x1111   : > { %6022 = vmatmul.mubr.f32.gmra.mxu0 %v12762_v38 }
0x1112   : > { %10286 = vmatprep.mubr.msk.f32.mxu0 %vm10577_vm4, %v10575_v0 }
0x11a9   : > { %v5916_v36 = vpop.f32.mrf.mxu0 }
0x11aa   : > { %v14696_v37 = vadd.f32 %v5916_v36, %v14264_v1  ;;  %v9507_v1 = vld [vmem:[%s16091_s5 + $0x1c8] sm:$0xff]  ;;  %v9536_v36 = vld [vmem:[%s16091_s5 + $0x1f0] sm:$0xf] }
0x11ab   : > { %v10262_v28 = vpop.f32.mrf.mxu0 }
0x11ac   : > { %v9552_v28 = vld [vmem:[%s16090_s4 + $0xc28] sm:$0xff] }
0x11ad   : > { %v5921_v53 = vpop.f32.mrf.mxu0 }
0x11ae   : > { %v14699_v50 = vadd.f32 %v5921_v53, %v14267_v45  ;;  %v9529_v45 = vld [vmem:[%s16090_s4 + $0xbb8] sm:$0xff]  ;;  %v9551_v53 = vld [vmem:[%s16090_s4 + $0xc20] sm:$0xff] }
0x11af   : > { %v10265_v7 = vpop.f32.mrf.mxu0 }
0x11b0   : > { %v9550_v7 = vld [vmem:[%s16090_s4 + $0xc18] sm:$0xff] }
0x11b1   : > { %v5926_v54 = vpop.f32.mrf.mxu0 }
0x11b2   : > { %v14702_v55 = vadd.f32 %v5926_v54, %v14270_v12  ;;  %v9528_v12 = vld [vmem:[%s16090_s4 + $0xbb0] sm:$0xff] }
0x11b3   : > { %v10268_v48 = vpop.f32.mrf.mxu0  ;;  %v9549_v54 = vld [vmem:[%s16090_s4 + $0xc10] sm:$0xff] }
0x11b4   : > { %v9548_v48 = vld [vmem:[%s16090_s4 + $0xc08] sm:$0xff] }
0x11cd   : > { %v6018_v52 = vpop.f32.mrf.mxu0 }
0x11cf   : > { %v6020_v8 = vpop.f32.mrf.mxu0 }
0x11d0   : > { %v9546_v8 = vld [vmem:[%s16090_s4 + $0xbf8] sm:$0xff] }
0x11d1   : > { %v6023_v51 = vpop.f32.mrf.mxu0 }
0x11d2   : > { %10270 = vmatpush3.msk.msra.mxu1 %vm2788_vm5, %v6023_v51  ;;  %v9545_v51 = vld [vmem:[%s16090_s4 + $0xbf0] sm:$0xff] }
0x11d3   : > { %v6025_v11 = vpop.f32.mrf.mxu0  ;;  %10271 = vmatprep.subr.mxu1 %v10575_v0 }
0x11d4   : > { %10272 = vmatpush3.msra.mxu1 %v6018_v52  ;;  %v9547_v52 = vld [vmem:[%s16090_s4 + $0xc00] sm:$0xff] }
0x11d5   : > { %10274 = vmatmul.mubr.msk.f32.vlgmr.msra.gmra.mxu1 %vm2778_vm6, %v9507_v1  ;;  %6145 = vmatprep.subr.mxu1 %v10575_v0  ;;  %v9544_v1 = vld [vmem:[%s16090_s4 + $0xbe8] sm:$0xff]  ;;  %v9543_v11 = vld [vmem:[%s16090_s4 + $0xbe0] sm:$0xff] }
0x11d6   : > { %6146 = vmatpush1.msra.mxu1 %v9529_v45  ;;  %10276 = vmatprep.mubr.msk.f32.mxu1 %vm10577_vm4, %v10575_v0  ;;  %v9542_v45 = vld [vmem:[%s16090_s4 + $0xbd8] sm:$0xff] }
0x11d7   : > { %6147 = vmatprep.subr.mxu1 %v10575_v0 }
0x11d8   : > { %6148 = vmatpush1.msra.mxu1 %v9528_v12  ;;  %v9541_v12 = vld [vmem:[%s16090_s4 + $0xbd0] sm:$0xff] }
0x11d9   : > { %10277 = vmatmul.mubr.msk.f32.gmra.mxu1 %vm2778_vm6, %v9508_v43  ;;  %6149 = vmatprep.subr.mxu1 %v10575_v0  ;;  %v9558_v43 = vld [vmem:[%s16090_s4 + $0xc58] sm:$0xff] }
0x11da   : > { %6150 = vmatpush1.msra.mxu1 %v9527_v5  ;;  %10279 = vmatprep.mubr.msk.f32.mxu1 %vm10577_vm4, %v10575_v0  ;;  %v9557_v5 = vld [vmem:[%s16090_s4 + $0xc50] sm:$0xff] }
0x11db   : > { %6151 = vmatprep.subr.mxu1 %v10575_v0 }
0x11dc   : > { %6152 = vmatpush1.msra.mxu1 %v9526_v3 }
0x11dd   : > { %10280 = vmatmul.mubr.msk.f32.gmra.mxu1 %vm2778_vm6, %v9509_v62  ;;  %6153 = vmatprep.subr.mxu1 %v10575_v0 }
0x11de   : > { %6154 = vmatpush1.msra.mxu1 %v9525_v2  ;;  %9532 = vmatprep.mubr.msk.f32.mxu1 %vm2301_vm3, %v12733_v4 }
0x11df   : > { %6155 = vmatprep.subr.mxu1 %v10575_v0 }
0x11e0   : > { %6156 = vmatpush1.msra.mxu1 %v9524_v9 }
0x11e1   : > { %6157 = vmatprep.subr.mxu1 %v10575_v0 }
0x11e2   : > { %6158 = vmatpush1.msra.mxu1 %v9523_v10 }
0x11e3   : > { %6159 = vmatprep.subr.mxu1 %v10575_v0 }
0x11e4   : > { %6160 = vmatpush1.msra.mxu1 %v9522_v49 }
0x11e5   : > { %6161 = vmatprep.subr.mxu1 %v10575_v0 }
0x11e6   : > { %6162 = vmatpush1.msra.mxu1 %v9521_v19 }
0x11e7   : > { %6163 = vmatprep.subr.mxu1 %v10575_v0 }
0x11e8   : > { %6164 = vmatpush1.msra.mxu1 %v9520_v58 }
0x11e9   : > { %6165 = vmatprep.subr.mxu1 %v10575_v0 }
0x11ea   : > { %6166 = vmatpush1.msra.mxu1 %v9519_v18 }
0x11eb   : > { %6167 = vmatprep.subr.mxu1 %v10575_v0 }
0x11ec   : > { %6168 = vmatpush1.msra.mxu1 %v9518_v21 }
0x11ed   : > { %6169 = vmatprep.subr.mxu1 %v10575_v0 }
0x11ee   : > { %6170 = vmatpush1.msra.mxu1 %v9517_v17 }
0x11ef   : > { %6171 = vmatprep.subr.mxu1 %v10575_v0 }
0x11f0   : > { %6172 = vmatpush1.msra.mxu1 %v9516_v22 }
0x11f1   : > { %6173 = vmatprep.subr.mxu1 %v10575_v0 }
0x11f2   : > { %6174 = vmatpush1.msra.mxu1 %v9515_v23 }
0x11f3   : > { %6175 = vmatprep.subr.mxu1 %v10575_v0 }
0x11f4   : > { %6176 = vmatpush1.msra.mxu1 %v9514_v30  ;;  %v9562_v30 = vld [vmem:[%s16091_s5 + $0x200] sm:$0xff] }
0x11f5   : > { %6205 = vmatprep.subr.mxu1 %v10575_v0 }
0x11f6   : > { %6206 = vmatpush2.msra.mxu1 %v9531_v26  ;;  %v9581_v26 = vld [vmem:[%s16090_s4 + $0xcc8] sm:$0xff] }
0x11f7   : > { %6207 = vmatprep.subr.mxu1 %v10575_v0 }
0x11f8   : > { %6208 = vmatpush2.msra.mxu1 %v9530_v24  ;;  %v9580_v24 = vld [vmem:[%s16090_s4 + $0xcc0] sm:$0xff] }
0x11f9   : > { %6210 = vmatmul.mubr.f32.vlgmr.msra.gmra.mxu1 %v12737_v42  ;;  %10295 = vmatprep.subr.mxu1 %v10575_v0 }
0x11fa   : > { %9533 = vmatprep.mubr.msk.f32.mxu1 %vm2301_vm3, %v12758_v59 }
0x11fd   : > { %6215 = vmatmul.mubr.f32.gmra.mxu1 %v12762_v38 }
0x11fe   : > { %10299 = vmatprep.mubr.msk.f32.mxu1 %vm10577_vm4, %v10575_v0 }
0x1295   : > { %v6109_v56 = vpop.f32.mrf.mxu1 }
0x1296   : > { %v14804_v15 = vadd.f32 %v6109_v56, %v14372_v39  ;;  %v9534_v39 = vld [vmem:[%s16091_s5 + $0x1e0] sm:$0xff]  ;;  %v9563_v56 = vld [vmem:[%s16091_s5 + $0x208] sm:$0xf] }
0x1297   : > { %v10275_v63 = vpop.f32.mrf.mxu1 }
0x1298   : > { %v9579_v63 = vld [vmem:[%s16090_s4 + $0xcb8] sm:$0xff] }
0x1299   : > { %v6114_v20 = vpop.f32.mrf.mxu1 }
0x129a   : > { %v14807_v27 = vadd.f32 %v6114_v20, %v14375_v57  ;;  %v9556_v57 = vld [vmem:[%s16090_s4 + $0xc48] sm:$0xff]  ;;  %v9578_v20 = vld [vmem:[%s16090_s4 + $0xcb0] sm:$0xff] }
0x129b   : > { %v10278_v31 = vpop.f32.mrf.mxu1 }
0x129c   : > { %v9577_v31 = vld [vmem:[%s16090_s4 + $0xca8] sm:$0xff] }
0x129d   : > { %v6119_v29 = vpop.f32.mrf.mxu1 }
0x129e   : > { %v14810_v34 = vadd.f32 %v6119_v29, %v14378_v47  ;;  %v9555_v47 = vld [vmem:[%s16090_s4 + $0xc40] sm:$0xff] }
0x129f   : > { %v10281_v61 = vpop.f32.mrf.mxu1  ;;  %v9576_v29 = vld [vmem:[%s16090_s4 + $0xca0] sm:$0xff] }
0x12a0   : > { %v9575_v61 = vld [vmem:[%s16090_s4 + $0xc98] sm:$0xff] }
0x12b9   : > { %v6211_v32 = vpop.f32.mrf.mxu1 }
0x12bb   : > { %v6213_v41 = vpop.f32.mrf.mxu1 }
0x12bc   : > { %v9573_v41 = vld [vmem:[%s16090_s4 + $0xc88] sm:$0xff] }
0x12bd   : > { %v6216_v13 = vpop.f32.mrf.mxu1 }
0x12be   : > { %10283 = vmatpush3.msk.msra.mxu0 %vm2788_vm5, %v6216_v13  ;;  %v9572_v13 = vld [vmem:[%s16090_s4 + $0xc80] sm:$0xff] }
0x12bf   : > { %v6218_v46 = vpop.f32.mrf.mxu1  ;;  %10284 = vmatprep.subr.mxu0 %v10575_v0 }
0x12c0   : > { %10285 = vmatpush3.msra.mxu0 %v6211_v32  ;;  %v9574_v32 = vld [vmem:[%s16090_s4 + $0xc90] sm:$0xff] }
0x12c1   : > { %10287 = vmatmul.mubr.msk.f32.vlgmr.msra.gmra.mxu0 %vm2778_vm6, %v9534_v39  ;;  %6338 = vmatprep.subr.mxu0 %v10575_v0  ;;  %v9571_v39 = vld [vmem:[%s16090_s4 + $0xc78] sm:$0xff]  ;;  %v9570_v46 = vld [vmem:[%s16090_s4 + $0xc70] sm:$0xff] }
0x12c2   : > { %6339 = vmatpush1.msra.mxu0 %v9556_v57  ;;  %10289 = vmatprep.mubr.msk.f32.mxu0 %vm10577_vm4, %v10575_v0  ;;  %v9569_v57 = vld [vmem:[%s16090_s4 + $0xc68] sm:$0xff] }
0x12c3   : > { %6340 = vmatprep.subr.mxu0 %v10575_v0 }
0x12c4   : > { %6341 = vmatpush1.msra.mxu0 %v9555_v47  ;;  %v9568_v47 = vld [vmem:[%s16090_s4 + $0xc60] sm:$0xff] }
0x12c5   : > { %10290 = vmatmul.mubr.msk.f32.gmra.mxu0 %vm2778_vm6, %v9535_v6  ;;  %6342 = vmatprep.subr.mxu0 %v10575_v0  ;;  %v9585_v6 = vld [vmem:[%s16090_s4 + $0xce8] sm:$0xff] }
0x12c6   : > { %6343 = vmatpush1.msra.mxu0 %v9554_v44  ;;  %10292 = vmatprep.mubr.msk.f32.mxu0 %vm10577_vm4, %v10575_v0  ;;  %v9584_v44 = vld [vmem:[%s16090_s4 + $0xce0] sm:$0xff] }
0x12c7   : > { %6344 = vmatprep.subr.mxu0 %v10575_v0 }
0x12c8   : > { %6345 = vmatpush1.msra.mxu0 %v9553_v35 }
0x12c9   : > { %10293 = vmatmul.mubr.msk.f32.gmra.mxu0 %vm2778_vm6, %v9536_v36  ;;  %6346 = vmatprep.subr.mxu0 %v10575_v0 }
0x12ca   : > { %6347 = vmatpush1.msra.mxu0 %v9552_v28  ;;  %9559 = vmatprep.mubr.msk.f32.mxu0 %vm2301_vm3, %v12733_v4 }
0x12cb   : > { %6348 = vmatprep.subr.mxu0 %v10575_v0 }
0x12cc   : > { %6349 = vmatpush1.msra.mxu0 %v9551_v53 }
0x12cd   : > { %6350 = vmatprep.subr.mxu0 %v10575_v0 }
0x12ce   : > { %6351 = vmatpush1.msra.mxu0 %v9550_v7 }
0x12cf   : > { %6352 = vmatprep.subr.mxu0 %v10575_v0 }
0x12d0   : > { %6353 = vmatpush1.msra.mxu0 %v9549_v54 }
0x12d1   : > { %6354 = vmatprep.subr.mxu0 %v10575_v0 }
0x12d2   : > { %6355 = vmatpush1.msra.mxu0 %v9548_v48 }
0x12d3   : > { %6356 = vmatprep.subr.mxu0 %v10575_v0 }
0x12d4   : > { %6357 = vmatpush1.msra.mxu0 %v9547_v52 }
0x12d5   : > { %6358 = vmatprep.subr.mxu0 %v10575_v0 }
0x12d6   : > { %6359 = vmatpush1.msra.mxu0 %v9546_v8 }
0x12d7   : > { %6360 = vmatprep.subr.mxu0 %v10575_v0 }
0x12d8   : > { %6361 = vmatpush1.msra.mxu0 %v9545_v51 }
0x12d9   : > { %6362 = vmatprep.subr.mxu0 %v10575_v0 }
0x12da   : > { %6363 = vmatpush1.msra.mxu0 %v9544_v1 }
0x12db   : > { %6364 = vmatprep.subr.mxu0 %v10575_v0 }
0x12dc   : > { %6365 = vmatpush1.msra.mxu0 %v9543_v11 }
0x12dd   : > { %6366 = vmatprep.subr.mxu0 %v10575_v0 }
0x12de   : > { %6367 = vmatpush1.msra.mxu0 %v9542_v45 }
0x12df   : > { %6368 = vmatprep.subr.mxu0 %v10575_v0 }
0x12e0   : > { %6369 = vmatpush1.msra.mxu0 %v9541_v12  ;;  %v9589_v12 = vld [vmem:[%s16091_s5 + $0x218] sm:$0xff] }
0x12e1   : > { %6398 = vmatprep.subr.mxu0 %v10575_v0 }
0x12e2   : > { %6399 = vmatpush2.msra.mxu0 %v9558_v43  ;;  %v9608_v43 = vld [vmem:[%s16090_s4 + $0xd58] sm:$0xff] }
0x12e3   : > { %6400 = vmatprep.subr.mxu0 %v10575_v0 }
0x12e4   : > { %6401 = vmatpush2.msra.mxu0 %v9557_v5  ;;  %v9607_v5 = vld [vmem:[%s16090_s4 + $0xd50] sm:$0xff] }
0x12e5   : > { %6403 = vmatmul.mubr.f32.vlgmr.msra.gmra.mxu0 %v12737_v42  ;;  %10308 = vmatprep.subr.mxu0 %v10575_v0 }
0x12e6   : > { %9560 = vmatprep.mubr.msk.f32.mxu0 %vm2301_vm3, %v12758_v59 }
0x12e9   : > { %6408 = vmatmul.mubr.f32.gmra.mxu0 %v12762_v38 }
0x12ea   : > { %10312 = vmatprep.mubr.msk.f32.mxu0 %vm10577_vm4, %v10575_v0 }
0x1381   : > { %v6302_v3 = vpop.f32.mrf.mxu0 }
0x1382   : > { %v14912_v62 = vadd.f32 %v6302_v3, %v14480_v16  ;;  %v9561_v16 = vld [vmem:[%s16091_s5 + $0x1f8] sm:$0xff]  ;;  %v9590_v3 = vld [vmem:[%s16091_s5 + $0x220] sm:$0xf] }
0x1383   : > { %v10288_v2 = vpop.f32.mrf.mxu0 }
0x1384   : > { %v9606_v2 = vld [vmem:[%s16090_s4 + $0xd48] sm:$0xff] }
0x1385   : > { %v6307_v9 = vpop.f32.mrf.mxu0 }
0x1386   : > { %v14915_v10 = vadd.f32 %v6307_v9, %v14483_v25  ;;  %v9583_v25 = vld [vmem:[%s16090_s4 + $0xcd8] sm:$0xff]  ;;  %v9605_v9 = vld [vmem:[%s16090_s4 + $0xd40] sm:$0xff] }
0x1387   : > { %v10291_v49 = vpop.f32.mrf.mxu0 }
0x1388   : > { %v9604_v49 = vld [vmem:[%s16090_s4 + $0xd38] sm:$0xff] }
0x1389   : > { %v6312_v19 = vpop.f32.mrf.mxu0 }
0x138a   : > { %v14918_v58 = vadd.f32 %v6312_v19, %v14486_v33  ;;  %v9582_v33 = vld [vmem:[%s16090_s4 + $0xcd0] sm:$0xff] }
0x138b   : > { %v10294_v18 = vpop.f32.mrf.mxu0  ;;  %v9603_v19 = vld [vmem:[%s16090_s4 + $0xd30] sm:$0xff] }
0x138c   : > { %v9602_v18 = vld [vmem:[%s16090_s4 + $0xd28] sm:$0xff] }
0x13a5   : > { %v6404_v21 = vpop.f32.mrf.mxu0 }
0x13a7   : > { %v6406_v17 = vpop.f32.mrf.mxu0 }
0x13a8   : > { %v9600_v17 = vld [vmem:[%s16090_s4 + $0xd18] sm:$0xff] }
0x13a9   : > { %v6409_v22 = vpop.f32.mrf.mxu0 }
0x13aa   : > { %10296 = vmatpush3.msk.msra.mxu1 %vm2788_vm5, %v6409_v22  ;;  %v9599_v22 = vld [vmem:[%s16090_s4 + $0xd10] sm:$0xff] }
0x13ab   : > { %v6411_v23 = vpop.f32.mrf.mxu0  ;;  %10297 = vmatprep.subr.mxu1 %v10575_v0 }
0x13ac   : > { %10298 = vmatpush3.msra.mxu1 %v6404_v21  ;;  %v9601_v21 = vld [vmem:[%s16090_s4 + $0xd20] sm:$0xff] }
0x13ad   : > { %10300 = vmatmul.mubr.msk.f32.vlgmr.msra.gmra.mxu1 %vm2778_vm6, %v9561_v16  ;;  %6531 = vmatprep.subr.mxu1 %v10575_v0  ;;  %v9598_v16 = vld [vmem:[%s16090_s4 + $0xd08] sm:$0xff]  ;;  %v9597_v23 = vld [vmem:[%s16090_s4 + $0xd00] sm:$0xff] }
0x13ae   : > { %6532 = vmatpush1.msra.mxu1 %v9583_v25  ;;  %10302 = vmatprep.mubr.msk.f32.mxu1 %vm10577_vm4, %v10575_v0  ;;  %v9596_v25 = vld [vmem:[%s16090_s4 + $0xcf8] sm:$0xff] }
0x13af   : > { %6533 = vmatprep.subr.mxu1 %v10575_v0 }
0x13b0   : > { %6534 = vmatpush1.msra.mxu1 %v9582_v33  ;;  %v9595_v33 = vld [vmem:[%s16090_s4 + $0xcf0] sm:$0xff] }
0x13b1   : > { %10303 = vmatmul.mubr.msk.f32.gmra.mxu1 %vm2778_vm6, %v9562_v30  ;;  %6535 = vmatprep.subr.mxu1 %v10575_v0  ;;  %v9612_v30 = vld [vmem:[%s16090_s4 + $0xd78] sm:$0xff] }
0x13b2   : > { %6536 = vmatpush1.msra.mxu1 %v9581_v26  ;;  %10305 = vmatprep.mubr.msk.f32.mxu1 %vm10577_vm4, %v10575_v0  ;;  %v9611_v26 = vld [vmem:[%s16090_s4 + $0xd70] sm:$0xff] }
0x13b3   : > { %6537 = vmatprep.subr.mxu1 %v10575_v0 }
0x13b4   : > { %6538 = vmatpush1.msra.mxu1 %v9580_v24 }
0x13b5   : > { %10306 = vmatmul.mubr.msk.f32.gmra.mxu1 %vm2778_vm6, %v9563_v56  ;;  %6539 = vmatprep.subr.mxu1 %v10575_v0 }
0x13b6   : > { %6540 = vmatpush1.msra.mxu1 %v9579_v63  ;;  %9586 = vmatprep.mubr.msk.f32.mxu1 %vm2301_vm3, %v12733_v4 }
0x13b7   : > { %6541 = vmatprep.subr.mxu1 %v10575_v0 }
0x13b8   : > { %6542 = vmatpush1.msra.mxu1 %v9578_v20 }
0x13b9   : > { %6543 = vmatprep.subr.mxu1 %v10575_v0 }
0x13ba   : > { %6544 = vmatpush1.msra.mxu1 %v9577_v31 }
0x13bb   : > { %6545 = vmatprep.subr.mxu1 %v10575_v0 }
0x13bc   : > { %6546 = vmatpush1.msra.mxu1 %v9576_v29 }
0x13bd   : > { %6547 = vmatprep.subr.mxu1 %v10575_v0 }
0x13be   : > { %6548 = vmatpush1.msra.mxu1 %v9575_v61 }
0x13bf   : > { %6549 = vmatprep.subr.mxu1 %v10575_v0 }
0x13c0   : > { %6550 = vmatpush1.msra.mxu1 %v9574_v32 }
0x13c1   : > { %6551 = vmatprep.subr.mxu1 %v10575_v0 }
0x13c2   : > { %6552 = vmatpush1.msra.mxu1 %v9573_v41 }
0x13c3   : > { %6553 = vmatprep.subr.mxu1 %v10575_v0 }
0x13c4   : > { %6554 = vmatpush1.msra.mxu1 %v9572_v13 }
0x13c5   : > { %6555 = vmatprep.subr.mxu1 %v10575_v0 }
0x13c6   : > { %6556 = vmatpush1.msra.mxu1 %v9571_v39 }
0x13c7   : > { %6557 = vmatprep.subr.mxu1 %v10575_v0 }
0x13c8   : > { %6558 = vmatpush1.msra.mxu1 %v9570_v46 }
0x13c9   : > { %6559 = vmatprep.subr.mxu1 %v10575_v0 }
0x13ca   : > { %6560 = vmatpush1.msra.mxu1 %v9569_v57 }
0x13cb   : > { %6561 = vmatprep.subr.mxu1 %v10575_v0 }
0x13cc   : > { %6562 = vmatpush1.msra.mxu1 %v9568_v47  ;;  %v9616_v47 = vld [vmem:[%s16091_s5 + $0x230] sm:$0xff] }
0x13cd   : > { %6591 = vmatprep.subr.mxu1 %v10575_v0 }
0x13ce   : > { %6592 = vmatpush2.msra.mxu1 %v9585_v6  ;;  %v9635_v6 = vld [vmem:[%s16090_s4 + $0xde8] sm:$0xff] }
0x13cf   : > { %6593 = vmatprep.subr.mxu1 %v10575_v0 }
0x13d0   : > { %6594 = vmatpush2.msra.mxu1 %v9584_v44  ;;  %v9634_v44 = vld [vmem:[%s16090_s4 + $0xde0] sm:$0xff] }
0x13d1   : > { %6596 = vmatmul.mubr.f32.vlgmr.msra.gmra.mxu1 %v12737_v42  ;;  %10321 = vmatprep.subr.mxu1 %v10575_v0 }
0x13d2   : > { %9587 = vmatprep.mubr.msk.f32.mxu1 %vm2301_vm3, %v12758_v59 }
0x13d5   : > { %6601 = vmatmul.mubr.f32.gmra.mxu1 %v12762_v38 }
0x13d6   : > { %10325 = vmatprep.mubr.msk.f32.mxu1 %vm10577_vm4, %v10575_v0 }
0x146d   : > { %v6495_v35 = vpop.f32.mrf.mxu1 }
0x146e   : > { %v15020_v36 = vadd.f32 %v6495_v35, %v14588_v14  ;;  %v9588_v14 = vld [vmem:[%s16091_s5 + $0x210] sm:$0xff]  ;;  %v9617_v35 = vld [vmem:[%s16091_s5 + $0x238] sm:$0xf] }
0x146f   : > { %v10301_v28 = vpop.f32.mrf.mxu1 }
0x1470   : > { %v9633_v28 = vld [vmem:[%s16090_s4 + $0xdd8] sm:$0xff] }
0x1471   : > { %v6500_v53 = vpop.f32.mrf.mxu1 }
0x1472   : > { %v15023_v7 = vadd.f32 %v6500_v53, %v14591_v40  ;;  %v9610_v40 = vld [vmem:[%s16090_s4 + $0xd68] sm:$0xff]  ;;  %v9632_v53 = vld [vmem:[%s16090_s4 + $0xdd0] sm:$0xff] }
0x1473   : > { %v10304_v54 = vpop.f32.mrf.mxu1 }
0x1474   : > { %v9631_v54 = vld [vmem:[%s16090_s4 + $0xdc8] sm:$0xff] }
0x1475   : > { %v6505_v48 = vpop.f32.mrf.mxu1 }
0x1476   : > { %v15026_v52 = vadd.f32 %v6505_v48, %v14594_v60  ;;  %v9609_v60 = vld [vmem:[%s16090_s4 + $0xd60] sm:$0xff] }
0x1477   : > { %v10307_v8 = vpop.f32.mrf.mxu1  ;;  %v9630_v48 = vld [vmem:[%s16090_s4 + $0xdc0] sm:$0xff] }
0x1478   : > { %v9628_v8 = vld [vmem:[%s16090_s4 + $0xdb0] sm:$0xff] }
0x1491   : > { %v6597_v51 = vpop.f32.mrf.mxu1 }
0x1493   : > { %v6599_v1 = vpop.f32.mrf.mxu1 }
0x1494   : > { %v9626_v1 = vld [vmem:[%s16090_s4 + $0xda0] sm:$0xff] }
0x1495   : > { %v6602_v11 = vpop.f32.mrf.mxu1 }
0x1496   : > { %10309 = vmatpush3.msk.msra.mxu0 %vm2788_vm5, %v6602_v11  ;;  %v9625_v11 = vld [vmem:[%s16090_s4 + $0xd98] sm:$0xff] }
0x1497   : > { %v6604_v45 = vpop.f32.mrf.mxu1  ;;  %10310 = vmatprep.subr.mxu0 %v10575_v0 }
0x1498   : > { %10311 = vmatpush3.msra.mxu0 %v6597_v51  ;;  %v9627_v51 = vld [vmem:[%s16090_s4 + $0xda8] sm:$0xff] }
0x1499   : > { %10313 = vmatmul.mubr.msk.f32.vlgmr.msra.gmra.mxu0 %vm2778_vm6, %v9588_v14  ;;  %6724 = vmatprep.subr.mxu0 %v10575_v0  ;;  %v9624_v14 = vld [vmem:[%s16090_s4 + $0xd90] sm:$0xff]  ;;  %v9623_v45 = vld [vmem:[%s16090_s4 + $0xd88] sm:$0xff] }
0x149a   : > { %6725 = vmatpush1.msra.mxu0 %v9610_v40  ;;  %10315 = vmatprep.mubr.msk.f32.mxu0 %vm10577_vm4, %v10575_v0  ;;  %v9622_v40 = vld [vmem:[%s16090_s4 + $0xd80] sm:$0xff] }
0x149b   : > { %6726 = vmatprep.subr.mxu0 %v10575_v0 }
0x149c   : > { %6727 = vmatpush1.msra.mxu0 %v9609_v60  ;;  %v9639_v60 = vld [vmem:[%s16090_s4 + $0xe08] sm:$0xff] }
0x149d   : > { %10316 = vmatmul.mubr.msk.f32.gmra.mxu0 %vm2778_vm6, %v9589_v12  ;;  %6728 = vmatprep.subr.mxu0 %v10575_v0  ;;  %v9638_v12 = vld [vmem:[%s16090_s4 + $0xe00] sm:$0xff] }
0x149e   : > { %6729 = vmatpush1.msra.mxu0 %v9608_v43  ;;  %10318 = vmatprep.mubr.msk.f32.mxu0 %vm10577_vm4, %v10575_v0  ;;  %v7100_v43 = vld [vmem:[%s16092_s6] sm:$0xff] }
0x149f   : > { %6730 = vmatprep.subr.mxu0 %v10575_v0  ;;  %7105 = vperm.xlu1 %10508, %v7100_v43   ;;  %v9656_v43 = vld [vmem:[%s16093_s7 + $0x60] sm:$0xff] }
0x14a0   : > { %6731 = vmatpush1.msra.mxu0 %v9607_v5  ;;  %v9670_v5 = vld [vmem:[%s16093_s7 + $0xb8] sm:$0xff] }
0x14a1   : > { %10319 = vmatmul.mubr.msk.f32.gmra.mxu0 %vm2778_vm6, %v9590_v3  ;;  %6732 = vmatprep.subr.mxu0 %v10575_v0 }
0x14a2   : > { %6733 = vmatpush1.msra.mxu0 %v9606_v2  ;;  %9613 = vmatprep.mubr.msk.f32.mxu0 %vm2301_vm3, %v12733_v4 }
0x14a3   : > { %6734 = vmatprep.subr.mxu0 %v10575_v0 }
0x14a4   : > { %6735 = vmatpush1.msra.mxu0 %v9605_v9 }
0x14a5   : > { %6736 = vmatprep.subr.mxu0 %v10575_v0 }
0x14a6   : > { %6737 = vmatpush1.msra.mxu0 %v9604_v49 }
0x14a7   : > { %6738 = vmatprep.subr.mxu0 %v10575_v0 }
0x14a8   : > { %6739 = vmatpush1.msra.mxu0 %v9603_v19 }
0x14a9   : > { %6740 = vmatprep.subr.mxu0 %v10575_v0 }
0x14aa   : > { %6741 = vmatpush1.msra.mxu0 %v9602_v18 }
0x14ab   : > { %6742 = vmatprep.subr.mxu0 %v10575_v0 }
0x14ac   : > { %6743 = vmatpush1.msra.mxu0 %v9601_v21 }
0x14ad   : > { %6744 = vmatprep.subr.mxu0 %v10575_v0 }
0x14ae   : > { %6745 = vmatpush1.msra.mxu0 %v9600_v17 }
0x14af   : > { %6746 = vmatprep.subr.mxu0 %v10575_v0 }
0x14b0   : > { %6747 = vmatpush1.msra.mxu0 %v9599_v22 }
0x14b1   : > { %6748 = vmatprep.subr.mxu0 %v10575_v0 }
0x14b2   : > { %6749 = vmatpush1.msra.mxu0 %v9598_v16 }
0x14b3   : > { %6750 = vmatprep.subr.mxu0 %v10575_v0 }
0x14b4   : > { %6751 = vmatpush1.msra.mxu0 %v9597_v23 }
0x14b5   : > { %6752 = vmatprep.subr.mxu0 %v10575_v0 }
0x14b6   : > { %6753 = vmatpush1.msra.mxu0 %v9596_v25 }
0x14b7   : > { %6754 = vmatprep.subr.mxu0 %v10575_v0 }
0x14b8   : > { %6755 = vmatpush1.msra.mxu0 %v9595_v33 }
0x14b9   : > { %6784 = vmatprep.subr.mxu0 %v10575_v0 }
0x14ba   : > { %6785 = vmatpush2.msra.mxu0 %v9612_v30 }
0x14bb   : > { %6786 = vmatprep.subr.mxu0 %v10575_v0 }
0x14bc   : > { %6787 = vmatpush2.msra.mxu0 %v9611_v26  ;;  %v7130_v26 = vld [vmem:[%s16093_s7 + $0x30] sm:$0xff] }
0x14bd   : > { %6789 = vmatmul.mubr.f32.vlgmr.msra.gmra.mxu0 %v12737_v42  ;;  %10334 = vmatprep.subr.mxu0 %v10575_v0 }
0x14be   : > { %9614 = vmatprep.mubr.msk.f32.mxu0 %vm2301_vm3, %v12758_v59 }
0x14c1   : > { %6794 = vmatmul.mubr.f32.gmra.mxu0 %v12762_v38 }
0x14c2   : > { %10338 = vmatprep.mubr.msk.f32.mxu0 %vm10577_vm4, %v10575_v0 }
0x1559   : > { %v6688_v24 = vpop.f32.mrf.mxu0 }
0x155a   : > { %v15128_v56 = vadd.f32 %v6688_v24, %v14696_v37  ;;  %v9615_v37 = vld [vmem:[%s16091_s5 + $0x228] sm:$0xff] }
0x155b   : > { %v10314_v63 = vpop.f32.mrf.mxu0  ;;  %v9643_v24 = vld [vmem:[%s16091_s5 + $0x248] sm:$0xff] }
0x155c   : > { %v9644_v63 = vld [vmem:[%s16091_s5 + $0x250] sm:$0xf] }
0x155d   : > { %v6693_v20 = vpop.f32.mrf.mxu0 }
0x155e   : > { %v15131_v31 = vadd.f32 %v6693_v20, %v14699_v50  ;;  %v9637_v50 = vld [vmem:[%s16090_s4 + $0xdf8] sm:$0xff]  ;;  %v9668_v20 = vld [vmem:[%s16093_s7 + $0xa8] sm:$0xff] }
0x155f   : > { %v10317_v29 = vpop.f32.mrf.mxu0 }
0x1560   : > { %v9667_v29 = vld [vmem:[%s16093_s7 + $0xa0] sm:$0xff] }
0x1561   : > { %v6698_v61 = vpop.f32.mrf.mxu0 }
0x1562   : > { %v15134_v32 = vadd.f32 %v6698_v61, %v14702_v55  ;;  %v9636_v55 = vld [vmem:[%s16090_s4 + $0xdf0] sm:$0xff]  ;;  %v7127_v61 = vld [vmem:[%s16093_s7 + $0x18] sm:$0xff] }
0x1563   : > { %v10320_v41 = vpop.f32.mrf.mxu0 }
0x1564   : > { %v7126_v41 = vld [vmem:[%s16093_s7 + $0x10] sm:$0xff] }
0x157d   : > { %v6790_v13 = vpop.f32.mrf.mxu0 }
0x157f   : > { %v6792_v39 = vpop.f32.mrf.mxu0 }
0x1580   : > { %v7125_v39 = vld [vmem:[%s16093_s7 + $0x8] sm:$0xff] }
0x1581   : > { %v6795_v46 = vpop.f32.mrf.mxu0 }
0x1582   : > { %10322 = vmatpush3.msk.msra.mxu1 %vm2788_vm5, %v6795_v46  ;;  %v9664_v46 = vld [vmem:[%s16093_s7 + $0x88] sm:$0xff] }
0x1583   : > { %v6797_v57 = vpop.f32.mrf.mxu0  ;;  %10323 = vmatprep.subr.mxu1 %v10575_v0 }
0x1584   : > { %10324 = vmatpush3.msra.mxu1 %v6790_v13  ;;  %v9665_v13 = vld [vmem:[%s16093_s7 + $0x90] sm:$0xff]  ;;  %v9663_v57 = vld [vmem:[%s16093_s7 + $0x80] sm:$0xff] }
0x1585   : > { %10326 = vmatmul.mubr.msk.f32.vlgmr.msra.gmra.mxu1 %vm2778_vm6, %v9615_v37  ;;  %6917 = vmatprep.subr.mxu1 %v10575_v0  ;;  %v7124_v37 = vld [vmem:[%s16093_s7] sm:$0xff] }
0x1586   : > { %6918 = vmatpush1.msra.mxu1 %v9637_v50  ;;  %10328 = vmatprep.mubr.msk.f32.mxu1 %vm10577_vm4, %v10575_v0 }
0x1587   : > { %6919 = vmatprep.subr.mxu1 %v10575_v0 }
0x1588   : > { %6920 = vmatpush1.msra.mxu1 %v9636_v55 }
0x1589   : > { %10329 = vmatmul.mubr.msk.f32.gmra.mxu1 %vm2778_vm6, %v9616_v47  ;;  %6921 = vmatprep.subr.mxu1 %v10575_v0 }
0x158a   : > { %6922 = vmatpush1.msra.mxu1 %v9635_v6  ;;  %10331 = vmatprep.mubr.msk.f32.mxu1 %vm10577_vm4, %v10575_v0 }
0x158b   : > { %6923 = vmatprep.subr.mxu1 %v10575_v0 }
0x158c   : > { %6924 = vmatpush1.msra.mxu1 %v9634_v44 }
0x158d   : > { %10332 = vmatmul.mubr.msk.f32.gmra.mxu1 %vm2778_vm6, %v9617_v35  ;;  %6925 = vmatprep.subr.mxu1 %v10575_v0  ;;  %v7106_v35 = vpop.permute.xlu1 %7105 }
0x158e   : > { %6926 = vmatpush1.msra.mxu1 %v9633_v28  ;;  %9640 = vmatprep.mubr.msk.f32.mxu1 %vm2301_vm3, %v12733_v4  ;;  %v9629_v4 = vld [vmem:[%s16090_s4 + $0xdb8] sm:$0xff] }
0x158f   : > { %6927 = vmatprep.subr.mxu1 %v10575_v0 }
0x1590   : > { %6928 = vmatpush1.msra.mxu1 %v9632_v53 }
0x1591   : > { %6929 = vmatprep.subr.mxu1 %v10575_v0 }
0x1592   : > { %6930 = vmatpush1.msra.mxu1 %v9631_v54 }
0x1593   : > { %6931 = vmatprep.subr.mxu1 %v10575_v0 }
0x1594   : > { %6932 = vmatpush1.msra.mxu1 %v9630_v48 }
0x1595   : > { %6933 = vmatprep.subr.mxu1 %v10575_v0 }
0x1596   : > { %6934 = vmatpush1.msra.mxu1 %v9629_v4 }
0x1597   : > { %6935 = vmatprep.subr.mxu1 %v10575_v0 }
0x1598   : > { %6936 = vmatpush1.msra.mxu1 %v9628_v8 }
0x1599   : > { %6937 = vmatprep.subr.mxu1 %v10575_v0 }
0x159a   : > { %6938 = vmatpush1.msra.mxu1 %v9627_v51 }
0x159b   : > { %6939 = vmatprep.subr.mxu1 %v10575_v0 }
0x159c   : > { %6940 = vmatpush1.msra.mxu1 %v9626_v1 }
0x159d   : > { %6941 = vmatprep.subr.mxu1 %v10575_v0 }
0x159e   : > { %6942 = vmatpush1.msra.mxu1 %v9625_v11 }
0x159f   : > { %6943 = vmatprep.subr.mxu1 %v10575_v0 }
0x15a0   : > { %6944 = vmatpush1.msra.mxu1 %v9624_v14 }
0x15a1   : > { %6945 = vmatprep.subr.mxu1 %v10575_v0 }
0x15a2   : > { %6946 = vmatpush1.msra.mxu1 %v9623_v45 }
0x15a3   : > { %6947 = vmatprep.subr.mxu1 %v10575_v0 }
0x15a4   : > { %6948 = vmatpush1.msra.mxu1 %v9622_v40 }
0x15a5   : > { %6977 = vmatprep.subr.mxu1 %v10575_v0 }
0x15a6   : > { %6978 = vmatpush2.msra.mxu1 %v9639_v60  ;;  %v7116_v60 = vpop.permute.xlu0 %7115 }
0x15a7   : > { %6979 = vmatprep.subr.mxu1 %v10575_v0 }
0x15a8   : > { %6980 = vmatpush2.msra.mxu1 %v9638_v12 }
0x15a9   : > { %6982 = vmatmul.mubr.f32.vlgmr.msra.gmra.mxu1 %v12737_v42  ;;  %10397 = vmatprep.subr.mxu1 %v10575_v0  ;;  %v9669_v42 = vld [vmem:[%s16093_s7 + $0xb0] sm:$0xff] }
0x15aa   : > { %9641 = vmatprep.mubr.msk.f32.mxu1 %vm2301_vm3, %v12758_v59  ;;  %v7101_v59 = vld [vmem:[%s16092_s6 + $0x8] sm:$0xff]  ;;  %10398 = vmatpush3.msra.mxu1 %v9670_v5 }
0x15ab   : > { %10399 = vmatprep.subr.mxu1 %v10575_v0  ;;  %7110 = vperm.xlu1 %10508, %v7101_v59   ;;  %v9654_v59 = vld [vmem:[%s16093_s7 + $0x50] sm:$0xff] }
0x15ac   : > { %10400 = vmatpush3.msra.mxu1 %v9669_v42  ;;  %v9655_v42 = vld [vmem:[%s16093_s7 + $0x58] sm:$0xff] }
0x15ad   : > { %6987 = vmatmul.mubr.f32.gmra.mxu1 %v12762_v38  ;;  %10401 = vmatprep.subr.mxu1 %v10575_v0 }
0x15ae   : > { %10413 = vmatprep.mubr.msk.f32.mxu1 %vm10577_vm4, %v10575_v0  ;;  %10402 = vmatpush3.msra.mxu1 %v9668_v20 }
0x15af   : > { %10403 = vmatprep.subr.mxu1 %v10575_v0 }
0x15b0   : > { %10404 = vmatpush3.msra.mxu1 %v9667_v29 }
0x15b1   : > { %10405 = vmatprep.subr.mxu1 %v10575_v0 }
0x1626   : > { %v7111_v11 = vpop.permute.xlu1 %7110 }
0x1645   : > { %v6881_v38 = vpop.f32.mrf.mxu1 }
0x1646   : > { %v6895_v3 = vadd.f32 %v6881_v38, %v14804_v15  ;;  %v9653_v38 = vld [vmem:[%s16093_s7 + $0x48] sm:$0xff] }
0x1647   : > { %v10327_v2 = vpop.f32.mrf.mxu1 }
0x1648   : > { %v15251_v9 = vadd.f32 %v6895_v3, %v15128_v56  ;;  %v7129_v56 = vld [vmem:[%s16093_s7 + $0x28] sm:$0xff]  ;;  %v9652_v3 = vld [vmem:[%s16093_s7 + $0x40] sm:$0xff]  ;;  %v9681_v2 = vld [vmem:[%s16093_s7 + $0xf8] sm:$0xff] }
0x1649   : > { %v6886_v49 = vpop.f32.mrf.mxu1 }
0x164a   : > { %v6896_v19 = vadd.f32 %v6886_v49, %v14807_v27  ;;  %v9642_v27 = vld [vmem:[%s16091_s5 + $0x240] sm:$0xff]  ;;  %v9679_v49 = vld [vmem:[%s16093_s7 + $0xe8] sm:$0xff] }
0x164b   : > { %v10330_v18 = vpop.f32.mrf.mxu1 }
0x164c   : > { %v15255_v21 = vadd.f32 %v6896_v19, %v15131_v31  ;;  %v7128_v31 = vld [vmem:[%s16093_s7 + $0x20] sm:$0xff]  ;;  %v9677_v18 = vld [vmem:[%s16093_s7 + $0xd8] sm:$0xff] }
0x164d   : > { %v6891_v17 = vpop.f32.mrf.mxu1  ;;  %v9678_v19 = vld [vmem:[%s16093_s7 + $0xe0] sm:$0xff] }
0x164e   : > { %v6897_v22 = vadd.f32 %v6891_v17, %v14810_v34  ;;  %v7131_v34 = vld [vmem:[%s16093_s7 + $0x38] sm:$0xff]  ;;  %v9675_v17 = vld [vmem:[%s16093_s7 + $0xc8] sm:$0xff] }
0x164f   : > { %v10333_v16 = vpop.f32.mrf.mxu1 }
0x1650   : > { %v15259_v23 = vadd.f32 %v6897_v22, %v15134_v32  ;;  %v9666_v32 = vld [vmem:[%s16093_s7 + $0x98] sm:$0xff]  ;;  %v9674_v22 = vld [vmem:[%s16093_s7 + $0xc0] sm:$0xff] }
0x1651   : > { %10406 = vmatpush3.msra.mxu1 %v9666_v32  ;;  %v7508_v16 = vld [vmem:[%s16094_s8 + $0x58] sm:$0xff] }
0x1652   : > { %10407 = vmatprep.subr.mxu1 %v10575_v0 }
0x1653   : > { %10408 = vmatpush3.msra.mxu1 %v9665_v13 }
0x1654   : > { %10409 = vmatprep.subr.mxu1 %v10575_v0 }
0x1655   : > { %10410 = vmatpush3.msra.mxu1 %v9664_v46 }
0x1656   : > { %10411 = vmatprep.subr.mxu1 %v10575_v0 }
0x1657   : > { %10412 = vmatpush3.msra.mxu1 %v9663_v57 }
0x1669   : > { %v6983_v25 = vpop.f32.mrf.mxu1 }
0x166b   : > { %v6985_v15 = vpop.f32.mrf.mxu1 }
0x166c   : > { %v7505_v15 = vld [vmem:[%s16094_s8 + $0x40] sm:$0xff] }
0x166d   : > { %v6988_v33 = vpop.f32.mrf.mxu1 }
0x166e   : > { %10335 = vmatpush3.msk.msra.mxu0 %vm2788_vm5, %v6988_v33  ;;  %v7498_v33 = vld [vmem:[%s16094_s8 + $0x8] sm:$0xff] }
0x166f   : > { %v6990_v30 = vpop.f32.mrf.mxu1  ;;  %10336 = vmatprep.subr.mxu0 %v10575_v0 }
0x1670   : > { %10337 = vmatpush3.msra.mxu0 %v6983_v25  ;;  %v7506_v25 = vld [vmem:[%s16094_s8 + $0x48] sm:$0xff]  ;;  %v7497_v30 = vld [vmem:[%s16094_s8] sm:$0xff] }
0x1671   : > { %10339 = vmatmul.mubr.msk.f32.vlgmr.msra.gmra.mxu0 %vm2778_vm6, %v9642_v27  ;;  %10347 = vmatprep.subr.mxu0 %v10575_v0  ;;  %v7500_v27 = vld [vmem:[%s16094_s8 + $0x18] sm:$0xff] }
0x1672   : > { %10341 = vmatprep.mubr.msk.f32.mxu0 %vm10577_vm4, %v10575_v0  ;;  %10348 = vmatpush3.msra.mxu0 %v7131_v34  ;;  %v7499_v34 = vld [vmem:[%s16094_s8 + $0x10] sm:$0xff] }
0x1673   : > { %10349 = vmatprep.subr.mxu0 %v10575_v0  ;;  %7550 = vmatprep.subr.mxu1 %v7506_v25  ;;  %v7929_v25 = vld [vmem:[%s16096_s10 + $0xd8] sm:$0xff] }
0x1674   : > { %10350 = vmatpush3.msra.mxu0 %v7130_v26  ;;  %v7510_v26 = vld [vmem:[%s16094_s8 + $0x68] sm:$0xff] }
0x1675   : > { %10342 = vmatmul.mubr.msk.f32.gmra.mxu0 %vm2778_vm6, %v9643_v24  ;;  %10351 = vmatprep.subr.mxu0 %v10575_v0  ;;  %v7512_v24 = vld [vmem:[%s16094_s8 + $0x78] sm:$0xff] }
0x1676   : > { %10344 = vmatprep.mubr.msk.f32.mxu0 %vm10577_vm4, %v10575_v0  ;;  %10352 = vmatpush3.msra.mxu0 %v7129_v56 }
0x1677   : > { %10353 = vmatprep.subr.mxu0 %v10575_v0 }
0x1678   : > { %10354 = vmatpush3.msra.mxu0 %v7128_v31 }
0x1679   : > { %10345 = vmatmul.mubr.msk.f32.gmra.mxu0 %vm2778_vm6, %v9644_v63  ;;  %10355 = vmatprep.subr.mxu0 %v10575_v0 }
0x167a   : > { %10363 = vmatprep.mubr.msk.f32.mxu0 %vm10577_vm4, %v10575_v0  ;;  %10356 = vmatpush3.msra.mxu0 %v7127_v61 }
0x167b   : > { %10357 = vmatprep.subr.mxu0 %v10575_v0 }
0x167c   : > { %10358 = vmatpush3.msra.mxu0 %v7126_v41 }
0x167d   : > { %10359 = vmatprep.subr.mxu0 %v10575_v0 }
0x167e   : > { %10360 = vmatpush3.msra.mxu0 %v7125_v39 }
0x167f   : > { %10361 = vmatprep.subr.mxu0 %v10575_v0 }
0x1680   : > { %10362 = vmatpush3.msra.mxu0 %v7124_v37 }
0x1681   : > { %10372 = vmatprep.subr.mxu0 %v10575_v0 }
0x1731   : > { %v7074_v50 = vpop.f32.mrf.mxu0 }
0x1732   : > { %v7088_v55 = vadd.f32 %v7074_v50, %v14912_v62 }
0x1733   : > { %v10340_v47 = vpop.f32.mrf.mxu0 }
0x1734   : > { %v7091_v6 = vadd.f32 %v7088_v55, %v15020_v36  ;;  %v9659_v36 = vld [vmem:[%s16093_s7 + $0x78] sm:$0xff] }
0x1735   : > { %v7079_v44 = vpop.f32.mrf.mxu0 }
0x1736   : > { %v7089_v28 = vadd.f32 %v7079_v44, %v14915_v10  ;;  %v7097_v53 = vadd.f32 %v15251_v9, %v7091_v6  ;;  %v9680_v9 = vld [vmem:[%s16093_s7 + $0xf0] sm:$0xff] }
0x1737   : > { %v10343_v54 = vpop.f32.mrf.mxu0 }
0x1738   : > { %v7092_v48 = vadd.f32 %v7089_v28, %v15023_v7  ;;  %v7118_v4 = vadd.f32 %v7106_v35, %v7097_v53 }
0x1739   : > { %v7084_v8 = vpop.f32.mrf.mxu0 }
0x173a   : > { %v15342_v51 = vmax.f32 %v7118_v4, 0.0  ;;  %v7090_v1 = vadd.f32 %v7084_v8, %v14918_v58  ;;  %v7098_v62 = vadd.f32 %v15255_v21, %v7092_v48  ;;  %v9658_v58 = vld [vmem:[%s16093_s7 + $0x70] sm:$0xff]  ;;  %v7509_v8 = vld [vmem:[%s16094_s8 + $0x60] sm:$0xff] }
0x173b   : > { %v10346_v14 = vpop.f32.mrf.mxu0  ;;  %v9676_v21 = vld [vmem:[%s16093_s7 + $0xd0] sm:$0xff] }
0x173c   : > { %v7093_v10 = vadd.f32 %v7090_v1, %v15026_v52  ;;  %v7119_v45 = vadd.f32 %v7111_v11, %v7098_v62  ;;  %10364 = vmatmul.mubr.msk.f32.vlgmr.msra.gmra.mxu0 %vm905_vm2, %v15342_v51  ;;  %10414 = vmatmul.mubr.msk.f32.vlgmr.msra.gmra.mxu1 %vm905_vm2, %v15342_v51  ;;  %v9657_v52 = vld [vmem:[%s16093_s7 + $0x68] sm:$0xff]  ;;  %v7504_v11 = vld [vmem:[%s16094_s8 + $0x38] sm:$0xff] }
0x173d   : > { %10373 = vmatpush3.msra.mxu0 %v9659_v36  ;;  %10366 = vmatprep.mubr.msk.f32.mxu0 %vm10577_vm4, %v10575_v0  ;;  %v7502_v36 = vld [vmem:[%s16094_s8 + $0x28] sm:$0xff] }
0x173e   : > { %v7099_v7 = vadd.f32 %v15259_v23, %v7093_v10  ;;  %v15360_v40 = vmax.f32 %v7119_v45, 0.0  ;;  %10374 = vmatprep.subr.mxu0 %v10575_v0  ;;  %10416 = vmatprep.mubr.msk.f32.mxu1 %vm10577_vm4, %v10575_v0  ;;  %v7507_v23 = vld [vmem:[%s16094_s8 + $0x50] sm:$0xff] }
0x173f   : > { %10375 = vmatpush3.msra.mxu0 %v9658_v58  ;;  %7551 = vmatpush1.msra.mxu1 %v7505_v15  ;;  %v7501_v58 = vld [vmem:[%s16094_s8 + $0x20] sm:$0xff]  ;;  %v7961_v15 = vld [vmem:[%s16096_s10 + $0x1d8] sm:$0xff] }
0x1740   : > { %v7120_v12 = vadd.f32 %v7116_v60, %v7099_v7  ;;  %10376 = vmatprep.subr.mxu0 %v10575_v0  ;;  %10367 = vmatmul.mubr.msk.f32.gmra.mxu0 %vm905_vm2, %v15360_v40  ;;  %v7503_v7 = vld [vmem:[%s16094_s8 + $0x30] sm:$0xff]  ;;  %v7933_v60 = vld [vmem:[%s16096_s10 + $0xf8] sm:$0xff] }
0x1741   : > { %10377 = vmatpush3.msra.mxu0 %v9657_v52  ;;  %10417 = vmatmul.mubr.msk.f32.gmra.mxu1 %vm905_vm2, %v15360_v40 }
0x1742   : > { %v7123_v5 = vmax.f32 %v7120_v12, 0.0  ;;  %10378 = vmatprep.subr.mxu0 %v10575_v0  ;;  %10369 = vmatprep.mubr.msk.f32.mxu0 %vm10577_vm4, %v10575_v0  ;;  %v7965_v12 = vld [vmem:[%s16096_s10 + $0x1f8] sm:$0xff] }
0x1743   : > { %10379 = vmatpush3.msra.mxu0 %v9656_v43  ;;  %10419 = vmatprep.mubr.msk.f32.mxu1 %vm10577_vm4, %v10575_v0 }
0x1744   : > { %10380 = vmatprep.subr.mxu0 %v10575_v0  ;;  %10370 = vmatmul.mubr.msk.f32.gmra.mxu0 %vm905_vm2, %v7123_v5 }
0x1745   : > { %10381 = vmatpush3.msra.mxu0 %v9655_v42  ;;  %10420 = vmatmul.mubr.msk.f32.gmra.mxu1 %vm905_vm2, %v7123_v5  ;;  %v7917_v42 = vld [vmem:[%s16096_s10 + $0x78] sm:$0xff] }
0x1746   : > { %10382 = vmatprep.subr.mxu0 %v10575_v0  ;;  %10388 = vmatprep.mubr.msk.f32.mxu0 %vm10577_vm4, %v10575_v0 }
0x1747   : > { %10383 = vmatpush3.msra.mxu0 %v9654_v59  ;;  %7586 = vmatprep.mubr.f32.mxu1 %v10575_v0  ;;  %v7949_v59 = vld [vmem:[%s16096_s10 + $0x178] sm:$0xff] }
0x1748   : > { %10384 = vmatprep.subr.mxu0 %v10575_v0  ;;  %7552 = vmatprep.subr.mxu1 %v7498_v33  ;;  %v7913_v33 = vld [vmem:[%s16096_s10 + $0x58] sm:$0xff] }
0x1749   : > { %10385 = vmatpush3.msra.mxu0 %v9653_v38  ;;  %7553 = vmatpush1.msra.mxu1 %v7497_v30  ;;  %v7932_v38 = vld [vmem:[%s16096_s10 + $0xf0] sm:$0xff] }
0x174a   : > { %10386 = vmatprep.subr.mxu0 %v10575_v0  ;;  %7716 = vmatprep.subr.mxu1 %v7510_v26  ;;  %v7928_v30 = vld [vmem:[%s16096_s10 + $0xd0] sm:$0xff] }
0x174b   : > { %10387 = vmatpush3.msra.mxu0 %v9652_v3  ;;  %v7964_v3 = vld [vmem:[%s16096_s10 + $0x1f0] sm:$0xff] }
0x174c   : > { %10389 = vmatmul.mubr.msk.f32.vlgmr.msra.gmra.mxu0 %vm905_vm2, %v15342_v51  ;;  %10422 = vmatprep.subr.mxu0 %v10575_v0  ;;  %v7912_v26 = vld [vmem:[%s16096_s10 + $0x50] sm:$0xff] }
0x174d   : > { %10423 = vmatpush3.msra.mxu0 %v9681_v2  ;;  %10391 = vmatprep.mubr.msk.f32.mxu0 %vm10577_vm4, %v10575_v0  ;;  %v7916_v2 = vld [vmem:[%s16096_s10 + $0x70] sm:$0xff] }
0x174e   : > { %10424 = vmatprep.subr.mxu0 %v10575_v0 }
0x174f   : > { %10425 = vmatpush3.msra.mxu0 %v9680_v9  ;;  %v7948_v9 = vld [vmem:[%s16096_s10 + $0x170] sm:$0xff] }
0x1750   : > { %10392 = vmatmul.mubr.msk.f32.gmra.mxu0 %vm905_vm2, %v15360_v40  ;;  %10426 = vmatprep.subr.mxu0 %v10575_v0 }
0x1751   : > { %10427 = vmatpush3.msra.mxu0 %v9679_v49  ;;  %10394 = vmatprep.mubr.msk.f32.mxu0 %vm10577_vm4, %v10575_v0  ;;  %v7931_v49 = vld [vmem:[%s16096_s10 + $0xe8] sm:$0xff] }
0x1752   : > { %10428 = vmatprep.subr.mxu0 %v10575_v0 }
0x1753   : > { %10429 = vmatpush3.msra.mxu0 %v9678_v19  ;;  %v7963_v19 = vld [vmem:[%s16096_s10 + $0x1e8] sm:$0xff] }
0x1754   : > { %10395 = vmatmul.mubr.msk.f32.gmra.mxu0 %vm905_vm2, %v7123_v5  ;;  %10430 = vmatprep.subr.mxu0 %v10575_v0 }
0x1755   : > { %10431 = vmatpush3.msra.mxu0 %v9677_v18  ;;  %10438 = vmatprep.mubr.msk.f32.mxu0 %vm10577_vm4, %v10575_v0  ;;  %v7915_v18 = vld [vmem:[%s16096_s10 + $0x68] sm:$0xff] }
0x1756   : > { %10432 = vmatprep.subr.mxu0 %v10575_v0 }
0x1757   : > { %10433 = vmatpush3.msra.mxu0 %v9676_v21  ;;  %v7947_v21 = vld [vmem:[%s16096_s10 + $0x168] sm:$0xff] }
0x1758   : > { %10434 = vmatprep.subr.mxu0 %v10575_v0 }
0x1759   : > { %10435 = vmatpush3.msra.mxu0 %v9675_v17  ;;  %v7930_v17 = vld [vmem:[%s16096_s10 + $0xe0] sm:$0xff] }
0x175a   : > { %10436 = vmatprep.subr.mxu0 %v10575_v0 }
0x175b   : > { %10437 = vmatpush3.msra.mxu0 %v9674_v22  ;;  %v7962_v22 = vld [vmem:[%s16096_s10 + $0x1e0] sm:$0xff] }
0x175c   : > { %10439 = vmatmul.mubr.msk.f32.vlgmr.msra.gmra.mxu0 %vm905_vm2, %v15342_v51  ;;  %7633 = vmatprep.subr.mxu0 %v7508_v16  ;;  %v7511_v51 = vld [vmem:[%s16094_s8 + $0x70] sm:$0xff]  ;;  %v7914_v16 = vld [vmem:[%s16096_s10 + $0x60] sm:$0xff] }
0x175d   : > { %10441 = vmatprep.mubr.msk.f32.mxu0 %vm10577_vm4, %v10575_v0  ;;  %7634 = vmatpush1.msra.mxu0 %v7507_v23  ;;  %v7946_v23 = vld [vmem:[%s16096_s10 + $0x160] sm:$0xff] }
0x175e   : > { %7635 = vmatprep.subr.mxu0 %v7500_v27  ;;  %v7945_v27 = vld [vmem:[%s16096_s10 + $0x158] sm:$0xff] }
0x175f   : > { %7636 = vmatpush1.msra.mxu0 %v7499_v34  ;;  %v7960_v34 = vld [vmem:[%s16096_s10 + $0x1d0] sm:$0xff] }
0x1760   : > { %10442 = vmatmul.mubr.msk.f32.gmra.mxu0 %vm905_vm2, %v15360_v40  ;;  %7799 = vmatprep.subr.mxu0 %v7512_v24  ;;  %v7944_v24 = vld [vmem:[%s16096_s10 + $0x150] sm:$0xff] }
0x1761   : > { %10444 = vmatprep.mubr.msk.f32.mxu0 %vm10577_vm4, %v10575_v0 }
0x1764   : > { %10445 = vmatmul.mubr.msk.f32.gmra.mxu0 %vm905_vm2, %v7123_v5 }
0x1765   : > { %7669 = vmatprep.mubr.f32.mxu0 %v10575_v0 }
0x17fc   : > { %v7207_v56 = vpop.f32.mrf.mxu0  ;;  %v7385_v63 = vpop.f32.mrf.mxu1 }
0x17fe   : > { %v10365_v20 = vpop.f32.mrf.mxu0  ;;  %v10415_v31 = vpop.f32.mrf.mxu1 }
0x17ff   : > { %v7911_v20 = vld [vmem:[%s16096_s10 + $0x48] sm:$0xff] }
0x1800   : > { %v7212_v29 = vpop.f32.mrf.mxu0  ;;  %v7943_v31 = vld [vmem:[%s16096_s10 + $0x148] sm:$0xff] }
0x1801   : > { %v7390_v61 = vpop.f32.mrf.mxu1 }
0x1802   : > { %v10368_v32 = vpop.f32.mrf.mxu0 }
0x1803   : > { %v10418_v41 = vpop.f32.mrf.mxu1  ;;  %v7910_v32 = vld [vmem:[%s16096_s10 + $0x40] sm:$0xff] }
0x1804   : > { %v7217_v13 = vpop.f32.mrf.mxu0  ;;  %v7942_v41 = vld [vmem:[%s16096_s10 + $0x140] sm:$0xff] }
0x1805   : > { %v7395_v39 = vpop.f32.mrf.mxu1 }
0x1806   : > { %v10371_v46 = vpop.f32.mrf.mxu0 }
0x1807   : > { %v10421_v37 = vpop.f32.mrf.mxu1  ;;  %v7909_v46 = vld [vmem:[%s16096_s10 + $0x38] sm:$0xff] }
0x1808   : > { %v7941_v37 = vld [vmem:[%s16096_s10 + $0x138] sm:$0xff] }
0x180c   : > { %v7296_v57 = vpop.f32.mrf.mxu0 }
0x180d   : > { %v7488_v28 = vmax.f32 %v7207_v56, %v7296_v57  ;;  %v7927_v56 = vld [vmem:[%s16096_s10 + $0xc8] sm:$0xff]  ;;  %v7924_v57 = vld [vmem:[%s16096_s10 + $0xb0] sm:$0xff] }
0x180e   : > { %v10390_v50 = vpop.f32.mrf.mxu0 }
0x180f   : > { %v7956_v50 = vld [vmem:[%s16096_s10 + $0x1b0] sm:$0xff] }
0x1810   : > { %v7301_v55 = vpop.f32.mrf.mxu0 }
0x1811   : > { %v7489_v1 = vmax.f32 %v7212_v29, %v7301_v55  ;;  %v7926_v29 = vld [vmem:[%s16096_s10 + $0xc0] sm:$0xff]  ;;  %v7908_v55 = vld [vmem:[%s16096_s10 + $0x30] sm:$0xff] }
0x1812   : > { %v10393_v47 = vpop.f32.mrf.mxu0 }
0x1813   : > { %v7940_v47 = vld [vmem:[%s16096_s10 + $0x130] sm:$0xff] }
0x1814   : > { %v7306_v6 = vpop.f32.mrf.mxu0 }
0x1815   : > { %v7490_v40 = vmax.f32 %v7217_v13, %v7306_v6  ;;  %v7925_v13 = vld [vmem:[%s16096_s10 + $0xb8] sm:$0xff]  ;;  %v7923_v6 = vld [vmem:[%s16096_s10 + $0xa8] sm:$0xff] }
0x1816   : > { %v10396_v44 = vpop.f32.mrf.mxu0 }
0x1817   : > { %v7955_v44 = vld [vmem:[%s16096_s10 + $0x1a8] sm:$0xff] }
0x181c   : > { %v7474_v35 = vpop.f32.mrf.mxu0 }
0x181d   : > { %v7491_v53 = vmax.f32 %v7385_v63, %v7474_v35  ;;  %v7959_v63 = vld [vmem:[%s16096_s10 + $0x1c8] sm:$0xff] }
0x181e   : > { %v10440_v54 = vpop.f32.mrf.mxu0  ;;  %v7907_v35 = vld [vmem:[%s16096_s10 + $0x28] sm:$0xff] }
0x181f   : > { %v7494_v48 = vmax.f32 %v7488_v28, %v7491_v53  ;;  %v7939_v28 = vld [vmem:[%s16096_s10 + $0x128] sm:$0xff]  ;;  %v7922_v53 = vld [vmem:[%s16096_s10 + $0xa0] sm:$0xff] }
0x1820   : > { %v7479_v4 = vpop.f32.mrf.mxu0  ;;  %v7954_v54 = vld [vmem:[%s16096_s10 + $0x1a0] sm:$0xff] }
0x1821   : > { %v7492_v62 = vmax.f32 %v7390_v61, %v7479_v4  ;;  %9685 = vmatmul.mubr.msk.f32.vlgmr.msra.gmra.mxu1 %vm2301_vm3, %v7494_v48  ;;  %9688 = vmatmul.mubr.msk.f32.vlgmr.msra.gmra.mxu0 %vm2301_vm3, %v7494_v48  ;;  %v7958_v61 = vld [vmem:[%s16096_s10 + $0x1c0] sm:$0xff] }
0x1822   : > { %v10443_v14 = vpop.f32.mrf.mxu0  ;;  %7592 = vmatprep.mubr.f32.mxu1 %v10575_v0  ;;  %7675 = vmatprep.mubr.f32.mxu0 %v10575_v0  ;;  %v7938_v4 = vld [vmem:[%s16096_s10 + $0x120] sm:$0xff] }
0x1823   : > { %v7495_v10 = vmax.f32 %v7489_v1, %v7492_v62  ;;  %7717 = vmatpush1.msra.mxu1 %v7509_v8  ;;  %7800 = vmatpush1.msra.mxu0 %v7511_v51  ;;  %v7921_v8 = vld [vmem:[%s16096_s10 + $0x98] sm:$0xff]  ;;  %v7904_v14 = vld [vmem:[%s16096_s10 + $0x10] sm:$0xff] }
0x1824   : > { %v7484_v45 = vpop.f32.mrf.mxu0  ;;  %7718 = vmatprep.subr.mxu1 %v7502_v36  ;;  %7801 = vmatprep.subr.mxu0 %v7504_v11  ;;  %v7953_v51 = vld [vmem:[%s16096_s10 + $0x198] sm:$0xff]  ;;  %v7920_v36 = vld [vmem:[%s16096_s10 + $0x90] sm:$0xff] }
0x1825   : > { %v7493_v52 = vmax.f32 %v7395_v39, %v7484_v45  ;;  %9686 = vmatmul.mubr.msk.f32.gmra.mxu1 %vm2301_vm3, %v7495_v10  ;;  %9689 = vmatmul.mubr.msk.f32.gmra.mxu0 %vm2301_vm3, %v7495_v10  ;;  %v7957_v39 = vld [vmem:[%s16096_s10 + $0x1b8] sm:$0xff]  ;;  %v7952_v11 = vld [vmem:[%s16096_s10 + $0x190] sm:$0xff]  ;;  %v7919_v45 = vld [vmem:[%s16096_s10 + $0x88] sm:$0xff] }
0x1826   : > { %v10446_v43 = vpop.f32.mrf.mxu0  ;;  %7598 = vmatprep.mubr.f32.mxu1 %v10575_v0  ;;  %7681 = vmatprep.mubr.f32.mxu0 %v10575_v0  ;;  %v7905_v1 = vld [vmem:[%s16096_s10 + $0x18] sm:$0xff] }
0x1827   : > { %v7496_v5 = vmax.f32 %v7490_v40, %v7493_v52  ;;  %7719 = vmatpush1.msra.mxu1 %v7501_v58  ;;  %7802 = vmatpush1.msra.mxu0 %v7503_v7  ;;  %v7937_v62 = vld [vmem:[%s16096_s10 + $0x118] sm:$0xff]  ;;  %v7951_v58 = vld [vmem:[%s16096_s10 + $0x188] sm:$0xff]  ;;  %v7918_v52 = vld [vmem:[%s16096_s10 + $0x80] sm:$0xff] }
0x1828   : > { %9880 = vmatprep.subr.mxu1 %v7933_v60  ;;  %9921 = vmatprep.subr.mxu0 %v7965_v12  ;;  %v7903_v7 = vld [vmem:[%s16096_s10 + $0x8] sm:$0xff]  ;;  %v7950_v60 = vld [vmem:[%s16096_s10 + $0x180] sm:$0xff] }
0x1829   : > { %9687 = vmatmul.mubr.msk.f32.gmra.mxu1 %vm2301_vm3, %v7496_v5  ;;  %9690 = vmatmul.mubr.msk.f32.gmra.mxu0 %vm2301_vm3, %v7496_v5  ;;  %v7935_v40 = vld [vmem:[%s16096_s10 + $0x108] sm:$0xff]  ;;  %v7902_v12 = vld [vmem:[%s16096_s10] sm:$0xff] }
0x182a   : > { %7752 = vmatprep.mubr.f32.mxu1 %v10575_v0  ;;  %7835 = vmatprep.mubr.f32.mxu0 %v10575_v0  ;;  %v7934_v43 = vld [vmem:[%s16096_s10 + $0x100] sm:$0xff] }
0x182d   : > { %9691 = vmatmul.mubr.msk.f32.vlgmr.msra.gmra.mxu1 %vm2301_vm3, %v7494_v48  ;;  %9694 = vmatmul.mubr.msk.f32.vlgmr.msra.gmra.mxu0 %vm2301_vm3, %v7494_v48  ;;  %v7906_v48 = vld [vmem:[%s16096_s10 + $0x20] sm:$0xff] }
0x182e   : > { %7758 = vmatprep.mubr.f32.mxu1 %v10575_v0  ;;  %7841 = vmatprep.mubr.f32.mxu0 %v10575_v0 }
0x182f   : > { %9881 = vmatpush3.msra.mxu1 %v7917_v42  ;;  %9922 = vmatpush3.msra.mxu0 %v7949_v59 }
0x1830   : > { %9882 = vmatprep.subr.mxu1 %v7932_v38  ;;  %9923 = vmatprep.subr.mxu0 %v7964_v3  ;;  %v7855_v38 = vld [vmem:[%s16095_s9 + $0x8] sm:$0xff]  ;;  %v7857_v3 = vld [vmem:[%s16095_s9 + $0x18] sm:$0xff] }
0x1831   : > { %9692 = vmatmul.mubr.msk.f32.gmra.mxu1 %vm2301_vm3, %v7495_v10  ;;  %9695 = vmatmul.mubr.msk.f32.gmra.mxu0 %vm2301_vm3, %v7495_v10  ;;  %v7936_v10 = vld [vmem:[%s16096_s10 + $0x110] sm:$0xff] }
0x1832   : > { %7764 = vmatprep.mubr.f32.mxu1 %v10575_v0  ;;  %7847 = vmatprep.mubr.f32.mxu0 %v10575_v0 }
0x1833   : > { %9883 = vmatpush3.msra.mxu1 %v7916_v2  ;;  %9924 = vmatpush3.msra.mxu0 %v7948_v9  ;;  %v7854_v2 = vld [vmem:[%s16095_s9] sm:$0xff]  ;;  %v7856_v9 = vld [vmem:[%s16095_s9 + $0x10] sm:$0xff] }
0x1834   : > { %9884 = vmatprep.subr.mxu1 %v7931_v49  ;;  %9925 = vmatprep.subr.mxu0 %v7963_v19 }
0x1835   : > { %9693 = vmatmul.mubr.msk.f32.gmra.mxu1 %vm2301_vm3, %v7496_v5  ;;  %9696 = vmatmul.mubr.msk.f32.gmra.mxu0 %vm2301_vm3, %v7496_v5  ;;  %v7997_v5 = vld [vmem:[%s16096_s10 + $0x2f8] sm:$0xff] }
0x1836   : > { %9885 = vmatpush3.msra.mxu1 %v7915_v18  ;;  %9926 = vmatpush3.msra.mxu0 %v7947_v21 }
0x1837   : > { %9886 = vmatprep.subr.mxu1 %v7930_v17  ;;  %9927 = vmatprep.subr.mxu0 %v7962_v22  ;;  %v7981_v17 = vld [vmem:[%s16096_s10 + $0x278] sm:$0xff] }
0x1838   : > { %9887 = vmatpush3.msra.mxu1 %v7914_v16  ;;  %9928 = vmatpush3.msra.mxu0 %v7946_v23 }
0x1839   : > { %9888 = vmatprep.subr.mxu1 %v7929_v25  ;;  %9929 = vmatprep.subr.mxu0 %v7961_v15  ;;  %v7863_v15 = vld [vmem:[%s16095_s9 + $0x48] sm:$0xff] }
0x183a   : > { %9889 = vmatpush3.msra.mxu1 %v7913_v33  ;;  %9930 = vmatpush3.msra.mxu0 %v7945_v27  ;;  %v7865_v33 = vld [vmem:[%s16095_s9 + $0x58] sm:$0xff] }
0x183b   : > { %9890 = vmatprep.subr.mxu1 %v7928_v30  ;;  %9931 = vmatprep.subr.mxu0 %v7960_v34  ;;  %v8013_v27 = vld [vmem:[%s16096_s10 + $0x378] sm:$0xff]  ;;  %v7996_v30 = vld [vmem:[%s16096_s10 + $0x2f0] sm:$0xff] }
0x183c   : > { %9891 = vmatpush3.msra.mxu1 %v7912_v26  ;;  %9932 = vmatpush3.msra.mxu0 %v7944_v24  ;;  %v7980_v24 = vld [vmem:[%s16096_s10 + $0x270] sm:$0xff] }
0x183d   : > { %9892 = vmatprep.subr.mxu1 %v7927_v56  ;;  %9933 = vmatprep.subr.mxu0 %v7959_v63  ;;  %v8012_v56 = vld [vmem:[%s16096_s10 + $0x370] sm:$0xff]  ;;  %v7862_v63 = vld [vmem:[%s16095_s9 + $0x40] sm:$0xff] }
0x183e   : > { %9893 = vmatpush3.msra.mxu1 %v7911_v20  ;;  %9934 = vmatpush3.msra.mxu0 %v7943_v31  ;;  %v7864_v20 = vld [vmem:[%s16095_s9 + $0x50] sm:$0xff] }
0x183f   : > { %9894 = vmatprep.subr.mxu1 %v7926_v29  ;;  %9935 = vmatprep.subr.mxu0 %v7958_v61 }
0x1840   : > { %9895 = vmatpush3.msra.mxu1 %v7910_v32  ;;  %9936 = vmatpush3.msra.mxu0 %v7942_v41  ;;  %v7995_v41 = vld [vmem:[%s16096_s10 + $0x2e8] sm:$0xff] }
0x1841   : > { %9896 = vmatprep.subr.mxu1 %v7925_v13  ;;  %9937 = vmatprep.subr.mxu0 %v7957_v39  ;;  %v7871_v13 = vld [vmem:[%s16095_s9 + $0x88] sm:$0xf]  ;;  %v7873_v39 = vld [vmem:[%s16095_s9 + $0x98] sm:$0xf] }
0x1842   : > { %9897 = vmatpush3.msra.mxu1 %v7909_v46  ;;  %9938 = vmatpush3.msra.mxu0 %v7941_v37 }
0x1843   : > { %9898 = vmatprep.subr.mxu1 %v7924_v57  ;;  %9939 = vmatprep.subr.mxu0 %v7956_v50 }
0x1844   : > { %9899 = vmatpush3.msra.mxu1 %v7908_v55  ;;  %9940 = vmatpush3.msra.mxu0 %v7940_v47  ;;  %v7979_v55 = vld [vmem:[%s16096_s10 + $0x268] sm:$0xff] }
0x1845   : > { %9900 = vmatprep.subr.mxu1 %v7923_v6  ;;  %9941 = vmatprep.subr.mxu0 %v7955_v44  ;;  %v8011_v47 = vld [vmem:[%s16096_s10 + $0x368] sm:$0xff]  ;;  %v7994_v6 = vld [vmem:[%s16096_s10 + $0x2e0] sm:$0xff] }
0x1846   : > { %9901 = vmatpush3.msra.mxu1 %v7907_v35  ;;  %9942 = vmatpush3.msra.mxu0 %v7939_v28 }
0x1847   : > { %9902 = vmatprep.subr.mxu1 %v7922_v53  ;;  %9943 = vmatprep.subr.mxu0 %v7954_v54  ;;  %v7978_v54 = vld [vmem:[%s16096_s10 + $0x260] sm:$0xff] }
0x1848   : > { %9903 = vmatpush3.msra.mxu1 %v7906_v48  ;;  %9944 = vmatpush3.msra.mxu0 %v7938_v4  ;;  %v8010_v48 = vld [vmem:[%s16096_s10 + $0x360] sm:$0xff] }
0x1849   : > { %9904 = vmatprep.subr.mxu1 %v7921_v8  ;;  %9945 = vmatprep.subr.mxu0 %v7953_v51  ;;  %v7870_v4 = vld [vmem:[%s16095_s9 + $0x80] sm:$0xf]  ;;  %v7872_v8 = vld [vmem:[%s16095_s9 + $0x90] sm:$0xf]  ;;  %v7993_v51 = vld [vmem:[%s16096_s10 + $0x2d8] sm:$0xff] }
0x184a   : > { %9905 = vmatpush3.msra.mxu1 %v7905_v1  ;;  %9946 = vmatpush3.msra.mxu0 %v7937_v62  ;;  %v7859_v62 = vld [vmem:[%s16095_s9 + $0x28] sm:$0xff] }
0x184b   : > { %9906 = vmatprep.subr.mxu1 %v7920_v36  ;;  %9947 = vmatprep.subr.mxu0 %v7952_v11 }
0x184c   : > { %9907 = vmatpush3.msra.mxu1 %v7904_v14  ;;  %9948 = vmatpush3.msra.mxu0 %v7936_v10  ;;  %v7861_v10 = vld [vmem:[%s16095_s9 + $0x38] sm:$0xff] }
0x184d   : > { %9908 = vmatprep.subr.mxu1 %v7919_v45  ;;  %9949 = vmatprep.subr.mxu0 %v7951_v58  ;;  %v7977_v45 = vld [vmem:[%s16096_s10 + $0x258] sm:$0xff] }
0x184e   : > { %9909 = vmatpush3.msra.mxu1 %v7903_v7  ;;  %9950 = vmatpush3.msra.mxu0 %v7935_v40  ;;  %v8009_v58 = vld [vmem:[%s16096_s10 + $0x358] sm:$0xff]  ;;  %v7992_v7 = vld [vmem:[%s16096_s10 + $0x2d0] sm:$0xff] }
0x184f   : > { %9910 = vmatprep.subr.mxu1 %v7918_v52  ;;  %9951 = vmatprep.subr.mxu0 %v7950_v60  ;;  %v7976_v52 = vld [vmem:[%s16096_s10 + $0x250] sm:$0xff] }
0x1850   : > { %9911 = vmatpush3.msra.mxu1 %v7902_v12  ;;  %9952 = vmatpush3.msra.mxu0 %v7934_v43  ;;  %v8008_v60 = vld [vmem:[%s16096_s10 + $0x350] sm:$0xff]  ;;  %v7991_v43 = vld [vmem:[%s16096_s10 + $0x2c8] sm:$0xff] }
0x1851   : > { %9962 = vmatprep.subr.mxu1 %v7997_v5  ;;  %8277 = vmatprep.subr.mxu0 %v10575_v0  ;;  %v7975_v5 = vld [vmem:[%s16096_s10 + $0x248] sm:$0xff] }
0x18e1   : > { %v7588_v42 = vpop.f32.mrf.mxu1  ;;  %v7671_v59 = vpop.f32.mrf.mxu0 }
0x18e2   : > { %v7878_v22 = vmul.f32 %v7854_v2, %v7588_v42  ;;  %v7880_v16 = vmul.f32 %v7856_v9, %v7671_v59  ;;  %v8007_v42 = vld [vmem:[%s16096_s10 + $0x348] sm:$0xff]  ;;  %v7990_v59 = vld [vmem:[%s16096_s10 + $0x2c0] sm:$0xff]  ;;  %v7989_v2 = vld [vmem:[%s16096_s10 + $0x2b8] sm:$0xff] }
0x18e3   : > { %v7590_v49 = vpop.f32.mrf.mxu1  ;;  %v7673_v19 = vpop.f32.mrf.mxu0  ;;  %v7973_v9 = vld [vmem:[%s16096_s10 + $0x238] sm:$0xff] }
0x18e4   : > { %v7879_v18 = vmul.f32 %v7855_v38, %v7590_v49  ;;  %v7881_v21 = vmul.f32 %v7857_v3, %v7673_v19  ;;  %v7974_v38 = vld [vmem:[%s16096_s10 + $0x240] sm:$0xff]  ;;  %v8005_v49 = vld [vmem:[%s16096_s10 + $0x338] sm:$0xff]  ;;  %v7988_v19 = vld [vmem:[%s16096_s10 + $0x2b0] sm:$0xff] }
0x18e5   : > { %v7594_v23 = vpop.f32.mrf.mxu1  ;;  %v7677_v25 = vpop.f32.mrf.mxu0  ;;  %v8006_v3 = vld [vmem:[%s16096_s10 + $0x340] sm:$0xff] }
0x18e6   : > { %8101 = vmatprep.mubr.f32.mxu1 %v7879_v18  ;;  %8181 = vmatprep.mubr.f32.mxu0 %v7881_v21  ;;  %v7886_v46 = vmul.f32 %v7862_v63, %v7594_v23  ;;  %v7888_v37 = vmul.f32 %v7864_v20, %v7677_v25  ;;  %v7972_v18 = vld [vmem:[%s16096_s10 + $0x230] sm:$0xff]  ;;  %v7986_v23 = vld [vmem:[%s16096_s10 + $0x2a0] sm:$0xff]  ;;  %v7983_v20 = vld [vmem:[%s16096_s10 + $0x288] sm:$0xff] }
0x18e7   : > { %v7596_v34 = vpop.f32.mrf.mxu1  ;;  %v7679_v26 = vpop.f32.mrf.mxu0  ;;  %8102 = vmatmul.mubr.f32.vlgmr.msra.gmra.mxu1 %v7878_v22  ;;  %8182 = vmatmul.mubr.f32.vlgmr.msra.gmra.mxu0 %v7880_v16  ;;  %v8004_v21 = vld [vmem:[%s16096_s10 + $0x330] sm:$0xff]  ;;  %v7971_v22 = vld [vmem:[%s16096_s10 + $0x228] sm:$0xff] }
0x18e8   : > { %v7887_v31 = vmul.f32 %v7863_v15, %v7596_v34  ;;  %v7889_v29 = vmul.f32 %v7865_v33, %v7679_v26  ;;  %9963 = vmatpush3.msra.mxu1 %v7981_v17  ;;  %8278 = vmatpush1.msra.mxu0 %v8013_v27  ;;  %v7987_v17 = vld [vmem:[%s16096_s10 + $0x2a8] sm:$0xff]  ;;  %v7970_v15 = vld [vmem:[%s16096_s10 + $0x220] sm:$0xff]  ;;  %v7985_v27 = vld [vmem:[%s16096_s10 + $0x298] sm:$0xff] }
0x18e9   : > { %9964 = vmatprep.subr.mxu1 %v7996_v30  ;;  %8279 = vmatprep.subr.mxu0 %v10575_v0  ;;  %v7600_v61 = vpop.f32.mrf.mxu1  ;;  %v7683_v32 = vpop.f32.mrf.mxu0  ;;  %v8003_v16 = vld [vmem:[%s16096_s10 + $0x328] sm:$0xff]  ;;  %v8002_v33 = vld [vmem:[%s16096_s10 + $0x320] sm:$0xff]  ;;  %v7969_v30 = vld [vmem:[%s16096_s10 + $0x218] sm:$0xff] }
0x18ea   : > { %9965 = vmatpush3.msra.mxu1 %v7980_v24  ;;  %8280 = vmatpush1.msra.mxu0 %v8012_v56  ;;  %v7894_v36 = vmul.f32 %v7870_v4, %v7600_v61  ;;  %v7896_v11 = vmul.f32 %v7872_v8, %v7683_v32  ;;  %v8001_v34 = vld [vmem:[%s16096_s10 + $0x318] sm:$0xff]  ;;  %v7984_v26 = vld [vmem:[%s16096_s10 + $0x290] sm:$0xff]  ;;  %v7858_v61 = vld [vmem:[%s16095_s9 + $0x20] sm:$0xff] }
0x18eb   : > { %8106 = vmatprep.mubr.f32.mxu1 %v7887_v31  ;;  %8186 = vmatprep.mubr.f32.mxu0 %v7889_v29  ;;  %v7602_v57 = vpop.f32.mrf.mxu1  ;;  %v7685_v50 = vpop.f32.mrf.mxu0  ;;  %v7968_v56 = vld [vmem:[%s16096_s10 + $0x210] sm:$0xff]  ;;  %v7967_v31 = vld [vmem:[%s16096_s10 + $0x208] sm:$0xff]  ;;  %v7982_v32 = vld [vmem:[%s16096_s10 + $0x280] sm:$0xff] }
0x18ec   : > { %9966 = vmatprep.subr.mxu1 %v7995_v41  ;;  %8281 = vmatprep.subr.mxu0 %v10575_v0  ;;  %v7895_v44 = vmul.f32 %v7871_v13, %v7602_v57  ;;  %v7897_v35 = vmul.f32 %v7873_v39, %v7685_v50  ;;  %v8000_v63 = vld [vmem:[%s16096_s10 + $0x310] sm:$0xff]  ;;  %v7999_v29 = vld [vmem:[%s16096_s10 + $0x308] sm:$0xff]  ;;  %v7966_v39 = vld [vmem:[%s16096_s10 + $0x200] sm:$0xff] }
0x18ed   : > { %8107 = vmatmul.mubr.f32.gmra.mxu1 %v7886_v46  ;;  %8187 = vmatmul.mubr.f32.gmra.mxu0 %v7888_v37  ;;  %v15780_v28 = vpop.f32.mrf.mxu1  ;;  %v15782_v53 = vpop.f32.mrf.mxu0  ;;  %v7867_v41 = vld [vmem:[%s16095_s9 + $0x68] sm:$0xff]  ;;  %v7998_v46 = vld [vmem:[%s16096_s10 + $0x300] sm:$0xff] }
0x18ee   : > { %9967 = vmatpush3.msra.mxu1 %v7979_v55  ;;  %8282 = vmatpush1.msra.mxu0 %v8011_v47  ;;  %v7882_v37 = vmul.f32 %v7858_v61, %v15780_v28  ;;  %v8026_v57 = vld [vmem:[%s16096_s10 + $0x3e0] sm:$0xff]  ;;  %v8024_v28 = vld [vmem:[%s16096_s10 + $0x3d0] sm:$0xff]  ;;  %v8023_v4 = vld [vmem:[%s16096_s10 + $0x3c8] sm:$0xff] }
0x18ef   : > { %9968 = vmatprep.subr.mxu1 %v7994_v6  ;;  %8283 = vmatprep.subr.mxu0 %v10575_v0  ;;  %v7756_v1 = vpop.f32.mrf.mxu1  ;;  %v7839_v14 = vpop.f32.mrf.mxu0  ;;  %v7866_v50 = vld [vmem:[%s16095_s9 + $0x60] sm:$0xff]  ;;  %v7875_v6 = vld [vmem:[%s16095_s9 + $0xa8] sm:$0xf] }
0x18f0   : > { %9969 = vmatpush3.msra.mxu1 %v7978_v54  ;;  %8284 = vmatpush1.msra.mxu0 %v8010_v48  ;;  %v7883_v40 = vmul.f32 %v7859_v62, %v7756_v1  ;;  %v7885_v12 = vmul.f32 %v7861_v10, %v7839_v14  ;;  %v7874_v54 = vld [vmem:[%s16095_s9 + $0xa0] sm:$0xf]  ;;  %v8021_v1 = vld [vmem:[%s16096_s10 + $0x3b8] sm:$0xff]  ;;  %v8020_v62 = vld [vmem:[%s16096_s10 + $0x3b0] sm:$0xff] }
0x18f1   : > { %8111 = vmatprep.mubr.f32.mxu1 %v7895_v44  ;;  %8191 = vmatprep.mubr.f32.mxu0 %v7897_v35  ;;  %v7760_v25 = vpop.f32.mrf.mxu1  ;;  %v8025_v44 = vld [vmem:[%s16096_s10 + $0x3d8] sm:$0xff]  ;;  %v8018_v14 = vld [vmem:[%s16096_s10 + $0x3a0] sm:$0xff] }
0x18f2   : > { %9970 = vmatprep.subr.mxu1 %v7993_v51  ;;  %8285 = vmatprep.subr.mxu0 %v10575_v0  ;;  %v7890_v35 = vmul.f32 %v7866_v50, %v7760_v25  ;;  %v8022_v51 = vld [vmem:[%s16096_s10 + $0x3c0] sm:$0xff]  ;;  %v8017_v10 = vld [vmem:[%s16096_s10 + $0x398] sm:$0xff] }
0x18f3   : > { %8112 = vmatmul.mubr.f32.gmra.mxu1 %v7894_v36  ;;  %8192 = vmatmul.mubr.f32.gmra.mxu0 %v7896_v11  ;;  %v7762_v24 = vpop.f32.mrf.mxu1  ;;  %v8019_v36 = vld [vmem:[%s16096_s10 + $0x3a8] sm:$0xff]  ;;  %v7843_v11 = vpop.f32.mrf.mxu0 }
0x18f4   : > { %9971 = vmatpush3.msra.mxu1 %v7977_v45  ;;  %8286 = vmatpush1.msra.mxu0 %v8009_v58  ;;  %v7891_v55 = vmul.f32 %v7867_v41, %v7762_v24  ;;  %v8016_v58 = vld [vmem:[%s16096_s10 + $0x390] sm:$0xff] }
0x18f5   : > { %9972 = vmatprep.subr.mxu1 %v7992_v7  ;;  %8287 = vmatprep.subr.mxu0 %v10575_v0  ;;  %v7766_v13 = vpop.f32.mrf.mxu1  ;;  %v7845_v45 = vpop.f32.mrf.mxu0  ;;  %v8015_v7 = vld [vmem:[%s16096_s10 + $0x388] sm:$0xff] }
0x18f6   : > { %9973 = vmatpush3.msra.mxu1 %v7976_v52  ;;  %8288 = vmatpush1.msra.mxu0 %v8008_v60  ;;  %v7898_v8 = vmul.f32 %v7874_v54, %v7766_v13  ;;  %v7869_v52 = vld [vmem:[%s16095_s9 + $0x78] sm:$0xff] }
0x18f7   : > { %9974 = vmatprep.subr.mxu1 %v7991_v43  ;;  %8261 = vmatprep.mubr.f32.mxu1 %v7883_v40  ;;  %v7768_v47 = vpop.f32.mrf.mxu1  ;;  %v7860_v40 = vld [vmem:[%s16095_s9 + $0x30] sm:$0xff]  ;;  %v7849_v60 = vpop.f32.mrf.mxu0 }
0x18f8   : > { %8289 = vmatprep.subr.mxu0 %v10575_v0  ;;  %9697 = vmatprep.mubr.msk.f32.mxu0 %vm8027_vm7, %v7885_v12  ;;  %v7899_v48 = vmul.f32 %v7875_v6, %v7768_v47  ;;  %v8014_v12 = vld [vmem:[%s16096_s10 + $0x380] sm:$0xff]  ;;  %v7884_v43 = vmul.f32 %v7860_v40, %v15782_v53  ;;  %v7876_v53 = vld [vmem:[%s16095_s9 + $0xb0] sm:$0xf] }
0x18f9   : > { %9975 = vmatpush3.msra.mxu1 %v7975_v5  ;;  %8290 = vmatpush1.msra.mxu0 %v8007_v42  ;;  %v7868_v5 = vld [vmem:[%s16095_s9 + $0x70] sm:$0xff]  ;;  %v7893_v42 = vmul.f32 %v7869_v52, %v7845_v45 }
0x18fa   : > { %9976 = vmatprep.subr.mxu1 %v7990_v59  ;;  %8291 = vmatprep.subr.mxu0 %v10575_v0  ;;  %v7851_v59 = vpop.f32.mrf.mxu0 }
0x18fb   : > { %9977 = vmatpush3.msra.mxu1 %v7974_v38  ;;  %8292 = vmatpush1.msra.mxu0 %v8006_v3  ;;  %v7877_v38 = vld [vmem:[%s16095_s9 + $0xb8] sm:$0xf]  ;;  %v7892_v3 = vmul.f32 %v7868_v5, %v7843_v11 }
0x18fc   : > { %9978 = vmatprep.subr.mxu1 %v7989_v2  ;;  %8293 = vmatprep.subr.mxu0 %v10575_v0  ;;  %v7901_v2 = vmul.f32 %v7877_v38, %v7851_v59  ;;  %v8370_v38 = vld [vmem:[%s16097_s11] sm:$0x1] }
0x18fd   : > { %9979 = vmatpush3.msra.mxu1 %v7973_v9  ;;  %8294 = vmatpush1.msra.mxu0 %v8005_v49  ;;  %v7900_v9 = vmul.f32 %v7876_v53, %v7849_v60  ;;  %v8379_v49 = vld [vmem:[%s16098_s12 + $0x30] sm:$0x3] }
0x18fe   : > { %9980 = vmatprep.subr.mxu1 %v7988_v19  ;;  %8295 = vmatprep.subr.mxu0 %v10575_v0  ;;  %v8378_v19 = vld [vmem:[%s16098_s12 + $0x28] sm:$0xff] }
0x18ff   : > { %9981 = vmatpush3.msra.mxu1 %v7972_v18  ;;  %8296 = vmatpush1.msra.mxu0 %v8004_v21  ;;  %v8377_v18 = vld [vmem:[%s16098_s12 + $0x20] sm:$0xff]  ;;  %v8376_v21 = vld [vmem:[%s16098_s12 + $0x18] sm:$0xff] }
0x1900   : > { %9982 = vmatprep.subr.mxu1 %v7987_v17  ;;  %8297 = vmatprep.subr.mxu0 %v10575_v0  ;;  %v8375_v17 = vld [vmem:[%s16098_s12 + $0x10] sm:$0xff] }
0x1901   : > { %9983 = vmatpush3.msra.mxu1 %v7971_v22  ;;  %8298 = vmatpush1.msra.mxu0 %v8003_v16  ;;  %v8374_v22 = vld [vmem:[%s16098_s12 + $0x8] sm:$0xff]  ;;  %v8373_v16 = vld [vmem:[%s16098_s12] sm:$0xff] }
0x1902   : > { %9984 = vmatprep.subr.mxu1 %v7986_v23  ;;  %8299 = vmatprep.subr.mxu0 %v10575_v0 }
0x1903   : > { %9985 = vmatpush3.msra.mxu1 %v7970_v15  ;;  %8300 = vmatpush1.msra.mxu0 %v8002_v33 }
0x1904   : > { %9986 = vmatprep.subr.mxu1 %v7985_v27  ;;  %8301 = vmatprep.subr.mxu0 %v10575_v0 }
0x1905   : > { %9987 = vmatpush3.msra.mxu1 %v7969_v30  ;;  %8302 = vmatpush1.msra.mxu0 %v8001_v34 }
0x1906   : > { %9988 = vmatprep.subr.mxu1 %v7984_v26  ;;  %8303 = vmatprep.subr.mxu0 %v10575_v0 }
0x1907   : > { %9989 = vmatpush3.msra.mxu1 %v7968_v56  ;;  %8304 = vmatpush1.msra.mxu0 %v8000_v63 }
0x1908   : > { %9990 = vmatprep.subr.mxu1 %v7983_v20  ;;  %8305 = vmatprep.subr.mxu0 %v10575_v0 }
0x1909   : > { %9991 = vmatpush3.msra.mxu1 %v7967_v31  ;;  %8306 = vmatpush1.msra.mxu0 %v7999_v29 }
0x190a   : > { %9992 = vmatprep.subr.mxu1 %v7982_v32  ;;  %8307 = vmatprep.subr.mxu0 %v10575_v0 }
0x190b   : > { %9993 = vmatpush3.msra.mxu1 %v7966_v39  ;;  %8308 = vmatpush1.msra.mxu0 %v7998_v46 }
0x190c   : > { %8262 = vmatmul.mubr.f32.vlgmr.msra.gmra.mxu1 %v7882_v37  ;;  %8315 = vmatprep.subr.mxu0 %v10575_v0 }
0x190d   : > { %8266 = vmatprep.mubr.f32.mxu1 %v7891_v55  ;;  %8316 = vmatpush2.msra.mxu0 %v8026_v57 }
0x190e   : > { %8317 = vmatprep.subr.mxu0 %v10575_v0  ;;  %10447 = vmatprep.subr.mxu1 %v10575_v0 }
0x190f   : > { %8318 = vmatpush2.msra.mxu0 %v8025_v44  ;;  %10448 = vmatpush3.msk.msra.mxu1 %vm2788_vm5, %v8379_v49 }
0x1910   : > { %8267 = vmatmul.mubr.f32.gmra.mxu1 %v7890_v35  ;;  %8319 = vmatprep.subr.mxu0 %v10575_v0 }
0x1911   : > { %8271 = vmatprep.mubr.f32.mxu1 %v7899_v48  ;;  %8320 = vmatpush2.msra.mxu0 %v8024_v28 }
0x1912   : > { %8321 = vmatprep.subr.mxu0 %v10575_v0  ;;  %10449 = vmatprep.subr.mxu1 %v10575_v0 }
0x1913   : > { %8322 = vmatpush2.msra.mxu0 %v8023_v4  ;;  %10450 = vmatpush3.msra.mxu1 %v8378_v19 }
0x1914   : > { %8272 = vmatmul.mubr.f32.gmra.mxu1 %v7898_v8  ;;  %8323 = vmatprep.subr.mxu0 %v10575_v0 }
0x1915   : > { %8324 = vmatpush2.msra.mxu0 %v8022_v51  ;;  %10461 = vmatprep.mubr.msk.f32.mxu1 %vm10577_vm4, %v10575_v0 }
0x1916   : > { %8325 = vmatprep.subr.mxu0 %v10575_v0  ;;  %10451 = vmatprep.subr.mxu1 %v10575_v0 }
0x1917   : > { %8326 = vmatpush2.msra.mxu0 %v8021_v1  ;;  %10452 = vmatpush3.msra.mxu1 %v8377_v18 }
0x1918   : > { %8327 = vmatprep.subr.mxu0 %v10575_v0  ;;  %10453 = vmatprep.subr.mxu1 %v10575_v0 }
0x1919   : > { %8328 = vmatpush2.msra.mxu0 %v8020_v62  ;;  %10454 = vmatpush3.msra.mxu1 %v8376_v21 }
0x191a   : > { %8329 = vmatprep.subr.mxu0 %v10575_v0  ;;  %10455 = vmatprep.subr.mxu1 %v10575_v0 }
0x191b   : > { %8330 = vmatpush2.msra.mxu0 %v8019_v36  ;;  %10456 = vmatpush3.msra.mxu1 %v8375_v17 }
0x191c   : > { %8331 = vmatprep.subr.mxu0 %v10575_v0  ;;  %10457 = vmatprep.subr.mxu1 %v10575_v0 }
0x191d   : > { %8332 = vmatpush2.msra.mxu0 %v8018_v14  ;;  %10458 = vmatpush3.msra.mxu1 %v8374_v22 }
0x191e   : > { %8333 = vmatprep.subr.mxu0 %v10575_v0  ;;  %10459 = vmatprep.subr.mxu1 %v10575_v0 }
0x191f   : > { %8334 = vmatpush2.msra.mxu0 %v8017_v10  ;;  %10460 = vmatpush3.msra.mxu1 %v8373_v16 }
0x1920   : > { %8335 = vmatprep.subr.mxu0 %v10575_v0 }
0x1921   : > { %8336 = vmatpush2.msra.mxu0 %v8016_v58 }
0x1922   : > { %8337 = vmatprep.subr.mxu0 %v10575_v0 }
0x1923   : > { %8338 = vmatpush2.msra.mxu0 %v8015_v7 }
0x1924   : > { %8339 = vmatprep.subr.mxu0 %v10575_v0 }
0x1925   : > { %8340 = vmatpush2.msra.mxu0 %v8014_v12 }
0x1926   : > { %8342 = vmatmul.mubr.f32.vlgmr.msra.gmra.mxu0 %v7884_v43 }
0x1927   : > { %9698 = vmatprep.mubr.msk.f32.mxu0 %vm8027_vm7, %v7893_v42 }
0x192a   : > { %8347 = vmatmul.mubr.f32.gmra.mxu0 %v7892_v3 }
0x192b   : > { %9699 = vmatprep.mubr.msk.f32.mxu0 %vm8027_vm7, %v7901_v2 }
0x192e   : > { %8352 = vmatmul.mubr.f32.gmra.mxu0 %v7900_v9  ;;  %v8380_v9 = vld [vmem:[%s16099_s13] sm:$0x1] }
0x19a7   : > { %v9912_v23 = vpop.f32.mrf.mxu1  ;;  %v9953_v30 = vpop.f32.mrf.mxu0 }
0x19a9   : > { %v9913_v25 = vpop.f32.mrf.mxu1  ;;  %v9954_v24 = vpop.f32.mrf.mxu0 }
0x19aa   : > { %v9914_v32 = vadd.f32 %v9913_v25, %v9912_v23  ;;  %v9955_v41 = vadd.f32 %v9954_v24, %v9953_v30 }
0x19ac   : > { %v8184_v47 = vadd.f32 %v9955_v41, %v9914_v32 }
0x19ad   : > { %v9915_v15 = vpop.f32.mrf.mxu1  ;;  %v9956_v63 = vpop.f32.mrf.mxu0 }
0x19af   : > { %v9916_v33 = vpop.f32.mrf.mxu1  ;;  %v9957_v31 = vpop.f32.mrf.mxu0 }
0x19b0   : > { %v9917_v13 = vadd.f32 %v9916_v33, %v9915_v15  ;;  %v9958_v39 = vadd.f32 %v9957_v31, %v9956_v63 }
0x19b2   : > { %v8189_v6 = vadd.f32 %v9958_v39, %v9917_v13 }
0x19b3   : > { %v9918_v27 = vpop.f32.mrf.mxu1  ;;  %v9959_v0 = vpop.f32.mrf.mxu0 }
0x19b5   : > { %v9919_v34 = vpop.f32.mrf.mxu1  ;;  %v9960_v46 = vpop.f32.mrf.mxu0 }
0x19b6   : > { %v9920_v44 = vadd.f32 %v9919_v34, %v9918_v27  ;;  %v9961_v35 = vadd.f32 %v9960_v46, %v9959_v0 }
0x19b8   : > { %v8194_v51 = vadd.f32 %v9961_v35, %v9920_v44 }
0x19cc   : > { %v9994_v26 = vpop.f32.mrf.mxu1 }
0x19ce   : > { %v9995_v56 = vpop.f32.mrf.mxu1 }
0x19cf   : > { %v9996_v37 = vadd.f32 %v9995_v56, %v9994_v26 }
0x19d0   : > { %v9997_v20 = vpop.f32.mrf.mxu1 }
0x19d1   : > { %v8264_v48 = vadd.f32 %v9996_v37, %v8184_v47 }
0x19d2   : > { %v9998_v29 = vpop.f32.mrf.mxu1 }
0x19d3   : > { %v9999_v57 = vadd.f32 %v9998_v29, %v9997_v20 }
0x19d4   : > { %v10000_v61 = vpop.f32.mrf.mxu1 }
0x19d5   : > { %v8269_v4 = vadd.f32 %v9999_v57, %v8189_v6 }
0x19d6   : > { %v10001_v50 = vpop.f32.mrf.mxu1 }
0x19d7   : > { %v10002_v54 = vadd.f32 %v10001_v50, %v10000_v61 }
0x19d9   : > { %v8274_v14 = vadd.f32 %v10002_v54, %v8194_v51 }
0x19e6   : > { %v8343_v55 = vpop.f32.mrf.mxu0 }
0x19e7   : > { %v8344_v1 = vadd.f32 %v8343_v55, %v8264_v48 }
0x19e8   : > { %v8345_v28 = vpop.f32.mrf.mxu0 }
0x19e9   : > { %v8358_v45 = vsel %vm8357_vm8, %v8344_v1, 0.0 }
0x19ea   : > { %v8348_v8 = vpop.f32.mrf.mxu0 }
0x19eb   : > { %v8349_v62 = vadd.f32 %v8348_v8, %v8269_v4 }
0x19ec   : > { %v8350_v36 = vpop.f32.mrf.mxu0 }
0x19ed   : > { %v8359_v11 = vsel %vm8357_vm8, %v8349_v62, 0.0 }
0x19ee   : > { %v8353_v10 = vpop.f32.mrf.mxu0  ;;  %v8360_v7 = vadd.f32 %v8359_v11, %v8358_v45 }
0x19ef   : > { %v8354_v58 = vadd.f32 %v8353_v10, %v8274_v14 }
0x19f0   : > { %v8355_v40 = vpop.f32.mrf.mxu0 }
0x19f1   : > { %v8362_v52 = vsel %vm8361_vm9, %v8354_v58, 0.0 }
0x19f2   : > { %v8363_v60 = vadd.f32 %v8362_v52, %v8360_v7 }
0x19f4   : > { %v8364_v12 = vrot.slane %v8363_v60, 4 }
0x19f6   : > { %v8365_v43 = vadd.f32 %v8364_v12, %v8363_v60 }
0x19f8   : > { %v8366_v5 = vrot.slane %v8365_v43, 2 }
0x19fa   : > { %v8367_v42 = vadd.f32 %v8366_v5, %v8365_v43 }
0x19fc   : > { %v8368_v59 = vrot.slane %v8367_v42, 1 }
0x19fe   : > { %v8369_v3 = vadd.f32 %v8368_v59, %v8367_v42 }
0x1a00   : > { %v8371_v53 = vadd.f32 %v8370_v38, %v8369_v3 }
0x1a02   : > { %v8372_v2 = vmax.f32 %v8371_v53, 0.0 }
0x1a04   : > { %10462 = vmatmul.mubr.msk.f32.vlgmr.msra.gmra.mxu1 %vm8357_vm8, %v8372_v2 }
0x1ac4   : > { %v8453_v49 = vpop.f32.mrf.mxu1 }
0x1ac5   : > { %v8454_v19 = vadd.f32 %v8453_v49, %v8380_v9 }
0x1ac6   : > { %v10463_v18 = vpop.f32.mrf.mxu1 }
0x1ac7   : > { %v8457_v21 = vsel %vm506_vm0, %v8454_v19, -inf }
0x1ac8   : > { %8458 = vmax.xlane.f32.xlu1 %v8457_v21 }
0x1b51   : > { %v8459_v17 = vpop.xlane.xlu1 %8458 }
0x1b52   : > { %v8460_v22 = vsub.f32 %v8454_v19, %v8459_v17 }
0x1b54   : > { %v8461_v16 = vmul.f32 1.442695, %v8460_v22 }
0x1b56   : > { %10509 = vpow2.f32 %v8461_v16 }
0x1b63   : > { %v10510_v23 = vpop.eup %10509 }
0x1b64   : > { %v8463_v25 = vsel %vm506_vm0, %v10510_v23, 0.0 }
0x1b65   : > { %8464 = vadd.xlane.f32.xlu0 %v8463_v25 }
0x1bee   : > { %v8465_v15 = vpop.xlane.xlu0 %8464 }
0x1bef   : > { %10511 = vlog2.f32 %v8465_v15 }
0x1bfc   : > { %v10512_v33 = vpop.eup %10511 }
0x1bfd   : > { %v8467_v27 = vmul.f32 0.6931472, %v10512_v33 }
0x1bff   : > { %v8468_v30 = vadd.f32 %v8467_v27, %v8459_v17 }
0x1c01   : > { %v8469_v34 = vsub.f32 %v8454_v19, %v8468_v30 }
0x1c03   : > { %8470 = vst [vmem:[%s459_s21] sm:$0x1] %v8469_v34 }
0x1c04   : > { %10526 = shalt.err (!%p10523_p3)
}
0x1c05   : > { %s10527_s2 = scalar_lea.hbm %s8482_s26, 16  ;;  %s10531_s21 = scalar_lea.hbm %s16100_s14, 32 }
0x1c06   : > { %p10528_p4 = scmp.ne.s32.totalorder %s8482_s26, %s10527_s2  ;;  %p10532_p9 = scmp.lt.s32.totalorder %s8482_s26, %s16100_s14 }
0x1c07   : > { %p10533_p10 = scmp.lt.s32.totalorder %s10531_s21, %s10527_s2 }
0x1c08   : > { %p10529_p7 = pnand %p10528_p4, %p10692_p5 }
0x1c09   : > { %p10534_p11 = por %p10533_p10, %p10532_p9 }
0x1c0a   : > { %p10530_p8 = pneg %p10529_p7 }
0x1c0c   : > { %p10535_p12 = pnand %p10534_p11, %p10530_p8 }
0x1c0e   : > { %10538 = shalt.err (!%p10535_p12)
}
0x1c0f   : > { %10465 = dma.vmem_to_hbm [thread:$0]  (%p10692_p5), %s8485_s0, 16, %s8482_s26, %s8472_s27  }
0x1c10 PF: > { %p10471_p13 = scmp.ge.s32.totalorder %s10573_s16, 2  ;;  %s8496_s1 = sand.u32 1, %s10561_s29  }
0x1c11   : > { %s8497_s15 = scalar_lea.sflag [#allocation3], %s8496_s1 }
0x1c12   : > { %p10468_p0 = pnand %p10471_p13, %p10696_p6 }
0x1c14   : > { %p10469_p1 = pneg %p10468_p0 }
0x1c16   : > { %10556 = dma.done.wait (%p10469_p1), %s8497_s15, 16  }
0x1c17   : > { %10558 = vsyncadd (%p10469_p1), %s8497_s15, 4294967280  ;;  %s16112_s2 = sld [smem:[#allocation5_spill]]  ;;  %p24_p2 = scmp.ge.s32.totalorder %s10679_s19, 4  }
0x1c18   : > { %s16113_s15 = sld [smem:[#allocation6_spill]]  ;;  %s16114_s29 = smov %s10565_s30 }
0x1c19   : > { %s16116_s16 = smov %s10679_s19  ;;  %26 = sbr.rel (!%p24_p2) target bundleno = 7 (0x7), region = 165 }
0x1c1d   : > { %s16115_s30 = smov %s16112_s2 }
0x1c1e   :  { %8501 = vsyncpa [#allocation3], 1 }
0x1c1f   :  { %8503 = vsyncpa [#allocation3 + $0x1], 1 }

</bundles_post_ra>
